<compile_context>
chip_gen: v7x
topology: tpu7x:2x2x1
jax: 0.10.0
libtpu: 0.0.40
codegen_flags: <defaults>
</compile_context>

<pallas_src>
import functools

import jax
import jax.numpy as jnp
from jax import lax
from jax.experimental import pallas as pl
from jax.experimental.pallas import tpu as pltpu


# ------------------------------ LSTM cell -----------------------------------

def _lstm_cell(gates, c_prev, H):
    """PyTorch gate order i, f, g, o."""
    i = jax.nn.sigmoid(gates[:, 0 * H:1 * H])
    f = jax.nn.sigmoid(gates[:, 1 * H:2 * H])
    g = jnp.tanh(gates[:, 2 * H:3 * H])
    o = jax.nn.sigmoid(gates[:, 3 * H:4 * H])
    c_new = f * c_prev + i * g
    h_new = o * jnp.tanh(c_new)
    return h_new, c_new


# ------------------------- fused whole-network kernel ------------------------

def _bilstm_net_kernel(x_ref, wih0_ref, wih_deep_ref, whh_ref, b_ref,
                       cls_w_ref, cls_b_ref, out_ref,
                       gin_ref, hf_ref, hb_ref, *, T, Bp, H, L, unroll):
    """x_ref:        (T*Bp, Din)   time-major, batch padded to Bp
       wih0_ref:     (Din, 8H)     layer-0 input weights, both directions
       wih_deep_ref: (L-1, 2H, 8H) input weights of layers 1..L-1
       whh_ref:      (L, 2, H, 4H) recurrent weights (dir 0 = fwd, 1 = bwd)
       b_ref:        (L, 1, 8H)    b_ih + b_hh, both directions
       out_ref:      (Bp, C)       classifier output
       gin/hf/hb:    VMEM scratch  (T*Bp, 8H) / (T*Bp, H) / (T*Bp, H)
    """
    G = 4 * H

    def scan_layer(whh_f, whh_b, write_seq):
        def step(s, carry):
            h_f, c_f, h_b, c_b = carry
            row_f = pl.multiple_of(s * Bp, Bp)
            row_b = pl.multiple_of((T - 1 - s) * Bp, Bp)
            # Two independent chains: fwd consumes time s, bwd time T-1-s.
            gates_f = gin_ref[pl.ds(row_f, Bp), :G] + jnp.dot(
                h_f, whh_f, preferred_element_type=jnp.float32)
            gates_b = gin_ref[pl.ds(row_b, Bp), G:] + jnp.dot(
                h_b, whh_b, preferred_element_type=jnp.float32)
            h_f, c_f = _lstm_cell(gates_f, c_f, H)
            h_b, c_b = _lstm_cell(gates_b, c_b, H)
            if write_seq:
                hf_ref[pl.ds(row_f, Bp), :] = h_f
                hb_ref[pl.ds(row_b, Bp), :] = h_b   # original time order
            return h_f, c_f, h_b, c_b

        z = jnp.zeros((Bp, H), jnp.float32)
        h_f, _, h_b, _ = lax.fori_loop(0, T, step, (z, z, z, z), unroll=unroll)
        return h_f, h_b

    # Layer 0 input projection: all timesteps & both directions in one MXU
    # matmul, hoisted out of the serial recurrence (bias folded in).
    gin_ref[...] = jnp.dot(x_ref[...], wih0_ref[...],
                           preferred_element_type=jnp.float32) + b_ref[0]

    h_f = h_b = None
    for l in range(L):
        if l > 0:
            # Projection for deeper layers from the previous layer's hidden
            # sequences (kept split fwd/bwd: no concatenation needed).
            gin_ref[...] = (
                jnp.dot(hf_ref[...], wih_deep_ref[l - 1, :H, :],
                        preferred_element_type=jnp.float32)
                + jnp.dot(hb_ref[...], wih_deep_ref[l - 1, H:, :],
                          preferred_element_type=jnp.float32)
                + b_ref[l])
        h_f, h_b = scan_layer(whh_ref[l, 0], whh_ref[l, 1],
                              write_seq=(l < L - 1))

    # h_n[-2] (final fwd) ++ h_n[-1] (final bwd); dropout == identity in eval
    # mode; classifier fused here (no extra launch / HBM round trip).
    last_hidden = jnp.concatenate([h_f, h_b], axis=-1)            # (Bp, 2H)
    out_ref[...] = (jnp.dot(last_hidden, cls_w_ref[...],
                            preferred_element_type=jnp.float32)
                    + cls_b_ref[...]).astype(out_ref.dtype)


# ------------------------------- wrapper -------------------------------------

def multilayer_bilstm_forward(x_btd, params, *, unroll=True):
    """Matches MultiLayerLSTM.forward (eval mode: dropout == identity)."""
    B, T, Din = x_btd.shape
    Bp = ((B + 7) // 8) * 8                     # pad batch to sublane multiple
    x = jnp.transpose(x_btd, (1, 0, 2))         # (T, B, Din) time-major
    if Bp != B:
        x = jnp.pad(x, ((0, 0), (0, Bp - B), (0, 0)))
    x2d = x.reshape(T * Bp, Din)

    layers = params["lstm"]
    L = len(layers)
    wih0 = layers[0]["wih"]                                     # (Din, 8H)
    whh = jnp.stack([lp["whh"] for lp in layers])               # (L, 2, H, 4H)
    bias = jnp.stack([lp["b"] for lp in layers])                # (L, 1, 8H)
    H = whh.shape[2]
    if L > 1:
        wih_deep = jnp.stack([lp["wih"] for lp in layers[1:]])  # (L-1, 2H, 8H)
    else:
        wih_deep = jnp.zeros((1, 2 * H, 8 * H), jnp.float32)    # unused
    C = params["cls_w"].shape[1]

    kernel = functools.partial(_bilstm_net_kernel,
                               T=T, Bp=Bp, H=H, L=L, unroll=unroll)
    out = pl.pallas_call(
        kernel,
        out_shape=jax.ShapeDtypeStruct((Bp, C), jnp.float32),
        scratch_shapes=[pltpu.VMEM((T * Bp, 8 * H), jnp.float32),   # gates
                        pltpu.VMEM((T * Bp, H), jnp.float32),       # h fwd seq
                        pltpu.VMEM((T * Bp, H), jnp.float32)],      # h bwd seq
        compiler_params=pltpu.CompilerParams(
            vmem_limit_bytes=32 * 1024 * 1024),
    )(x2d, wih0, wih_deep, whh, bias,
      params["cls_w"], params["cls_b"].reshape(1, C))
    # TODO(synk): inter-layer LSTM dropout + self.dropout are identity here
    # (eval-mode semantics); training-mode random dropout is not implemented.
    return out[:B]


# ------------------------------ parameter init -------------------------------

def init_params(key, input_size, hidden_size, num_classes, num_layers):
    H = hidden_size
    k = 1.0 / float(H) ** 0.5
    params = {"lstm": []}
    for layer in range(num_layers):
        din = input_size if layer == 0 else 2 * H
        raw = {}
        for tag in ("f", "b"):
            key, k1, k2, k3, k4 = jax.random.split(key, 5)
            raw[f"w_ih_{tag}"] = jax.random.uniform(k1, (4 * H, din), jnp.float32, -k, k)
            raw[f"w_hh_{tag}"] = jax.random.uniform(k2, (4 * H, H), jnp.float32, -k, k)
            raw[f"b_ih_{tag}"] = jax.random.uniform(k3, (4 * H,), jnp.float32, -k, k)
            raw[f"b_hh_{tag}"] = jax.random.uniform(k4, (4 * H,), jnp.float32, -k, k)
        # Fused input weight: (Din, 8H) = [Wih_f^T | Wih_b^T]
        wih_cat = jnp.concatenate([raw["w_ih_f"].T, raw["w_ih_b"].T], axis=1)
        # Recurrent weights per direction, stacked: (2, H, 4H)
        whh = jnp.stack([raw["w_hh_f"].T, raw["w_hh_b"].T])
        bias = jnp.concatenate([raw["b_ih_f"] + raw["b_hh_f"],
                                raw["b_ih_b"] + raw["b_hh_b"]]).reshape(1, 8 * H)
        params["lstm"].append({"wih": wih_cat, "whh": whh, "b": bias})
    key, k1, k2 = jax.random.split(key, 3)
    kc = 1.0 / float(2 * H) ** 0.5
    params["cls_w"] = jax.random.uniform(k1, (2 * H, num_classes), jnp.float32, -kc, kc)
    params["cls_b"] = jax.random.uniform(k2, (num_classes,), jnp.float32, -kc, kc)
    return params


# ------------------------------ pure-JAX reference ---------------------------

def _ref_lstm_dir(x_tbd, w_ih, w_hh, b):
    T, B, _ = x_tbd.shape
    H = w_hh.shape[0]

    def step(carry, x_t):
        h, c = carry
        gates = x_t @ w_ih + h @ w_hh + b
        i = jax.nn.sigmoid(gates[:, :H])
        f = jax.nn.sigmoid(gates[:, H:2 * H])
        g = jnp.tanh(gates[:, 2 * H:3 * H])
        o = jax.nn.sigmoid(gates[:, 3 * H:])
        c = f * c + i * g
        h = o * jnp.tanh(c)
        return (h, c), h

    z = jnp.zeros((B, H), jnp.float32)
    (_, _), hs = lax.scan(step, (z, z), x_tbd)
    return hs


def _ref_forward(x_btd, params):
    x = jnp.transpose(x_btd, (1, 0, 2))
    T = x.shape[0]
    layer_in = x
    h_last_fwd = h_last_bwd = None
    for lp in params["lstm"]:
        H = lp["whh"].shape[1]
        wih_f, wih_b = lp["wih"][:, :4 * H], lp["wih"][:, 4 * H:]
        whh_f, whh_b = lp["whh"][0], lp["whh"][1]
        b_f, b_b = lp["b"][0, :4 * H], lp["b"][0, 4 * H:]
        h_fwd = _ref_lstm_dir(layer_in, wih_f, whh_f, b_f)
        h_bwd_rev = _ref_lstm_dir(layer_in[::-1], wih_b, whh_b, b_b)
        layer_in = jnp.concatenate([h_fwd, h_bwd_rev[::-1]], axis=-1)
        h_last_fwd = h_fwd[T - 1]
        h_last_bwd = h_bwd_rev[T - 1]
    last_hidden = jnp.concatenate([h_last_fwd, h_last_bwd], axis=-1)
    return last_hidden @ params["cls_w"] + params["cls_b"]


# ----------------------------------- main ------------------------------------

if __name__ == "__main__":
    B, T = 2, 8
    INPUT_SIZE, HIDDEN_SIZE = 16, 32
    NUM_CLASSES, NUM_LAYERS = 12, 4

    key = jax.random.PRNGKey(0)
    key, kx, kp = jax.random.split(key, 3)
    x = jax.random.normal(kx, (B, T, INPUT_SIZE), jnp.float32)
    params = init_params(kp, INPUT_SIZE, HIDDEN_SIZE, NUM_CLASSES, NUM_LAYERS)

    fwd = jax.jit(multilayer_bilstm_forward)
    out = jax.block_until_ready(fwd(x, params))
    assert out.shape == (B, NUM_CLASSES), out.shape

    ref = jax.block_until_ready(_ref_forward(x, params))
    err = float(jnp.max(jnp.abs(out - ref)))
    assert jnp.allclose(out, ref, atol=2e-4, rtol=2e-4), err

    print("KERNEL_OK")
</pallas_src>

<mosaic_0001>
module attributes {stable_mosaic.version = 11 : i64} {
  func.func @_bilstm_net_kernel(%arg0: memref<64x16xf32, #tpu.memory_space<vmem>>, %arg1: memref<16x256xf32, #tpu.memory_space<vmem>>, %arg2: memref<3x64x256xf32, #tpu.memory_space<vmem>>, %arg3: memref<4x2x32x128xf32, #tpu.memory_space<vmem>>, %arg4: memref<4x1x256xf32, #tpu.memory_space<vmem>>, %arg5: memref<64x12xf32, #tpu.memory_space<vmem>>, %arg6: memref<1x12xf32, #tpu.memory_space<vmem>>, %arg7: memref<8x12xf32, #tpu.memory_space<vmem>>, %arg8: memref<64x256xf32, #tpu.memory_space<vmem>>, %arg9: memref<64x32xf32, #tpu.memory_space<vmem>>, %arg10: memref<64x32xf32, #tpu.memory_space<vmem>>) attributes {dimension_semantics = [], scalar_prefetch = 0 : i64, scratch_operands = 3 : i64, tpu.core_type = #tpu.core_type<tc>} {
    %c0 = arith.constant 0 : index
    %c0_0 = arith.constant 0 : index
    %0 = vector.load %arg0[%c0, %c0_0] : memref<64x16xf32, #tpu.memory_space<vmem>>, vector<64x16xf32>
    %c0_1 = arith.constant 0 : index
    %c0_2 = arith.constant 0 : index
    %1 = vector.load %arg1[%c0_1, %c0_2] : memref<16x256xf32, #tpu.memory_space<vmem>>, vector<16x256xf32>
    %cst = arith.constant dense<0.000000e+00> : vector<64x256xf32>
    %2 = tpu.matmul %0, %1, %cst {dimension_numbers = #tpu.dot_dimension_numbers<[1], [0], [0], [1], [0, 0, 1, 1], [], []>} : vector<64x16xf32>, vector<16x256xf32>, vector<64x256xf32> -> vector<64x256xf32>
    %c0_3 = arith.constant 0 : index
    %c0_4 = arith.constant 0 : index
    %c0_5 = arith.constant 0 : index
    %3 = vector.load %arg4[%c0_3, %c0_4, %c0_5] : memref<4x1x256xf32, #tpu.memory_space<vmem>>, vector<1x1x256xf32>
    %4 = vector.shape_cast %3 : vector<1x1x256xf32> to vector<1x256xf32>
    %5 = vector.broadcast %4 : vector<1x256xf32> to vector<64x256xf32>
    %6 = arith.addf %2, %5 : vector<64x256xf32>
    %c0_6 = arith.constant 0 : index
    %c0_7 = arith.constant 0 : index
    %7 = vector.load %arg8[%c0_6, %c0_7] : memref<64x256xf32, #tpu.memory_space<vmem>>, vector<64x256xf32>
    tpu.vector_store %arg8[%c0_6, %c0_7], %6 {strides = array<i32>} : memref<64x256xf32, #tpu.memory_space<vmem>>, vector<64x256xf32>,
    %c0_8 = arith.constant 0 : index
    %c0_9 = arith.constant 0 : index
    %c0_10 = arith.constant 0 : index
    %c0_11 = arith.constant 0 : index
    %8 = vector.load %arg3[%c0_8, %c0_9, %c0_10, %c0_11] : memref<4x2x32x128xf32, #tpu.memory_space<vmem>>, vector<1x1x32x128xf32>
    %9 = vector.shape_cast %8 : vector<1x1x32x128xf32> to vector<32x128xf32>
    %c0_12 = arith.constant 0 : index
    %c1 = arith.constant 1 : index
    %c0_13 = arith.constant 0 : index
    %c0_14 = arith.constant 0 : index
    %10 = vector.load %arg3[%c0_12, %c1, %c0_13, %c0_14] : memref<4x2x32x128xf32, #tpu.memory_space<vmem>>, vector<1x1x32x128xf32>
    %11 = vector.shape_cast %10 : vector<1x1x32x128xf32> to vector<32x128xf32>
    %cst_15 = arith.constant 0.000000e+00 : f32
    %12 = vector.broadcast %cst_15 : f32 to vector<8x32xf32>
    %c0_i32 = arith.constant 0 : i32
    %c8_i32 = arith.constant 8 : i32
    %13 = arith.muli %c0_i32, %c8_i32 : i32
    %14 = tpu.assume_multiple %13, 8 : i32
    %c7_i32 = arith.constant 7 : i32
    %15 = arith.subi %c7_i32, %c0_i32 : i32
    %c8_i32_16 = arith.constant 8 : i32
    %16 = arith.muli %15, %c8_i32_16 : i32
    %17 = tpu.assume_multiple %16, 8 : i32
    %18 = arith.index_cast %14 : i32 to index
    %c0_17 = arith.constant 0 : index
    %19 = vector.load %arg8[%18, %c0_17] : memref<64x256xf32, #tpu.memory_space<vmem>>, vector<8x128xf32>
    %cst_18 = arith.constant dense<0.000000e+00> : vector<8x128xf32>
    %20 = tpu.matmul %12, %9, %cst_18 {dimension_numbers = #tpu.dot_dimension_numbers<[1], [0], [0], [1], [0, 0, 1, 1], [], []>} : vector<8x32xf32>, vector<32x128xf32>, vector<8x128xf32> -> vector<8x128xf32>
    %21 = arith.addf %19, %20 : vector<8x128xf32>
    %22 = arith.index_cast %17 : i32 to index
    %c128 = arith.constant 128 : index
    %23 = vector.load %arg8[%22, %c128] : memref<64x256xf32, #tpu.memory_space<vmem>>, vector<8x128xf32>
    %cst_19 = arith.constant dense<0.000000e+00> : vector<8x128xf32>
    %24 = tpu.matmul %12, %11, %cst_19 {dimension_numbers = #tpu.dot_dimension_numbers<[1], [0], [0], [1], [0, 0, 1, 1], [], []>} : vector<8x32xf32>, vector<32x128xf32>, vector<8x128xf32> -> vector<8x128xf32>
    %25 = arith.addf %23, %24 : vector<8x128xf32>
    %26 = vector.extract_strided_slice %21 {offsets = [0, 0], sizes = [8, 32], strides = [1, 1]} : vector<8x128xf32> to vector<8x32xf32>
    %27 = arith.negf %26 : vector<8x32xf32>
    %28 = math.exp %27 : vector<8x32xf32>
    %cst_20 = arith.constant 1.000000e+00 : f32
    %29 = vector.broadcast %cst_20 : f32 to vector<8x32xf32>
    %30 = arith.addf %29, %28 : vector<8x32xf32>
    %31 = arith.divf %29, %30 : vector<8x32xf32>
    %32 = vector.extract_strided_slice %21 {offsets = [0, 32], sizes = [8, 32], strides = [1, 1]} : vector<8x128xf32> to vector<8x32xf32>
    %33 = arith.negf %32 : vector<8x32xf32>
    %34 = math.exp %33 : vector<8x32xf32>
    %cst_21 = arith.constant 1.000000e+00 : f32
    %35 = vector.broadcast %cst_21 : f32 to vector<8x32xf32>
    %36 = arith.addf %35, %34 : vector<8x32xf32>
    %37 = arith.divf %35, %36 : vector<8x32xf32>
    %38 = vector.extract_strided_slice %21 {offsets = [0, 64], sizes = [8, 32], strides = [1, 1]} : vector<8x128xf32> to vector<8x32xf32>
    %39 = math.tanh %38 : vector<8x32xf32>
    %40 = vector.extract_strided_slice %21 {offsets = [0, 96], sizes = [8, 32], strides = [1, 1]} : vector<8x128xf32> to vector<8x32xf32>
    %41 = arith.negf %40 : vector<8x32xf32>
    %42 = math.exp %41 : vector<8x32xf32>
    %cst_22 = arith.constant 1.000000e+00 : f32
    %43 = vector.broadcast %cst_22 : f32 to vector<8x32xf32>
    %44 = arith.addf %43, %42 : vector<8x32xf32>
    %45 = arith.divf %43, %44 : vector<8x32xf32>
    %46 = arith.mulf %37, %12 : vector<8x32xf32>
    %47 = arith.mulf %31, %39 : vector<8x32xf32>
    %48 = arith.addf %46, %47 : vector<8x32xf32>
    %49 = math.tanh %48 : vector<8x32xf32>
    %50 = arith.mulf %45, %49 : vector<8x32xf32>
    %51 = vector.extract_strided_slice %25 {offsets = [0, 0], sizes = [8, 32], strides = [1, 1]} : vector<8x128xf32> to vector<8x32xf32>
    %52 = arith.negf %51 : vector<8x32xf32>
    %53 = math.exp %52 : vector<8x32xf32>
    %cst_23 = arith.constant 1.000000e+00 : f32
    %54 = vector.broadcast %cst_23 : f32 to vector<8x32xf32>
    %55 = arith.addf %54, %53 : vector<8x32xf32>
    %56 = arith.divf %54, %55 : vector<8x32xf32>
    %57 = vector.extract_strided_slice %25 {offsets = [0, 32], sizes = [8, 32], strides = [1, 1]} : vector<8x128xf32> to vector<8x32xf32>
    %58 = arith.negf %57 : vector<8x32xf32>
    %59 = math.exp %58 : vector<8x32xf32>
    %cst_24 = arith.constant 1.000000e+00 : f32
    %60 = vector.broadcast %cst_24 : f32 to vector<8x32xf32>
    %61 = arith.addf %60, %59 : vector<8x32xf32>
    %62 = arith.divf %60, %61 : vector<8x32xf32>
    %63 = vector.extract_strided_slice %25 {offsets = [0, 64], sizes = [8, 32], strides = [1, 1]} : vector<8x128xf32> to vector<8x32xf32>
    %64 = math.tanh %63 : vector<8x32xf32>
    %65 = vector.extract_strided_slice %25 {offsets = [0, 96], sizes = [8, 32], strides = [1, 1]} : vector<8x128xf32> to vector<8x32xf32>
    %66 = arith.negf %65 : vector<8x32xf32>
    %67 = math.exp %66 : vector<8x32xf32>
    %cst_25 = arith.constant 1.000000e+00 : f32
    %68 = vector.broadcast %cst_25 : f32 to vector<8x32xf32>
    %69 = arith.addf %68, %67 : vector<8x32xf32>
    %70 = arith.divf %68, %69 : vector<8x32xf32>
    %71 = arith.mulf %62, %12 : vector<8x32xf32>
    %72 = arith.mulf %56, %64 : vector<8x32xf32>
    %73 = arith.addf %71, %72 : vector<8x32xf32>
    %74 = math.tanh %73 : vector<8x32xf32>
    %75 = arith.mulf %70, %74 : vector<8x32xf32>
    %76 = arith.index_cast %14 : i32 to index
    %c0_26 = arith.constant 0 : index
    %77 = vector.load %arg9[%76, %c0_26] : memref<64x32xf32, #tpu.memory_space<vmem>>, vector<8x32xf32>
    tpu.vector_store %arg9[%76, %c0_26], %50 {strides = array<i32>} : memref<64x32xf32, #tpu.memory_space<vmem>>, vector<8x32xf32>,
    %78 = arith.index_cast %17 : i32 to index
    %c0_27 = arith.constant 0 : index
    %79 = vector.load %arg10[%78, %c0_27] : memref<64x32xf32, #tpu.memory_space<vmem>>, vector<8x32xf32>
    tpu.vector_store %arg10[%78, %c0_27], %75 {strides = array<i32>} : memref<64x32xf32, #tpu.memory_space<vmem>>, vector<8x32xf32>,
    %c1_i32 = arith.constant 1 : i32
    %c8_i32_28 = arith.constant 8 : i32
    %80 = arith.muli %c1_i32, %c8_i32_28 : i32
    %81 = tpu.assume_multiple %80, 8 : i32
    %c7_i32_29 = arith.constant 7 : i32
    %82 = arith.subi %c7_i32_29, %c1_i32 : i32
    %c8_i32_30 = arith.constant 8 : i32
    %83 = arith.muli %82, %c8_i32_30 : i32
    %84 = tpu.assume_multiple %83, 8 : i32
    %85 = arith.index_cast %81 : i32 to index
    %c0_31 = arith.constant 0 : index
    %86 = vector.load %arg8[%85, %c0_31] : memref<64x256xf32, #tpu.memory_space<vmem>>, vector<8x128xf32>
    %cst_32 = arith.constant dense<0.000000e+00> : vector<8x128xf32>
    %87 = tpu.matmul %50, %9, %cst_32 {dimension_numbers = #tpu.dot_dimension_numbers<[1], [0], [0], [1], [0, 0, 1, 1], [], []>} : vector<8x32xf32>, vector<32x128xf32>, vector<8x128xf32> -> vector<8x128xf32>
    %88 = arith.addf %86, %87 : vector<8x128xf32>
    %89 = arith.index_cast %84 : i32 to index
    %c128_33 = arith.constant 128 : index
    %90 = vector.load %arg8[%89, %c128_33] : memref<64x256xf32, #tpu.memory_space<vmem>>, vector<8x128xf32>
    %cst_34 = arith.constant dense<0.000000e+00> : vector<8x128xf32>
    %91 = tpu.matmul %75, %11, %cst_34 {dimension_numbers = #tpu.dot_dimension_numbers<[1], [0], [0], [1], [0, 0, 1, 1], [], []>} : vector<8x32xf32>, vector<32x128xf32>, vector<8x128xf32> -> vector<8x128xf32>
    %92 = arith.addf %90, %91 : vector<8x128xf32>
    %93 = vector.extract_strided_slice %88 {offsets = [0, 0], sizes = [8, 32], strides = [1, 1]} : vector<8x128xf32> to vector<8x32xf32>
    %94 = arith.negf %93 : vector<8x32xf32>
    %95 = math.exp %94 : vector<8x32xf32>
    %cst_35 = arith.constant 1.000000e+00 : f32
    %96 = vector.broadcast %cst_35 : f32 to vector<8x32xf32>
    %97 = arith.addf %96, %95 : vector<8x32xf32>
    %98 = arith.divf %96, %97 : vector<8x32xf32>
    %99 = vector.extract_strided_slice %88 {offsets = [0, 32], sizes = [8, 32], strides = [1, 1]} : vector<8x128xf32> to vector<8x32xf32>
    %100 = arith.negf %99 : vector<8x32xf32>
    %101 = math.exp %100 : vector<8x32xf32>
    %cst_36 = arith.constant 1.000000e+00 : f32
    %102 = vector.broadcast %cst_36 : f32 to vector<8x32xf32>
    %103 = arith.addf %102, %101 : vector<8x32xf32>
    %104 = arith.divf %102, %103 : vector<8x32xf32>
    %105 = vector.extract_strided_slice %88 {offsets = [0, 64], sizes = [8, 32], strides = [1, 1]} : vector<8x128xf32> to vector<8x32xf32>
    %106 = math.tanh %105 : vector<8x32xf32>
    %107 = vector.extract_strided_slice %88 {offsets = [0, 96], sizes = [8, 32], strides = [1, 1]} : vector<8x128xf32> to vector<8x32xf32>
    %108 = arith.negf %107 : vector<8x32xf32>
    %109 = math.exp %108 : vector<8x32xf32>
    %cst_37 = arith.constant 1.000000e+00 : f32
    %110 = vector.broadcast %cst_37 : f32 to vector<8x32xf32>
    %111 = arith.addf %110, %109 : vector<8x32xf32>
    %112 = arith.divf %110, %111 : vector<8x32xf32>
    %113 = arith.mulf %104, %48 : vector<8x32xf32>
    %114 = arith.mulf %98, %106 : vector<8x32xf32>
    %115 = arith.addf %113, %114 : vector<8x32xf32>
    %116 = math.tanh %115 : vector<8x32xf32>
    %117 = arith.mulf %112, %116 : vector<8x32xf32>
    %118 = vector.extract_strided_slice %92 {offsets = [0, 0], sizes = [8, 32], strides = [1, 1]} : vector<8x128xf32> to vector<8x32xf32>
    %119 = arith.negf %118 : vector<8x32xf32>
    %120 = math.exp %119 : vector<8x32xf32>
    %cst_38 = arith.constant 1.000000e+00 : f32
    %121 = vector.broadcast %cst_38 : f32 to vector<8x32xf32>
    %122 = arith.addf %121, %120 : vector<8x32xf32>
    %123 = arith.divf %121, %122 : vector<8x32xf32>
    %124 = vector.extract_strided_slice %92 {offsets = [0, 32], sizes = [8, 32], strides = [1, 1]} : vector<8x128xf32> to vector<8x32xf32>
    %125 = arith.negf %124 : vector<8x32xf32>
    %126 = math.exp %125 : vector<8x32xf32>
    %cst_39 = arith.constant 1.000000e+00 : f32
    %127 = vector.broadcast %cst_39 : f32 to vector<8x32xf32>
    %128 = arith.addf %127, %126 : vector<8x32xf32>
    %129 = arith.divf %127, %128 : vector<8x32xf32>
    %130 = vector.extract_strided_slice %92 {offsets = [0, 64], sizes = [8, 32], strides = [1, 1]} : vector<8x128xf32> to vector<8x32xf32>
    %131 = math.tanh %130 : vector<8x32xf32>
    %132 = vector.extract_strided_slice %92 {offsets = [0, 96], sizes = [8, 32], strides = [1, 1]} : vector<8x128xf32> to vector<8x32xf32>
    %133 = arith.negf %132 : vector<8x32xf32>
    %134 = math.exp %133 : vector<8x32xf32>
    %cst_40 = arith.constant 1.000000e+00 : f32
    %135 = vector.broadcast %cst_40 : f32 to vector<8x32xf32>
    %136 = arith.addf %135, %134 : vector<8x32xf32>
    %137 = arith.divf %135, %136 : vector<8x32xf32>
    %138 = arith.mulf %129, %73 : vector<8x32xf32>
    %139 = arith.mulf %123, %131 : vector<8x32xf32>
    %140 = arith.addf %138, %139 : vector<8x32xf32>
    %141 = math.tanh %140 : vector<8x32xf32>
    %142 = arith.mulf %137, %141 : vector<8x32xf32>
    %143 = arith.index_cast %81 : i32 to index
    %c0_41 = arith.constant 0 : index
    %144 = vector.load %arg9[%143, %c0_41] : memref<64x32xf32, #tpu.memory_space<vmem>>, vector<8x32xf32>
    tpu.vector_store %arg9[%143, %c0_41], %117 {strides = array<i32>} : memref<64x32xf32, #tpu.memory_space<vmem>>, vector<8x32xf32>,
    %145 = arith.index_cast %84 : i32 to index
    %c0_42 = arith.constant 0 : index
    %146 = vector.load %arg10[%145, %c0_42] : memref<64x32xf32, #tpu.memory_space<vmem>>, vector<8x32xf32>
    tpu.vector_store %arg10[%145, %c0_42], %142 {strides = array<i32>} : memref<64x32xf32, #tpu.memory_space<vmem>>, vector<8x32xf32>,
    %c2_i32 = arith.constant 2 : i32
    %c8_i32_43 = arith.constant 8 : i32
    %147 = arith.muli %c2_i32, %c8_i32_43 : i32
    %148 = tpu.assume_multiple %147, 8 : i32
    %c7_i32_44 = arith.constant 7 : i32
    %149 = arith.subi %c7_i32_44, %c2_i32 : i32
    %c8_i32_45 = arith.constant 8 : i32
    %150 = arith.muli %149, %c8_i32_45 : i32
    %151 = tpu.assume_multiple %150, 8 : i32
    %152 = arith.index_cast %148 : i32 to index
    %c0_46 = arith.constant 0 : index
    %153 = vector.load %arg8[%152, %c0_46] : memref<64x256xf32, #tpu.memory_space<vmem>>, vector<8x128xf32>
    %cst_47 = arith.constant dense<0.000000e+00> : vector<8x128xf32>
    %154 = tpu.matmul %117, %9, %cst_47 {dimension_numbers = #tpu.dot_dimension_numbers<[1], [0], [0], [1], [0, 0, 1, 1], [], []>} : vector<8x32xf32>, vector<32x128xf32>, vector<8x128xf32> -> vector<8x128xf32>
    %155 = arith.addf %153, %154 : vector<8x128xf32>
    %156 = arith.index_cast %151 : i32 to index
    %c128_48 = arith.constant 128 : index
    %157 = vector.load %arg8[%156, %c128_48] : memref<64x256xf32, #tpu.memory_space<vmem>>, vector<8x128xf32>
    %cst_49 = arith.constant dense<0.000000e+00> : vector<8x128xf32>
    %158 = tpu.matmul %142, %11, %cst_49 {dimension_numbers = #tpu.dot_dimension_numbers<[1], [0], [0], [1], [0, 0, 1, 1], [], []>} : vector<8x32xf32>, vector<32x128xf32>, vector<8x128xf32> -> vector<8x128xf32>
    %159 = arith.addf %157, %158 : vector<8x128xf32>
    %160 = vector.extract_strided_slice %155 {offsets = [0, 0], sizes = [8, 32], strides = [1, 1]} : vector<8x128xf32> to vector<8x32xf32>
    %161 = arith.negf %160 : vector<8x32xf32>
    %162 = math.exp %161 : vector<8x32xf32>
    %cst_50 = arith.constant 1.000000e+00 : f32
    %163 = vector.broadcast %cst_50 : f32 to vector<8x32xf32>
    %164 = arith.addf %163, %162 : vector<8x32xf32>
    %165 = arith.divf %163, %164 : vector<8x32xf32>
    %166 = vector.extract_strided_slice %155 {offsets = [0, 32], sizes = [8, 32], strides = [1, 1]} : vector<8x128xf32> to vector<8x32xf32>
    %167 = arith.negf %166 : vector<8x32xf32>
    %168 = math.exp %167 : vector<8x32xf32>
    %cst_51 = arith.constant 1.000000e+00 : f32
    %169 = vector.broadcast %cst_51 : f32 to vector<8x32xf32>
    %170 = arith.addf %169, %168 : vector<8x32xf32>
    %171 = arith.divf %169, %170 : vector<8x32xf32>
    %172 = vector.extract_strided_slice %155 {offsets = [0, 64], sizes = [8, 32], strides = [1, 1]} : vector<8x128xf32> to vector<8x32xf32>
    %173 = math.tanh %172 : vector<8x32xf32>
    %174 = vector.extract_strided_slice %155 {offsets = [0, 96], sizes = [8, 32], strides = [1, 1]} : vector<8x128xf32> to vector<8x32xf32>
    %175 = arith.negf %174 : vector<8x32xf32>
    %176 = math.exp %175 : vector<8x32xf32>
    %cst_52 = arith.constant 1.000000e+00 : f32
    %177 = vector.broadcast %cst_52 : f32 to vector<8x32xf32>
    %178 = arith.addf %177, %176 : vector<8x32xf32>
    %179 = arith.divf %177, %178 : vector<8x32xf32>
    %180 = arith.mulf %171, %115 : vector<8x32xf32>
    %181 = arith.mulf %165, %173 : vector<8x32xf32>
    %182 = arith.addf %180, %181 : vector<8x32xf32>
    %183 = math.tanh %182 : vector<8x32xf32>
    %184 = arith.mulf %179, %183 : vector<8x32xf32>
    %185 = vector.extract_strided_slice %159 {offsets = [0, 0], sizes = [8, 32], strides = [1, 1]} : vector<8x128xf32> to vector<8x32xf32>
    %186 = arith.negf %185 : vector<8x32xf32>
    %187 = math.exp %186 : vector<8x32xf32>
    %cst_53 = arith.constant 1.000000e+00 : f32
    %188 = vector.broadcast %cst_53 : f32 to vector<8x32xf32>
    %189 = arith.addf %188, %187 : vector<8x32xf32>
    %190 = arith.divf %188, %189 : vector<8x32xf32>
    %191 = vector.extract_strided_slice %159 {offsets = [0, 32], sizes = [8, 32], strides = [1, 1]} : vector<8x128xf32> to vector<8x32xf32>
    %192 = arith.negf %191 : vector<8x32xf32>
    %193 = math.exp %192 : vector<8x32xf32>
    %cst_54 = arith.constant 1.000000e+00 : f32
    %194 = vector.broadcast %cst_54 : f32 to vector<8x32xf32>
    %195 = arith.addf %194, %193 : vector<8x32xf32>
    %196 = arith.divf %194, %195 : vector<8x32xf32>
    %197 = vector.extract_strided_slice %159 {offsets = [0, 64], sizes = [8, 32], strides = [1, 1]} : vector<8x128xf32> to vector<8x32xf32>
    %198 = math.tanh %197 : vector<8x32xf32>
    %199 = vector.extract_strided_slice %159 {offsets = [0, 96], sizes = [8, 32], strides = [1, 1]} : vector<8x128xf32> to vector<8x32xf32>
    %200 = arith.negf %199 : vector<8x32xf32>
    %201 = math.exp %200 : vector<8x32xf32>
    %cst_55 = arith.constant 1.000000e+00 : f32
    %202 = vector.broadcast %cst_55 : f32 to vector<8x32xf32>
    %203 = arith.addf %202, %201 : vector<8x32xf32>
    %204 = arith.divf %202, %203 : vector<8x32xf32>
    %205 = arith.mulf %196, %140 : vector<8x32xf32>
    %206 = arith.mulf %190, %198 : vector<8x32xf32>
    %207 = arith.addf %205, %206 : vector<8x32xf32>
    %208 = math.tanh %207 : vector<8x32xf32>
    %209 = arith.mulf %204, %208 : vector<8x32xf32>
    %210 = arith.index_cast %148 : i32 to index
    %c0_56 = arith.constant 0 : index
    %211 = vector.load %arg9[%210, %c0_56] : memref<64x32xf32, #tpu.memory_space<vmem>>, vector<8x32xf32>
    tpu.vector_store %arg9[%210, %c0_56], %184 {strides = array<i32>} : memref<64x32xf32, #tpu.memory_space<vmem>>, vector<8x32xf32>,
    %212 = arith.index_cast %151 : i32 to index
    %c0_57 = arith.constant 0 : index
    %213 = vector.load %arg10[%212, %c0_57] : memref<64x32xf32, #tpu.memory_space<vmem>>, vector<8x32xf32>
    tpu.vector_store %arg10[%212, %c0_57], %209 {strides = array<i32>} : memref<64x32xf32, #tpu.memory_space<vmem>>, vector<8x32xf32>,
    %c3_i32 = arith.constant 3 : i32
    %c8_i32_58 = arith.constant 8 : i32
    %214 = arith.muli %c3_i32, %c8_i32_58 : i32
    %215 = tpu.assume_multiple %214, 8 : i32
    %c7_i32_59 = arith.constant 7 : i32
    %216 = arith.subi %c7_i32_59, %c3_i32 : i32
    %c8_i32_60 = arith.constant 8 : i32
    %217 = arith.muli %216, %c8_i32_60 : i32
    %218 = tpu.assume_multiple %217, 8 : i32
    %219 = arith.index_cast %215 : i32 to index
    %c0_61 = arith.constant 0 : index
    %220 = vector.load %arg8[%219, %c0_61] : memref<64x256xf32, #tpu.memory_space<vmem>>, vector<8x128xf32>
    %cst_62 = arith.constant dense<0.000000e+00> : vector<8x128xf32>
    %221 = tpu.matmul %184, %9, %cst_62 {dimension_numbers = #tpu.dot_dimension_numbers<[1], [0], [0], [1], [0, 0, 1, 1], [], []>} : vector<8x32xf32>, vector<32x128xf32>, vector<8x128xf32> -> vector<8x128xf32>
    %222 = arith.addf %220, %221 : vector<8x128xf32>
    %223 = arith.index_cast %218 : i32 to index
    %c128_63 = arith.constant 128 : index
    %224 = vector.load %arg8[%223, %c128_63] : memref<64x256xf32, #tpu.memory_space<vmem>>, vector<8x128xf32>
    %cst_64 = arith.constant dense<0.000000e+00> : vector<8x128xf32>
    %225 = tpu.matmul %209, %11, %cst_64 {dimension_numbers = #tpu.dot_dimension_numbers<[1], [0], [0], [1], [0, 0, 1, 1], [], []>} : vector<8x32xf32>, vector<32x128xf32>, vector<8x128xf32> -> vector<8x128xf32>
    %226 = arith.addf %224, %225 : vector<8x128xf32>
    %227 = vector.extract_strided_slice %222 {offsets = [0, 0], sizes = [8, 32], strides = [1, 1]} : vector<8x128xf32> to vector<8x32xf32>
    %228 = arith.negf %227 : vector<8x32xf32>
    %229 = math.exp %228 : vector<8x32xf32>
    %cst_65 = arith.constant 1.000000e+00 : f32
    %230 = vector.broadcast %cst_65 : f32 to vector<8x32xf32>
    %231 = arith.addf %230, %229 : vector<8x32xf32>
    %232 = arith.divf %230, %231 : vector<8x32xf32>
    %233 = vector.extract_strided_slice %222 {offsets = [0, 32], sizes = [8, 32], strides = [1, 1]} : vector<8x128xf32> to vector<8x32xf32>
    %234 = arith.negf %233 : vector<8x32xf32>
    %235 = math.exp %234 : vector<8x32xf32>
    %cst_66 = arith.constant 1.000000e+00 : f32
    %236 = vector.broadcast %cst_66 : f32 to vector<8x32xf32>
    %237 = arith.addf %236, %235 : vector<8x32xf32>
    %238 = arith.divf %236, %237 : vector<8x32xf32>
    %239 = vector.extract_strided_slice %222 {offsets = [0, 64], sizes = [8, 32], strides = [1, 1]} : vector<8x128xf32> to vector<8x32xf32>
    %240 = math.tanh %239 : vector<8x32xf32>
    %241 = vector.extract_strided_slice %222 {offsets = [0, 96], sizes = [8, 32], strides = [1, 1]} : vector<8x128xf32> to vector<8x32xf32>
    %242 = arith.negf %241 : vector<8x32xf32>
    %243 = math.exp %242 : vector<8x32xf32>
    %cst_67 = arith.constant 1.000000e+00 : f32
    %244 = vector.broadcast %cst_67 : f32 to vector<8x32xf32>
    %245 = arith.addf %244, %243 : vector<8x32xf32>
    %246 = arith.divf %244, %245 : vector<8x32xf32>
    %247 = arith.mulf %238, %182 : vector<8x32xf32>
    %248 = arith.mulf %232, %240 : vector<8x32xf32>
    %249 = arith.addf %247, %248 : vector<8x32xf32>
    %250 = math.tanh %249 : vector<8x32xf32>
    %251 = arith.mulf %246, %250 : vector<8x32xf32>
    %252 = vector.extract_strided_slice %226 {offsets = [0, 0], sizes = [8, 32], strides = [1, 1]} : vector<8x128xf32> to vector<8x32xf32>
    %253 = arith.negf %252 : vector<8x32xf32>
    %254 = math.exp %253 : vector<8x32xf32>
    %cst_68 = arith.constant 1.000000e+00 : f32
    %255 = vector.broadcast %cst_68 : f32 to vector<8x32xf32>
    %256 = arith.addf %255, %254 : vector<8x32xf32>
    %257 = arith.divf %255, %256 : vector<8x32xf32>
    %258 = vector.extract_strided_slice %226 {offsets = [0, 32], sizes = [8, 32], strides = [1, 1]} : vector<8x128xf32> to vector<8x32xf32>
    %259 = arith.negf %258 : vector<8x32xf32>
    %260 = math.exp %259 : vector<8x32xf32>
    %cst_69 = arith.constant 1.000000e+00 : f32
    %261 = vector.broadcast %cst_69 : f32 to vector<8x32xf32>
    %262 = arith.addf %261, %260 : vector<8x32xf32>
    %263 = arith.divf %261, %262 : vector<8x32xf32>
    %264 = vector.extract_strided_slice %226 {offsets = [0, 64], sizes = [8, 32], strides = [1, 1]} : vector<8x128xf32> to vector<8x32xf32>
    %265 = math.tanh %264 : vector<8x32xf32>
    %266 = vector.extract_strided_slice %226 {offsets = [0, 96], sizes = [8, 32], strides = [1, 1]} : vector<8x128xf32> to vector<8x32xf32>
    %267 = arith.negf %266 : vector<8x32xf32>
    %268 = math.exp %267 : vector<8x32xf32>
    %cst_70 = arith.constant 1.000000e+00 : f32
    %269 = vector.broadcast %cst_70 : f32 to vector<8x32xf32>
    %270 = arith.addf %269, %268 : vector<8x32xf32>
    %271 = arith.divf %269, %270 : vector<8x32xf32>
    %272 = arith.mulf %263, %207 : vector<8x32xf32>
    %273 = arith.mulf %257, %265 : vector<8x32xf32>
    %274 = arith.addf %272, %273 : vector<8x32xf32>
    %275 = math.tanh %274 : vector<8x32xf32>
    %276 = arith.mulf %271, %275 : vector<8x32xf32>
    %277 = arith.index_cast %215 : i32 to index
    %c0_71 = arith.constant 0 : index
    %278 = vector.load %arg9[%277, %c0_71] : memref<64x32xf32, #tpu.memory_space<vmem>>, vector<8x32xf32>
    tpu.vector_store %arg9[%277, %c0_71], %251 {strides = array<i32>} : memref<64x32xf32, #tpu.memory_space<vmem>>, vector<8x32xf32>,
    %279 = arith.index_cast %218 : i32 to index
    %c0_72 = arith.constant 0 : index
    %280 = vector.load %arg10[%279, %c0_72] : memref<64x32xf32, #tpu.memory_space<vmem>>, vector<8x32xf32>
    tpu.vector_store %arg10[%279, %c0_72], %276 {strides = array<i32>} : memref<64x32xf32, #tpu.memory_space<vmem>>, vector<8x32xf32>,
    %c4_i32 = arith.constant 4 : i32
    %c8_i32_73 = arith.constant 8 : i32
    %281 = arith.muli %c4_i32, %c8_i32_73 : i32
    %282 = tpu.assume_multiple %281, 8 : i32
    %c7_i32_74 = arith.constant 7 : i32
    %283 = arith.subi %c7_i32_74, %c4_i32 : i32
    %c8_i32_75 = arith.constant 8 : i32
    %284 = arith.muli %283, %c8_i32_75 : i32
    %285 = tpu.assume_multiple %284, 8 : i32
    %286 = arith.index_cast %282 : i32 to index
    %c0_76 = arith.constant 0 : index
    %287 = vector.load %arg8[%286, %c0_76] : memref<64x256xf32, #tpu.memory_space<vmem>>, vector<8x128xf32>
    %cst_77 = arith.constant dense<0.000000e+00> : vector<8x128xf32>
    %288 = tpu.matmul %251, %9, %cst_77 {dimension_numbers = #tpu.dot_dimension_numbers<[1], [0], [0], [1], [0, 0, 1, 1], [], []>} : vector<8x32xf32>, vector<32x128xf32>, vector<8x128xf32> -> vector<8x128xf32>
    %289 = arith.addf %287, %288 : vector<8x128xf32>
    %290 = arith.index_cast %285 : i32 to index
    %c128_78 = arith.constant 128 : index
    %291 = vector.load %arg8[%290, %c128_78] : memref<64x256xf32, #tpu.memory_space<vmem>>, vector<8x128xf32>
    %cst_79 = arith.constant dense<0.000000e+00> : vector<8x128xf32>
    %292 = tpu.matmul %276, %11, %cst_79 {dimension_numbers = #tpu.dot_dimension_numbers<[1], [0], [0], [1], [0, 0, 1, 1], [], []>} : vector<8x32xf32>, vector<32x128xf32>, vector<8x128xf32> -> vector<8x128xf32>
    %293 = arith.addf %291, %292 : vector<8x128xf32>
    %294 = vector.extract_strided_slice %289 {offsets = [0, 0], sizes = [8, 32], strides = [1, 1]} : vector<8x128xf32> to vector<8x32xf32>
    %295 = arith.negf %294 : vector<8x32xf32>
    %296 = math.exp %295 : vector<8x32xf32>
    %cst_80 = arith.constant 1.000000e+00 : f32
    %297 = vector.broadcast %cst_80 : f32 to vector<8x32xf32>
    %298 = arith.addf %297, %296 : vector<8x32xf32>
    %299 = arith.divf %297, %298 : vector<8x32xf32>
    %300 = vector.extract_strided_slice %289 {offsets = [0, 32], sizes = [8, 32], strides = [1, 1]} : vector<8x128xf32> to vector<8x32xf32>
    %301 = arith.negf %300 : vector<8x32xf32>
    %302 = math.exp %301 : vector<8x32xf32>
    %cst_81 = arith.constant 1.000000e+00 : f32
    %303 = vector.broadcast %cst_81 : f32 to vector<8x32xf32>
    %304 = arith.addf %303, %302 : vector<8x32xf32>
    %305 = arith.divf %303, %304 : vector<8x32xf32>
    %306 = vector.extract_strided_slice %289 {offsets = [0, 64], sizes = [8, 32], strides = [1, 1]} : vector<8x128xf32> to vector<8x32xf32>
    %307 = math.tanh %306 : vector<8x32xf32>
    %308 = vector.extract_strided_slice %289 {offsets = [0, 96], sizes = [8, 32], strides = [1, 1]} : vector<8x128xf32> to vector<8x32xf32>
    %309 = arith.negf %308 : vector<8x32xf32>
    %310 = math.exp %309 : vector<8x32xf32>
    %cst_82 = arith.constant 1.000000e+00 : f32
    %311 = vector.broadcast %cst_82 : f32 to vector<8x32xf32>
    %312 = arith.addf %311, %310 : vector<8x32xf32>
    %313 = arith.divf %311, %312 : vector<8x32xf32>
    %314 = arith.mulf %305, %249 : vector<8x32xf32>
    %315 = arith.mulf %299, %307 : vector<8x32xf32>
    %316 = arith.addf %314, %315 : vector<8x32xf32>
    %317 = math.tanh %316 : vector<8x32xf32>
    %318 = arith.mulf %313, %317 : vector<8x32xf32>
    %319 = vector.extract_strided_slice %293 {offsets = [0, 0], sizes = [8, 32], strides = [1, 1]} : vector<8x128xf32> to vector<8x32xf32>
    %320 = arith.negf %319 : vector<8x32xf32>
    %321 = math.exp %320 : vector<8x32xf32>
    %cst_83 = arith.constant 1.000000e+00 : f32
    %322 = vector.broadcast %cst_83 : f32 to vector<8x32xf32>
    %323 = arith.addf %322, %321 : vector<8x32xf32>
    %324 = arith.divf %322, %323 : vector<8x32xf32>
    %325 = vector.extract_strided_slice %293 {offsets = [0, 32], sizes = [8, 32], strides = [1, 1]} : vector<8x128xf32> to vector<8x32xf32>
    %326 = arith.negf %325 : vector<8x32xf32>
    %327 = math.exp %326 : vector<8x32xf32>
    %cst_84 = arith.constant 1.000000e+00 : f32
    %328 = vector.broadcast %cst_84 : f32 to vector<8x32xf32>
    %329 = arith.addf %328, %327 : vector<8x32xf32>
    %330 = arith.divf %328, %329 : vector<8x32xf32>
    %331 = vector.extract_strided_slice %293 {offsets = [0, 64], sizes = [8, 32], strides = [1, 1]} : vector<8x128xf32> to vector<8x32xf32>
    %332 = math.tanh %331 : vector<8x32xf32>
    %333 = vector.extract_strided_slice %293 {offsets = [0, 96], sizes = [8, 32], strides = [1, 1]} : vector<8x128xf32> to vector<8x32xf32>
    %334 = arith.negf %333 : vector<8x32xf32>
    %335 = math.exp %334 : vector<8x32xf32>
    %cst_85 = arith.constant 1.000000e+00 : f32
    %336 = vector.broadcast %cst_85 : f32 to vector<8x32xf32>
    %337 = arith.addf %336, %335 : vector<8x32xf32>
    %338 = arith.divf %336, %337 : vector<8x32xf32>
    %339 = arith.mulf %330, %274 : vector<8x32xf32>
    %340 = arith.mulf %324, %332 : vector<8x32xf32>
    %341 = arith.addf %339, %340 : vector<8x32xf32>
    %342 = math.tanh %341 : vector<8x32xf32>
    %343 = arith.mulf %338, %342 : vector<8x32xf32>
    %344 = arith.index_cast %282 : i32 to index
    %c0_86 = arith.constant 0 : index
    %345 = vector.load %arg9[%344, %c0_86] : memref<64x32xf32, #tpu.memory_space<vmem>>, vector<8x32xf32>
    tpu.vector_store %arg9[%344, %c0_86], %318 {strides = array<i32>} : memref<64x32xf32, #tpu.memory_space<vmem>>, vector<8x32xf32>,
    %346 = arith.index_cast %285 : i32 to index
    %c0_87 = arith.constant 0 : index
    %347 = vector.load %arg10[%346, %c0_87] : memref<64x32xf32, #tpu.memory_space<vmem>>, vector<8x32xf32>
    tpu.vector_store %arg10[%346, %c0_87], %343 {strides = array<i32>} : memref<64x32xf32, #tpu.memory_space<vmem>>, vector<8x32xf32>,
    %c5_i32 = arith.constant 5 : i32
    %c8_i32_88 = arith.constant 8 : i32
    %348 = arith.muli %c5_i32, %c8_i32_88 : i32
    %349 = tpu.assume_multiple %348, 8 : i32
    %c7_i32_89 = arith.constant 7 : i32
    %350 = arith.subi %c7_i32_89, %c5_i32 : i32
    %c8_i32_90 = arith.constant 8 : i32
    %351 = arith.muli %350, %c8_i32_90 : i32
    %352 = tpu.assume_multiple %351, 8 : i32
    %353 = arith.index_cast %349 : i32 to index
    %c0_91 = arith.constant 0 : index
    %354 = vector.load %arg8[%353, %c0_91] : memref<64x256xf32, #tpu.memory_space<vmem>>, vector<8x128xf32>
    %cst_92 = arith.constant dense<0.000000e+00> : vector<8x128xf32>
    %355 = tpu.matmul %318, %9, %cst_92 {dimension_numbers = #tpu.dot_dimension_numbers<[1], [0], [0], [1], [0, 0, 1, 1], [], []>} : vector<8x32xf32>, vector<32x128xf32>, vector<8x128xf32> -> vector<8x128xf32>
    %356 = arith.addf %354, %355 : vector<8x128xf32>
    %357 = arith.index_cast %352 : i32 to index
    %c128_93 = arith.constant 128 : index
    %358 = vector.load %arg8[%357, %c128_93] : memref<64x256xf32, #tpu.memory_space<vmem>>, vector<8x128xf32>
    %cst_94 = arith.constant dense<0.000000e+00> : vector<8x128xf32>
    %359 = tpu.matmul %343, %11, %cst_94 {dimension_numbers = #tpu.dot_dimension_numbers<[1], [0], [0], [1], [0, 0, 1, 1], [], []>} : vector<8x32xf32>, vector<32x128xf32>, vector<8x128xf32> -> vector<8x128xf32>
    %360 = arith.addf %358, %359 : vector<8x128xf32>
    %361 = vector.extract_strided_slice %356 {offsets = [0, 0], sizes = [8, 32], strides = [1, 1]} : vector<8x128xf32> to vector<8x32xf32>
    %362 = arith.negf %361 : vector<8x32xf32>
    %363 = math.exp %362 : vector<8x32xf32>
    %cst_95 = arith.constant 1.000000e+00 : f32
    %364 = vector.broadcast %cst_95 : f32 to vector<8x32xf32>
    %365 = arith.addf %364, %363 : vector<8x32xf32>
    %366 = arith.divf %364, %365 : vector<8x32xf32>
    %367 = vector.extract_strided_slice %356 {offsets = [0, 32], sizes = [8, 32], strides = [1, 1]} : vector<8x128xf32> to vector<8x32xf32>
    %368 = arith.negf %367 : vector<8x32xf32>
    %369 = math.exp %368 : vector<8x32xf32>
    %cst_96 = arith.constant 1.000000e+00 : f32
    %370 = vector.broadcast %cst_96 : f32 to vector<8x32xf32>
    %371 = arith.addf %370, %369 : vector<8x32xf32>
    %372 = arith.divf %370, %371 : vector<8x32xf32>
    %373 = vector.extract_strided_slice %356 {offsets = [0, 64], sizes = [8, 32], strides = [1, 1]} : vector<8x128xf32> to vector<8x32xf32>
    %374 = math.tanh %373 : vector<8x32xf32>
    %375 = vector.extract_strided_slice %356 {offsets = [0, 96], sizes = [8, 32], strides = [1, 1]} : vector<8x128xf32> to vector<8x32xf32>
    %376 = arith.negf %375 : vector<8x32xf32>
    %377 = math.exp %376 : vector<8x32xf32>
    %cst_97 = arith.constant 1.000000e+00 : f32
    %378 = vector.broadcast %cst_97 : f32 to vector<8x32xf32>
    %379 = arith.addf %378, %377 : vector<8x32xf32>
    %380 = arith.divf %378, %379 : vector<8x32xf32>
    %381 = arith.mulf %372, %316 : vector<8x32xf32>
    %382 = arith.mulf %366, %374 : vector<8x32xf32>
    %383 = arith.addf %381, %382 : vector<8x32xf32>
    %384 = math.tanh %383 : vector<8x32xf32>
    %385 = arith.mulf %380, %384 : vector<8x32xf32>
    %386 = vector.extract_strided_slice %360 {offsets = [0, 0], sizes = [8, 32], strides = [1, 1]} : vector<8x128xf32> to vector<8x32xf32>
    %387 = arith.negf %386 : vector<8x32xf32>
    %388 = math.exp %387 : vector<8x32xf32>
    %cst_98 = arith.constant 1.000000e+00 : f32
    %389 = vector.broadcast %cst_98 : f32 to vector<8x32xf32>
    %390 = arith.addf %389, %388 : vector<8x32xf32>
    %391 = arith.divf %389, %390 : vector<8x32xf32>
    %392 = vector.extract_strided_slice %360 {offsets = [0, 32], sizes = [8, 32], strides = [1, 1]} : vector<8x128xf32> to vector<8x32xf32>
    %393 = arith.negf %392 : vector<8x32xf32>
    %394 = math.exp %393 : vector<8x32xf32>
    %cst_99 = arith.constant 1.000000e+00 : f32
    %395 = vector.broadcast %cst_99 : f32 to vector<8x32xf32>
    %396 = arith.addf %395, %394 : vector<8x32xf32>
    %397 = arith.divf %395, %396 : vector<8x32xf32>
    %398 = vector.extract_strided_slice %360 {offsets = [0, 64], sizes = [8, 32], strides = [1, 1]} : vector<8x128xf32> to vector<8x32xf32>
    %399 = math.tanh %398 : vector<8x32xf32>
    %400 = vector.extract_strided_slice %360 {offsets = [0, 96], sizes = [8, 32], strides = [1, 1]} : vector<8x128xf32> to vector<8x32xf32>
    %401 = arith.negf %400 : vector<8x32xf32>
    %402 = math.exp %401 : vector<8x32xf32>
    %cst_100 = arith.constant 1.000000e+00 : f32
    %403 = vector.broadcast %cst_100 : f32 to vector<8x32xf32>
    %404 = arith.addf %403, %402 : vector<8x32xf32>
    %405 = arith.divf %403, %404 : vector<8x32xf32>
    %406 = arith.mulf %397, %341 : vector<8x32xf32>
    %407 = arith.mulf %391, %399 : vector<8x32xf32>
    %408 = arith.addf %406, %407 : vector<8x32xf32>
    %409 = math.tanh %408 : vector<8x32xf32>
    %410 = arith.mulf %405, %409 : vector<8x32xf32>
    %411 = arith.index_cast %349 : i32 to index
    %c0_101 = arith.constant 0 : index
    %412 = vector.load %arg9[%411, %c0_101] : memref<64x32xf32, #tpu.memory_space<vmem>>, vector<8x32xf32>
    tpu.vector_store %arg9[%411, %c0_101], %385 {strides = array<i32>} : memref<64x32xf32, #tpu.memory_space<vmem>>, vector<8x32xf32>,
    %413 = arith.index_cast %352 : i32 to index
    %c0_102 = arith.constant 0 : index
    %414 = vector.load %arg10[%413, %c0_102] : memref<64x32xf32, #tpu.memory_space<vmem>>, vector<8x32xf32>
    tpu.vector_store %arg10[%413, %c0_102], %410 {strides = array<i32>} : memref<64x32xf32, #tpu.memory_space<vmem>>, vector<8x32xf32>,
    %c6_i32 = arith.constant 6 : i32
    %c8_i32_103 = arith.constant 8 : i32
    %415 = arith.muli %c6_i32, %c8_i32_103 : i32
    %416 = tpu.assume_multiple %415, 8 : i32
    %c7_i32_104 = arith.constant 7 : i32
    %417 = arith.subi %c7_i32_104, %c6_i32 : i32
    %c8_i32_105 = arith.constant 8 : i32
    %418 = arith.muli %417, %c8_i32_105 : i32
    %419 = tpu.assume_multiple %418, 8 : i32
    %420 = arith.index_cast %416 : i32 to index
    %c0_106 = arith.constant 0 : index
    %421 = vector.load %arg8[%420, %c0_106] : memref<64x256xf32, #tpu.memory_space<vmem>>, vector<8x128xf32>
    %cst_107 = arith.constant dense<0.000000e+00> : vector<8x128xf32>
    %422 = tpu.matmul %385, %9, %cst_107 {dimension_numbers = #tpu.dot_dimension_numbers<[1], [0], [0], [1], [0, 0, 1, 1], [], []>} : vector<8x32xf32>, vector<32x128xf32>, vector<8x128xf32> -> vector<8x128xf32>
    %423 = arith.addf %421, %422 : vector<8x128xf32>
    %424 = arith.index_cast %419 : i32 to index
    %c128_108 = arith.constant 128 : index
    %425 = vector.load %arg8[%424, %c128_108] : memref<64x256xf32, #tpu.memory_space<vmem>>, vector<8x128xf32>
    %cst_109 = arith.constant dense<0.000000e+00> : vector<8x128xf32>
    %426 = tpu.matmul %410, %11, %cst_109 {dimension_numbers = #tpu.dot_dimension_numbers<[1], [0], [0], [1], [0, 0, 1, 1], [], []>} : vector<8x32xf32>, vector<32x128xf32>, vector<8x128xf32> -> vector<8x128xf32>
    %427 = arith.addf %425, %426 : vector<8x128xf32>
    %428 = vector.extract_strided_slice %423 {offsets = [0, 0], sizes = [8, 32], strides = [1, 1]} : vector<8x128xf32> to vector<8x32xf32>
    %429 = arith.negf %428 : vector<8x32xf32>
    %430 = math.exp %429 : vector<8x32xf32>
    %cst_110 = arith.constant 1.000000e+00 : f32
    %431 = vector.broadcast %cst_110 : f32 to vector<8x32xf32>
    %432 = arith.addf %431, %430 : vector<8x32xf32>
    %433 = arith.divf %431, %432 : vector<8x32xf32>
    %434 = vector.extract_strided_slice %423 {offsets = [0, 32], sizes = [8, 32], strides = [1, 1]} : vector<8x128xf32> to vector<8x32xf32>
    %435 = arith.negf %434 : vector<8x32xf32>
    %436 = math.exp %435 : vector<8x32xf32>
    %cst_111 = arith.constant 1.000000e+00 : f32
    %437 = vector.broadcast %cst_111 : f32 to vector<8x32xf32>
    %438 = arith.addf %437, %436 : vector<8x32xf32>
    %439 = arith.divf %437, %438 : vector<8x32xf32>
    %440 = vector.extract_strided_slice %423 {offsets = [0, 64], sizes = [8, 32], strides = [1, 1]} : vector<8x128xf32> to vector<8x32xf32>
    %441 = math.tanh %440 : vector<8x32xf32>
    %442 = vector.extract_strided_slice %423 {offsets = [0, 96], sizes = [8, 32], strides = [1, 1]} : vector<8x128xf32> to vector<8x32xf32>
    %443 = arith.negf %442 : vector<8x32xf32>
    %444 = math.exp %443 : vector<8x32xf32>
    %cst_112 = arith.constant 1.000000e+00 : f32
    %445 = vector.broadcast %cst_112 : f32 to vector<8x32xf32>
    %446 = arith.addf %445, %444 : vector<8x32xf32>
    %447 = arith.divf %445, %446 : vector<8x32xf32>
    %448 = arith.mulf %439, %383 : vector<8x32xf32>
    %449 = arith.mulf %433, %441 : vector<8x32xf32>
    %450 = arith.addf %448, %449 : vector<8x32xf32>
    %451 = math.tanh %450 : vector<8x32xf32>
    %452 = arith.mulf %447, %451 : vector<8x32xf32>
    %453 = vector.extract_strided_slice %427 {offsets = [0, 0], sizes = [8, 32], strides = [1, 1]} : vector<8x128xf32> to vector<8x32xf32>
    %454 = arith.negf %453 : vector<8x32xf32>
    %455 = math.exp %454 : vector<8x32xf32>
    %cst_113 = arith.constant 1.000000e+00 : f32
    %456 = vector.broadcast %cst_113 : f32 to vector<8x32xf32>
    %457 = arith.addf %456, %455 : vector<8x32xf32>
    %458 = arith.divf %456, %457 : vector<8x32xf32>
    %459 = vector.extract_strided_slice %427 {offsets = [0, 32], sizes = [8, 32], strides = [1, 1]} : vector<8x128xf32> to vector<8x32xf32>
    %460 = arith.negf %459 : vector<8x32xf32>
    %461 = math.exp %460 : vector<8x32xf32>
    %cst_114 = arith.constant 1.000000e+00 : f32
    %462 = vector.broadcast %cst_114 : f32 to vector<8x32xf32>
    %463 = arith.addf %462, %461 : vector<8x32xf32>
    %464 = arith.divf %462, %463 : vector<8x32xf32>
    %465 = vector.extract_strided_slice %427 {offsets = [0, 64], sizes = [8, 32], strides = [1, 1]} : vector<8x128xf32> to vector<8x32xf32>
    %466 = math.tanh %465 : vector<8x32xf32>
    %467 = vector.extract_strided_slice %427 {offsets = [0, 96], sizes = [8, 32], strides = [1, 1]} : vector<8x128xf32> to vector<8x32xf32>
    %468 = arith.negf %467 : vector<8x32xf32>
    %469 = math.exp %468 : vector<8x32xf32>
    %cst_115 = arith.constant 1.000000e+00 : f32
    %470 = vector.broadcast %cst_115 : f32 to vector<8x32xf32>
    %471 = arith.addf %470, %469 : vector<8x32xf32>
    %472 = arith.divf %470, %471 : vector<8x32xf32>
    %473 = arith.mulf %464, %408 : vector<8x32xf32>
    %474 = arith.mulf %458, %466 : vector<8x32xf32>
    %475 = arith.addf %473, %474 : vector<8x32xf32>
    %476 = math.tanh %475 : vector<8x32xf32>
    %477 = arith.mulf %472, %476 : vector<8x32xf32>
    %478 = arith.index_cast %416 : i32 to index
    %c0_116 = arith.constant 0 : index
    %479 = vector.load %arg9[%478, %c0_116] : memref<64x32xf32, #tpu.memory_space<vmem>>, vector<8x32xf32>
    tpu.vector_store %arg9[%478, %c0_116], %452 {strides = array<i32>} : memref<64x32xf32, #tpu.memory_space<vmem>>, vector<8x32xf32>,
    %480 = arith.index_cast %419 : i32 to index
    %c0_117 = arith.constant 0 : index
    %481 = vector.load %arg10[%480, %c0_117] : memref<64x32xf32, #tpu.memory_space<vmem>>, vector<8x32xf32>
    tpu.vector_store %arg10[%480, %c0_117], %477 {strides = array<i32>} : memref<64x32xf32, #tpu.memory_space<vmem>>, vector<8x32xf32>,
    %c7_i32_118 = arith.constant 7 : i32
    %c8_i32_119 = arith.constant 8 : i32
    %482 = arith.muli %c7_i32_118, %c8_i32_119 : i32
    %483 = tpu.assume_multiple %482, 8 : i32
    %c7_i32_120 = arith.constant 7 : i32
    %484 = arith.subi %c7_i32_120, %c7_i32_118 : i32
    %c8_i32_121 = arith.constant 8 : i32
    %485 = arith.muli %484, %c8_i32_121 : i32
    %486 = tpu.assume_multiple %485, 8 : i32
    %487 = arith.index_cast %483 : i32 to index
    %c0_122 = arith.constant 0 : index
    %488 = vector.load %arg8[%487, %c0_122] : memref<64x256xf32, #tpu.memory_space<vmem>>, vector<8x128xf32>
    %cst_123 = arith.constant dense<0.000000e+00> : vector<8x128xf32>
    %489 = tpu.matmul %452, %9, %cst_123 {dimension_numbers = #tpu.dot_dimension_numbers<[1], [0], [0], [1], [0, 0, 1, 1], [], []>} : vector<8x32xf32>, vector<32x128xf32>, vector<8x128xf32> -> vector<8x128xf32>
    %490 = arith.addf %488, %489 : vector<8x128xf32>
    %491 = arith.index_cast %486 : i32 to index
    %c128_124 = arith.constant 128 : index
    %492 = vector.load %arg8[%491, %c128_124] : memref<64x256xf32, #tpu.memory_space<vmem>>, vector<8x128xf32>
    %cst_125 = arith.constant dense<0.000000e+00> : vector<8x128xf32>
    %493 = tpu.matmul %477, %11, %cst_125 {dimension_numbers = #tpu.dot_dimension_numbers<[1], [0], [0], [1], [0, 0, 1, 1], [], []>} : vector<8x32xf32>, vector<32x128xf32>, vector<8x128xf32> -> vector<8x128xf32>
    %494 = arith.addf %492, %493 : vector<8x128xf32>
    %495 = vector.extract_strided_slice %490 {offsets = [0, 0], sizes = [8, 32], strides = [1, 1]} : vector<8x128xf32> to vector<8x32xf32>
    %496 = arith.negf %495 : vector<8x32xf32>
    %497 = math.exp %496 : vector<8x32xf32>
    %cst_126 = arith.constant 1.000000e+00 : f32
    %498 = vector.broadcast %cst_126 : f32 to vector<8x32xf32>
    %499 = arith.addf %498, %497 : vector<8x32xf32>
    %500 = arith.divf %498, %499 : vector<8x32xf32>
    %501 = vector.extract_strided_slice %490 {offsets = [0, 32], sizes = [8, 32], strides = [1, 1]} : vector<8x128xf32> to vector<8x32xf32>
    %502 = arith.negf %501 : vector<8x32xf32>
    %503 = math.exp %502 : vector<8x32xf32>
    %cst_127 = arith.constant 1.000000e+00 : f32
    %504 = vector.broadcast %cst_127 : f32 to vector<8x32xf32>
    %505 = arith.addf %504, %503 : vector<8x32xf32>
    %506 = arith.divf %504, %505 : vector<8x32xf32>
    %507 = vector.extract_strided_slice %490 {offsets = [0, 64], sizes = [8, 32], strides = [1, 1]} : vector<8x128xf32> to vector<8x32xf32>
    %508 = math.tanh %507 : vector<8x32xf32>
    %509 = vector.extract_strided_slice %490 {offsets = [0, 96], sizes = [8, 32], strides = [1, 1]} : vector<8x128xf32> to vector<8x32xf32>
    %510 = arith.negf %509 : vector<8x32xf32>
    %511 = math.exp %510 : vector<8x32xf32>
    %cst_128 = arith.constant 1.000000e+00 : f32
    %512 = vector.broadcast %cst_128 : f32 to vector<8x32xf32>
    %513 = arith.addf %512, %511 : vector<8x32xf32>
    %514 = arith.divf %512, %513 : vector<8x32xf32>
    %515 = arith.mulf %506, %450 : vector<8x32xf32>
    %516 = arith.mulf %500, %508 : vector<8x32xf32>
    %517 = arith.addf %515, %516 : vector<8x32xf32>
    %518 = math.tanh %517 : vector<8x32xf32>
    %519 = arith.mulf %514, %518 : vector<8x32xf32>
    %520 = vector.extract_strided_slice %494 {offsets = [0, 0], sizes = [8, 32], strides = [1, 1]} : vector<8x128xf32> to vector<8x32xf32>
    %521 = arith.negf %520 : vector<8x32xf32>
    %522 = math.exp %521 : vector<8x32xf32>
    %cst_129 = arith.constant 1.000000e+00 : f32
    %523 = vector.broadcast %cst_129 : f32 to vector<8x32xf32>
    %524 = arith.addf %523, %522 : vector<8x32xf32>
    %525 = arith.divf %523, %524 : vector<8x32xf32>
    %526 = vector.extract_strided_slice %494 {offsets = [0, 32], sizes = [8, 32], strides = [1, 1]} : vector<8x128xf32> to vector<8x32xf32>
    %527 = arith.negf %526 : vector<8x32xf32>
    %528 = math.exp %527 : vector<8x32xf32>
    %cst_130 = arith.constant 1.000000e+00 : f32
    %529 = vector.broadcast %cst_130 : f32 to vector<8x32xf32>
    %530 = arith.addf %529, %528 : vector<8x32xf32>
    %531 = arith.divf %529, %530 : vector<8x32xf32>
    %532 = vector.extract_strided_slice %494 {offsets = [0, 64], sizes = [8, 32], strides = [1, 1]} : vector<8x128xf32> to vector<8x32xf32>
    %533 = math.tanh %532 : vector<8x32xf32>
    %534 = vector.extract_strided_slice %494 {offsets = [0, 96], sizes = [8, 32], strides = [1, 1]} : vector<8x128xf32> to vector<8x32xf32>
    %535 = arith.negf %534 : vector<8x32xf32>
    %536 = math.exp %535 : vector<8x32xf32>
    %cst_131 = arith.constant 1.000000e+00 : f32
    %537 = vector.broadcast %cst_131 : f32 to vector<8x32xf32>
    %538 = arith.addf %537, %536 : vector<8x32xf32>
    %539 = arith.divf %537, %538 : vector<8x32xf32>
    %540 = arith.mulf %531, %475 : vector<8x32xf32>
    %541 = arith.mulf %525, %533 : vector<8x32xf32>
    %542 = arith.addf %540, %541 : vector<8x32xf32>
    %543 = math.tanh %542 : vector<8x32xf32>
    %544 = arith.mulf %539, %543 : vector<8x32xf32>
    %545 = arith.index_cast %483 : i32 to index
    %c0_132 = arith.constant 0 : index
    %546 = vector.load %arg9[%545, %c0_132] : memref<64x32xf32, #tpu.memory_space<vmem>>, vector<8x32xf32>
    tpu.vector_store %arg9[%545, %c0_132], %519 {strides = array<i32>} : memref<64x32xf32, #tpu.memory_space<vmem>>, vector<8x32xf32>,
    %547 = arith.index_cast %486 : i32 to index
    %c0_133 = arith.constant 0 : index
    %548 = vector.load %arg10[%547, %c0_133] : memref<64x32xf32, #tpu.memory_space<vmem>>, vector<8x32xf32>
    tpu.vector_store %arg10[%547, %c0_133], %544 {strides = array<i32>} : memref<64x32xf32, #tpu.memory_space<vmem>>, vector<8x32xf32>,
    %c8_i32_134 = arith.constant 8 : i32
    %c0_135 = arith.constant 0 : index
    %c0_136 = arith.constant 0 : index
    %549 = vector.load %arg9[%c0_135, %c0_136] : memref<64x32xf32, #tpu.memory_space<vmem>>, vector<64x32xf32>
    %c0_137 = arith.constant 0 : index
    %c0_138 = arith.constant 0 : index
    %c0_139 = arith.constant 0 : index
    %550 = vector.load %arg2[%c0_137, %c0_138, %c0_139] : memref<3x64x256xf32, #tpu.memory_space<vmem>>, vector<1x32x256xf32>
    %551 = vector.shape_cast %550 : vector<1x32x256xf32> to vector<32x256xf32>
    %cst_140 = arith.constant dense<0.000000e+00> : vector<64x256xf32>
    %552 = tpu.matmul %549, %551, %cst_140 {dimension_numbers = #tpu.dot_dimension_numbers<[1], [0], [0], [1], [0, 0, 1, 1], [], []>} : vector<64x32xf32>, vector<32x256xf32>, vector<64x256xf32> -> vector<64x256xf32>
    %c0_141 = arith.constant 0 : index
    %c0_142 = arith.constant 0 : index
    %553 = vector.load %arg10[%c0_141, %c0_142] : memref<64x32xf32, #tpu.memory_space<vmem>>, vector<64x32xf32>
    %c0_143 = arith.constant 0 : index
    %c32 = arith.constant 32 : index
    %c0_144 = arith.constant 0 : index
    %554 = vector.load %arg2[%c0_143, %c32, %c0_144] : memref<3x64x256xf32, #tpu.memory_space<vmem>>, vector<1x32x256xf32>
    %555 = vector.shape_cast %554 : vector<1x32x256xf32> to vector<32x256xf32>
    %cst_145 = arith.constant dense<0.000000e+00> : vector<64x256xf32>
    %556 = tpu.matmul %553, %555, %cst_145 {dimension_numbers = #tpu.dot_dimension_numbers<[1], [0], [0], [1], [0, 0, 1, 1], [], []>} : vector<64x32xf32>, vector<32x256xf32>, vector<64x256xf32> -> vector<64x256xf32>
    %557 = arith.addf %552, %556 : vector<64x256xf32>
    %c1_146 = arith.constant 1 : index
    %c0_147 = arith.constant 0 : index
    %c0_148 = arith.constant 0 : index
    %558 = vector.load %arg4[%c1_146, %c0_147, %c0_148] : memref<4x1x256xf32, #tpu.memory_space<vmem>>, vector<1x1x256xf32>
    %559 = vector.shape_cast %558 : vector<1x1x256xf32> to vector<1x256xf32>
    %560 = vector.broadcast %559 : vector<1x256xf32> to vector<64x256xf32>
    %561 = arith.addf %557, %560 : vector<64x256xf32>
    %c0_149 = arith.constant 0 : index
    %c0_150 = arith.constant 0 : index
    %562 = vector.load %arg8[%c0_149, %c0_150] : memref<64x256xf32, #tpu.memory_space<vmem>>, vector<64x256xf32>
    tpu.vector_store %arg8[%c0_149, %c0_150], %561 {strides = array<i32>} : memref<64x256xf32, #tpu.memory_space<vmem>>, vector<64x256xf32>,
    %c1_151 = arith.constant 1 : index
    %c0_152 = arith.constant 0 : index
    %c0_153 = arith.constant 0 : index
    %c0_154 = arith.constant 0 : index
    %563 = vector.load %arg3[%c1_151, %c0_152, %c0_153, %c0_154] : memref<4x2x32x128xf32, #tpu.memory_space<vmem>>, vector<1x1x32x128xf32>
    %564 = vector.shape_cast %563 : vector<1x1x32x128xf32> to vector<32x128xf32>
    %c1_155 = arith.constant 1 : index
    %c1_156 = arith.constant 1 : index
    %c0_157 = arith.constant 0 : index
    %c0_158 = arith.constant 0 : index
    %565 = vector.load %arg3[%c1_155, %c1_156, %c0_157, %c0_158] : memref<4x2x32x128xf32, #tpu.memory_space<vmem>>, vector<1x1x32x128xf32>
    %566 = vector.shape_cast %565 : vector<1x1x32x128xf32> to vector<32x128xf32>
    %cst_159 = arith.constant 0.000000e+00 : f32
    %567 = vector.broadcast %cst_159 : f32 to vector<8x32xf32>
    %c0_i32_160 = arith.constant 0 : i32
    %c8_i32_161 = arith.constant 8 : i32
    %568 = arith.muli %c0_i32_160, %c8_i32_161 : i32
    %569 = tpu.assume_multiple %568, 8 : i32
    %c7_i32_162 = arith.constant 7 : i32
    %570 = arith.subi %c7_i32_162, %c0_i32_160 : i32
    %c8_i32_163 = arith.constant 8 : i32
    %571 = arith.muli %570, %c8_i32_163 : i32
    %572 = tpu.assume_multiple %571, 8 : i32
    %573 = arith.index_cast %569 : i32 to index
    %c0_164 = arith.constant 0 : index
    %574 = vector.load %arg8[%573, %c0_164] : memref<64x256xf32, #tpu.memory_space<vmem>>, vector<8x128xf32>
    %cst_165 = arith.constant dense<0.000000e+00> : vector<8x128xf32>
    %575 = tpu.matmul %567, %564, %cst_165 {dimension_numbers = #tpu.dot_dimension_numbers<[1], [0], [0], [1], [0, 0, 1, 1], [], []>} : vector<8x32xf32>, vector<32x128xf32>, vector<8x128xf32> -> vector<8x128xf32>
    %576 = arith.addf %574, %575 : vector<8x128xf32>
    %577 = arith.index_cast %572 : i32 to index
    %c128_166 = arith.constant 128 : index
    %578 = vector.load %arg8[%577, %c128_166] : memref<64x256xf32, #tpu.memory_space<vmem>>, vector<8x128xf32>
    %cst_167 = arith.constant dense<0.000000e+00> : vector<8x128xf32>
    %579 = tpu.matmul %567, %566, %cst_167 {dimension_numbers = #tpu.dot_dimension_numbers<[1], [0], [0], [1], [0, 0, 1, 1], [], []>} : vector<8x32xf32>, vector<32x128xf32>, vector<8x128xf32> -> vector<8x128xf32>
    %580 = arith.addf %578, %579 : vector<8x128xf32>
    %581 = vector.extract_strided_slice %576 {offsets = [0, 0], sizes = [8, 32], strides = [1, 1]} : vector<8x128xf32> to vector<8x32xf32>
    %582 = arith.negf %581 : vector<8x32xf32>
    %583 = math.exp %582 : vector<8x32xf32>
    %cst_168 = arith.constant 1.000000e+00 : f32
    %584 = vector.broadcast %cst_168 : f32 to vector<8x32xf32>
    %585 = arith.addf %584, %583 : vector<8x32xf32>
    %586 = arith.divf %584, %585 : vector<8x32xf32>
    %587 = vector.extract_strided_slice %576 {offsets = [0, 32], sizes = [8, 32], strides = [1, 1]} : vector<8x128xf32> to vector<8x32xf32>
    %588 = arith.negf %587 : vector<8x32xf32>
    %589 = math.exp %588 : vector<8x32xf32>
    %cst_169 = arith.constant 1.000000e+00 : f32
    %590 = vector.broadcast %cst_169 : f32 to vector<8x32xf32>
    %591 = arith.addf %590, %589 : vector<8x32xf32>
    %592 = arith.divf %590, %591 : vector<8x32xf32>
    %593 = vector.extract_strided_slice %576 {offsets = [0, 64], sizes = [8, 32], strides = [1, 1]} : vector<8x128xf32> to vector<8x32xf32>
    %594 = math.tanh %593 : vector<8x32xf32>
    %595 = vector.extract_strided_slice %576 {offsets = [0, 96], sizes = [8, 32], strides = [1, 1]} : vector<8x128xf32> to vector<8x32xf32>
    %596 = arith.negf %595 : vector<8x32xf32>
    %597 = math.exp %596 : vector<8x32xf32>
    %cst_170 = arith.constant 1.000000e+00 : f32
    %598 = vector.broadcast %cst_170 : f32 to vector<8x32xf32>
    %599 = arith.addf %598, %597 : vector<8x32xf32>
    %600 = arith.divf %598, %599 : vector<8x32xf32>
    %601 = arith.mulf %592, %567 : vector<8x32xf32>
    %602 = arith.mulf %586, %594 : vector<8x32xf32>
    %603 = arith.addf %601, %602 : vector<8x32xf32>
    %604 = math.tanh %603 : vector<8x32xf32>
    %605 = arith.mulf %600, %604 : vector<8x32xf32>
    %606 = vector.extract_strided_slice %580 {offsets = [0, 0], sizes = [8, 32], strides = [1, 1]} : vector<8x128xf32> to vector<8x32xf32>
    %607 = arith.negf %606 : vector<8x32xf32>
    %608 = math.exp %607 : vector<8x32xf32>
    %cst_171 = arith.constant 1.000000e+00 : f32
    %609 = vector.broadcast %cst_171 : f32 to vector<8x32xf32>
    %610 = arith.addf %609, %608 : vector<8x32xf32>
    %611 = arith.divf %609, %610 : vector<8x32xf32>
    %612 = vector.extract_strided_slice %580 {offsets = [0, 32], sizes = [8, 32], strides = [1, 1]} : vector<8x128xf32> to vector<8x32xf32>
    %613 = arith.negf %612 : vector<8x32xf32>
    %614 = math.exp %613 : vector<8x32xf32>
    %cst_172 = arith.constant 1.000000e+00 : f32
    %615 = vector.broadcast %cst_172 : f32 to vector<8x32xf32>
    %616 = arith.addf %615, %614 : vector<8x32xf32>
    %617 = arith.divf %615, %616 : vector<8x32xf32>
    %618 = vector.extract_strided_slice %580 {offsets = [0, 64], sizes = [8, 32], strides = [1, 1]} : vector<8x128xf32> to vector<8x32xf32>
    %619 = math.tanh %618 : vector<8x32xf32>
    %620 = vector.extract_strided_slice %580 {offsets = [0, 96], sizes = [8, 32], strides = [1, 1]} : vector<8x128xf32> to vector<8x32xf32>
    %621 = arith.negf %620 : vector<8x32xf32>
    %622 = math.exp %621 : vector<8x32xf32>
    %cst_173 = arith.constant 1.000000e+00 : f32
    %623 = vector.broadcast %cst_173 : f32 to vector<8x32xf32>
    %624 = arith.addf %623, %622 : vector<8x32xf32>
    %625 = arith.divf %623, %624 : vector<8x32xf32>
    %626 = arith.mulf %617, %567 : vector<8x32xf32>
    %627 = arith.mulf %611, %619 : vector<8x32xf32>
    %628 = arith.addf %626, %627 : vector<8x32xf32>
    %629 = math.tanh %628 : vector<8x32xf32>
    %630 = arith.mulf %625, %629 : vector<8x32xf32>
    %631 = arith.index_cast %569 : i32 to index
    %c0_174 = arith.constant 0 : index
    %632 = vector.load %arg9[%631, %c0_174] : memref<64x32xf32, #tpu.memory_space<vmem>>, vector<8x32xf32>
    tpu.vector_store %arg9[%631, %c0_174], %605 {strides = array<i32>} : memref<64x32xf32, #tpu.memory_space<vmem>>, vector<8x32xf32>,
    %633 = arith.index_cast %572 : i32 to index
    %c0_175 = arith.constant 0 : index
    %634 = vector.load %arg10[%633, %c0_175] : memref<64x32xf32, #tpu.memory_space<vmem>>, vector<8x32xf32>
    tpu.vector_store %arg10[%633, %c0_175], %630 {strides = array<i32>} : memref<64x32xf32, #tpu.memory_space<vmem>>, vector<8x32xf32>,
    %c1_i32_176 = arith.constant 1 : i32
    %c8_i32_177 = arith.constant 8 : i32
    %635 = arith.muli %c1_i32_176, %c8_i32_177 : i32
    %636 = tpu.assume_multiple %635, 8 : i32
    %c7_i32_178 = arith.constant 7 : i32
    %637 = arith.subi %c7_i32_178, %c1_i32_176 : i32
    %c8_i32_179 = arith.constant 8 : i32
    %638 = arith.muli %637, %c8_i32_179 : i32
    %639 = tpu.assume_multiple %638, 8 : i32
    %640 = arith.index_cast %636 : i32 to index
    %c0_180 = arith.constant 0 : index
    %641 = vector.load %arg8[%640, %c0_180] : memref<64x256xf32, #tpu.memory_space<vmem>>, vector<8x128xf32>
    %cst_181 = arith.constant dense<0.000000e+00> : vector<8x128xf32>
    %642 = tpu.matmul %605, %564, %cst_181 {dimension_numbers = #tpu.dot_dimension_numbers<[1], [0], [0], [1], [0, 0, 1, 1], [], []>} : vector<8x32xf32>, vector<32x128xf32>, vector<8x128xf32> -> vector<8x128xf32>
    %643 = arith.addf %641, %642 : vector<8x128xf32>
    %644 = arith.index_cast %639 : i32 to index
    %c128_182 = arith.constant 128 : index
    %645 = vector.load %arg8[%644, %c128_182] : memref<64x256xf32, #tpu.memory_space<vmem>>, vector<8x128xf32>
    %cst_183 = arith.constant dense<0.000000e+00> : vector<8x128xf32>
    %646 = tpu.matmul %630, %566, %cst_183 {dimension_numbers = #tpu.dot_dimension_numbers<[1], [0], [0], [1], [0, 0, 1, 1], [], []>} : vector<8x32xf32>, vector<32x128xf32>, vector<8x128xf32> -> vector<8x128xf32>
    %647 = arith.addf %645, %646 : vector<8x128xf32>
    %648 = vector.extract_strided_slice %643 {offsets = [0, 0], sizes = [8, 32], strides = [1, 1]} : vector<8x128xf32> to vector<8x32xf32>
    %649 = arith.negf %648 : vector<8x32xf32>
    %650 = math.exp %649 : vector<8x32xf32>
    %cst_184 = arith.constant 1.000000e+00 : f32
    %651 = vector.broadcast %cst_184 : f32 to vector<8x32xf32>
    %652 = arith.addf %651, %650 : vector<8x32xf32>
    %653 = arith.divf %651, %652 : vector<8x32xf32>
    %654 = vector.extract_strided_slice %643 {offsets = [0, 32], sizes = [8, 32], strides = [1, 1]} : vector<8x128xf32> to vector<8x32xf32>
    %655 = arith.negf %654 : vector<8x32xf32>
    %656 = math.exp %655 : vector<8x32xf32>
    %cst_185 = arith.constant 1.000000e+00 : f32
    %657 = vector.broadcast %cst_185 : f32 to vector<8x32xf32>
    %658 = arith.addf %657, %656 : vector<8x32xf32>
    %659 = arith.divf %657, %658 : vector<8x32xf32>
    %660 = vector.extract_strided_slice %643 {offsets = [0, 64], sizes = [8, 32], strides = [1, 1]} : vector<8x128xf32> to vector<8x32xf32>
    %661 = math.tanh %660 : vector<8x32xf32>
    %662 = vector.extract_strided_slice %643 {offsets = [0, 96], sizes = [8, 32], strides = [1, 1]} : vector<8x128xf32> to vector<8x32xf32>
    %663 = arith.negf %662 : vector<8x32xf32>
    %664 = math.exp %663 : vector<8x32xf32>
    %cst_186 = arith.constant 1.000000e+00 : f32
    %665 = vector.broadcast %cst_186 : f32 to vector<8x32xf32>
    %666 = arith.addf %665, %664 : vector<8x32xf32>
    %667 = arith.divf %665, %666 : vector<8x32xf32>
    %668 = arith.mulf %659, %603 : vector<8x32xf32>
    %669 = arith.mulf %653, %661 : vector<8x32xf32>
    %670 = arith.addf %668, %669 : vector<8x32xf32>
    %671 = math.tanh %670 : vector<8x32xf32>
    %672 = arith.mulf %667, %671 : vector<8x32xf32>
    %673 = vector.extract_strided_slice %647 {offsets = [0, 0], sizes = [8, 32], strides = [1, 1]} : vector<8x128xf32> to vector<8x32xf32>
    %674 = arith.negf %673 : vector<8x32xf32>
    %675 = math.exp %674 : vector<8x32xf32>
    %cst_187 = arith.constant 1.000000e+00 : f32
    %676 = vector.broadcast %cst_187 : f32 to vector<8x32xf32>
    %677 = arith.addf %676, %675 : vector<8x32xf32>
    %678 = arith.divf %676, %677 : vector<8x32xf32>
    %679 = vector.extract_strided_slice %647 {offsets = [0, 32], sizes = [8, 32], strides = [1, 1]} : vector<8x128xf32> to vector<8x32xf32>
    %680 = arith.negf %679 : vector<8x32xf32>
    %681 = math.exp %680 : vector<8x32xf32>
    %cst_188 = arith.constant 1.000000e+00 : f32
    %682 = vector.broadcast %cst_188 : f32 to vector<8x32xf32>
    %683 = arith.addf %682, %681 : vector<8x32xf32>
    %684 = arith.divf %682, %683 : vector<8x32xf32>
    %685 = vector.extract_strided_slice %647 {offsets = [0, 64], sizes = [8, 32], strides = [1, 1]} : vector<8x128xf32> to vector<8x32xf32>
    %686 = math.tanh %685 : vector<8x32xf32>
    %687 = vector.extract_strided_slice %647 {offsets = [0, 96], sizes = [8, 32], strides = [1, 1]} : vector<8x128xf32> to vector<8x32xf32>
    %688 = arith.negf %687 : vector<8x32xf32>
    %689 = math.exp %688 : vector<8x32xf32>
    %cst_189 = arith.constant 1.000000e+00 : f32
    %690 = vector.broadcast %cst_189 : f32 to vector<8x32xf32>
    %691 = arith.addf %690, %689 : vector<8x32xf32>
    %692 = arith.divf %690, %691 : vector<8x32xf32>
    %693 = arith.mulf %684, %628 : vector<8x32xf32>
    %694 = arith.mulf %678, %686 : vector<8x32xf32>
    %695 = arith.addf %693, %694 : vector<8x32xf32>
    %696 = math.tanh %695 : vector<8x32xf32>
    %697 = arith.mulf %692, %696 : vector<8x32xf32>
    %698 = arith.index_cast %636 : i32 to index
    %c0_190 = arith.constant 0 : index
    %699 = vector.load %arg9[%698, %c0_190] : memref<64x32xf32, #tpu.memory_space<vmem>>, vector<8x32xf32>
    tpu.vector_store %arg9[%698, %c0_190], %672 {strides = array<i32>} : memref<64x32xf32, #tpu.memory_space<vmem>>, vector<8x32xf32>,
    %700 = arith.index_cast %639 : i32 to index
    %c0_191 = arith.constant 0 : index
    %701 = vector.load %arg10[%700, %c0_191] : memref<64x32xf32, #tpu.memory_space<vmem>>, vector<8x32xf32>
    tpu.vector_store %arg10[%700, %c0_191], %697 {strides = array<i32>} : memref<64x32xf32, #tpu.memory_space<vmem>>, vector<8x32xf32>,
    %c2_i32_192 = arith.constant 2 : i32
    %c8_i32_193 = arith.constant 8 : i32
    %702 = arith.muli %c2_i32_192, %c8_i32_193 : i32
    %703 = tpu.assume_multiple %702, 8 : i32
    %c7_i32_194 = arith.constant 7 : i32
    %704 = arith.subi %c7_i32_194, %c2_i32_192 : i32
    %c8_i32_195 = arith.constant 8 : i32
    %705 = arith.muli %704, %c8_i32_195 : i32
    %706 = tpu.assume_multiple %705, 8 : i32
    %707 = arith.index_cast %703 : i32 to index
    %c0_196 = arith.constant 0 : index
    %708 = vector.load %arg8[%707, %c0_196] : memref<64x256xf32, #tpu.memory_space<vmem>>, vector<8x128xf32>
    %cst_197 = arith.constant dense<0.000000e+00> : vector<8x128xf32>
    %709 = tpu.matmul %672, %564, %cst_197 {dimension_numbers = #tpu.dot_dimension_numbers<[1], [0], [0], [1], [0, 0, 1, 1], [], []>} : vector<8x32xf32>, vector<32x128xf32>, vector<8x128xf32> -> vector<8x128xf32>
    %710 = arith.addf %708, %709 : vector<8x128xf32>
    %711 = arith.index_cast %706 : i32 to index
    %c128_198 = arith.constant 128 : index
    %712 = vector.load %arg8[%711, %c128_198] : memref<64x256xf32, #tpu.memory_space<vmem>>, vector<8x128xf32>
    %cst_199 = arith.constant dense<0.000000e+00> : vector<8x128xf32>
    %713 = tpu.matmul %697, %566, %cst_199 {dimension_numbers = #tpu.dot_dimension_numbers<[1], [0], [0], [1], [0, 0, 1, 1], [], []>} : vector<8x32xf32>, vector<32x128xf32>, vector<8x128xf32> -> vector<8x128xf32>
    %714 = arith.addf %712, %713 : vector<8x128xf32>
    %715 = vector.extract_strided_slice %710 {offsets = [0, 0], sizes = [8, 32], strides = [1, 1]} : vector<8x128xf32> to vector<8x32xf32>
    %716 = arith.negf %715 : vector<8x32xf32>
    %717 = math.exp %716 : vector<8x32xf32>
    %cst_200 = arith.constant 1.000000e+00 : f32
    %718 = vector.broadcast %cst_200 : f32 to vector<8x32xf32>
    %719 = arith.addf %718, %717 : vector<8x32xf32>
    %720 = arith.divf %718, %719 : vector<8x32xf32>
    %721 = vector.extract_strided_slice %710 {offsets = [0, 32], sizes = [8, 32], strides = [1, 1]} : vector<8x128xf32> to vector<8x32xf32>
    %722 = arith.negf %721 : vector<8x32xf32>
    %723 = math.exp %722 : vector<8x32xf32>
    %cst_201 = arith.constant 1.000000e+00 : f32
    %724 = vector.broadcast %cst_201 : f32 to vector<8x32xf32>
    %725 = arith.addf %724, %723 : vector<8x32xf32>
    %726 = arith.divf %724, %725 : vector<8x32xf32>
    %727 = vector.extract_strided_slice %710 {offsets = [0, 64], sizes = [8, 32], strides = [1, 1]} : vector<8x128xf32> to vector<8x32xf32>
    %728 = math.tanh %727 : vector<8x32xf32>
    %729 = vector.extract_strided_slice %710 {offsets = [0, 96], sizes = [8, 32], strides = [1, 1]} : vector<8x128xf32> to vector<8x32xf32>
    %730 = arith.negf %729 : vector<8x32xf32>
    %731 = math.exp %730 : vector<8x32xf32>
    %cst_202 = arith.constant 1.000000e+00 : f32
    %732 = vector.broadcast %cst_202 : f32 to vector<8x32xf32>
    %733 = arith.addf %732, %731 : vector<8x32xf32>
    %734 = arith.divf %732, %733 : vector<8x32xf32>
    %735 = arith.mulf %726, %670 : vector<8x32xf32>
    %736 = arith.mulf %720, %728 : vector<8x32xf32>
    %737 = arith.addf %735, %736 : vector<8x32xf32>
    %738 = math.tanh %737 : vector<8x32xf32>
    %739 = arith.mulf %734, %738 : vector<8x32xf32>
    %740 = vector.extract_strided_slice %714 {offsets = [0, 0], sizes = [8, 32], strides = [1, 1]} : vector<8x128xf32> to vector<8x32xf32>
    %741 = arith.negf %740 : vector<8x32xf32>
    %742 = math.exp %741 : vector<8x32xf32>
    %cst_203 = arith.constant 1.000000e+00 : f32
    %743 = vector.broadcast %cst_203 : f32 to vector<8x32xf32>
    %744 = arith.addf %743, %742 : vector<8x32xf32>
    %745 = arith.divf %743, %744 : vector<8x32xf32>
    %746 = vector.extract_strided_slice %714 {offsets = [0, 32], sizes = [8, 32], strides = [1, 1]} : vector<8x128xf32> to vector<8x32xf32>
    %747 = arith.negf %746 : vector<8x32xf32>
    %748 = math.exp %747 : vector<8x32xf32>
    %cst_204 = arith.constant 1.000000e+00 : f32
    %749 = vector.broadcast %cst_204 : f32 to vector<8x32xf32>
    %750 = arith.addf %749, %748 : vector<8x32xf32>
    %751 = arith.divf %749, %750 : vector<8x32xf32>
    %752 = vector.extract_strided_slice %714 {offsets = [0, 64], sizes = [8, 32], strides = [1, 1]} : vector<8x128xf32> to vector<8x32xf32>
    %753 = math.tanh %752 : vector<8x32xf32>
    %754 = vector.extract_strided_slice %714 {offsets = [0, 96], sizes = [8, 32], strides = [1, 1]} : vector<8x128xf32> to vector<8x32xf32>
    %755 = arith.negf %754 : vector<8x32xf32>
    %756 = math.exp %755 : vector<8x32xf32>
    %cst_205 = arith.constant 1.000000e+00 : f32
    %757 = vector.broadcast %cst_205 : f32 to vector<8x32xf32>
    %758 = arith.addf %757, %756 : vector<8x32xf32>
    %759 = arith.divf %757, %758 : vector<8x32xf32>
    %760 = arith.mulf %751, %695 : vector<8x32xf32>
    %761 = arith.mulf %745, %753 : vector<8x32xf32>
    %762 = arith.addf %760, %761 : vector<8x32xf32>
    %763 = math.tanh %762 : vector<8x32xf32>
    %764 = arith.mulf %759, %763 : vector<8x32xf32>
    %765 = arith.index_cast %703 : i32 to index
    %c0_206 = arith.constant 0 : index
    %766 = vector.load %arg9[%765, %c0_206] : memref<64x32xf32, #tpu.memory_space<vmem>>, vector<8x32xf32>
    tpu.vector_store %arg9[%765, %c0_206], %739 {strides = array<i32>} : memref<64x32xf32, #tpu.memory_space<vmem>>, vector<8x32xf32>,
    %767 = arith.index_cast %706 : i32 to index
    %c0_207 = arith.constant 0 : index
    %768 = vector.load %arg10[%767, %c0_207] : memref<64x32xf32, #tpu.memory_space<vmem>>, vector<8x32xf32>
    tpu.vector_store %arg10[%767, %c0_207], %764 {strides = array<i32>} : memref<64x32xf32, #tpu.memory_space<vmem>>, vector<8x32xf32>,
    %c3_i32_208 = arith.constant 3 : i32
    %c8_i32_209 = arith.constant 8 : i32
    %769 = arith.muli %c3_i32_208, %c8_i32_209 : i32
    %770 = tpu.assume_multiple %769, 8 : i32
    %c7_i32_210 = arith.constant 7 : i32
    %771 = arith.subi %c7_i32_210, %c3_i32_208 : i32
    %c8_i32_211 = arith.constant 8 : i32
    %772 = arith.muli %771, %c8_i32_211 : i32
    %773 = tpu.assume_multiple %772, 8 : i32
    %774 = arith.index_cast %770 : i32 to index
    %c0_212 = arith.constant 0 : index
    %775 = vector.load %arg8[%774, %c0_212] : memref<64x256xf32, #tpu.memory_space<vmem>>, vector<8x128xf32>
    %cst_213 = arith.constant dense<0.000000e+00> : vector<8x128xf32>
    %776 = tpu.matmul %739, %564, %cst_213 {dimension_numbers = #tpu.dot_dimension_numbers<[1], [0], [0], [1], [0, 0, 1, 1], [], []>} : vector<8x32xf32>, vector<32x128xf32>, vector<8x128xf32> -> vector<8x128xf32>
    %777 = arith.addf %775, %776 : vector<8x128xf32>
    %778 = arith.index_cast %773 : i32 to index
    %c128_214 = arith.constant 128 : index
    %779 = vector.load %arg8[%778, %c128_214] : memref<64x256xf32, #tpu.memory_space<vmem>>, vector<8x128xf32>
    %cst_215 = arith.constant dense<0.000000e+00> : vector<8x128xf32>
    %780 = tpu.matmul %764, %566, %cst_215 {dimension_numbers = #tpu.dot_dimension_numbers<[1], [0], [0], [1], [0, 0, 1, 1], [], []>} : vector<8x32xf32>, vector<32x128xf32>, vector<8x128xf32> -> vector<8x128xf32>
    %781 = arith.addf %779, %780 : vector<8x128xf32>
    %782 = vector.extract_strided_slice %777 {offsets = [0, 0], sizes = [8, 32], strides = [1, 1]} : vector<8x128xf32> to vector<8x32xf32>
    %783 = arith.negf %782 : vector<8x32xf32>
    %784 = math.exp %783 : vector<8x32xf32>
    %cst_216 = arith.constant 1.000000e+00 : f32
    %785 = vector.broadcast %cst_216 : f32 to vector<8x32xf32>
    %786 = arith.addf %785, %784 : vector<8x32xf32>
    %787 = arith.divf %785, %786 : vector<8x32xf32>
    %788 = vector.extract_strided_slice %777 {offsets = [0, 32], sizes = [8, 32], strides = [1, 1]} : vector<8x128xf32> to vector<8x32xf32>
    %789 = arith.negf %788 : vector<8x32xf32>
    %790 = math.exp %789 : vector<8x32xf32>
    %cst_217 = arith.constant 1.000000e+00 : f32
    %791 = vector.broadcast %cst_217 : f32 to vector<8x32xf32>
    %792 = arith.addf %791, %790 : vector<8x32xf32>
    %793 = arith.divf %791, %792 : vector<8x32xf32>
    %794 = vector.extract_strided_slice %777 {offsets = [0, 64], sizes = [8, 32], strides = [1, 1]} : vector<8x128xf32> to vector<8x32xf32>
    %795 = math.tanh %794 : vector<8x32xf32>
    %796 = vector.extract_strided_slice %777 {offsets = [0, 96], sizes = [8, 32], strides = [1, 1]} : vector<8x128xf32> to vector<8x32xf32>
    %797 = arith.negf %796 : vector<8x32xf32>
    %798 = math.exp %797 : vector<8x32xf32>
    %cst_218 = arith.constant 1.000000e+00 : f32
    %799 = vector.broadcast %cst_218 : f32 to vector<8x32xf32>
    %800 = arith.addf %799, %798 : vector<8x32xf32>
    %801 = arith.divf %799, %800 : vector<8x32xf32>
    %802 = arith.mulf %793, %737 : vector<8x32xf32>
    %803 = arith.mulf %787, %795 : vector<8x32xf32>
    %804 = arith.addf %802, %803 : vector<8x32xf32>
    %805 = math.tanh %804 : vector<8x32xf32>
    %806 = arith.mulf %801, %805 : vector<8x32xf32>
    %807 = vector.extract_strided_slice %781 {offsets = [0, 0], sizes = [8, 32], strides = [1, 1]} : vector<8x128xf32> to vector<8x32xf32>
    %808 = arith.negf %807 : vector<8x32xf32>
    %809 = math.exp %808 : vector<8x32xf32>
    %cst_219 = arith.constant 1.000000e+00 : f32
    %810 = vector.broadcast %cst_219 : f32 to vector<8x32xf32>
    %811 = arith.addf %810, %809 : vector<8x32xf32>
    %812 = arith.divf %810, %811 : vector<8x32xf32>
    %813 = vector.extract_strided_slice %781 {offsets = [0, 32], sizes = [8, 32], strides = [1, 1]} : vector<8x128xf32> to vector<8x32xf32>
    %814 = arith.negf %813 : vector<8x32xf32>
    %815 = math.exp %814 : vector<8x32xf32>
    %cst_220 = arith.constant 1.000000e+00 : f32
    %816 = vector.broadcast %cst_220 : f32 to vector<8x32xf32>
    %817 = arith.addf %816, %815 : vector<8x32xf32>
    %818 = arith.divf %816, %817 : vector<8x32xf32>
    %819 = vector.extract_strided_slice %781 {offsets = [0, 64], sizes = [8, 32], strides = [1, 1]} : vector<8x128xf32> to vector<8x32xf32>
    %820 = math.tanh %819 : vector<8x32xf32>
    %821 = vector.extract_strided_slice %781 {offsets = [0, 96], sizes = [8, 32], strides = [1, 1]} : vector<8x128xf32> to vector<8x32xf32>
    %822 = arith.negf %821 : vector<8x32xf32>
    %823 = math.exp %822 : vector<8x32xf32>
    %cst_221 = arith.constant 1.000000e+00 : f32
    %824 = vector.broadcast %cst_221 : f32 to vector<8x32xf32>
    %825 = arith.addf %824, %823 : vector<8x32xf32>
    %826 = arith.divf %824, %825 : vector<8x32xf32>
    %827 = arith.mulf %818, %762 : vector<8x32xf32>
    %828 = arith.mulf %812, %820 : vector<8x32xf32>
    %829 = arith.addf %827, %828 : vector<8x32xf32>
    %830 = math.tanh %829 : vector<8x32xf32>
    %831 = arith.mulf %826, %830 : vector<8x32xf32>
    %832 = arith.index_cast %770 : i32 to index
    %c0_222 = arith.constant 0 : index
    %833 = vector.load %arg9[%832, %c0_222] : memref<64x32xf32, #tpu.memory_space<vmem>>, vector<8x32xf32>
    tpu.vector_store %arg9[%832, %c0_222], %806 {strides = array<i32>} : memref<64x32xf32, #tpu.memory_space<vmem>>, vector<8x32xf32>,
    %834 = arith.index_cast %773 : i32 to index
    %c0_223 = arith.constant 0 : index
    %835 = vector.load %arg10[%834, %c0_223] : memref<64x32xf32, #tpu.memory_space<vmem>>, vector<8x32xf32>
    tpu.vector_store %arg10[%834, %c0_223], %831 {strides = array<i32>} : memref<64x32xf32, #tpu.memory_space<vmem>>, vector<8x32xf32>,
    %c4_i32_224 = arith.constant 4 : i32
    %c8_i32_225 = arith.constant 8 : i32
    %836 = arith.muli %c4_i32_224, %c8_i32_225 : i32
    %837 = tpu.assume_multiple %836, 8 : i32
    %c7_i32_226 = arith.constant 7 : i32
    %838 = arith.subi %c7_i32_226, %c4_i32_224 : i32
    %c8_i32_227 = arith.constant 8 : i32
    %839 = arith.muli %838, %c8_i32_227 : i32
    %840 = tpu.assume_multiple %839, 8 : i32
    %841 = arith.index_cast %837 : i32 to index
    %c0_228 = arith.constant 0 : index
    %842 = vector.load %arg8[%841, %c0_228] : memref<64x256xf32, #tpu.memory_space<vmem>>, vector<8x128xf32>
    %cst_229 = arith.constant dense<0.000000e+00> : vector<8x128xf32>
    %843 = tpu.matmul %806, %564, %cst_229 {dimension_numbers = #tpu.dot_dimension_numbers<[1], [0], [0], [1], [0, 0, 1, 1], [], []>} : vector<8x32xf32>, vector<32x128xf32>, vector<8x128xf32> -> vector<8x128xf32>
    %844 = arith.addf %842, %843 : vector<8x128xf32>
    %845 = arith.index_cast %840 : i32 to index
    %c128_230 = arith.constant 128 : index
    %846 = vector.load %arg8[%845, %c128_230] : memref<64x256xf32, #tpu.memory_space<vmem>>, vector<8x128xf32>
    %cst_231 = arith.constant dense<0.000000e+00> : vector<8x128xf32>
    %847 = tpu.matmul %831, %566, %cst_231 {dimension_numbers = #tpu.dot_dimension_numbers<[1], [0], [0], [1], [0, 0, 1, 1], [], []>} : vector<8x32xf32>, vector<32x128xf32>, vector<8x128xf32> -> vector<8x128xf32>
    %848 = arith.addf %846, %847 : vector<8x128xf32>
    %849 = vector.extract_strided_slice %844 {offsets = [0, 0], sizes = [8, 32], strides = [1, 1]} : vector<8x128xf32> to vector<8x32xf32>
    %850 = arith.negf %849 : vector<8x32xf32>
    %851 = math.exp %850 : vector<8x32xf32>
    %cst_232 = arith.constant 1.000000e+00 : f32
    %852 = vector.broadcast %cst_232 : f32 to vector<8x32xf32>
    %853 = arith.addf %852, %851 : vector<8x32xf32>
    %854 = arith.divf %852, %853 : vector<8x32xf32>
    %855 = vector.extract_strided_slice %844 {offsets = [0, 32], sizes = [8, 32], strides = [1, 1]} : vector<8x128xf32> to vector<8x32xf32>
    %856 = arith.negf %855 : vector<8x32xf32>
    %857 = math.exp %856 : vector<8x32xf32>
    %cst_233 = arith.constant 1.000000e+00 : f32
    %858 = vector.broadcast %cst_233 : f32 to vector<8x32xf32>
    %859 = arith.addf %858, %857 : vector<8x32xf32>
    %860 = arith.divf %858, %859 : vector<8x32xf32>
    %861 = vector.extract_strided_slice %844 {offsets = [0, 64], sizes = [8, 32], strides = [1, 1]} : vector<8x128xf32> to vector<8x32xf32>
    %862 = math.tanh %861 : vector<8x32xf32>
    %863 = vector.extract_strided_slice %844 {offsets = [0, 96], sizes = [8, 32], strides = [1, 1]} : vector<8x128xf32> to vector<8x32xf32>
    %864 = arith.negf %863 : vector<8x32xf32>
    %865 = math.exp %864 : vector<8x32xf32>
    %cst_234 = arith.constant 1.000000e+00 : f32
    %866 = vector.broadcast %cst_234 : f32 to vector<8x32xf32>
    %867 = arith.addf %866, %865 : vector<8x32xf32>
    %868 = arith.divf %866, %867 : vector<8x32xf32>
    %869 = arith.mulf %860, %804 : vector<8x32xf32>
    %870 = arith.mulf %854, %862 : vector<8x32xf32>
    %871 = arith.addf %869, %870 : vector<8x32xf32>
    %872 = math.tanh %871 : vector<8x32xf32>
    %873 = arith.mulf %868, %872 : vector<8x32xf32>
    %874 = vector.extract_strided_slice %848 {offsets = [0, 0], sizes = [8, 32], strides = [1, 1]} : vector<8x128xf32> to vector<8x32xf32>
    %875 = arith.negf %874 : vector<8x32xf32>
    %876 = math.exp %875 : vector<8x32xf32>
    %cst_235 = arith.constant 1.000000e+00 : f32
    %877 = vector.broadcast %cst_235 : f32 to vector<8x32xf32>
    %878 = arith.addf %877, %876 : vector<8x32xf32>
    %879 = arith.divf %877, %878 : vector<8x32xf32>
    %880 = vector.extract_strided_slice %848 {offsets = [0, 32], sizes = [8, 32], strides = [1, 1]} : vector<8x128xf32> to vector<8x32xf32>
    %881 = arith.negf %880 : vector<8x32xf32>
    %882 = math.exp %881 : vector<8x32xf32>
    %cst_236 = arith.constant 1.000000e+00 : f32
    %883 = vector.broadcast %cst_236 : f32 to vector<8x32xf32>
    %884 = arith.addf %883, %882 : vector<8x32xf32>
    %885 = arith.divf %883, %884 : vector<8x32xf32>
    %886 = vector.extract_strided_slice %848 {offsets = [0, 64], sizes = [8, 32], strides = [1, 1]} : vector<8x128xf32> to vector<8x32xf32>
    %887 = math.tanh %886 : vector<8x32xf32>
    %888 = vector.extract_strided_slice %848 {offsets = [0, 96], sizes = [8, 32], strides = [1, 1]} : vector<8x128xf32> to vector<8x32xf32>
    %889 = arith.negf %888 : vector<8x32xf32>
    %890 = math.exp %889 : vector<8x32xf32>
    %cst_237 = arith.constant 1.000000e+00 : f32
    %891 = vector.broadcast %cst_237 : f32 to vector<8x32xf32>
    %892 = arith.addf %891, %890 : vector<8x32xf32>
    %893 = arith.divf %891, %892 : vector<8x32xf32>
    %894 = arith.mulf %885, %829 : vector<8x32xf32>
    %895 = arith.mulf %879, %887 : vector<8x32xf32>
    %896 = arith.addf %894, %895 : vector<8x32xf32>
    %897 = math.tanh %896 : vector<8x32xf32>
    %898 = arith.mulf %893, %897 : vector<8x32xf32>
    %899 = arith.index_cast %837 : i32 to index
    %c0_238 = arith.constant 0 : index
    %900 = vector.load %arg9[%899, %c0_238] : memref<64x32xf32, #tpu.memory_space<vmem>>, vector<8x32xf32>
    tpu.vector_store %arg9[%899, %c0_238], %873 {strides = array<i32>} : memref<64x32xf32, #tpu.memory_space<vmem>>, vector<8x32xf32>,
    %901 = arith.index_cast %840 : i32 to index
    %c0_239 = arith.constant 0 : index
    %902 = vector.load %arg10[%901, %c0_239] : memref<64x32xf32, #tpu.memory_space<vmem>>, vector<8x32xf32>
    tpu.vector_store %arg10[%901, %c0_239], %898 {strides = array<i32>} : memref<64x32xf32, #tpu.memory_space<vmem>>, vector<8x32xf32>,
    %c5_i32_240 = arith.constant 5 : i32
    %c8_i32_241 = arith.constant 8 : i32
    %903 = arith.muli %c5_i32_240, %c8_i32_241 : i32
    %904 = tpu.assume_multiple %903, 8 : i32
    %c7_i32_242 = arith.constant 7 : i32
    %905 = arith.subi %c7_i32_242, %c5_i32_240 : i32
    %c8_i32_243 = arith.constant 8 : i32
    %906 = arith.muli %905, %c8_i32_243 : i32
    %907 = tpu.assume_multiple %906, 8 : i32
    %908 = arith.index_cast %904 : i32 to index
    %c0_244 = arith.constant 0 : index
    %909 = vector.load %arg8[%908, %c0_244] : memref<64x256xf32, #tpu.memory_space<vmem>>, vector<8x128xf32>
    %cst_245 = arith.constant dense<0.000000e+00> : vector<8x128xf32>
    %910 = tpu.matmul %873, %564, %cst_245 {dimension_numbers = #tpu.dot_dimension_numbers<[1], [0], [0], [1], [0, 0, 1, 1], [], []>} : vector<8x32xf32>, vector<32x128xf32>, vector<8x128xf32> -> vector<8x128xf32>
    %911 = arith.addf %909, %910 : vector<8x128xf32>
    %912 = arith.index_cast %907 : i32 to index
    %c128_246 = arith.constant 128 : index
    %913 = vector.load %arg8[%912, %c128_246] : memref<64x256xf32, #tpu.memory_space<vmem>>, vector<8x128xf32>
    %cst_247 = arith.constant dense<0.000000e+00> : vector<8x128xf32>
    %914 = tpu.matmul %898, %566, %cst_247 {dimension_numbers = #tpu.dot_dimension_numbers<[1], [0], [0], [1], [0, 0, 1, 1], [], []>} : vector<8x32xf32>, vector<32x128xf32>, vector<8x128xf32> -> vector<8x128xf32>
    %915 = arith.addf %913, %914 : vector<8x128xf32>
    %916 = vector.extract_strided_slice %911 {offsets = [0, 0], sizes = [8, 32], strides = [1, 1]} : vector<8x128xf32> to vector<8x32xf32>
    %917 = arith.negf %916 : vector<8x32xf32>
    %918 = math.exp %917 : vector<8x32xf32>
    %cst_248 = arith.constant 1.000000e+00 : f32
    %919 = vector.broadcast %cst_248 : f32 to vector<8x32xf32>
    %920 = arith.addf %919, %918 : vector<8x32xf32>
    %921 = arith.divf %919, %920 : vector<8x32xf32>
    %922 = vector.extract_strided_slice %911 {offsets = [0, 32], sizes = [8, 32], strides = [1, 1]} : vector<8x128xf32> to vector<8x32xf32>
    %923 = arith.negf %922 : vector<8x32xf32>
    %924 = math.exp %923 : vector<8x32xf32>
    %cst_249 = arith.constant 1.000000e+00 : f32
    %925 = vector.broadcast %cst_249 : f32 to vector<8x32xf32>
    %926 = arith.addf %925, %924 : vector<8x32xf32>
    %927 = arith.divf %925, %926 : vector<8x32xf32>
    %928 = vector.extract_strided_slice %911 {offsets = [0, 64], sizes = [8, 32], strides = [1, 1]} : vector<8x128xf32> to vector<8x32xf32>
    %929 = math.tanh %928 : vector<8x32xf32>
    %930 = vector.extract_strided_slice %911 {offsets = [0, 96], sizes = [8, 32], strides = [1, 1]} : vector<8x128xf32> to vector<8x32xf32>
    %931 = arith.negf %930 : vector<8x32xf32>
    %932 = math.exp %931 : vector<8x32xf32>
    %cst_250 = arith.constant 1.000000e+00 : f32
    %933 = vector.broadcast %cst_250 : f32 to vector<8x32xf32>
    %934 = arith.addf %933, %932 : vector<8x32xf32>
    %935 = arith.divf %933, %934 : vector<8x32xf32>
    %936 = arith.mulf %927, %871 : vector<8x32xf32>
    %937 = arith.mulf %921, %929 : vector<8x32xf32>
    %938 = arith.addf %936, %937 : vector<8x32xf32>
    %939 = math.tanh %938 : vector<8x32xf32>
    %940 = arith.mulf %935, %939 : vector<8x32xf32>
    %941 = vector.extract_strided_slice %915 {offsets = [0, 0], sizes = [8, 32], strides = [1, 1]} : vector<8x128xf32> to vector<8x32xf32>
    %942 = arith.negf %941 : vector<8x32xf32>
    %943 = math.exp %942 : vector<8x32xf32>
    %cst_251 = arith.constant 1.000000e+00 : f32
    %944 = vector.broadcast %cst_251 : f32 to vector<8x32xf32>
    %945 = arith.addf %944, %943 : vector<8x32xf32>
    %946 = arith.divf %944, %945 : vector<8x32xf32>
    %947 = vector.extract_strided_slice %915 {offsets = [0, 32], sizes = [8, 32], strides = [1, 1]} : vector<8x128xf32> to vector<8x32xf32>
    %948 = arith.negf %947 : vector<8x32xf32>
    %949 = math.exp %948 : vector<8x32xf32>
    %cst_252 = arith.constant 1.000000e+00 : f32
    %950 = vector.broadcast %cst_252 : f32 to vector<8x32xf32>
    %951 = arith.addf %950, %949 : vector<8x32xf32>
    %952 = arith.divf %950, %951 : vector<8x32xf32>
    %953 = vector.extract_strided_slice %915 {offsets = [0, 64], sizes = [8, 32], strides = [1, 1]} : vector<8x128xf32> to vector<8x32xf32>
    %954 = math.tanh %953 : vector<8x32xf32>
    %955 = vector.extract_strided_slice %915 {offsets = [0, 96], sizes = [8, 32], strides = [1, 1]} : vector<8x128xf32> to vector<8x32xf32>
    %956 = arith.negf %955 : vector<8x32xf32>
    %957 = math.exp %956 : vector<8x32xf32>
    %cst_253 = arith.constant 1.000000e+00 : f32
    %958 = vector.broadcast %cst_253 : f32 to vector<8x32xf32>
    %959 = arith.addf %958, %957 : vector<8x32xf32>
    %960 = arith.divf %958, %959 : vector<8x32xf32>
    %961 = arith.mulf %952, %896 : vector<8x32xf32>
    %962 = arith.mulf %946, %954 : vector<8x32xf32>
    %963 = arith.addf %961, %962 : vector<8x32xf32>
    %964 = math.tanh %963 : vector<8x32xf32>
    %965 = arith.mulf %960, %964 : vector<8x32xf32>
    %966 = arith.index_cast %904 : i32 to index
    %c0_254 = arith.constant 0 : index
    %967 = vector.load %arg9[%966, %c0_254] : memref<64x32xf32, #tpu.memory_space<vmem>>, vector<8x32xf32>
    tpu.vector_store %arg9[%966, %c0_254], %940 {strides = array<i32>} : memref<64x32xf32, #tpu.memory_space<vmem>>, vector<8x32xf32>,
    %968 = arith.index_cast %907 : i32 to index
    %c0_255 = arith.constant 0 : index
    %969 = vector.load %arg10[%968, %c0_255] : memref<64x32xf32, #tpu.memory_space<vmem>>, vector<8x32xf32>
    tpu.vector_store %arg10[%968, %c0_255], %965 {strides = array<i32>} : memref<64x32xf32, #tpu.memory_space<vmem>>, vector<8x32xf32>,
    %c6_i32_256 = arith.constant 6 : i32
    %c8_i32_257 = arith.constant 8 : i32
    %970 = arith.muli %c6_i32_256, %c8_i32_257 : i32
    %971 = tpu.assume_multiple %970, 8 : i32
    %c7_i32_258 = arith.constant 7 : i32
    %972 = arith.subi %c7_i32_258, %c6_i32_256 : i32
    %c8_i32_259 = arith.constant 8 : i32
    %973 = arith.muli %972, %c8_i32_259 : i32
    %974 = tpu.assume_multiple %973, 8 : i32
    %975 = arith.index_cast %971 : i32 to index
    %c0_260 = arith.constant 0 : index
    %976 = vector.load %arg8[%975, %c0_260] : memref<64x256xf32, #tpu.memory_space<vmem>>, vector<8x128xf32>
    %cst_261 = arith.constant dense<0.000000e+00> : vector<8x128xf32>
    %977 = tpu.matmul %940, %564, %cst_261 {dimension_numbers = #tpu.dot_dimension_numbers<[1], [0], [0], [1], [0, 0, 1, 1], [], []>} : vector<8x32xf32>, vector<32x128xf32>, vector<8x128xf32> -> vector<8x128xf32>
    %978 = arith.addf %976, %977 : vector<8x128xf32>
    %979 = arith.index_cast %974 : i32 to index
    %c128_262 = arith.constant 128 : index
    %980 = vector.load %arg8[%979, %c128_262] : memref<64x256xf32, #tpu.memory_space<vmem>>, vector<8x128xf32>
    %cst_263 = arith.constant dense<0.000000e+00> : vector<8x128xf32>
    %981 = tpu.matmul %965, %566, %cst_263 {dimension_numbers = #tpu.dot_dimension_numbers<[1], [0], [0], [1], [0, 0, 1, 1], [], []>} : vector<8x32xf32>, vector<32x128xf32>, vector<8x128xf32> -> vector<8x128xf32>
    %982 = arith.addf %980, %981 : vector<8x128xf32>
    %983 = vector.extract_strided_slice %978 {offsets = [0, 0], sizes = [8, 32], strides = [1, 1]} : vector<8x128xf32> to vector<8x32xf32>
    %984 = arith.negf %983 : vector<8x32xf32>
    %985 = math.exp %984 : vector<8x32xf32>
    %cst_264 = arith.constant 1.000000e+00 : f32
    %986 = vector.broadcast %cst_264 : f32 to vector<8x32xf32>
    %987 = arith.addf %986, %985 : vector<8x32xf32>
    %988 = arith.divf %986, %987 : vector<8x32xf32>
    %989 = vector.extract_strided_slice %978 {offsets = [0, 32], sizes = [8, 32], strides = [1, 1]} : vector<8x128xf32> to vector<8x32xf32>
    %990 = arith.negf %989 : vector<8x32xf32>
    %991 = math.exp %990 : vector<8x32xf32>
    %cst_265 = arith.constant 1.000000e+00 : f32
    %992 = vector.broadcast %cst_265 : f32 to vector<8x32xf32>
    %993 = arith.addf %992, %991 : vector<8x32xf32>
    %994 = arith.divf %992, %993 : vector<8x32xf32>
    %995 = vector.extract_strided_slice %978 {offsets = [0, 64], sizes = [8, 32], strides = [1, 1]} : vector<8x128xf32> to vector<8x32xf32>
    %996 = math.tanh %995 : vector<8x32xf32>
    %997 = vector.extract_strided_slice %978 {offsets = [0, 96], sizes = [8, 32], strides = [1, 1]} : vector<8x128xf32> to vector<8x32xf32>
    %998 = arith.negf %997 : vector<8x32xf32>
    %999 = math.exp %998 : vector<8x32xf32>
    %cst_266 = arith.constant 1.000000e+00 : f32
    %1000 = vector.broadcast %cst_266 : f32 to vector<8x32xf32>
    %1001 = arith.addf %1000, %999 : vector<8x32xf32>
    %1002 = arith.divf %1000, %1001 : vector<8x32xf32>
    %1003 = arith.mulf %994, %938 : vector<8x32xf32>
    %1004 = arith.mulf %988, %996 : vector<8x32xf32>
    %1005 = arith.addf %1003, %1004 : vector<8x32xf32>
    %1006 = math.tanh %1005 : vector<8x32xf32>
    %1007 = arith.mulf %1002, %1006 : vector<8x32xf32>
    %1008 = vector.extract_strided_slice %982 {offsets = [0, 0], sizes = [8, 32], strides = [1, 1]} : vector<8x128xf32> to vector<8x32xf32>
    %1009 = arith.negf %1008 : vector<8x32xf32>
    %1010 = math.exp %1009 : vector<8x32xf32>
    %cst_267 = arith.constant 1.000000e+00 : f32
    %1011 = vector.broadcast %cst_267 : f32 to vector<8x32xf32>
    %1012 = arith.addf %1011, %1010 : vector<8x32xf32>
    %1013 = arith.divf %1011, %1012 : vector<8x32xf32>
    %1014 = vector.extract_strided_slice %982 {offsets = [0, 32], sizes = [8, 32], strides = [1, 1]} : vector<8x128xf32> to vector<8x32xf32>
    %1015 = arith.negf %1014 : vector<8x32xf32>
    %1016 = math.exp %1015 : vector<8x32xf32>
    %cst_268 = arith.constant 1.000000e+00 : f32
    %1017 = vector.broadcast %cst_268 : f32 to vector<8x32xf32>
    %1018 = arith.addf %1017, %1016 : vector<8x32xf32>
    %1019 = arith.divf %1017, %1018 : vector<8x32xf32>
    %1020 = vector.extract_strided_slice %982 {offsets = [0, 64], sizes = [8, 32], strides = [1, 1]} : vector<8x128xf32> to vector<8x32xf32>
    %1021 = math.tanh %1020 : vector<8x32xf32>
    %1022 = vector.extract_strided_slice %982 {offsets = [0, 96], sizes = [8, 32], strides = [1, 1]} : vector<8x128xf32> to vector<8x32xf32>
    %1023 = arith.negf %1022 : vector<8x32xf32>
    %1024 = math.exp %1023 : vector<8x32xf32>
    %cst_269 = arith.constant 1.000000e+00 : f32
    %1025 = vector.broadcast %cst_269 : f32 to vector<8x32xf32>
    %1026 = arith.addf %1025, %1024 : vector<8x32xf32>
    %1027 = arith.divf %1025, %1026 : vector<8x32xf32>
    %1028 = arith.mulf %1019, %963 : vector<8x32xf32>
    %1029 = arith.mulf %1013, %1021 : vector<8x32xf32>
    %1030 = arith.addf %1028, %1029 : vector<8x32xf32>
    %1031 = math.tanh %1030 : vector<8x32xf32>
    %1032 = arith.mulf %1027, %1031 : vector<8x32xf32>
    %1033 = arith.index_cast %971 : i32 to index
    %c0_270 = arith.constant 0 : index
    %1034 = vector.load %arg9[%1033, %c0_270] : memref<64x32xf32, #tpu.memory_space<vmem>>, vector<8x32xf32>
    tpu.vector_store %arg9[%1033, %c0_270], %1007 {strides = array<i32>} : memref<64x32xf32, #tpu.memory_space<vmem>>, vector<8x32xf32>,
    %1035 = arith.index_cast %974 : i32 to index
    %c0_271 = arith.constant 0 : index
    %1036 = vector.load %arg10[%1035, %c0_271] : memref<64x32xf32, #tpu.memory_space<vmem>>, vector<8x32xf32>
    tpu.vector_store %arg10[%1035, %c0_271], %1032 {strides = array<i32>} : memref<64x32xf32, #tpu.memory_space<vmem>>, vector<8x32xf32>,
    %c7_i32_272 = arith.constant 7 : i32
    %c8_i32_273 = arith.constant 8 : i32
    %1037 = arith.muli %c7_i32_272, %c8_i32_273 : i32
    %1038 = tpu.assume_multiple %1037, 8 : i32
    %c7_i32_274 = arith.constant 7 : i32
    %1039 = arith.subi %c7_i32_274, %c7_i32_272 : i32
    %c8_i32_275 = arith.constant 8 : i32
    %1040 = arith.muli %1039, %c8_i32_275 : i32
    %1041 = tpu.assume_multiple %1040, 8 : i32
    %1042 = arith.index_cast %1038 : i32 to index
    %c0_276 = arith.constant 0 : index
    %1043 = vector.load %arg8[%1042, %c0_276] : memref<64x256xf32, #tpu.memory_space<vmem>>, vector<8x128xf32>
    %cst_277 = arith.constant dense<0.000000e+00> : vector<8x128xf32>
    %1044 = tpu.matmul %1007, %564, %cst_277 {dimension_numbers = #tpu.dot_dimension_numbers<[1], [0], [0], [1], [0, 0, 1, 1], [], []>} : vector<8x32xf32>, vector<32x128xf32>, vector<8x128xf32> -> vector<8x128xf32>
    %1045 = arith.addf %1043, %1044 : vector<8x128xf32>
    %1046 = arith.index_cast %1041 : i32 to index
    %c128_278 = arith.constant 128 : index
    %1047 = vector.load %arg8[%1046, %c128_278] : memref<64x256xf32, #tpu.memory_space<vmem>>, vector<8x128xf32>
    %cst_279 = arith.constant dense<0.000000e+00> : vector<8x128xf32>
    %1048 = tpu.matmul %1032, %566, %cst_279 {dimension_numbers = #tpu.dot_dimension_numbers<[1], [0], [0], [1], [0, 0, 1, 1], [], []>} : vector<8x32xf32>, vector<32x128xf32>, vector<8x128xf32> -> vector<8x128xf32>
    %1049 = arith.addf %1047, %1048 : vector<8x128xf32>
    %1050 = vector.extract_strided_slice %1045 {offsets = [0, 0], sizes = [8, 32], strides = [1, 1]} : vector<8x128xf32> to vector<8x32xf32>
    %1051 = arith.negf %1050 : vector<8x32xf32>
    %1052 = math.exp %1051 : vector<8x32xf32>
    %cst_280 = arith.constant 1.000000e+00 : f32
    %1053 = vector.broadcast %cst_280 : f32 to vector<8x32xf32>
    %1054 = arith.addf %1053, %1052 : vector<8x32xf32>
    %1055 = arith.divf %1053, %1054 : vector<8x32xf32>
    %1056 = vector.extract_strided_slice %1045 {offsets = [0, 32], sizes = [8, 32], strides = [1, 1]} : vector<8x128xf32> to vector<8x32xf32>
    %1057 = arith.negf %1056 : vector<8x32xf32>
    %1058 = math.exp %1057 : vector<8x32xf32>
    %cst_281 = arith.constant 1.000000e+00 : f32
    %1059 = vector.broadcast %cst_281 : f32 to vector<8x32xf32>
    %1060 = arith.addf %1059, %1058 : vector<8x32xf32>
    %1061 = arith.divf %1059, %1060 : vector<8x32xf32>
    %1062 = vector.extract_strided_slice %1045 {offsets = [0, 64], sizes = [8, 32], strides = [1, 1]} : vector<8x128xf32> to vector<8x32xf32>
    %1063 = math.tanh %1062 : vector<8x32xf32>
    %1064 = vector.extract_strided_slice %1045 {offsets = [0, 96], sizes = [8, 32], strides = [1, 1]} : vector<8x128xf32> to vector<8x32xf32>
    %1065 = arith.negf %1064 : vector<8x32xf32>
    %1066 = math.exp %1065 : vector<8x32xf32>
    %cst_282 = arith.constant 1.000000e+00 : f32
    %1067 = vector.broadcast %cst_282 : f32 to vector<8x32xf32>
    %1068 = arith.addf %1067, %1066 : vector<8x32xf32>
    %1069 = arith.divf %1067, %1068 : vector<8x32xf32>
    %1070 = arith.mulf %1061, %1005 : vector<8x32xf32>
    %1071 = arith.mulf %1055, %1063 : vector<8x32xf32>
    %1072 = arith.addf %1070, %1071 : vector<8x32xf32>
    %1073 = math.tanh %1072 : vector<8x32xf32>
    %1074 = arith.mulf %1069, %1073 : vector<8x32xf32>
    %1075 = vector.extract_strided_slice %1049 {offsets = [0, 0], sizes = [8, 32], strides = [1, 1]} : vector<8x128xf32> to vector<8x32xf32>
    %1076 = arith.negf %1075 : vector<8x32xf32>
    %1077 = math.exp %1076 : vector<8x32xf32>
    %cst_283 = arith.constant 1.000000e+00 : f32
    %1078 = vector.broadcast %cst_283 : f32 to vector<8x32xf32>
    %1079 = arith.addf %1078, %1077 : vector<8x32xf32>
    %1080 = arith.divf %1078, %1079 : vector<8x32xf32>
    %1081 = vector.extract_strided_slice %1049 {offsets = [0, 32], sizes = [8, 32], strides = [1, 1]} : vector<8x128xf32> to vector<8x32xf32>
    %1082 = arith.negf %1081 : vector<8x32xf32>
    %1083 = math.exp %1082 : vector<8x32xf32>
    %cst_284 = arith.constant 1.000000e+00 : f32
    %1084 = vector.broadcast %cst_284 : f32 to vector<8x32xf32>
    %1085 = arith.addf %1084, %1083 : vector<8x32xf32>
    %1086 = arith.divf %1084, %1085 : vector<8x32xf32>
    %1087 = vector.extract_strided_slice %1049 {offsets = [0, 64], sizes = [8, 32], strides = [1, 1]} : vector<8x128xf32> to vector<8x32xf32>
    %1088 = math.tanh %1087 : vector<8x32xf32>
    %1089 = vector.extract_strided_slice %1049 {offsets = [0, 96], sizes = [8, 32], strides = [1, 1]} : vector<8x128xf32> to vector<8x32xf32>
    %1090 = arith.negf %1089 : vector<8x32xf32>
    %1091 = math.exp %1090 : vector<8x32xf32>
    %cst_285 = arith.constant 1.000000e+00 : f32
    %1092 = vector.broadcast %cst_285 : f32 to vector<8x32xf32>
    %1093 = arith.addf %1092, %1091 : vector<8x32xf32>
    %1094 = arith.divf %1092, %1093 : vector<8x32xf32>
    %1095 = arith.mulf %1086, %1030 : vector<8x32xf32>
    %1096 = arith.mulf %1080, %1088 : vector<8x32xf32>
    %1097 = arith.addf %1095, %1096 : vector<8x32xf32>
    %1098 = math.tanh %1097 : vector<8x32xf32>
    %1099 = arith.mulf %1094, %1098 : vector<8x32xf32>
    %1100 = arith.index_cast %1038 : i32 to index
    %c0_286 = arith.constant 0 : index
    %1101 = vector.load %arg9[%1100, %c0_286] : memref<64x32xf32, #tpu.memory_space<vmem>>, vector<8x32xf32>
    tpu.vector_store %arg9[%1100, %c0_286], %1074 {strides = array<i32>} : memref<64x32xf32, #tpu.memory_space<vmem>>, vector<8x32xf32>,
    %1102 = arith.index_cast %1041 : i32 to index
    %c0_287 = arith.constant 0 : index
    %1103 = vector.load %arg10[%1102, %c0_287] : memref<64x32xf32, #tpu.memory_space<vmem>>, vector<8x32xf32>
    tpu.vector_store %arg10[%1102, %c0_287], %1099 {strides = array<i32>} : memref<64x32xf32, #tpu.memory_space<vmem>>, vector<8x32xf32>,
    %c8_i32_288 = arith.constant 8 : i32
    %c0_289 = arith.constant 0 : index
    %c0_290 = arith.constant 0 : index
    %1104 = vector.load %arg9[%c0_289, %c0_290] : memref<64x32xf32, #tpu.memory_space<vmem>>, vector<64x32xf32>
    %c1_291 = arith.constant 1 : index
    %c0_292 = arith.constant 0 : index
    %c0_293 = arith.constant 0 : index
    %1105 = vector.load %arg2[%c1_291, %c0_292, %c0_293] : memref<3x64x256xf32, #tpu.memory_space<vmem>>, vector<1x32x256xf32>
    %1106 = vector.shape_cast %1105 : vector<1x32x256xf32> to vector<32x256xf32>
    %cst_294 = arith.constant dense<0.000000e+00> : vector<64x256xf32>
    %1107 = tpu.matmul %1104, %1106, %cst_294 {dimension_numbers = #tpu.dot_dimension_numbers<[1], [0], [0], [1], [0, 0, 1, 1], [], []>} : vector<64x32xf32>, vector<32x256xf32>, vector<64x256xf32> -> vector<64x256xf32>
    %c0_295 = arith.constant 0 : index
    %c0_296 = arith.constant 0 : index
    %1108 = vector.load %arg10[%c0_295, %c0_296] : memref<64x32xf32, #tpu.memory_space<vmem>>, vector<64x32xf32>
    %c1_297 = arith.constant 1 : index
    %c32_298 = arith.constant 32 : index
    %c0_299 = arith.constant 0 : index
    %1109 = vector.load %arg2[%c1_297, %c32_298, %c0_299] : memref<3x64x256xf32, #tpu.memory_space<vmem>>, vector<1x32x256xf32>
    %1110 = vector.shape_cast %1109 : vector<1x32x256xf32> to vector<32x256xf32>
    %cst_300 = arith.constant dense<0.000000e+00> : vector<64x256xf32>
    %1111 = tpu.matmul %1108, %1110, %cst_300 {dimension_numbers = #tpu.dot_dimension_numbers<[1], [0], [0], [1], [0, 0, 1, 1], [], []>} : vector<64x32xf32>, vector<32x256xf32>, vector<64x256xf32> -> vector<64x256xf32>
    %1112 = arith.addf %1107, %1111 : vector<64x256xf32>
    %c2 = arith.constant 2 : index
    %c0_301 = arith.constant 0 : index
    %c0_302 = arith.constant 0 : index
    %1113 = vector.load %arg4[%c2, %c0_301, %c0_302] : memref<4x1x256xf32, #tpu.memory_space<vmem>>, vector<1x1x256xf32>
    %1114 = vector.shape_cast %1113 : vector<1x1x256xf32> to vector<1x256xf32>
    %1115 = vector.broadcast %1114 : vector<1x256xf32> to vector<64x256xf32>
    %1116 = arith.addf %1112, %1115 : vector<64x256xf32>
    %c0_303 = arith.constant 0 : index
    %c0_304 = arith.constant 0 : index
    %1117 = vector.load %arg8[%c0_303, %c0_304] : memref<64x256xf32, #tpu.memory_space<vmem>>, vector<64x256xf32>
    tpu.vector_store %arg8[%c0_303, %c0_304], %1116 {strides = array<i32>} : memref<64x256xf32, #tpu.memory_space<vmem>>, vector<64x256xf32>,
    %c2_305 = arith.constant 2 : index
    %c0_306 = arith.constant 0 : index
    %c0_307 = arith.constant 0 : index
    %c0_308 = arith.constant 0 : index
    %1118 = vector.load %arg3[%c2_305, %c0_306, %c0_307, %c0_308] : memref<4x2x32x128xf32, #tpu.memory_space<vmem>>, vector<1x1x32x128xf32>
    %1119 = vector.shape_cast %1118 : vector<1x1x32x128xf32> to vector<32x128xf32>
    %c2_309 = arith.constant 2 : index
    %c1_310 = arith.constant 1 : index
    %c0_311 = arith.constant 0 : index
    %c0_312 = arith.constant 0 : index
    %1120 = vector.load %arg3[%c2_309, %c1_310, %c0_311, %c0_312] : memref<4x2x32x128xf32, #tpu.memory_space<vmem>>, vector<1x1x32x128xf32>
    %1121 = vector.shape_cast %1120 : vector<1x1x32x128xf32> to vector<32x128xf32>
    %cst_313 = arith.constant 0.000000e+00 : f32
    %1122 = vector.broadcast %cst_313 : f32 to vector<8x32xf32>
    %c0_i32_314 = arith.constant 0 : i32
    %c8_i32_315 = arith.constant 8 : i32
    %1123 = arith.muli %c0_i32_314, %c8_i32_315 : i32
    %1124 = tpu.assume_multiple %1123, 8 : i32
    %c7_i32_316 = arith.constant 7 : i32
    %1125 = arith.subi %c7_i32_316, %c0_i32_314 : i32
    %c8_i32_317 = arith.constant 8 : i32
    %1126 = arith.muli %1125, %c8_i32_317 : i32
    %1127 = tpu.assume_multiple %1126, 8 : i32
    %1128 = arith.index_cast %1124 : i32 to index
    %c0_318 = arith.constant 0 : index
    %1129 = vector.load %arg8[%1128, %c0_318] : memref<64x256xf32, #tpu.memory_space<vmem>>, vector<8x128xf32>
    %cst_319 = arith.constant dense<0.000000e+00> : vector<8x128xf32>
    %1130 = tpu.matmul %1122, %1119, %cst_319 {dimension_numbers = #tpu.dot_dimension_numbers<[1], [0], [0], [1], [0, 0, 1, 1], [], []>} : vector<8x32xf32>, vector<32x128xf32>, vector<8x128xf32> -> vector<8x128xf32>
    %1131 = arith.addf %1129, %1130 : vector<8x128xf32>
    %1132 = arith.index_cast %1127 : i32 to index
    %c128_320 = arith.constant 128 : index
    %1133 = vector.load %arg8[%1132, %c128_320] : memref<64x256xf32, #tpu.memory_space<vmem>>, vector<8x128xf32>
    %cst_321 = arith.constant dense<0.000000e+00> : vector<8x128xf32>
    %1134 = tpu.matmul %1122, %1121, %cst_321 {dimension_numbers = #tpu.dot_dimension_numbers<[1], [0], [0], [1], [0, 0, 1, 1], [], []>} : vector<8x32xf32>, vector<32x128xf32>, vector<8x128xf32> -> vector<8x128xf32>
    %1135 = arith.addf %1133, %1134 : vector<8x128xf32>
    %1136 = vector.extract_strided_slice %1131 {offsets = [0, 0], sizes = [8, 32], strides = [1, 1]} : vector<8x128xf32> to vector<8x32xf32>
    %1137 = arith.negf %1136 : vector<8x32xf32>
    %1138 = math.exp %1137 : vector<8x32xf32>
    %cst_322 = arith.constant 1.000000e+00 : f32
    %1139 = vector.broadcast %cst_322 : f32 to vector<8x32xf32>
    %1140 = arith.addf %1139, %1138 : vector<8x32xf32>
    %1141 = arith.divf %1139, %1140 : vector<8x32xf32>
    %1142 = vector.extract_strided_slice %1131 {offsets = [0, 32], sizes = [8, 32], strides = [1, 1]} : vector<8x128xf32> to vector<8x32xf32>
    %1143 = arith.negf %1142 : vector<8x32xf32>
    %1144 = math.exp %1143 : vector<8x32xf32>
    %cst_323 = arith.constant 1.000000e+00 : f32
    %1145 = vector.broadcast %cst_323 : f32 to vector<8x32xf32>
    %1146 = arith.addf %1145, %1144 : vector<8x32xf32>
    %1147 = arith.divf %1145, %1146 : vector<8x32xf32>
    %1148 = vector.extract_strided_slice %1131 {offsets = [0, 64], sizes = [8, 32], strides = [1, 1]} : vector<8x128xf32> to vector<8x32xf32>
    %1149 = math.tanh %1148 : vector<8x32xf32>
    %1150 = vector.extract_strided_slice %1131 {offsets = [0, 96], sizes = [8, 32], strides = [1, 1]} : vector<8x128xf32> to vector<8x32xf32>
    %1151 = arith.negf %1150 : vector<8x32xf32>
    %1152 = math.exp %1151 : vector<8x32xf32>
    %cst_324 = arith.constant 1.000000e+00 : f32
    %1153 = vector.broadcast %cst_324 : f32 to vector<8x32xf32>
    %1154 = arith.addf %1153, %1152 : vector<8x32xf32>
    %1155 = arith.divf %1153, %1154 : vector<8x32xf32>
    %1156 = arith.mulf %1147, %1122 : vector<8x32xf32>
    %1157 = arith.mulf %1141, %1149 : vector<8x32xf32>
    %1158 = arith.addf %1156, %1157 : vector<8x32xf32>
    %1159 = math.tanh %1158 : vector<8x32xf32>
    %1160 = arith.mulf %1155, %1159 : vector<8x32xf32>
    %1161 = vector.extract_strided_slice %1135 {offsets = [0, 0], sizes = [8, 32], strides = [1, 1]} : vector<8x128xf32> to vector<8x32xf32>
    %1162 = arith.negf %1161 : vector<8x32xf32>
    %1163 = math.exp %1162 : vector<8x32xf32>
    %cst_325 = arith.constant 1.000000e+00 : f32
    %1164 = vector.broadcast %cst_325 : f32 to vector<8x32xf32>
    %1165 = arith.addf %1164, %1163 : vector<8x32xf32>
    %1166 = arith.divf %1164, %1165 : vector<8x32xf32>
    %1167 = vector.extract_strided_slice %1135 {offsets = [0, 32], sizes = [8, 32], strides = [1, 1]} : vector<8x128xf32> to vector<8x32xf32>
    %1168 = arith.negf %1167 : vector<8x32xf32>
    %1169 = math.exp %1168 : vector<8x32xf32>
    %cst_326 = arith.constant 1.000000e+00 : f32
    %1170 = vector.broadcast %cst_326 : f32 to vector<8x32xf32>
    %1171 = arith.addf %1170, %1169 : vector<8x32xf32>
    %1172 = arith.divf %1170, %1171 : vector<8x32xf32>
    %1173 = vector.extract_strided_slice %1135 {offsets = [0, 64], sizes = [8, 32], strides = [1, 1]} : vector<8x128xf32> to vector<8x32xf32>
    %1174 = math.tanh %1173 : vector<8x32xf32>
    %1175 = vector.extract_strided_slice %1135 {offsets = [0, 96], sizes = [8, 32], strides = [1, 1]} : vector<8x128xf32> to vector<8x32xf32>
    %1176 = arith.negf %1175 : vector<8x32xf32>
    %1177 = math.exp %1176 : vector<8x32xf32>
    %cst_327 = arith.constant 1.000000e+00 : f32
    %1178 = vector.broadcast %cst_327 : f32 to vector<8x32xf32>
    %1179 = arith.addf %1178, %1177 : vector<8x32xf32>
    %1180 = arith.divf %1178, %1179 : vector<8x32xf32>
    %1181 = arith.mulf %1172, %1122 : vector<8x32xf32>
    %1182 = arith.mulf %1166, %1174 : vector<8x32xf32>
    %1183 = arith.addf %1181, %1182 : vector<8x32xf32>
    %1184 = math.tanh %1183 : vector<8x32xf32>
    %1185 = arith.mulf %1180, %1184 : vector<8x32xf32>
    %1186 = arith.index_cast %1124 : i32 to index
    %c0_328 = arith.constant 0 : index
    %1187 = vector.load %arg9[%1186, %c0_328] : memref<64x32xf32, #tpu.memory_space<vmem>>, vector<8x32xf32>
    tpu.vector_store %arg9[%1186, %c0_328], %1160 {strides = array<i32>} : memref<64x32xf32, #tpu.memory_space<vmem>>, vector<8x32xf32>,
    %1188 = arith.index_cast %1127 : i32 to index
    %c0_329 = arith.constant 0 : index
    %1189 = vector.load %arg10[%1188, %c0_329] : memref<64x32xf32, #tpu.memory_space<vmem>>, vector<8x32xf32>
    tpu.vector_store %arg10[%1188, %c0_329], %1185 {strides = array<i32>} : memref<64x32xf32, #tpu.memory_space<vmem>>, vector<8x32xf32>,
    %c1_i32_330 = arith.constant 1 : i32
    %c8_i32_331 = arith.constant 8 : i32
    %1190 = arith.muli %c1_i32_330, %c8_i32_331 : i32
    %1191 = tpu.assume_multiple %1190, 8 : i32
    %c7_i32_332 = arith.constant 7 : i32
    %1192 = arith.subi %c7_i32_332, %c1_i32_330 : i32
    %c8_i32_333 = arith.constant 8 : i32
    %1193 = arith.muli %1192, %c8_i32_333 : i32
    %1194 = tpu.assume_multiple %1193, 8 : i32
    %1195 = arith.index_cast %1191 : i32 to index
    %c0_334 = arith.constant 0 : index
    %1196 = vector.load %arg8[%1195, %c0_334] : memref<64x256xf32, #tpu.memory_space<vmem>>, vector<8x128xf32>
    %cst_335 = arith.constant dense<0.000000e+00> : vector<8x128xf32>
    %1197 = tpu.matmul %1160, %1119, %cst_335 {dimension_numbers = #tpu.dot_dimension_numbers<[1], [0], [0], [1], [0, 0, 1, 1], [], []>} : vector<8x32xf32>, vector<32x128xf32>, vector<8x128xf32> -> vector<8x128xf32>
    %1198 = arith.addf %1196, %1197 : vector<8x128xf32>
    %1199 = arith.index_cast %1194 : i32 to index
    %c128_336 = arith.constant 128 : index
    %1200 = vector.load %arg8[%1199, %c128_336] : memref<64x256xf32, #tpu.memory_space<vmem>>, vector<8x128xf32>
    %cst_337 = arith.constant dense<0.000000e+00> : vector<8x128xf32>
    %1201 = tpu.matmul %1185, %1121, %cst_337 {dimension_numbers = #tpu.dot_dimension_numbers<[1], [0], [0], [1], [0, 0, 1, 1], [], []>} : vector<8x32xf32>, vector<32x128xf32>, vector<8x128xf32> -> vector<8x128xf32>
    %1202 = arith.addf %1200, %1201 : vector<8x128xf32>
    %1203 = vector.extract_strided_slice %1198 {offsets = [0, 0], sizes = [8, 32], strides = [1, 1]} : vector<8x128xf32> to vector<8x32xf32>
    %1204 = arith.negf %1203 : vector<8x32xf32>
    %1205 = math.exp %1204 : vector<8x32xf32>
    %cst_338 = arith.constant 1.000000e+00 : f32
    %1206 = vector.broadcast %cst_338 : f32 to vector<8x32xf32>
    %1207 = arith.addf %1206, %1205 : vector<8x32xf32>
    %1208 = arith.divf %1206, %1207 : vector<8x32xf32>
    %1209 = vector.extract_strided_slice %1198 {offsets = [0, 32], sizes = [8, 32], strides = [1, 1]} : vector<8x128xf32> to vector<8x32xf32>
    %1210 = arith.negf %1209 : vector<8x32xf32>
    %1211 = math.exp %1210 : vector<8x32xf32>
    %cst_339 = arith.constant 1.000000e+00 : f32
    %1212 = vector.broadcast %cst_339 : f32 to vector<8x32xf32>
    %1213 = arith.addf %1212, %1211 : vector<8x32xf32>
    %1214 = arith.divf %1212, %1213 : vector<8x32xf32>
    %1215 = vector.extract_strided_slice %1198 {offsets = [0, 64], sizes = [8, 32], strides = [1, 1]} : vector<8x128xf32> to vector<8x32xf32>
    %1216 = math.tanh %1215 : vector<8x32xf32>
    %1217 = vector.extract_strided_slice %1198 {offsets = [0, 96], sizes = [8, 32], strides = [1, 1]} : vector<8x128xf32> to vector<8x32xf32>
    %1218 = arith.negf %1217 : vector<8x32xf32>
    %1219 = math.exp %1218 : vector<8x32xf32>
    %cst_340 = arith.constant 1.000000e+00 : f32
    %1220 = vector.broadcast %cst_340 : f32 to vector<8x32xf32>
    %1221 = arith.addf %1220, %1219 : vector<8x32xf32>
    %1222 = arith.divf %1220, %1221 : vector<8x32xf32>
    %1223 = arith.mulf %1214, %1158 : vector<8x32xf32>
    %1224 = arith.mulf %1208, %1216 : vector<8x32xf32>
    %1225 = arith.addf %1223, %1224 : vector<8x32xf32>
    %1226 = math.tanh %1225 : vector<8x32xf32>
    %1227 = arith.mulf %1222, %1226 : vector<8x32xf32>
    %1228 = vector.extract_strided_slice %1202 {offsets = [0, 0], sizes = [8, 32], strides = [1, 1]} : vector<8x128xf32> to vector<8x32xf32>
    %1229 = arith.negf %1228 : vector<8x32xf32>
    %1230 = math.exp %1229 : vector<8x32xf32>
    %cst_341 = arith.constant 1.000000e+00 : f32
    %1231 = vector.broadcast %cst_341 : f32 to vector<8x32xf32>
    %1232 = arith.addf %1231, %1230 : vector<8x32xf32>
    %1233 = arith.divf %1231, %1232 : vector<8x32xf32>
    %1234 = vector.extract_strided_slice %1202 {offsets = [0, 32], sizes = [8, 32], strides = [1, 1]} : vector<8x128xf32> to vector<8x32xf32>
    %1235 = arith.negf %1234 : vector<8x32xf32>
    %1236 = math.exp %1235 : vector<8x32xf32>
    %cst_342 = arith.constant 1.000000e+00 : f32
    %1237 = vector.broadcast %cst_342 : f32 to vector<8x32xf32>
    %1238 = arith.addf %1237, %1236 : vector<8x32xf32>
    %1239 = arith.divf %1237, %1238 : vector<8x32xf32>
    %1240 = vector.extract_strided_slice %1202 {offsets = [0, 64], sizes = [8, 32], strides = [1, 1]} : vector<8x128xf32> to vector<8x32xf32>
    %1241 = math.tanh %1240 : vector<8x32xf32>
    %1242 = vector.extract_strided_slice %1202 {offsets = [0, 96], sizes = [8, 32], strides = [1, 1]} : vector<8x128xf32> to vector<8x32xf32>
    %1243 = arith.negf %1242 : vector<8x32xf32>
    %1244 = math.exp %1243 : vector<8x32xf32>
    %cst_343 = arith.constant 1.000000e+00 : f32
    %1245 = vector.broadcast %cst_343 : f32 to vector<8x32xf32>
    %1246 = arith.addf %1245, %1244 : vector<8x32xf32>
    %1247 = arith.divf %1245, %1246 : vector<8x32xf32>
    %1248 = arith.mulf %1239, %1183 : vector<8x32xf32>
    %1249 = arith.mulf %1233, %1241 : vector<8x32xf32>
    %1250 = arith.addf %1248, %1249 : vector<8x32xf32>
    %1251 = math.tanh %1250 : vector<8x32xf32>
    %1252 = arith.mulf %1247, %1251 : vector<8x32xf32>
    %1253 = arith.index_cast %1191 : i32 to index
    %c0_344 = arith.constant 0 : index
    %1254 = vector.load %arg9[%1253, %c0_344] : memref<64x32xf32, #tpu.memory_space<vmem>>, vector<8x32xf32>
    tpu.vector_store %arg9[%1253, %c0_344], %1227 {strides = array<i32>} : memref<64x32xf32, #tpu.memory_space<vmem>>, vector<8x32xf32>,
    %1255 = arith.index_cast %1194 : i32 to index
    %c0_345 = arith.constant 0 : index
    %1256 = vector.load %arg10[%1255, %c0_345] : memref<64x32xf32, #tpu.memory_space<vmem>>, vector<8x32xf32>
    tpu.vector_store %arg10[%1255, %c0_345], %1252 {strides = array<i32>} : memref<64x32xf32, #tpu.memory_space<vmem>>, vector<8x32xf32>,
    %c2_i32_346 = arith.constant 2 : i32
    %c8_i32_347 = arith.constant 8 : i32
    %1257 = arith.muli %c2_i32_346, %c8_i32_347 : i32
    %1258 = tpu.assume_multiple %1257, 8 : i32
    %c7_i32_348 = arith.constant 7 : i32
    %1259 = arith.subi %c7_i32_348, %c2_i32_346 : i32
    %c8_i32_349 = arith.constant 8 : i32
    %1260 = arith.muli %1259, %c8_i32_349 : i32
    %1261 = tpu.assume_multiple %1260, 8 : i32
    %1262 = arith.index_cast %1258 : i32 to index
    %c0_350 = arith.constant 0 : index
    %1263 = vector.load %arg8[%1262, %c0_350] : memref<64x256xf32, #tpu.memory_space<vmem>>, vector<8x128xf32>
    %cst_351 = arith.constant dense<0.000000e+00> : vector<8x128xf32>
    %1264 = tpu.matmul %1227, %1119, %cst_351 {dimension_numbers = #tpu.dot_dimension_numbers<[1], [0], [0], [1], [0, 0, 1, 1], [], []>} : vector<8x32xf32>, vector<32x128xf32>, vector<8x128xf32> -> vector<8x128xf32>
    %1265 = arith.addf %1263, %1264 : vector<8x128xf32>
    %1266 = arith.index_cast %1261 : i32 to index
    %c128_352 = arith.constant 128 : index
    %1267 = vector.load %arg8[%1266, %c128_352] : memref<64x256xf32, #tpu.memory_space<vmem>>, vector<8x128xf32>
    %cst_353 = arith.constant dense<0.000000e+00> : vector<8x128xf32>
    %1268 = tpu.matmul %1252, %1121, %cst_353 {dimension_numbers = #tpu.dot_dimension_numbers<[1], [0], [0], [1], [0, 0, 1, 1], [], []>} : vector<8x32xf32>, vector<32x128xf32>, vector<8x128xf32> -> vector<8x128xf32>
    %1269 = arith.addf %1267, %1268 : vector<8x128xf32>
    %1270 = vector.extract_strided_slice %1265 {offsets = [0, 0], sizes = [8, 32], strides = [1, 1]} : vector<8x128xf32> to vector<8x32xf32>
    %1271 = arith.negf %1270 : vector<8x32xf32>
    %1272 = math.exp %1271 : vector<8x32xf32>
    %cst_354 = arith.constant 1.000000e+00 : f32
    %1273 = vector.broadcast %cst_354 : f32 to vector<8x32xf32>
    %1274 = arith.addf %1273, %1272 : vector<8x32xf32>
    %1275 = arith.divf %1273, %1274 : vector<8x32xf32>
    %1276 = vector.extract_strided_slice %1265 {offsets = [0, 32], sizes = [8, 32], strides = [1, 1]} : vector<8x128xf32> to vector<8x32xf32>
    %1277 = arith.negf %1276 : vector<8x32xf32>
    %1278 = math.exp %1277 : vector<8x32xf32>
    %cst_355 = arith.constant 1.000000e+00 : f32
    %1279 = vector.broadcast %cst_355 : f32 to vector<8x32xf32>
    %1280 = arith.addf %1279, %1278 : vector<8x32xf32>
    %1281 = arith.divf %1279, %1280 : vector<8x32xf32>
    %1282 = vector.extract_strided_slice %1265 {offsets = [0, 64], sizes = [8, 32], strides = [1, 1]} : vector<8x128xf32> to vector<8x32xf32>
    %1283 = math.tanh %1282 : vector<8x32xf32>
    %1284 = vector.extract_strided_slice %1265 {offsets = [0, 96], sizes = [8, 32], strides = [1, 1]} : vector<8x128xf32> to vector<8x32xf32>
    %1285 = arith.negf %1284 : vector<8x32xf32>
    %1286 = math.exp %1285 : vector<8x32xf32>
    %cst_356 = arith.constant 1.000000e+00 : f32
    %1287 = vector.broadcast %cst_356 : f32 to vector<8x32xf32>
    %1288 = arith.addf %1287, %1286 : vector<8x32xf32>
    %1289 = arith.divf %1287, %1288 : vector<8x32xf32>
    %1290 = arith.mulf %1281, %1225 : vector<8x32xf32>
    %1291 = arith.mulf %1275, %1283 : vector<8x32xf32>
    %1292 = arith.addf %1290, %1291 : vector<8x32xf32>
    %1293 = math.tanh %1292 : vector<8x32xf32>
    %1294 = arith.mulf %1289, %1293 : vector<8x32xf32>
    %1295 = vector.extract_strided_slice %1269 {offsets = [0, 0], sizes = [8, 32], strides = [1, 1]} : vector<8x128xf32> to vector<8x32xf32>
    %1296 = arith.negf %1295 : vector<8x32xf32>
    %1297 = math.exp %1296 : vector<8x32xf32>
    %cst_357 = arith.constant 1.000000e+00 : f32
    %1298 = vector.broadcast %cst_357 : f32 to vector<8x32xf32>
    %1299 = arith.addf %1298, %1297 : vector<8x32xf32>
    %1300 = arith.divf %1298, %1299 : vector<8x32xf32>
    %1301 = vector.extract_strided_slice %1269 {offsets = [0, 32], sizes = [8, 32], strides = [1, 1]} : vector<8x128xf32> to vector<8x32xf32>
    %1302 = arith.negf %1301 : vector<8x32xf32>
    %1303 = math.exp %1302 : vector<8x32xf32>
    %cst_358 = arith.constant 1.000000e+00 : f32
    %1304 = vector.broadcast %cst_358 : f32 to vector<8x32xf32>
    %1305 = arith.addf %1304, %1303 : vector<8x32xf32>
    %1306 = arith.divf %1304, %1305 : vector<8x32xf32>
    %1307 = vector.extract_strided_slice %1269 {offsets = [0, 64], sizes = [8, 32], strides = [1, 1]} : vector<8x128xf32> to vector<8x32xf32>
    %1308 = math.tanh %1307 : vector<8x32xf32>
    %1309 = vector.extract_strided_slice %1269 {offsets = [0, 96], sizes = [8, 32], strides = [1, 1]} : vector<8x128xf32> to vector<8x32xf32>
    %1310 = arith.negf %1309 : vector<8x32xf32>
    %1311 = math.exp %1310 : vector<8x32xf32>
    %cst_359 = arith.constant 1.000000e+00 : f32
    %1312 = vector.broadcast %cst_359 : f32 to vector<8x32xf32>
    %1313 = arith.addf %1312, %1311 : vector<8x32xf32>
    %1314 = arith.divf %1312, %1313 : vector<8x32xf32>
    %1315 = arith.mulf %1306, %1250 : vector<8x32xf32>
    %1316 = arith.mulf %1300, %1308 : vector<8x32xf32>
    %1317 = arith.addf %1315, %1316 : vector<8x32xf32>
    %1318 = math.tanh %1317 : vector<8x32xf32>
    %1319 = arith.mulf %1314, %1318 : vector<8x32xf32>
    %1320 = arith.index_cast %1258 : i32 to index
    %c0_360 = arith.constant 0 : index
    %1321 = vector.load %arg9[%1320, %c0_360] : memref<64x32xf32, #tpu.memory_space<vmem>>, vector<8x32xf32>
    tpu.vector_store %arg9[%1320, %c0_360], %1294 {strides = array<i32>} : memref<64x32xf32, #tpu.memory_space<vmem>>, vector<8x32xf32>,
    %1322 = arith.index_cast %1261 : i32 to index
    %c0_361 = arith.constant 0 : index
    %1323 = vector.load %arg10[%1322, %c0_361] : memref<64x32xf32, #tpu.memory_space<vmem>>, vector<8x32xf32>
    tpu.vector_store %arg10[%1322, %c0_361], %1319 {strides = array<i32>} : memref<64x32xf32, #tpu.memory_space<vmem>>, vector<8x32xf32>,
    %c3_i32_362 = arith.constant 3 : i32
    %c8_i32_363 = arith.constant 8 : i32
    %1324 = arith.muli %c3_i32_362, %c8_i32_363 : i32
    %1325 = tpu.assume_multiple %1324, 8 : i32
    %c7_i32_364 = arith.constant 7 : i32
    %1326 = arith.subi %c7_i32_364, %c3_i32_362 : i32
    %c8_i32_365 = arith.constant 8 : i32
    %1327 = arith.muli %1326, %c8_i32_365 : i32
    %1328 = tpu.assume_multiple %1327, 8 : i32
    %1329 = arith.index_cast %1325 : i32 to index
    %c0_366 = arith.constant 0 : index
    %1330 = vector.load %arg8[%1329, %c0_366] : memref<64x256xf32, #tpu.memory_space<vmem>>, vector<8x128xf32>
    %cst_367 = arith.constant dense<0.000000e+00> : vector<8x128xf32>
    %1331 = tpu.matmul %1294, %1119, %cst_367 {dimension_numbers = #tpu.dot_dimension_numbers<[1], [0], [0], [1], [0, 0, 1, 1], [], []>} : vector<8x32xf32>, vector<32x128xf32>, vector<8x128xf32> -> vector<8x128xf32>
    %1332 = arith.addf %1330, %1331 : vector<8x128xf32>
    %1333 = arith.index_cast %1328 : i32 to index
    %c128_368 = arith.constant 128 : index
    %1334 = vector.load %arg8[%1333, %c128_368] : memref<64x256xf32, #tpu.memory_space<vmem>>, vector<8x128xf32>
    %cst_369 = arith.constant dense<0.000000e+00> : vector<8x128xf32>
    %1335 = tpu.matmul %1319, %1121, %cst_369 {dimension_numbers = #tpu.dot_dimension_numbers<[1], [0], [0], [1], [0, 0, 1, 1], [], []>} : vector<8x32xf32>, vector<32x128xf32>, vector<8x128xf32> -> vector<8x128xf32>
    %1336 = arith.addf %1334, %1335 : vector<8x128xf32>
    %1337 = vector.extract_strided_slice %1332 {offsets = [0, 0], sizes = [8, 32], strides = [1, 1]} : vector<8x128xf32> to vector<8x32xf32>
    %1338 = arith.negf %1337 : vector<8x32xf32>
    %1339 = math.exp %1338 : vector<8x32xf32>
    %cst_370 = arith.constant 1.000000e+00 : f32
    %1340 = vector.broadcast %cst_370 : f32 to vector<8x32xf32>
    %1341 = arith.addf %1340, %1339 : vector<8x32xf32>
    %1342 = arith.divf %1340, %1341 : vector<8x32xf32>
    %1343 = vector.extract_strided_slice %1332 {offsets = [0, 32], sizes = [8, 32], strides = [1, 1]} : vector<8x128xf32> to vector<8x32xf32>
    %1344 = arith.negf %1343 : vector<8x32xf32>
    %1345 = math.exp %1344 : vector<8x32xf32>
    %cst_371 = arith.constant 1.000000e+00 : f32
    %1346 = vector.broadcast %cst_371 : f32 to vector<8x32xf32>
    %1347 = arith.addf %1346, %1345 : vector<8x32xf32>
    %1348 = arith.divf %1346, %1347 : vector<8x32xf32>
    %1349 = vector.extract_strided_slice %1332 {offsets = [0, 64], sizes = [8, 32], strides = [1, 1]} : vector<8x128xf32> to vector<8x32xf32>
    %1350 = math.tanh %1349 : vector<8x32xf32>
    %1351 = vector.extract_strided_slice %1332 {offsets = [0, 96], sizes = [8, 32], strides = [1, 1]} : vector<8x128xf32> to vector<8x32xf32>
    %1352 = arith.negf %1351 : vector<8x32xf32>
    %1353 = math.exp %1352 : vector<8x32xf32>
    %cst_372 = arith.constant 1.000000e+00 : f32
    %1354 = vector.broadcast %cst_372 : f32 to vector<8x32xf32>
    %1355 = arith.addf %1354, %1353 : vector<8x32xf32>
    %1356 = arith.divf %1354, %1355 : vector<8x32xf32>
    %1357 = arith.mulf %1348, %1292 : vector<8x32xf32>
    %1358 = arith.mulf %1342, %1350 : vector<8x32xf32>
    %1359 = arith.addf %1357, %1358 : vector<8x32xf32>
    %1360 = math.tanh %1359 : vector<8x32xf32>
    %1361 = arith.mulf %1356, %1360 : vector<8x32xf32>
    %1362 = vector.extract_strided_slice %1336 {offsets = [0, 0], sizes = [8, 32], strides = [1, 1]} : vector<8x128xf32> to vector<8x32xf32>
    %1363 = arith.negf %1362 : vector<8x32xf32>
    %1364 = math.exp %1363 : vector<8x32xf32>
    %cst_373 = arith.constant 1.000000e+00 : f32
    %1365 = vector.broadcast %cst_373 : f32 to vector<8x32xf32>
    %1366 = arith.addf %1365, %1364 : vector<8x32xf32>
    %1367 = arith.divf %1365, %1366 : vector<8x32xf32>
    %1368 = vector.extract_strided_slice %1336 {offsets = [0, 32], sizes = [8, 32], strides = [1, 1]} : vector<8x128xf32> to vector<8x32xf32>
    %1369 = arith.negf %1368 : vector<8x32xf32>
    %1370 = math.exp %1369 : vector<8x32xf32>
    %cst_374 = arith.constant 1.000000e+00 : f32
    %1371 = vector.broadcast %cst_374 : f32 to vector<8x32xf32>
    %1372 = arith.addf %1371, %1370 : vector<8x32xf32>
    %1373 = arith.divf %1371, %1372 : vector<8x32xf32>
    %1374 = vector.extract_strided_slice %1336 {offsets = [0, 64], sizes = [8, 32], strides = [1, 1]} : vector<8x128xf32> to vector<8x32xf32>
    %1375 = math.tanh %1374 : vector<8x32xf32>
    %1376 = vector.extract_strided_slice %1336 {offsets = [0, 96], sizes = [8, 32], strides = [1, 1]} : vector<8x128xf32> to vector<8x32xf32>
    %1377 = arith.negf %1376 : vector<8x32xf32>
    %1378 = math.exp %1377 : vector<8x32xf32>
    %cst_375 = arith.constant 1.000000e+00 : f32
    %1379 = vector.broadcast %cst_375 : f32 to vector<8x32xf32>
    %1380 = arith.addf %1379, %1378 : vector<8x32xf32>
    %1381 = arith.divf %1379, %1380 : vector<8x32xf32>
    %1382 = arith.mulf %1373, %1317 : vector<8x32xf32>
    %1383 = arith.mulf %1367, %1375 : vector<8x32xf32>
    %1384 = arith.addf %1382, %1383 : vector<8x32xf32>
    %1385 = math.tanh %1384 : vector<8x32xf32>
    %1386 = arith.mulf %1381, %1385 : vector<8x32xf32>
    %1387 = arith.index_cast %1325 : i32 to index
    %c0_376 = arith.constant 0 : index
    %1388 = vector.load %arg9[%1387, %c0_376] : memref<64x32xf32, #tpu.memory_space<vmem>>, vector<8x32xf32>
    tpu.vector_store %arg9[%1387, %c0_376], %1361 {strides = array<i32>} : memref<64x32xf32, #tpu.memory_space<vmem>>, vector<8x32xf32>,
    %1389 = arith.index_cast %1328 : i32 to index
    %c0_377 = arith.constant 0 : index
    %1390 = vector.load %arg10[%1389, %c0_377] : memref<64x32xf32, #tpu.memory_space<vmem>>, vector<8x32xf32>
    tpu.vector_store %arg10[%1389, %c0_377], %1386 {strides = array<i32>} : memref<64x32xf32, #tpu.memory_space<vmem>>, vector<8x32xf32>,
    %c4_i32_378 = arith.constant 4 : i32
    %c8_i32_379 = arith.constant 8 : i32
    %1391 = arith.muli %c4_i32_378, %c8_i32_379 : i32
    %1392 = tpu.assume_multiple %1391, 8 : i32
    %c7_i32_380 = arith.constant 7 : i32
    %1393 = arith.subi %c7_i32_380, %c4_i32_378 : i32
    %c8_i32_381 = arith.constant 8 : i32
    %1394 = arith.muli %1393, %c8_i32_381 : i32
    %1395 = tpu.assume_multiple %1394, 8 : i32
    %1396 = arith.index_cast %1392 : i32 to index
    %c0_382 = arith.constant 0 : index
    %1397 = vector.load %arg8[%1396, %c0_382] : memref<64x256xf32, #tpu.memory_space<vmem>>, vector<8x128xf32>
    %cst_383 = arith.constant dense<0.000000e+00> : vector<8x128xf32>
    %1398 = tpu.matmul %1361, %1119, %cst_383 {dimension_numbers = #tpu.dot_dimension_numbers<[1], [0], [0], [1], [0, 0, 1, 1], [], []>} : vector<8x32xf32>, vector<32x128xf32>, vector<8x128xf32> -> vector<8x128xf32>
    %1399 = arith.addf %1397, %1398 : vector<8x128xf32>
    %1400 = arith.index_cast %1395 : i32 to index
    %c128_384 = arith.constant 128 : index
    %1401 = vector.load %arg8[%1400, %c128_384] : memref<64x256xf32, #tpu.memory_space<vmem>>, vector<8x128xf32>
    %cst_385 = arith.constant dense<0.000000e+00> : vector<8x128xf32>
    %1402 = tpu.matmul %1386, %1121, %cst_385 {dimension_numbers = #tpu.dot_dimension_numbers<[1], [0], [0], [1], [0, 0, 1, 1], [], []>} : vector<8x32xf32>, vector<32x128xf32>, vector<8x128xf32> -> vector<8x128xf32>
    %1403 = arith.addf %1401, %1402 : vector<8x128xf32>
    %1404 = vector.extract_strided_slice %1399 {offsets = [0, 0], sizes = [8, 32], strides = [1, 1]} : vector<8x128xf32> to vector<8x32xf32>
    %1405 = arith.negf %1404 : vector<8x32xf32>
    %1406 = math.exp %1405 : vector<8x32xf32>
    %cst_386 = arith.constant 1.000000e+00 : f32
    %1407 = vector.broadcast %cst_386 : f32 to vector<8x32xf32>
    %1408 = arith.addf %1407, %1406 : vector<8x32xf32>
    %1409 = arith.divf %1407, %1408 : vector<8x32xf32>
    %1410 = vector.extract_strided_slice %1399 {offsets = [0, 32], sizes = [8, 32], strides = [1, 1]} : vector<8x128xf32> to vector<8x32xf32>
    %1411 = arith.negf %1410 : vector<8x32xf32>
    %1412 = math.exp %1411 : vector<8x32xf32>
    %cst_387 = arith.constant 1.000000e+00 : f32
    %1413 = vector.broadcast %cst_387 : f32 to vector<8x32xf32>
    %1414 = arith.addf %1413, %1412 : vector<8x32xf32>
    %1415 = arith.divf %1413, %1414 : vector<8x32xf32>
    %1416 = vector.extract_strided_slice %1399 {offsets = [0, 64], sizes = [8, 32], strides = [1, 1]} : vector<8x128xf32> to vector<8x32xf32>
    %1417 = math.tanh %1416 : vector<8x32xf32>
    %1418 = vector.extract_strided_slice %1399 {offsets = [0, 96], sizes = [8, 32], strides = [1, 1]} : vector<8x128xf32> to vector<8x32xf32>
    %1419 = arith.negf %1418 : vector<8x32xf32>
    %1420 = math.exp %1419 : vector<8x32xf32>
    %cst_388 = arith.constant 1.000000e+00 : f32
    %1421 = vector.broadcast %cst_388 : f32 to vector<8x32xf32>
    %1422 = arith.addf %1421, %1420 : vector<8x32xf32>
    %1423 = arith.divf %1421, %1422 : vector<8x32xf32>
    %1424 = arith.mulf %1415, %1359 : vector<8x32xf32>
    %1425 = arith.mulf %1409, %1417 : vector<8x32xf32>
    %1426 = arith.addf %1424, %1425 : vector<8x32xf32>
    %1427 = math.tanh %1426 : vector<8x32xf32>
    %1428 = arith.mulf %1423, %1427 : vector<8x32xf32>
    %1429 = vector.extract_strided_slice %1403 {offsets = [0, 0], sizes = [8, 32], strides = [1, 1]} : vector<8x128xf32> to vector<8x32xf32>
    %1430 = arith.negf %1429 : vector<8x32xf32>
    %1431 = math.exp %1430 : vector<8x32xf32>
    %cst_389 = arith.constant 1.000000e+00 : f32
    %1432 = vector.broadcast %cst_389 : f32 to vector<8x32xf32>
    %1433 = arith.addf %1432, %1431 : vector<8x32xf32>
    %1434 = arith.divf %1432, %1433 : vector<8x32xf32>
    %1435 = vector.extract_strided_slice %1403 {offsets = [0, 32], sizes = [8, 32], strides = [1, 1]} : vector<8x128xf32> to vector<8x32xf32>
    %1436 = arith.negf %1435 : vector<8x32xf32>
    %1437 = math.exp %1436 : vector<8x32xf32>
    %cst_390 = arith.constant 1.000000e+00 : f32
    %1438 = vector.broadcast %cst_390 : f32 to vector<8x32xf32>
    %1439 = arith.addf %1438, %1437 : vector<8x32xf32>
    %1440 = arith.divf %1438, %1439 : vector<8x32xf32>
    %1441 = vector.extract_strided_slice %1403 {offsets = [0, 64], sizes = [8, 32], strides = [1, 1]} : vector<8x128xf32> to vector<8x32xf32>
    %1442 = math.tanh %1441 : vector<8x32xf32>
    %1443 = vector.extract_strided_slice %1403 {offsets = [0, 96], sizes = [8, 32], strides = [1, 1]} : vector<8x128xf32> to vector<8x32xf32>
    %1444 = arith.negf %1443 : vector<8x32xf32>
    %1445 = math.exp %1444 : vector<8x32xf32>
    %cst_391 = arith.constant 1.000000e+00 : f32
    %1446 = vector.broadcast %cst_391 : f32 to vector<8x32xf32>
    %1447 = arith.addf %1446, %1445 : vector<8x32xf32>
    %1448 = arith.divf %1446, %1447 : vector<8x32xf32>
    %1449 = arith.mulf %1440, %1384 : vector<8x32xf32>
    %1450 = arith.mulf %1434, %1442 : vector<8x32xf32>
    %1451 = arith.addf %1449, %1450 : vector<8x32xf32>
    %1452 = math.tanh %1451 : vector<8x32xf32>
    %1453 = arith.mulf %1448, %1452 : vector<8x32xf32>
    %1454 = arith.index_cast %1392 : i32 to index
    %c0_392 = arith.constant 0 : index
    %1455 = vector.load %arg9[%1454, %c0_392] : memref<64x32xf32, #tpu.memory_space<vmem>>, vector<8x32xf32>
    tpu.vector_store %arg9[%1454, %c0_392], %1428 {strides = array<i32>} : memref<64x32xf32, #tpu.memory_space<vmem>>, vector<8x32xf32>,
    %1456 = arith.index_cast %1395 : i32 to index
    %c0_393 = arith.constant 0 : index
    %1457 = vector.load %arg10[%1456, %c0_393] : memref<64x32xf32, #tpu.memory_space<vmem>>, vector<8x32xf32>
    tpu.vector_store %arg10[%1456, %c0_393], %1453 {strides = array<i32>} : memref<64x32xf32, #tpu.memory_space<vmem>>, vector<8x32xf32>,
    %c5_i32_394 = arith.constant 5 : i32
    %c8_i32_395 = arith.constant 8 : i32
    %1458 = arith.muli %c5_i32_394, %c8_i32_395 : i32
    %1459 = tpu.assume_multiple %1458, 8 : i32
    %c7_i32_396 = arith.constant 7 : i32
    %1460 = arith.subi %c7_i32_396, %c5_i32_394 : i32
    %c8_i32_397 = arith.constant 8 : i32
    %1461 = arith.muli %1460, %c8_i32_397 : i32
    %1462 = tpu.assume_multiple %1461, 8 : i32
    %1463 = arith.index_cast %1459 : i32 to index
    %c0_398 = arith.constant 0 : index
    %1464 = vector.load %arg8[%1463, %c0_398] : memref<64x256xf32, #tpu.memory_space<vmem>>, vector<8x128xf32>
    %cst_399 = arith.constant dense<0.000000e+00> : vector<8x128xf32>
    %1465 = tpu.matmul %1428, %1119, %cst_399 {dimension_numbers = #tpu.dot_dimension_numbers<[1], [0], [0], [1], [0, 0, 1, 1], [], []>} : vector<8x32xf32>, vector<32x128xf32>, vector<8x128xf32> -> vector<8x128xf32>
    %1466 = arith.addf %1464, %1465 : vector<8x128xf32>
    %1467 = arith.index_cast %1462 : i32 to index
    %c128_400 = arith.constant 128 : index
    %1468 = vector.load %arg8[%1467, %c128_400] : memref<64x256xf32, #tpu.memory_space<vmem>>, vector<8x128xf32>
    %cst_401 = arith.constant dense<0.000000e+00> : vector<8x128xf32>
    %1469 = tpu.matmul %1453, %1121, %cst_401 {dimension_numbers = #tpu.dot_dimension_numbers<[1], [0], [0], [1], [0, 0, 1, 1], [], []>} : vector<8x32xf32>, vector<32x128xf32>, vector<8x128xf32> -> vector<8x128xf32>
    %1470 = arith.addf %1468, %1469 : vector<8x128xf32>
    %1471 = vector.extract_strided_slice %1466 {offsets = [0, 0], sizes = [8, 32], strides = [1, 1]} : vector<8x128xf32> to vector<8x32xf32>
    %1472 = arith.negf %1471 : vector<8x32xf32>
    %1473 = math.exp %1472 : vector<8x32xf32>
    %cst_402 = arith.constant 1.000000e+00 : f32
    %1474 = vector.broadcast %cst_402 : f32 to vector<8x32xf32>
    %1475 = arith.addf %1474, %1473 : vector<8x32xf32>
    %1476 = arith.divf %1474, %1475 : vector<8x32xf32>
    %1477 = vector.extract_strided_slice %1466 {offsets = [0, 32], sizes = [8, 32], strides = [1, 1]} : vector<8x128xf32> to vector<8x32xf32>
    %1478 = arith.negf %1477 : vector<8x32xf32>
    %1479 = math.exp %1478 : vector<8x32xf32>
    %cst_403 = arith.constant 1.000000e+00 : f32
    %1480 = vector.broadcast %cst_403 : f32 to vector<8x32xf32>
    %1481 = arith.addf %1480, %1479 : vector<8x32xf32>
    %1482 = arith.divf %1480, %1481 : vector<8x32xf32>
    %1483 = vector.extract_strided_slice %1466 {offsets = [0, 64], sizes = [8, 32], strides = [1, 1]} : vector<8x128xf32> to vector<8x32xf32>
    %1484 = math.tanh %1483 : vector<8x32xf32>
    %1485 = vector.extract_strided_slice %1466 {offsets = [0, 96], sizes = [8, 32], strides = [1, 1]} : vector<8x128xf32> to vector<8x32xf32>
    %1486 = arith.negf %1485 : vector<8x32xf32>
    %1487 = math.exp %1486 : vector<8x32xf32>
    %cst_404 = arith.constant 1.000000e+00 : f32
    %1488 = vector.broadcast %cst_404 : f32 to vector<8x32xf32>
    %1489 = arith.addf %1488, %1487 : vector<8x32xf32>
    %1490 = arith.divf %1488, %1489 : vector<8x32xf32>
    %1491 = arith.mulf %1482, %1426 : vector<8x32xf32>
    %1492 = arith.mulf %1476, %1484 : vector<8x32xf32>
    %1493 = arith.addf %1491, %1492 : vector<8x32xf32>
    %1494 = math.tanh %1493 : vector<8x32xf32>
    %1495 = arith.mulf %1490, %1494 : vector<8x32xf32>
    %1496 = vector.extract_strided_slice %1470 {offsets = [0, 0], sizes = [8, 32], strides = [1, 1]} : vector<8x128xf32> to vector<8x32xf32>
    %1497 = arith.negf %1496 : vector<8x32xf32>
    %1498 = math.exp %1497 : vector<8x32xf32>
    %cst_405 = arith.constant 1.000000e+00 : f32
    %1499 = vector.broadcast %cst_405 : f32 to vector<8x32xf32>
    %1500 = arith.addf %1499, %1498 : vector<8x32xf32>
    %1501 = arith.divf %1499, %1500 : vector<8x32xf32>
    %1502 = vector.extract_strided_slice %1470 {offsets = [0, 32], sizes = [8, 32], strides = [1, 1]} : vector<8x128xf32> to vector<8x32xf32>
    %1503 = arith.negf %1502 : vector<8x32xf32>
    %1504 = math.exp %1503 : vector<8x32xf32>
    %cst_406 = arith.constant 1.000000e+00 : f32
    %1505 = vector.broadcast %cst_406 : f32 to vector<8x32xf32>
    %1506 = arith.addf %1505, %1504 : vector<8x32xf32>
    %1507 = arith.divf %1505, %1506 : vector<8x32xf32>
    %1508 = vector.extract_strided_slice %1470 {offsets = [0, 64], sizes = [8, 32], strides = [1, 1]} : vector<8x128xf32> to vector<8x32xf32>
    %1509 = math.tanh %1508 : vector<8x32xf32>
    %1510 = vector.extract_strided_slice %1470 {offsets = [0, 96], sizes = [8, 32], strides = [1, 1]} : vector<8x128xf32> to vector<8x32xf32>
    %1511 = arith.negf %1510 : vector<8x32xf32>
    %1512 = math.exp %1511 : vector<8x32xf32>
    %cst_407 = arith.constant 1.000000e+00 : f32
    %1513 = vector.broadcast %cst_407 : f32 to vector<8x32xf32>
    %1514 = arith.addf %1513, %1512 : vector<8x32xf32>
    %1515 = arith.divf %1513, %1514 : vector<8x32xf32>
    %1516 = arith.mulf %1507, %1451 : vector<8x32xf32>
    %1517 = arith.mulf %1501, %1509 : vector<8x32xf32>
    %1518 = arith.addf %1516, %1517 : vector<8x32xf32>
    %1519 = math.tanh %1518 : vector<8x32xf32>
    %1520 = arith.mulf %1515, %1519 : vector<8x32xf32>
    %1521 = arith.index_cast %1459 : i32 to index
    %c0_408 = arith.constant 0 : index
    %1522 = vector.load %arg9[%1521, %c0_408] : memref<64x32xf32, #tpu.memory_space<vmem>>, vector<8x32xf32>
    tpu.vector_store %arg9[%1521, %c0_408], %1495 {strides = array<i32>} : memref<64x32xf32, #tpu.memory_space<vmem>>, vector<8x32xf32>,
    %1523 = arith.index_cast %1462 : i32 to index
    %c0_409 = arith.constant 0 : index
    %1524 = vector.load %arg10[%1523, %c0_409] : memref<64x32xf32, #tpu.memory_space<vmem>>, vector<8x32xf32>
    tpu.vector_store %arg10[%1523, %c0_409], %1520 {strides = array<i32>} : memref<64x32xf32, #tpu.memory_space<vmem>>, vector<8x32xf32>,
    %c6_i32_410 = arith.constant 6 : i32
    %c8_i32_411 = arith.constant 8 : i32
    %1525 = arith.muli %c6_i32_410, %c8_i32_411 : i32
    %1526 = tpu.assume_multiple %1525, 8 : i32
    %c7_i32_412 = arith.constant 7 : i32
    %1527 = arith.subi %c7_i32_412, %c6_i32_410 : i32
    %c8_i32_413 = arith.constant 8 : i32
    %1528 = arith.muli %1527, %c8_i32_413 : i32
    %1529 = tpu.assume_multiple %1528, 8 : i32
    %1530 = arith.index_cast %1526 : i32 to index
    %c0_414 = arith.constant 0 : index
    %1531 = vector.load %arg8[%1530, %c0_414] : memref<64x256xf32, #tpu.memory_space<vmem>>, vector<8x128xf32>
    %cst_415 = arith.constant dense<0.000000e+00> : vector<8x128xf32>
    %1532 = tpu.matmul %1495, %1119, %cst_415 {dimension_numbers = #tpu.dot_dimension_numbers<[1], [0], [0], [1], [0, 0, 1, 1], [], []>} : vector<8x32xf32>, vector<32x128xf32>, vector<8x128xf32> -> vector<8x128xf32>
    %1533 = arith.addf %1531, %1532 : vector<8x128xf32>
    %1534 = arith.index_cast %1529 : i32 to index
    %c128_416 = arith.constant 128 : index
    %1535 = vector.load %arg8[%1534, %c128_416] : memref<64x256xf32, #tpu.memory_space<vmem>>, vector<8x128xf32>
    %cst_417 = arith.constant dense<0.000000e+00> : vector<8x128xf32>
    %1536 = tpu.matmul %1520, %1121, %cst_417 {dimension_numbers = #tpu.dot_dimension_numbers<[1], [0], [0], [1], [0, 0, 1, 1], [], []>} : vector<8x32xf32>, vector<32x128xf32>, vector<8x128xf32> -> vector<8x128xf32>
    %1537 = arith.addf %1535, %1536 : vector<8x128xf32>
    %1538 = vector.extract_strided_slice %1533 {offsets = [0, 0], sizes = [8, 32], strides = [1, 1]} : vector<8x128xf32> to vector<8x32xf32>
    %1539 = arith.negf %1538 : vector<8x32xf32>
    %1540 = math.exp %1539 : vector<8x32xf32>
    %cst_418 = arith.constant 1.000000e+00 : f32
    %1541 = vector.broadcast %cst_418 : f32 to vector<8x32xf32>
    %1542 = arith.addf %1541, %1540 : vector<8x32xf32>
    %1543 = arith.divf %1541, %1542 : vector<8x32xf32>
    %1544 = vector.extract_strided_slice %1533 {offsets = [0, 32], sizes = [8, 32], strides = [1, 1]} : vector<8x128xf32> to vector<8x32xf32>
    %1545 = arith.negf %1544 : vector<8x32xf32>
    %1546 = math.exp %1545 : vector<8x32xf32>
    %cst_419 = arith.constant 1.000000e+00 : f32
    %1547 = vector.broadcast %cst_419 : f32 to vector<8x32xf32>
    %1548 = arith.addf %1547, %1546 : vector<8x32xf32>
    %1549 = arith.divf %1547, %1548 : vector<8x32xf32>
    %1550 = vector.extract_strided_slice %1533 {offsets = [0, 64], sizes = [8, 32], strides = [1, 1]} : vector<8x128xf32> to vector<8x32xf32>
    %1551 = math.tanh %1550 : vector<8x32xf32>
    %1552 = vector.extract_strided_slice %1533 {offsets = [0, 96], sizes = [8, 32], strides = [1, 1]} : vector<8x128xf32> to vector<8x32xf32>
    %1553 = arith.negf %1552 : vector<8x32xf32>
    %1554 = math.exp %1553 : vector<8x32xf32>
    %cst_420 = arith.constant 1.000000e+00 : f32
    %1555 = vector.broadcast %cst_420 : f32 to vector<8x32xf32>
    %1556 = arith.addf %1555, %1554 : vector<8x32xf32>
    %1557 = arith.divf %1555, %1556 : vector<8x32xf32>
    %1558 = arith.mulf %1549, %1493 : vector<8x32xf32>
    %1559 = arith.mulf %1543, %1551 : vector<8x32xf32>
    %1560 = arith.addf %1558, %1559 : vector<8x32xf32>
    %1561 = math.tanh %1560 : vector<8x32xf32>
    %1562 = arith.mulf %1557, %1561 : vector<8x32xf32>
    %1563 = vector.extract_strided_slice %1537 {offsets = [0, 0], sizes = [8, 32], strides = [1, 1]} : vector<8x128xf32> to vector<8x32xf32>
    %1564 = arith.negf %1563 : vector<8x32xf32>
    %1565 = math.exp %1564 : vector<8x32xf32>
    %cst_421 = arith.constant 1.000000e+00 : f32
    %1566 = vector.broadcast %cst_421 : f32 to vector<8x32xf32>
    %1567 = arith.addf %1566, %1565 : vector<8x32xf32>
    %1568 = arith.divf %1566, %1567 : vector<8x32xf32>
    %1569 = vector.extract_strided_slice %1537 {offsets = [0, 32], sizes = [8, 32], strides = [1, 1]} : vector<8x128xf32> to vector<8x32xf32>
    %1570 = arith.negf %1569 : vector<8x32xf32>
    %1571 = math.exp %1570 : vector<8x32xf32>
    %cst_422 = arith.constant 1.000000e+00 : f32
    %1572 = vector.broadcast %cst_422 : f32 to vector<8x32xf32>
    %1573 = arith.addf %1572, %1571 : vector<8x32xf32>
    %1574 = arith.divf %1572, %1573 : vector<8x32xf32>
    %1575 = vector.extract_strided_slice %1537 {offsets = [0, 64], sizes = [8, 32], strides = [1, 1]} : vector<8x128xf32> to vector<8x32xf32>
    %1576 = math.tanh %1575 : vector<8x32xf32>
    %1577 = vector.extract_strided_slice %1537 {offsets = [0, 96], sizes = [8, 32], strides = [1, 1]} : vector<8x128xf32> to vector<8x32xf32>
    %1578 = arith.negf %1577 : vector<8x32xf32>
    %1579 = math.exp %1578 : vector<8x32xf32>
    %cst_423 = arith.constant 1.000000e+00 : f32
    %1580 = vector.broadcast %cst_423 : f32 to vector<8x32xf32>
    %1581 = arith.addf %1580, %1579 : vector<8x32xf32>
    %1582 = arith.divf %1580, %1581 : vector<8x32xf32>
    %1583 = arith.mulf %1574, %1518 : vector<8x32xf32>
    %1584 = arith.mulf %1568, %1576 : vector<8x32xf32>
    %1585 = arith.addf %1583, %1584 : vector<8x32xf32>
    %1586 = math.tanh %1585 : vector<8x32xf32>
    %1587 = arith.mulf %1582, %1586 : vector<8x32xf32>
    %1588 = arith.index_cast %1526 : i32 to index
    %c0_424 = arith.constant 0 : index
    %1589 = vector.load %arg9[%1588, %c0_424] : memref<64x32xf32, #tpu.memory_space<vmem>>, vector<8x32xf32>
    tpu.vector_store %arg9[%1588, %c0_424], %1562 {strides = array<i32>} : memref<64x32xf32, #tpu.memory_space<vmem>>, vector<8x32xf32>,
    %1590 = arith.index_cast %1529 : i32 to index
    %c0_425 = arith.constant 0 : index
    %1591 = vector.load %arg10[%1590, %c0_425] : memref<64x32xf32, #tpu.memory_space<vmem>>, vector<8x32xf32>
    tpu.vector_store %arg10[%1590, %c0_425], %1587 {strides = array<i32>} : memref<64x32xf32, #tpu.memory_space<vmem>>, vector<8x32xf32>,
    %c7_i32_426 = arith.constant 7 : i32
    %c8_i32_427 = arith.constant 8 : i32
    %1592 = arith.muli %c7_i32_426, %c8_i32_427 : i32
    %1593 = tpu.assume_multiple %1592, 8 : i32
    %c7_i32_428 = arith.constant 7 : i32
    %1594 = arith.subi %c7_i32_428, %c7_i32_426 : i32
    %c8_i32_429 = arith.constant 8 : i32
    %1595 = arith.muli %1594, %c8_i32_429 : i32
    %1596 = tpu.assume_multiple %1595, 8 : i32
    %1597 = arith.index_cast %1593 : i32 to index
    %c0_430 = arith.constant 0 : index
    %1598 = vector.load %arg8[%1597, %c0_430] : memref<64x256xf32, #tpu.memory_space<vmem>>, vector<8x128xf32>
    %cst_431 = arith.constant dense<0.000000e+00> : vector<8x128xf32>
    %1599 = tpu.matmul %1562, %1119, %cst_431 {dimension_numbers = #tpu.dot_dimension_numbers<[1], [0], [0], [1], [0, 0, 1, 1], [], []>} : vector<8x32xf32>, vector<32x128xf32>, vector<8x128xf32> -> vector<8x128xf32>
    %1600 = arith.addf %1598, %1599 : vector<8x128xf32>
    %1601 = arith.index_cast %1596 : i32 to index
    %c128_432 = arith.constant 128 : index
    %1602 = vector.load %arg8[%1601, %c128_432] : memref<64x256xf32, #tpu.memory_space<vmem>>, vector<8x128xf32>
    %cst_433 = arith.constant dense<0.000000e+00> : vector<8x128xf32>
    %1603 = tpu.matmul %1587, %1121, %cst_433 {dimension_numbers = #tpu.dot_dimension_numbers<[1], [0], [0], [1], [0, 0, 1, 1], [], []>} : vector<8x32xf32>, vector<32x128xf32>, vector<8x128xf32> -> vector<8x128xf32>
    %1604 = arith.addf %1602, %1603 : vector<8x128xf32>
    %1605 = vector.extract_strided_slice %1600 {offsets = [0, 0], sizes = [8, 32], strides = [1, 1]} : vector<8x128xf32> to vector<8x32xf32>
    %1606 = arith.negf %1605 : vector<8x32xf32>
    %1607 = math.exp %1606 : vector<8x32xf32>
    %cst_434 = arith.constant 1.000000e+00 : f32
    %1608 = vector.broadcast %cst_434 : f32 to vector<8x32xf32>
    %1609 = arith.addf %1608, %1607 : vector<8x32xf32>
    %1610 = arith.divf %1608, %1609 : vector<8x32xf32>
    %1611 = vector.extract_strided_slice %1600 {offsets = [0, 32], sizes = [8, 32], strides = [1, 1]} : vector<8x128xf32> to vector<8x32xf32>
    %1612 = arith.negf %1611 : vector<8x32xf32>
    %1613 = math.exp %1612 : vector<8x32xf32>
    %cst_435 = arith.constant 1.000000e+00 : f32
    %1614 = vector.broadcast %cst_435 : f32 to vector<8x32xf32>
    %1615 = arith.addf %1614, %1613 : vector<8x32xf32>
    %1616 = arith.divf %1614, %1615 : vector<8x32xf32>
    %1617 = vector.extract_strided_slice %1600 {offsets = [0, 64], sizes = [8, 32], strides = [1, 1]} : vector<8x128xf32> to vector<8x32xf32>
    %1618 = math.tanh %1617 : vector<8x32xf32>
    %1619 = vector.extract_strided_slice %1600 {offsets = [0, 96], sizes = [8, 32], strides = [1, 1]} : vector<8x128xf32> to vector<8x32xf32>
    %1620 = arith.negf %1619 : vector<8x32xf32>
    %1621 = math.exp %1620 : vector<8x32xf32>
    %cst_436 = arith.constant 1.000000e+00 : f32
    %1622 = vector.broadcast %cst_436 : f32 to vector<8x32xf32>
    %1623 = arith.addf %1622, %1621 : vector<8x32xf32>
    %1624 = arith.divf %1622, %1623 : vector<8x32xf32>
    %1625 = arith.mulf %1616, %1560 : vector<8x32xf32>
    %1626 = arith.mulf %1610, %1618 : vector<8x32xf32>
    %1627 = arith.addf %1625, %1626 : vector<8x32xf32>
    %1628 = math.tanh %1627 : vector<8x32xf32>
    %1629 = arith.mulf %1624, %1628 : vector<8x32xf32>
    %1630 = vector.extract_strided_slice %1604 {offsets = [0, 0], sizes = [8, 32], strides = [1, 1]} : vector<8x128xf32> to vector<8x32xf32>
    %1631 = arith.negf %1630 : vector<8x32xf32>
    %1632 = math.exp %1631 : vector<8x32xf32>
    %cst_437 = arith.constant 1.000000e+00 : f32
    %1633 = vector.broadcast %cst_437 : f32 to vector<8x32xf32>
    %1634 = arith.addf %1633, %1632 : vector<8x32xf32>
    %1635 = arith.divf %1633, %1634 : vector<8x32xf32>
    %1636 = vector.extract_strided_slice %1604 {offsets = [0, 32], sizes = [8, 32], strides = [1, 1]} : vector<8x128xf32> to vector<8x32xf32>
    %1637 = arith.negf %1636 : vector<8x32xf32>
    %1638 = math.exp %1637 : vector<8x32xf32>
    %cst_438 = arith.constant 1.000000e+00 : f32
    %1639 = vector.broadcast %cst_438 : f32 to vector<8x32xf32>
    %1640 = arith.addf %1639, %1638 : vector<8x32xf32>
    %1641 = arith.divf %1639, %1640 : vector<8x32xf32>
    %1642 = vector.extract_strided_slice %1604 {offsets = [0, 64], sizes = [8, 32], strides = [1, 1]} : vector<8x128xf32> to vector<8x32xf32>
    %1643 = math.tanh %1642 : vector<8x32xf32>
    %1644 = vector.extract_strided_slice %1604 {offsets = [0, 96], sizes = [8, 32], strides = [1, 1]} : vector<8x128xf32> to vector<8x32xf32>
    %1645 = arith.negf %1644 : vector<8x32xf32>
    %1646 = math.exp %1645 : vector<8x32xf32>
    %cst_439 = arith.constant 1.000000e+00 : f32
    %1647 = vector.broadcast %cst_439 : f32 to vector<8x32xf32>
    %1648 = arith.addf %1647, %1646 : vector<8x32xf32>
    %1649 = arith.divf %1647, %1648 : vector<8x32xf32>
    %1650 = arith.mulf %1641, %1585 : vector<8x32xf32>
    %1651 = arith.mulf %1635, %1643 : vector<8x32xf32>
    %1652 = arith.addf %1650, %1651 : vector<8x32xf32>
    %1653 = math.tanh %1652 : vector<8x32xf32>
    %1654 = arith.mulf %1649, %1653 : vector<8x32xf32>
    %1655 = arith.index_cast %1593 : i32 to index
    %c0_440 = arith.constant 0 : index
    %1656 = vector.load %arg9[%1655, %c0_440] : memref<64x32xf32, #tpu.memory_space<vmem>>, vector<8x32xf32>
    tpu.vector_store %arg9[%1655, %c0_440], %1629 {strides = array<i32>} : memref<64x32xf32, #tpu.memory_space<vmem>>, vector<8x32xf32>,
    %1657 = arith.index_cast %1596 : i32 to index
    %c0_441 = arith.constant 0 : index
    %1658 = vector.load %arg10[%1657, %c0_441] : memref<64x32xf32, #tpu.memory_space<vmem>>, vector<8x32xf32>
    tpu.vector_store %arg10[%1657, %c0_441], %1654 {strides = array<i32>} : memref<64x32xf32, #tpu.memory_space<vmem>>, vector<8x32xf32>,
    %c8_i32_442 = arith.constant 8 : i32
    %c0_443 = arith.constant 0 : index
    %c0_444 = arith.constant 0 : index
    %1659 = vector.load %arg9[%c0_443, %c0_444] : memref<64x32xf32, #tpu.memory_space<vmem>>, vector<64x32xf32>
    %c2_445 = arith.constant 2 : index
    %c0_446 = arith.constant 0 : index
    %c0_447 = arith.constant 0 : index
    %1660 = vector.load %arg2[%c2_445, %c0_446, %c0_447] : memref<3x64x256xf32, #tpu.memory_space<vmem>>, vector<1x32x256xf32>
    %1661 = vector.shape_cast %1660 : vector<1x32x256xf32> to vector<32x256xf32>
    %cst_448 = arith.constant dense<0.000000e+00> : vector<64x256xf32>
    %1662 = tpu.matmul %1659, %1661, %cst_448 {dimension_numbers = #tpu.dot_dimension_numbers<[1], [0], [0], [1], [0, 0, 1, 1], [], []>} : vector<64x32xf32>, vector<32x256xf32>, vector<64x256xf32> -> vector<64x256xf32>
    %c0_449 = arith.constant 0 : index
    %c0_450 = arith.constant 0 : index
    %1663 = vector.load %arg10[%c0_449, %c0_450] : memref<64x32xf32, #tpu.memory_space<vmem>>, vector<64x32xf32>
    %c2_451 = arith.constant 2 : index
    %c32_452 = arith.constant 32 : index
    %c0_453 = arith.constant 0 : index
    %1664 = vector.load %arg2[%c2_451, %c32_452, %c0_453] : memref<3x64x256xf32, #tpu.memory_space<vmem>>, vector<1x32x256xf32>
    %1665 = vector.shape_cast %1664 : vector<1x32x256xf32> to vector<32x256xf32>
    %cst_454 = arith.constant dense<0.000000e+00> : vector<64x256xf32>
    %1666 = tpu.matmul %1663, %1665, %cst_454 {dimension_numbers = #tpu.dot_dimension_numbers<[1], [0], [0], [1], [0, 0, 1, 1], [], []>} : vector<64x32xf32>, vector<32x256xf32>, vector<64x256xf32> -> vector<64x256xf32>
    %1667 = arith.addf %1662, %1666 : vector<64x256xf32>
    %c3 = arith.constant 3 : index
    %c0_455 = arith.constant 0 : index
    %c0_456 = arith.constant 0 : index
    %1668 = vector.load %arg4[%c3, %c0_455, %c0_456] : memref<4x1x256xf32, #tpu.memory_space<vmem>>, vector<1x1x256xf32>
    %1669 = vector.shape_cast %1668 : vector<1x1x256xf32> to vector<1x256xf32>
    %1670 = vector.broadcast %1669 : vector<1x256xf32> to vector<64x256xf32>
    %1671 = arith.addf %1667, %1670 : vector<64x256xf32>
    %c0_457 = arith.constant 0 : index
    %c0_458 = arith.constant 0 : index
    %1672 = vector.load %arg8[%c0_457, %c0_458] : memref<64x256xf32, #tpu.memory_space<vmem>>, vector<64x256xf32>
    tpu.vector_store %arg8[%c0_457, %c0_458], %1671 {strides = array<i32>} : memref<64x256xf32, #tpu.memory_space<vmem>>, vector<64x256xf32>,
    %c3_459 = arith.constant 3 : index
    %c0_460 = arith.constant 0 : index
    %c0_461 = arith.constant 0 : index
    %c0_462 = arith.constant 0 : index
    %1673 = vector.load %arg3[%c3_459, %c0_460, %c0_461, %c0_462] : memref<4x2x32x128xf32, #tpu.memory_space<vmem>>, vector<1x1x32x128xf32>
    %1674 = vector.shape_cast %1673 : vector<1x1x32x128xf32> to vector<32x128xf32>
    %c3_463 = arith.constant 3 : index
    %c1_464 = arith.constant 1 : index
    %c0_465 = arith.constant 0 : index
    %c0_466 = arith.constant 0 : index
    %1675 = vector.load %arg3[%c3_463, %c1_464, %c0_465, %c0_466] : memref<4x2x32x128xf32, #tpu.memory_space<vmem>>, vector<1x1x32x128xf32>
    %1676 = vector.shape_cast %1675 : vector<1x1x32x128xf32> to vector<32x128xf32>
    %cst_467 = arith.constant 0.000000e+00 : f32
    %1677 = vector.broadcast %cst_467 : f32 to vector<8x32xf32>
    %c0_i32_468 = arith.constant 0 : i32
    %c8_i32_469 = arith.constant 8 : i32
    %1678 = arith.muli %c0_i32_468, %c8_i32_469 : i32
    %1679 = tpu.assume_multiple %1678, 8 : i32
    %c7_i32_470 = arith.constant 7 : i32
    %1680 = arith.subi %c7_i32_470, %c0_i32_468 : i32
    %c8_i32_471 = arith.constant 8 : i32
    %1681 = arith.muli %1680, %c8_i32_471 : i32
    %1682 = tpu.assume_multiple %1681, 8 : i32
    %1683 = arith.index_cast %1679 : i32 to index
    %c0_472 = arith.constant 0 : index
    %1684 = vector.load %arg8[%1683, %c0_472] : memref<64x256xf32, #tpu.memory_space<vmem>>, vector<8x128xf32>
    %cst_473 = arith.constant dense<0.000000e+00> : vector<8x128xf32>
    %1685 = tpu.matmul %1677, %1674, %cst_473 {dimension_numbers = #tpu.dot_dimension_numbers<[1], [0], [0], [1], [0, 0, 1, 1], [], []>} : vector<8x32xf32>, vector<32x128xf32>, vector<8x128xf32> -> vector<8x128xf32>
    %1686 = arith.addf %1684, %1685 : vector<8x128xf32>
    %1687 = arith.index_cast %1682 : i32 to index
    %c128_474 = arith.constant 128 : index
    %1688 = vector.load %arg8[%1687, %c128_474] : memref<64x256xf32, #tpu.memory_space<vmem>>, vector<8x128xf32>
    %cst_475 = arith.constant dense<0.000000e+00> : vector<8x128xf32>
    %1689 = tpu.matmul %1677, %1676, %cst_475 {dimension_numbers = #tpu.dot_dimension_numbers<[1], [0], [0], [1], [0, 0, 1, 1], [], []>} : vector<8x32xf32>, vector<32x128xf32>, vector<8x128xf32> -> vector<8x128xf32>
    %1690 = arith.addf %1688, %1689 : vector<8x128xf32>
    %1691 = vector.extract_strided_slice %1686 {offsets = [0, 0], sizes = [8, 32], strides = [1, 1]} : vector<8x128xf32> to vector<8x32xf32>
    %1692 = arith.negf %1691 : vector<8x32xf32>
    %1693 = math.exp %1692 : vector<8x32xf32>
    %cst_476 = arith.constant 1.000000e+00 : f32
    %1694 = vector.broadcast %cst_476 : f32 to vector<8x32xf32>
    %1695 = arith.addf %1694, %1693 : vector<8x32xf32>
    %1696 = arith.divf %1694, %1695 : vector<8x32xf32>
    %1697 = vector.extract_strided_slice %1686 {offsets = [0, 32], sizes = [8, 32], strides = [1, 1]} : vector<8x128xf32> to vector<8x32xf32>
    %1698 = arith.negf %1697 : vector<8x32xf32>
    %1699 = math.exp %1698 : vector<8x32xf32>
    %cst_477 = arith.constant 1.000000e+00 : f32
    %1700 = vector.broadcast %cst_477 : f32 to vector<8x32xf32>
    %1701 = arith.addf %1700, %1699 : vector<8x32xf32>
    %1702 = arith.divf %1700, %1701 : vector<8x32xf32>
    %1703 = vector.extract_strided_slice %1686 {offsets = [0, 64], sizes = [8, 32], strides = [1, 1]} : vector<8x128xf32> to vector<8x32xf32>
    %1704 = math.tanh %1703 : vector<8x32xf32>
    %1705 = vector.extract_strided_slice %1686 {offsets = [0, 96], sizes = [8, 32], strides = [1, 1]} : vector<8x128xf32> to vector<8x32xf32>
    %1706 = arith.negf %1705 : vector<8x32xf32>
    %1707 = math.exp %1706 : vector<8x32xf32>
    %cst_478 = arith.constant 1.000000e+00 : f32
    %1708 = vector.broadcast %cst_478 : f32 to vector<8x32xf32>
    %1709 = arith.addf %1708, %1707 : vector<8x32xf32>
    %1710 = arith.divf %1708, %1709 : vector<8x32xf32>
    %1711 = arith.mulf %1702, %1677 : vector<8x32xf32>
    %1712 = arith.mulf %1696, %1704 : vector<8x32xf32>
    %1713 = arith.addf %1711, %1712 : vector<8x32xf32>
    %1714 = math.tanh %1713 : vector<8x32xf32>
    %1715 = arith.mulf %1710, %1714 : vector<8x32xf32>
    %1716 = vector.extract_strided_slice %1690 {offsets = [0, 0], sizes = [8, 32], strides = [1, 1]} : vector<8x128xf32> to vector<8x32xf32>
    %1717 = arith.negf %1716 : vector<8x32xf32>
    %1718 = math.exp %1717 : vector<8x32xf32>
    %cst_479 = arith.constant 1.000000e+00 : f32
    %1719 = vector.broadcast %cst_479 : f32 to vector<8x32xf32>
    %1720 = arith.addf %1719, %1718 : vector<8x32xf32>
    %1721 = arith.divf %1719, %1720 : vector<8x32xf32>
    %1722 = vector.extract_strided_slice %1690 {offsets = [0, 32], sizes = [8, 32], strides = [1, 1]} : vector<8x128xf32> to vector<8x32xf32>
    %1723 = arith.negf %1722 : vector<8x32xf32>
    %1724 = math.exp %1723 : vector<8x32xf32>
    %cst_480 = arith.constant 1.000000e+00 : f32
    %1725 = vector.broadcast %cst_480 : f32 to vector<8x32xf32>
    %1726 = arith.addf %1725, %1724 : vector<8x32xf32>
    %1727 = arith.divf %1725, %1726 : vector<8x32xf32>
    %1728 = vector.extract_strided_slice %1690 {offsets = [0, 64], sizes = [8, 32], strides = [1, 1]} : vector<8x128xf32> to vector<8x32xf32>
    %1729 = math.tanh %1728 : vector<8x32xf32>
    %1730 = vector.extract_strided_slice %1690 {offsets = [0, 96], sizes = [8, 32], strides = [1, 1]} : vector<8x128xf32> to vector<8x32xf32>
    %1731 = arith.negf %1730 : vector<8x32xf32>
    %1732 = math.exp %1731 : vector<8x32xf32>
    %cst_481 = arith.constant 1.000000e+00 : f32
    %1733 = vector.broadcast %cst_481 : f32 to vector<8x32xf32>
    %1734 = arith.addf %1733, %1732 : vector<8x32xf32>
    %1735 = arith.divf %1733, %1734 : vector<8x32xf32>
    %1736 = arith.mulf %1727, %1677 : vector<8x32xf32>
    %1737 = arith.mulf %1721, %1729 : vector<8x32xf32>
    %1738 = arith.addf %1736, %1737 : vector<8x32xf32>
    %1739 = math.tanh %1738 : vector<8x32xf32>
    %1740 = arith.mulf %1735, %1739 : vector<8x32xf32>
    %c1_i32_482 = arith.constant 1 : i32
    %c8_i32_483 = arith.constant 8 : i32
    %1741 = arith.muli %c1_i32_482, %c8_i32_483 : i32
    %1742 = tpu.assume_multiple %1741, 8 : i32
    %c7_i32_484 = arith.constant 7 : i32
    %1743 = arith.subi %c7_i32_484, %c1_i32_482 : i32
    %c8_i32_485 = arith.constant 8 : i32
    %1744 = arith.muli %1743, %c8_i32_485 : i32
    %1745 = tpu.assume_multiple %1744, 8 : i32
    %1746 = arith.index_cast %1742 : i32 to index
    %c0_486 = arith.constant 0 : index
    %1747 = vector.load %arg8[%1746, %c0_486] : memref<64x256xf32, #tpu.memory_space<vmem>>, vector<8x128xf32>
    %cst_487 = arith.constant dense<0.000000e+00> : vector<8x128xf32>
    %1748 = tpu.matmul %1715, %1674, %cst_487 {dimension_numbers = #tpu.dot_dimension_numbers<[1], [0], [0], [1], [0, 0, 1, 1], [], []>} : vector<8x32xf32>, vector<32x128xf32>, vector<8x128xf32> -> vector<8x128xf32>
    %1749 = arith.addf %1747, %1748 : vector<8x128xf32>
    %1750 = arith.index_cast %1745 : i32 to index
    %c128_488 = arith.constant 128 : index
    %1751 = vector.load %arg8[%1750, %c128_488] : memref<64x256xf32, #tpu.memory_space<vmem>>, vector<8x128xf32>
    %cst_489 = arith.constant dense<0.000000e+00> : vector<8x128xf32>
    %1752 = tpu.matmul %1740, %1676, %cst_489 {dimension_numbers = #tpu.dot_dimension_numbers<[1], [0], [0], [1], [0, 0, 1, 1], [], []>} : vector<8x32xf32>, vector<32x128xf32>, vector<8x128xf32> -> vector<8x128xf32>
    %1753 = arith.addf %1751, %1752 : vector<8x128xf32>
    %1754 = vector.extract_strided_slice %1749 {offsets = [0, 0], sizes = [8, 32], strides = [1, 1]} : vector<8x128xf32> to vector<8x32xf32>
    %1755 = arith.negf %1754 : vector<8x32xf32>
    %1756 = math.exp %1755 : vector<8x32xf32>
    %cst_490 = arith.constant 1.000000e+00 : f32
    %1757 = vector.broadcast %cst_490 : f32 to vector<8x32xf32>
    %1758 = arith.addf %1757, %1756 : vector<8x32xf32>
    %1759 = arith.divf %1757, %1758 : vector<8x32xf32>
    %1760 = vector.extract_strided_slice %1749 {offsets = [0, 32], sizes = [8, 32], strides = [1, 1]} : vector<8x128xf32> to vector<8x32xf32>
    %1761 = arith.negf %1760 : vector<8x32xf32>
    %1762 = math.exp %1761 : vector<8x32xf32>
    %cst_491 = arith.constant 1.000000e+00 : f32
    %1763 = vector.broadcast %cst_491 : f32 to vector<8x32xf32>
    %1764 = arith.addf %1763, %1762 : vector<8x32xf32>
    %1765 = arith.divf %1763, %1764 : vector<8x32xf32>
    %1766 = vector.extract_strided_slice %1749 {offsets = [0, 64], sizes = [8, 32], strides = [1, 1]} : vector<8x128xf32> to vector<8x32xf32>
    %1767 = math.tanh %1766 : vector<8x32xf32>
    %1768 = vector.extract_strided_slice %1749 {offsets = [0, 96], sizes = [8, 32], strides = [1, 1]} : vector<8x128xf32> to vector<8x32xf32>
    %1769 = arith.negf %1768 : vector<8x32xf32>
    %1770 = math.exp %1769 : vector<8x32xf32>
    %cst_492 = arith.constant 1.000000e+00 : f32
    %1771 = vector.broadcast %cst_492 : f32 to vector<8x32xf32>
    %1772 = arith.addf %1771, %1770 : vector<8x32xf32>
    %1773 = arith.divf %1771, %1772 : vector<8x32xf32>
    %1774 = arith.mulf %1765, %1713 : vector<8x32xf32>
    %1775 = arith.mulf %1759, %1767 : vector<8x32xf32>
    %1776 = arith.addf %1774, %1775 : vector<8x32xf32>
    %1777 = math.tanh %1776 : vector<8x32xf32>
    %1778 = arith.mulf %1773, %1777 : vector<8x32xf32>
    %1779 = vector.extract_strided_slice %1753 {offsets = [0, 0], sizes = [8, 32], strides = [1, 1]} : vector<8x128xf32> to vector<8x32xf32>
    %1780 = arith.negf %1779 : vector<8x32xf32>
    %1781 = math.exp %1780 : vector<8x32xf32>
    %cst_493 = arith.constant 1.000000e+00 : f32
    %1782 = vector.broadcast %cst_493 : f32 to vector<8x32xf32>
    %1783 = arith.addf %1782, %1781 : vector<8x32xf32>
    %1784 = arith.divf %1782, %1783 : vector<8x32xf32>
    %1785 = vector.extract_strided_slice %1753 {offsets = [0, 32], sizes = [8, 32], strides = [1, 1]} : vector<8x128xf32> to vector<8x32xf32>
    %1786 = arith.negf %1785 : vector<8x32xf32>
    %1787 = math.exp %1786 : vector<8x32xf32>
    %cst_494 = arith.constant 1.000000e+00 : f32
    %1788 = vector.broadcast %cst_494 : f32 to vector<8x32xf32>
    %1789 = arith.addf %1788, %1787 : vector<8x32xf32>
    %1790 = arith.divf %1788, %1789 : vector<8x32xf32>
    %1791 = vector.extract_strided_slice %1753 {offsets = [0, 64], sizes = [8, 32], strides = [1, 1]} : vector<8x128xf32> to vector<8x32xf32>
    %1792 = math.tanh %1791 : vector<8x32xf32>
    %1793 = vector.extract_strided_slice %1753 {offsets = [0, 96], sizes = [8, 32], strides = [1, 1]} : vector<8x128xf32> to vector<8x32xf32>
    %1794 = arith.negf %1793 : vector<8x32xf32>
    %1795 = math.exp %1794 : vector<8x32xf32>
    %cst_495 = arith.constant 1.000000e+00 : f32
    %1796 = vector.broadcast %cst_495 : f32 to vector<8x32xf32>
    %1797 = arith.addf %1796, %1795 : vector<8x32xf32>
    %1798 = arith.divf %1796, %1797 : vector<8x32xf32>
    %1799 = arith.mulf %1790, %1738 : vector<8x32xf32>
    %1800 = arith.mulf %1784, %1792 : vector<8x32xf32>
    %1801 = arith.addf %1799, %1800 : vector<8x32xf32>
    %1802 = math.tanh %1801 : vector<8x32xf32>
    %1803 = arith.mulf %1798, %1802 : vector<8x32xf32>
    %c2_i32_496 = arith.constant 2 : i32
    %c8_i32_497 = arith.constant 8 : i32
    %1804 = arith.muli %c2_i32_496, %c8_i32_497 : i32
    %1805 = tpu.assume_multiple %1804, 8 : i32
    %c7_i32_498 = arith.constant 7 : i32
    %1806 = arith.subi %c7_i32_498, %c2_i32_496 : i32
    %c8_i32_499 = arith.constant 8 : i32
    %1807 = arith.muli %1806, %c8_i32_499 : i32
    %1808 = tpu.assume_multiple %1807, 8 : i32
    %1809 = arith.index_cast %1805 : i32 to index
    %c0_500 = arith.constant 0 : index
    %1810 = vector.load %arg8[%1809, %c0_500] : memref<64x256xf32, #tpu.memory_space<vmem>>, vector<8x128xf32>
    %cst_501 = arith.constant dense<0.000000e+00> : vector<8x128xf32>
    %1811 = tpu.matmul %1778, %1674, %cst_501 {dimension_numbers = #tpu.dot_dimension_numbers<[1], [0], [0], [1], [0, 0, 1, 1], [], []>} : vector<8x32xf32>, vector<32x128xf32>, vector<8x128xf32> -> vector<8x128xf32>
    %1812 = arith.addf %1810, %1811 : vector<8x128xf32>
    %1813 = arith.index_cast %1808 : i32 to index
    %c128_502 = arith.constant 128 : index
    %1814 = vector.load %arg8[%1813, %c128_502] : memref<64x256xf32, #tpu.memory_space<vmem>>, vector<8x128xf32>
    %cst_503 = arith.constant dense<0.000000e+00> : vector<8x128xf32>
    %1815 = tpu.matmul %1803, %1676, %cst_503 {dimension_numbers = #tpu.dot_dimension_numbers<[1], [0], [0], [1], [0, 0, 1, 1], [], []>} : vector<8x32xf32>, vector<32x128xf32>, vector<8x128xf32> -> vector<8x128xf32>
    %1816 = arith.addf %1814, %1815 : vector<8x128xf32>
    %1817 = vector.extract_strided_slice %1812 {offsets = [0, 0], sizes = [8, 32], strides = [1, 1]} : vector<8x128xf32> to vector<8x32xf32>
    %1818 = arith.negf %1817 : vector<8x32xf32>
    %1819 = math.exp %1818 : vector<8x32xf32>
    %cst_504 = arith.constant 1.000000e+00 : f32
    %1820 = vector.broadcast %cst_504 : f32 to vector<8x32xf32>
    %1821 = arith.addf %1820, %1819 : vector<8x32xf32>
    %1822 = arith.divf %1820, %1821 : vector<8x32xf32>
    %1823 = vector.extract_strided_slice %1812 {offsets = [0, 32], sizes = [8, 32], strides = [1, 1]} : vector<8x128xf32> to vector<8x32xf32>
    %1824 = arith.negf %1823 : vector<8x32xf32>
    %1825 = math.exp %1824 : vector<8x32xf32>
    %cst_505 = arith.constant 1.000000e+00 : f32
    %1826 = vector.broadcast %cst_505 : f32 to vector<8x32xf32>
    %1827 = arith.addf %1826, %1825 : vector<8x32xf32>
    %1828 = arith.divf %1826, %1827 : vector<8x32xf32>
    %1829 = vector.extract_strided_slice %1812 {offsets = [0, 64], sizes = [8, 32], strides = [1, 1]} : vector<8x128xf32> to vector<8x32xf32>
    %1830 = math.tanh %1829 : vector<8x32xf32>
    %1831 = vector.extract_strided_slice %1812 {offsets = [0, 96], sizes = [8, 32], strides = [1, 1]} : vector<8x128xf32> to vector<8x32xf32>
    %1832 = arith.negf %1831 : vector<8x32xf32>
    %1833 = math.exp %1832 : vector<8x32xf32>
    %cst_506 = arith.constant 1.000000e+00 : f32
    %1834 = vector.broadcast %cst_506 : f32 to vector<8x32xf32>
    %1835 = arith.addf %1834, %1833 : vector<8x32xf32>
    %1836 = arith.divf %1834, %1835 : vector<8x32xf32>
    %1837 = arith.mulf %1828, %1776 : vector<8x32xf32>
    %1838 = arith.mulf %1822, %1830 : vector<8x32xf32>
    %1839 = arith.addf %1837, %1838 : vector<8x32xf32>
    %1840 = math.tanh %1839 : vector<8x32xf32>
    %1841 = arith.mulf %1836, %1840 : vector<8x32xf32>
    %1842 = vector.extract_strided_slice %1816 {offsets = [0, 0], sizes = [8, 32], strides = [1, 1]} : vector<8x128xf32> to vector<8x32xf32>
    %1843 = arith.negf %1842 : vector<8x32xf32>
    %1844 = math.exp %1843 : vector<8x32xf32>
    %cst_507 = arith.constant 1.000000e+00 : f32
    %1845 = vector.broadcast %cst_507 : f32 to vector<8x32xf32>
    %1846 = arith.addf %1845, %1844 : vector<8x32xf32>
    %1847 = arith.divf %1845, %1846 : vector<8x32xf32>
    %1848 = vector.extract_strided_slice %1816 {offsets = [0, 32], sizes = [8, 32], strides = [1, 1]} : vector<8x128xf32> to vector<8x32xf32>
    %1849 = arith.negf %1848 : vector<8x32xf32>
    %1850 = math.exp %1849 : vector<8x32xf32>
    %cst_508 = arith.constant 1.000000e+00 : f32
    %1851 = vector.broadcast %cst_508 : f32 to vector<8x32xf32>
    %1852 = arith.addf %1851, %1850 : vector<8x32xf32>
    %1853 = arith.divf %1851, %1852 : vector<8x32xf32>
    %1854 = vector.extract_strided_slice %1816 {offsets = [0, 64], sizes = [8, 32], strides = [1, 1]} : vector<8x128xf32> to vector<8x32xf32>
    %1855 = math.tanh %1854 : vector<8x32xf32>
    %1856 = vector.extract_strided_slice %1816 {offsets = [0, 96], sizes = [8, 32], strides = [1, 1]} : vector<8x128xf32> to vector<8x32xf32>
    %1857 = arith.negf %1856 : vector<8x32xf32>
    %1858 = math.exp %1857 : vector<8x32xf32>
    %cst_509 = arith.constant 1.000000e+00 : f32
    %1859 = vector.broadcast %cst_509 : f32 to vector<8x32xf32>
    %1860 = arith.addf %1859, %1858 : vector<8x32xf32>
    %1861 = arith.divf %1859, %1860 : vector<8x32xf32>
    %1862 = arith.mulf %1853, %1801 : vector<8x32xf32>
    %1863 = arith.mulf %1847, %1855 : vector<8x32xf32>
    %1864 = arith.addf %1862, %1863 : vector<8x32xf32>
    %1865 = math.tanh %1864 : vector<8x32xf32>
    %1866 = arith.mulf %1861, %1865 : vector<8x32xf32>
    %c3_i32_510 = arith.constant 3 : i32
    %c8_i32_511 = arith.constant 8 : i32
    %1867 = arith.muli %c3_i32_510, %c8_i32_511 : i32
    %1868 = tpu.assume_multiple %1867, 8 : i32
    %c7_i32_512 = arith.constant 7 : i32
    %1869 = arith.subi %c7_i32_512, %c3_i32_510 : i32
    %c8_i32_513 = arith.constant 8 : i32
    %1870 = arith.muli %1869, %c8_i32_513 : i32
    %1871 = tpu.assume_multiple %1870, 8 : i32
    %1872 = arith.index_cast %1868 : i32 to index
    %c0_514 = arith.constant 0 : index
    %1873 = vector.load %arg8[%1872, %c0_514] : memref<64x256xf32, #tpu.memory_space<vmem>>, vector<8x128xf32>
    %cst_515 = arith.constant dense<0.000000e+00> : vector<8x128xf32>
    %1874 = tpu.matmul %1841, %1674, %cst_515 {dimension_numbers = #tpu.dot_dimension_numbers<[1], [0], [0], [1], [0, 0, 1, 1], [], []>} : vector<8x32xf32>, vector<32x128xf32>, vector<8x128xf32> -> vector<8x128xf32>
    %1875 = arith.addf %1873, %1874 : vector<8x128xf32>
    %1876 = arith.index_cast %1871 : i32 to index
    %c128_516 = arith.constant 128 : index
    %1877 = vector.load %arg8[%1876, %c128_516] : memref<64x256xf32, #tpu.memory_space<vmem>>, vector<8x128xf32>
    %cst_517 = arith.constant dense<0.000000e+00> : vector<8x128xf32>
    %1878 = tpu.matmul %1866, %1676, %cst_517 {dimension_numbers = #tpu.dot_dimension_numbers<[1], [0], [0], [1], [0, 0, 1, 1], [], []>} : vector<8x32xf32>, vector<32x128xf32>, vector<8x128xf32> -> vector<8x128xf32>
    %1879 = arith.addf %1877, %1878 : vector<8x128xf32>
    %1880 = vector.extract_strided_slice %1875 {offsets = [0, 0], sizes = [8, 32], strides = [1, 1]} : vector<8x128xf32> to vector<8x32xf32>
    %1881 = arith.negf %1880 : vector<8x32xf32>
    %1882 = math.exp %1881 : vector<8x32xf32>
    %cst_518 = arith.constant 1.000000e+00 : f32
    %1883 = vector.broadcast %cst_518 : f32 to vector<8x32xf32>
    %1884 = arith.addf %1883, %1882 : vector<8x32xf32>
    %1885 = arith.divf %1883, %1884 : vector<8x32xf32>
    %1886 = vector.extract_strided_slice %1875 {offsets = [0, 32], sizes = [8, 32], strides = [1, 1]} : vector<8x128xf32> to vector<8x32xf32>
    %1887 = arith.negf %1886 : vector<8x32xf32>
    %1888 = math.exp %1887 : vector<8x32xf32>
    %cst_519 = arith.constant 1.000000e+00 : f32
    %1889 = vector.broadcast %cst_519 : f32 to vector<8x32xf32>
    %1890 = arith.addf %1889, %1888 : vector<8x32xf32>
    %1891 = arith.divf %1889, %1890 : vector<8x32xf32>
    %1892 = vector.extract_strided_slice %1875 {offsets = [0, 64], sizes = [8, 32], strides = [1, 1]} : vector<8x128xf32> to vector<8x32xf32>
    %1893 = math.tanh %1892 : vector<8x32xf32>
    %1894 = vector.extract_strided_slice %1875 {offsets = [0, 96], sizes = [8, 32], strides = [1, 1]} : vector<8x128xf32> to vector<8x32xf32>
    %1895 = arith.negf %1894 : vector<8x32xf32>
    %1896 = math.exp %1895 : vector<8x32xf32>
    %cst_520 = arith.constant 1.000000e+00 : f32
    %1897 = vector.broadcast %cst_520 : f32 to vector<8x32xf32>
    %1898 = arith.addf %1897, %1896 : vector<8x32xf32>
    %1899 = arith.divf %1897, %1898 : vector<8x32xf32>
    %1900 = arith.mulf %1891, %1839 : vector<8x32xf32>
    %1901 = arith.mulf %1885, %1893 : vector<8x32xf32>
    %1902 = arith.addf %1900, %1901 : vector<8x32xf32>
    %1903 = math.tanh %1902 : vector<8x32xf32>
    %1904 = arith.mulf %1899, %1903 : vector<8x32xf32>
    %1905 = vector.extract_strided_slice %1879 {offsets = [0, 0], sizes = [8, 32], strides = [1, 1]} : vector<8x128xf32> to vector<8x32xf32>
    %1906 = arith.negf %1905 : vector<8x32xf32>
    %1907 = math.exp %1906 : vector<8x32xf32>
    %cst_521 = arith.constant 1.000000e+00 : f32
    %1908 = vector.broadcast %cst_521 : f32 to vector<8x32xf32>
    %1909 = arith.addf %1908, %1907 : vector<8x32xf32>
    %1910 = arith.divf %1908, %1909 : vector<8x32xf32>
    %1911 = vector.extract_strided_slice %1879 {offsets = [0, 32], sizes = [8, 32], strides = [1, 1]} : vector<8x128xf32> to vector<8x32xf32>
    %1912 = arith.negf %1911 : vector<8x32xf32>
    %1913 = math.exp %1912 : vector<8x32xf32>
    %cst_522 = arith.constant 1.000000e+00 : f32
    %1914 = vector.broadcast %cst_522 : f32 to vector<8x32xf32>
    %1915 = arith.addf %1914, %1913 : vector<8x32xf32>
    %1916 = arith.divf %1914, %1915 : vector<8x32xf32>
    %1917 = vector.extract_strided_slice %1879 {offsets = [0, 64], sizes = [8, 32], strides = [1, 1]} : vector<8x128xf32> to vector<8x32xf32>
    %1918 = math.tanh %1917 : vector<8x32xf32>
    %1919 = vector.extract_strided_slice %1879 {offsets = [0, 96], sizes = [8, 32], strides = [1, 1]} : vector<8x128xf32> to vector<8x32xf32>
    %1920 = arith.negf %1919 : vector<8x32xf32>
    %1921 = math.exp %1920 : vector<8x32xf32>
    %cst_523 = arith.constant 1.000000e+00 : f32
    %1922 = vector.broadcast %cst_523 : f32 to vector<8x32xf32>
    %1923 = arith.addf %1922, %1921 : vector<8x32xf32>
    %1924 = arith.divf %1922, %1923 : vector<8x32xf32>
    %1925 = arith.mulf %1916, %1864 : vector<8x32xf32>
    %1926 = arith.mulf %1910, %1918 : vector<8x32xf32>
    %1927 = arith.addf %1925, %1926 : vector<8x32xf32>
    %1928 = math.tanh %1927 : vector<8x32xf32>
    %1929 = arith.mulf %1924, %1928 : vector<8x32xf32>
    %c4_i32_524 = arith.constant 4 : i32
    %c8_i32_525 = arith.constant 8 : i32
    %1930 = arith.muli %c4_i32_524, %c8_i32_525 : i32
    %1931 = tpu.assume_multiple %1930, 8 : i32
    %c7_i32_526 = arith.constant 7 : i32
    %1932 = arith.subi %c7_i32_526, %c4_i32_524 : i32
    %c8_i32_527 = arith.constant 8 : i32
    %1933 = arith.muli %1932, %c8_i32_527 : i32
    %1934 = tpu.assume_multiple %1933, 8 : i32
    %1935 = arith.index_cast %1931 : i32 to index
    %c0_528 = arith.constant 0 : index
    %1936 = vector.load %arg8[%1935, %c0_528] : memref<64x256xf32, #tpu.memory_space<vmem>>, vector<8x128xf32>
    %cst_529 = arith.constant dense<0.000000e+00> : vector<8x128xf32>
    %1937 = tpu.matmul %1904, %1674, %cst_529 {dimension_numbers = #tpu.dot_dimension_numbers<[1], [0], [0], [1], [0, 0, 1, 1], [], []>} : vector<8x32xf32>, vector<32x128xf32>, vector<8x128xf32> -> vector<8x128xf32>
    %1938 = arith.addf %1936, %1937 : vector<8x128xf32>
    %1939 = arith.index_cast %1934 : i32 to index
    %c128_530 = arith.constant 128 : index
    %1940 = vector.load %arg8[%1939, %c128_530] : memref<64x256xf32, #tpu.memory_space<vmem>>, vector<8x128xf32>
    %cst_531 = arith.constant dense<0.000000e+00> : vector<8x128xf32>
    %1941 = tpu.matmul %1929, %1676, %cst_531 {dimension_numbers = #tpu.dot_dimension_numbers<[1], [0], [0], [1], [0, 0, 1, 1], [], []>} : vector<8x32xf32>, vector<32x128xf32>, vector<8x128xf32> -> vector<8x128xf32>
    %1942 = arith.addf %1940, %1941 : vector<8x128xf32>
    %1943 = vector.extract_strided_slice %1938 {offsets = [0, 0], sizes = [8, 32], strides = [1, 1]} : vector<8x128xf32> to vector<8x32xf32>
    %1944 = arith.negf %1943 : vector<8x32xf32>
    %1945 = math.exp %1944 : vector<8x32xf32>
    %cst_532 = arith.constant 1.000000e+00 : f32
    %1946 = vector.broadcast %cst_532 : f32 to vector<8x32xf32>
    %1947 = arith.addf %1946, %1945 : vector<8x32xf32>
    %1948 = arith.divf %1946, %1947 : vector<8x32xf32>
    %1949 = vector.extract_strided_slice %1938 {offsets = [0, 32], sizes = [8, 32], strides = [1, 1]} : vector<8x128xf32> to vector<8x32xf32>
    %1950 = arith.negf %1949 : vector<8x32xf32>
    %1951 = math.exp %1950 : vector<8x32xf32>
    %cst_533 = arith.constant 1.000000e+00 : f32
    %1952 = vector.broadcast %cst_533 : f32 to vector<8x32xf32>
    %1953 = arith.addf %1952, %1951 : vector<8x32xf32>
    %1954 = arith.divf %1952, %1953 : vector<8x32xf32>
    %1955 = vector.extract_strided_slice %1938 {offsets = [0, 64], sizes = [8, 32], strides = [1, 1]} : vector<8x128xf32> to vector<8x32xf32>
    %1956 = math.tanh %1955 : vector<8x32xf32>
    %1957 = vector.extract_strided_slice %1938 {offsets = [0, 96], sizes = [8, 32], strides = [1, 1]} : vector<8x128xf32> to vector<8x32xf32>
    %1958 = arith.negf %1957 : vector<8x32xf32>
    %1959 = math.exp %1958 : vector<8x32xf32>
    %cst_534 = arith.constant 1.000000e+00 : f32
    %1960 = vector.broadcast %cst_534 : f32 to vector<8x32xf32>
    %1961 = arith.addf %1960, %1959 : vector<8x32xf32>
    %1962 = arith.divf %1960, %1961 : vector<8x32xf32>
    %1963 = arith.mulf %1954, %1902 : vector<8x32xf32>
    %1964 = arith.mulf %1948, %1956 : vector<8x32xf32>
    %1965 = arith.addf %1963, %1964 : vector<8x32xf32>
    %1966 = math.tanh %1965 : vector<8x32xf32>
    %1967 = arith.mulf %1962, %1966 : vector<8x32xf32>
    %1968 = vector.extract_strided_slice %1942 {offsets = [0, 0], sizes = [8, 32], strides = [1, 1]} : vector<8x128xf32> to vector<8x32xf32>
    %1969 = arith.negf %1968 : vector<8x32xf32>
    %1970 = math.exp %1969 : vector<8x32xf32>
    %cst_535 = arith.constant 1.000000e+00 : f32
    %1971 = vector.broadcast %cst_535 : f32 to vector<8x32xf32>
    %1972 = arith.addf %1971, %1970 : vector<8x32xf32>
    %1973 = arith.divf %1971, %1972 : vector<8x32xf32>
    %1974 = vector.extract_strided_slice %1942 {offsets = [0, 32], sizes = [8, 32], strides = [1, 1]} : vector<8x128xf32> to vector<8x32xf32>
    %1975 = arith.negf %1974 : vector<8x32xf32>
    %1976 = math.exp %1975 : vector<8x32xf32>
    %cst_536 = arith.constant 1.000000e+00 : f32
    %1977 = vector.broadcast %cst_536 : f32 to vector<8x32xf32>
    %1978 = arith.addf %1977, %1976 : vector<8x32xf32>
    %1979 = arith.divf %1977, %1978 : vector<8x32xf32>
    %1980 = vector.extract_strided_slice %1942 {offsets = [0, 64], sizes = [8, 32], strides = [1, 1]} : vector<8x128xf32> to vector<8x32xf32>
    %1981 = math.tanh %1980 : vector<8x32xf32>
    %1982 = vector.extract_strided_slice %1942 {offsets = [0, 96], sizes = [8, 32], strides = [1, 1]} : vector<8x128xf32> to vector<8x32xf32>
    %1983 = arith.negf %1982 : vector<8x32xf32>
    %1984 = math.exp %1983 : vector<8x32xf32>
    %cst_537 = arith.constant 1.000000e+00 : f32
    %1985 = vector.broadcast %cst_537 : f32 to vector<8x32xf32>
    %1986 = arith.addf %1985, %1984 : vector<8x32xf32>
    %1987 = arith.divf %1985, %1986 : vector<8x32xf32>
    %1988 = arith.mulf %1979, %1927 : vector<8x32xf32>
    %1989 = arith.mulf %1973, %1981 : vector<8x32xf32>
    %1990 = arith.addf %1988, %1989 : vector<8x32xf32>
    %1991 = math.tanh %1990 : vector<8x32xf32>
    %1992 = arith.mulf %1987, %1991 : vector<8x32xf32>
    %c5_i32_538 = arith.constant 5 : i32
    %c8_i32_539 = arith.constant 8 : i32
    %1993 = arith.muli %c5_i32_538, %c8_i32_539 : i32
    %1994 = tpu.assume_multiple %1993, 8 : i32
    %c7_i32_540 = arith.constant 7 : i32
    %1995 = arith.subi %c7_i32_540, %c5_i32_538 : i32
    %c8_i32_541 = arith.constant 8 : i32
    %1996 = arith.muli %1995, %c8_i32_541 : i32
    %1997 = tpu.assume_multiple %1996, 8 : i32
    %1998 = arith.index_cast %1994 : i32 to index
    %c0_542 = arith.constant 0 : index
    %1999 = vector.load %arg8[%1998, %c0_542] : memref<64x256xf32, #tpu.memory_space<vmem>>, vector<8x128xf32>
    %cst_543 = arith.constant dense<0.000000e+00> : vector<8x128xf32>
    %2000 = tpu.matmul %1967, %1674, %cst_543 {dimension_numbers = #tpu.dot_dimension_numbers<[1], [0], [0], [1], [0, 0, 1, 1], [], []>} : vector<8x32xf32>, vector<32x128xf32>, vector<8x128xf32> -> vector<8x128xf32>
    %2001 = arith.addf %1999, %2000 : vector<8x128xf32>
    %2002 = arith.index_cast %1997 : i32 to index
    %c128_544 = arith.constant 128 : index
    %2003 = vector.load %arg8[%2002, %c128_544] : memref<64x256xf32, #tpu.memory_space<vmem>>, vector<8x128xf32>
    %cst_545 = arith.constant dense<0.000000e+00> : vector<8x128xf32>
    %2004 = tpu.matmul %1992, %1676, %cst_545 {dimension_numbers = #tpu.dot_dimension_numbers<[1], [0], [0], [1], [0, 0, 1, 1], [], []>} : vector<8x32xf32>, vector<32x128xf32>, vector<8x128xf32> -> vector<8x128xf32>
    %2005 = arith.addf %2003, %2004 : vector<8x128xf32>
    %2006 = vector.extract_strided_slice %2001 {offsets = [0, 0], sizes = [8, 32], strides = [1, 1]} : vector<8x128xf32> to vector<8x32xf32>
    %2007 = arith.negf %2006 : vector<8x32xf32>
    %2008 = math.exp %2007 : vector<8x32xf32>
    %cst_546 = arith.constant 1.000000e+00 : f32
    %2009 = vector.broadcast %cst_546 : f32 to vector<8x32xf32>
    %2010 = arith.addf %2009, %2008 : vector<8x32xf32>
    %2011 = arith.divf %2009, %2010 : vector<8x32xf32>
    %2012 = vector.extract_strided_slice %2001 {offsets = [0, 32], sizes = [8, 32], strides = [1, 1]} : vector<8x128xf32> to vector<8x32xf32>
    %2013 = arith.negf %2012 : vector<8x32xf32>
    %2014 = math.exp %2013 : vector<8x32xf32>
    %cst_547 = arith.constant 1.000000e+00 : f32
    %2015 = vector.broadcast %cst_547 : f32 to vector<8x32xf32>
    %2016 = arith.addf %2015, %2014 : vector<8x32xf32>
    %2017 = arith.divf %2015, %2016 : vector<8x32xf32>
    %2018 = vector.extract_strided_slice %2001 {offsets = [0, 64], sizes = [8, 32], strides = [1, 1]} : vector<8x128xf32> to vector<8x32xf32>
    %2019 = math.tanh %2018 : vector<8x32xf32>
    %2020 = vector.extract_strided_slice %2001 {offsets = [0, 96], sizes = [8, 32], strides = [1, 1]} : vector<8x128xf32> to vector<8x32xf32>
    %2021 = arith.negf %2020 : vector<8x32xf32>
    %2022 = math.exp %2021 : vector<8x32xf32>
    %cst_548 = arith.constant 1.000000e+00 : f32
    %2023 = vector.broadcast %cst_548 : f32 to vector<8x32xf32>
    %2024 = arith.addf %2023, %2022 : vector<8x32xf32>
    %2025 = arith.divf %2023, %2024 : vector<8x32xf32>
    %2026 = arith.mulf %2017, %1965 : vector<8x32xf32>
    %2027 = arith.mulf %2011, %2019 : vector<8x32xf32>
    %2028 = arith.addf %2026, %2027 : vector<8x32xf32>
    %2029 = math.tanh %2028 : vector<8x32xf32>
    %2030 = arith.mulf %2025, %2029 : vector<8x32xf32>
    %2031 = vector.extract_strided_slice %2005 {offsets = [0, 0], sizes = [8, 32], strides = [1, 1]} : vector<8x128xf32> to vector<8x32xf32>
    %2032 = arith.negf %2031 : vector<8x32xf32>
    %2033 = math.exp %2032 : vector<8x32xf32>
    %cst_549 = arith.constant 1.000000e+00 : f32
    %2034 = vector.broadcast %cst_549 : f32 to vector<8x32xf32>
    %2035 = arith.addf %2034, %2033 : vector<8x32xf32>
    %2036 = arith.divf %2034, %2035 : vector<8x32xf32>
    %2037 = vector.extract_strided_slice %2005 {offsets = [0, 32], sizes = [8, 32], strides = [1, 1]} : vector<8x128xf32> to vector<8x32xf32>
    %2038 = arith.negf %2037 : vector<8x32xf32>
    %2039 = math.exp %2038 : vector<8x32xf32>
    %cst_550 = arith.constant 1.000000e+00 : f32
    %2040 = vector.broadcast %cst_550 : f32 to vector<8x32xf32>
    %2041 = arith.addf %2040, %2039 : vector<8x32xf32>
    %2042 = arith.divf %2040, %2041 : vector<8x32xf32>
    %2043 = vector.extract_strided_slice %2005 {offsets = [0, 64], sizes = [8, 32], strides = [1, 1]} : vector<8x128xf32> to vector<8x32xf32>
    %2044 = math.tanh %2043 : vector<8x32xf32>
    %2045 = vector.extract_strided_slice %2005 {offsets = [0, 96], sizes = [8, 32], strides = [1, 1]} : vector<8x128xf32> to vector<8x32xf32>
    %2046 = arith.negf %2045 : vector<8x32xf32>
    %2047 = math.exp %2046 : vector<8x32xf32>
    %cst_551 = arith.constant 1.000000e+00 : f32
    %2048 = vector.broadcast %cst_551 : f32 to vector<8x32xf32>
    %2049 = arith.addf %2048, %2047 : vector<8x32xf32>
    %2050 = arith.divf %2048, %2049 : vector<8x32xf32>
    %2051 = arith.mulf %2042, %1990 : vector<8x32xf32>
    %2052 = arith.mulf %2036, %2044 : vector<8x32xf32>
    %2053 = arith.addf %2051, %2052 : vector<8x32xf32>
    %2054 = math.tanh %2053 : vector<8x32xf32>
    %2055 = arith.mulf %2050, %2054 : vector<8x32xf32>
    %c6_i32_552 = arith.constant 6 : i32
    %c8_i32_553 = arith.constant 8 : i32
    %2056 = arith.muli %c6_i32_552, %c8_i32_553 : i32
    %2057 = tpu.assume_multiple %2056, 8 : i32
    %c7_i32_554 = arith.constant 7 : i32
    %2058 = arith.subi %c7_i32_554, %c6_i32_552 : i32
    %c8_i32_555 = arith.constant 8 : i32
    %2059 = arith.muli %2058, %c8_i32_555 : i32
    %2060 = tpu.assume_multiple %2059, 8 : i32
    %2061 = arith.index_cast %2057 : i32 to index
    %c0_556 = arith.constant 0 : index
    %2062 = vector.load %arg8[%2061, %c0_556] : memref<64x256xf32, #tpu.memory_space<vmem>>, vector<8x128xf32>
    %cst_557 = arith.constant dense<0.000000e+00> : vector<8x128xf32>
    %2063 = tpu.matmul %2030, %1674, %cst_557 {dimension_numbers = #tpu.dot_dimension_numbers<[1], [0], [0], [1], [0, 0, 1, 1], [], []>} : vector<8x32xf32>, vector<32x128xf32>, vector<8x128xf32> -> vector<8x128xf32>
    %2064 = arith.addf %2062, %2063 : vector<8x128xf32>
    %2065 = arith.index_cast %2060 : i32 to index
    %c128_558 = arith.constant 128 : index
    %2066 = vector.load %arg8[%2065, %c128_558] : memref<64x256xf32, #tpu.memory_space<vmem>>, vector<8x128xf32>
    %cst_559 = arith.constant dense<0.000000e+00> : vector<8x128xf32>
    %2067 = tpu.matmul %2055, %1676, %cst_559 {dimension_numbers = #tpu.dot_dimension_numbers<[1], [0], [0], [1], [0, 0, 1, 1], [], []>} : vector<8x32xf32>, vector<32x128xf32>, vector<8x128xf32> -> vector<8x128xf32>
    %2068 = arith.addf %2066, %2067 : vector<8x128xf32>
    %2069 = vector.extract_strided_slice %2064 {offsets = [0, 0], sizes = [8, 32], strides = [1, 1]} : vector<8x128xf32> to vector<8x32xf32>
    %2070 = arith.negf %2069 : vector<8x32xf32>
    %2071 = math.exp %2070 : vector<8x32xf32>
    %cst_560 = arith.constant 1.000000e+00 : f32
    %2072 = vector.broadcast %cst_560 : f32 to vector<8x32xf32>
    %2073 = arith.addf %2072, %2071 : vector<8x32xf32>
    %2074 = arith.divf %2072, %2073 : vector<8x32xf32>
    %2075 = vector.extract_strided_slice %2064 {offsets = [0, 32], sizes = [8, 32], strides = [1, 1]} : vector<8x128xf32> to vector<8x32xf32>
    %2076 = arith.negf %2075 : vector<8x32xf32>
    %2077 = math.exp %2076 : vector<8x32xf32>
    %cst_561 = arith.constant 1.000000e+00 : f32
    %2078 = vector.broadcast %cst_561 : f32 to vector<8x32xf32>
    %2079 = arith.addf %2078, %2077 : vector<8x32xf32>
    %2080 = arith.divf %2078, %2079 : vector<8x32xf32>
    %2081 = vector.extract_strided_slice %2064 {offsets = [0, 64], sizes = [8, 32], strides = [1, 1]} : vector<8x128xf32> to vector<8x32xf32>
    %2082 = math.tanh %2081 : vector<8x32xf32>
    %2083 = vector.extract_strided_slice %2064 {offsets = [0, 96], sizes = [8, 32], strides = [1, 1]} : vector<8x128xf32> to vector<8x32xf32>
    %2084 = arith.negf %2083 : vector<8x32xf32>
    %2085 = math.exp %2084 : vector<8x32xf32>
    %cst_562 = arith.constant 1.000000e+00 : f32
    %2086 = vector.broadcast %cst_562 : f32 to vector<8x32xf32>
    %2087 = arith.addf %2086, %2085 : vector<8x32xf32>
    %2088 = arith.divf %2086, %2087 : vector<8x32xf32>
    %2089 = arith.mulf %2080, %2028 : vector<8x32xf32>
    %2090 = arith.mulf %2074, %2082 : vector<8x32xf32>
    %2091 = arith.addf %2089, %2090 : vector<8x32xf32>
    %2092 = math.tanh %2091 : vector<8x32xf32>
    %2093 = arith.mulf %2088, %2092 : vector<8x32xf32>
    %2094 = vector.extract_strided_slice %2068 {offsets = [0, 0], sizes = [8, 32], strides = [1, 1]} : vector<8x128xf32> to vector<8x32xf32>
    %2095 = arith.negf %2094 : vector<8x32xf32>
    %2096 = math.exp %2095 : vector<8x32xf32>
    %cst_563 = arith.constant 1.000000e+00 : f32
    %2097 = vector.broadcast %cst_563 : f32 to vector<8x32xf32>
    %2098 = arith.addf %2097, %2096 : vector<8x32xf32>
    %2099 = arith.divf %2097, %2098 : vector<8x32xf32>
    %2100 = vector.extract_strided_slice %2068 {offsets = [0, 32], sizes = [8, 32], strides = [1, 1]} : vector<8x128xf32> to vector<8x32xf32>
    %2101 = arith.negf %2100 : vector<8x32xf32>
    %2102 = math.exp %2101 : vector<8x32xf32>
    %cst_564 = arith.constant 1.000000e+00 : f32
    %2103 = vector.broadcast %cst_564 : f32 to vector<8x32xf32>
    %2104 = arith.addf %2103, %2102 : vector<8x32xf32>
    %2105 = arith.divf %2103, %2104 : vector<8x32xf32>
    %2106 = vector.extract_strided_slice %2068 {offsets = [0, 64], sizes = [8, 32], strides = [1, 1]} : vector<8x128xf32> to vector<8x32xf32>
    %2107 = math.tanh %2106 : vector<8x32xf32>
    %2108 = vector.extract_strided_slice %2068 {offsets = [0, 96], sizes = [8, 32], strides = [1, 1]} : vector<8x128xf32> to vector<8x32xf32>
    %2109 = arith.negf %2108 : vector<8x32xf32>
    %2110 = math.exp %2109 : vector<8x32xf32>
    %cst_565 = arith.constant 1.000000e+00 : f32
    %2111 = vector.broadcast %cst_565 : f32 to vector<8x32xf32>
    %2112 = arith.addf %2111, %2110 : vector<8x32xf32>
    %2113 = arith.divf %2111, %2112 : vector<8x32xf32>
    %2114 = arith.mulf %2105, %2053 : vector<8x32xf32>
    %2115 = arith.mulf %2099, %2107 : vector<8x32xf32>
    %2116 = arith.addf %2114, %2115 : vector<8x32xf32>
    %2117 = math.tanh %2116 : vector<8x32xf32>
    %2118 = arith.mulf %2113, %2117 : vector<8x32xf32>
    %c7_i32_566 = arith.constant 7 : i32
    %c8_i32_567 = arith.constant 8 : i32
    %2119 = arith.muli %c7_i32_566, %c8_i32_567 : i32
    %2120 = tpu.assume_multiple %2119, 8 : i32
    %c7_i32_568 = arith.constant 7 : i32
    %2121 = arith.subi %c7_i32_568, %c7_i32_566 : i32
    %c8_i32_569 = arith.constant 8 : i32
    %2122 = arith.muli %2121, %c8_i32_569 : i32
    %2123 = tpu.assume_multiple %2122, 8 : i32
    %2124 = arith.index_cast %2120 : i32 to index
    %c0_570 = arith.constant 0 : index
    %2125 = vector.load %arg8[%2124, %c0_570] : memref<64x256xf32, #tpu.memory_space<vmem>>, vector<8x128xf32>
    %cst_571 = arith.constant dense<0.000000e+00> : vector<8x128xf32>
    %2126 = tpu.matmul %2093, %1674, %cst_571 {dimension_numbers = #tpu.dot_dimension_numbers<[1], [0], [0], [1], [0, 0, 1, 1], [], []>} : vector<8x32xf32>, vector<32x128xf32>, vector<8x128xf32> -> vector<8x128xf32>
    %2127 = arith.addf %2125, %2126 : vector<8x128xf32>
    %2128 = arith.index_cast %2123 : i32 to index
    %c128_572 = arith.constant 128 : index
    %2129 = vector.load %arg8[%2128, %c128_572] : memref<64x256xf32, #tpu.memory_space<vmem>>, vector<8x128xf32>
    %cst_573 = arith.constant dense<0.000000e+00> : vector<8x128xf32>
    %2130 = tpu.matmul %2118, %1676, %cst_573 {dimension_numbers = #tpu.dot_dimension_numbers<[1], [0], [0], [1], [0, 0, 1, 1], [], []>} : vector<8x32xf32>, vector<32x128xf32>, vector<8x128xf32> -> vector<8x128xf32>
    %2131 = arith.addf %2129, %2130 : vector<8x128xf32>
    %2132 = vector.extract_strided_slice %2127 {offsets = [0, 0], sizes = [8, 32], strides = [1, 1]} : vector<8x128xf32> to vector<8x32xf32>
    %2133 = arith.negf %2132 : vector<8x32xf32>
    %2134 = math.exp %2133 : vector<8x32xf32>
    %cst_574 = arith.constant 1.000000e+00 : f32
    %2135 = vector.broadcast %cst_574 : f32 to vector<8x32xf32>
    %2136 = arith.addf %2135, %2134 : vector<8x32xf32>
    %2137 = arith.divf %2135, %2136 : vector<8x32xf32>
    %2138 = vector.extract_strided_slice %2127 {offsets = [0, 32], sizes = [8, 32], strides = [1, 1]} : vector<8x128xf32> to vector<8x32xf32>
    %2139 = arith.negf %2138 : vector<8x32xf32>
    %2140 = math.exp %2139 : vector<8x32xf32>
    %cst_575 = arith.constant 1.000000e+00 : f32
    %2141 = vector.broadcast %cst_575 : f32 to vector<8x32xf32>
    %2142 = arith.addf %2141, %2140 : vector<8x32xf32>
    %2143 = arith.divf %2141, %2142 : vector<8x32xf32>
    %2144 = vector.extract_strided_slice %2127 {offsets = [0, 64], sizes = [8, 32], strides = [1, 1]} : vector<8x128xf32> to vector<8x32xf32>
    %2145 = math.tanh %2144 : vector<8x32xf32>
    %2146 = vector.extract_strided_slice %2127 {offsets = [0, 96], sizes = [8, 32], strides = [1, 1]} : vector<8x128xf32> to vector<8x32xf32>
    %2147 = arith.negf %2146 : vector<8x32xf32>
    %2148 = math.exp %2147 : vector<8x32xf32>
    %cst_576 = arith.constant 1.000000e+00 : f32
    %2149 = vector.broadcast %cst_576 : f32 to vector<8x32xf32>
    %2150 = arith.addf %2149, %2148 : vector<8x32xf32>
    %2151 = arith.divf %2149, %2150 : vector<8x32xf32>
    %2152 = arith.mulf %2143, %2091 : vector<8x32xf32>
    %2153 = arith.mulf %2137, %2145 : vector<8x32xf32>
    %2154 = arith.addf %2152, %2153 : vector<8x32xf32>
    %2155 = math.tanh %2154 : vector<8x32xf32>
    %2156 = arith.mulf %2151, %2155 : vector<8x32xf32>
    %2157 = vector.extract_strided_slice %2131 {offsets = [0, 0], sizes = [8, 32], strides = [1, 1]} : vector<8x128xf32> to vector<8x32xf32>
    %2158 = arith.negf %2157 : vector<8x32xf32>
    %2159 = math.exp %2158 : vector<8x32xf32>
    %cst_577 = arith.constant 1.000000e+00 : f32
    %2160 = vector.broadcast %cst_577 : f32 to vector<8x32xf32>
    %2161 = arith.addf %2160, %2159 : vector<8x32xf32>
    %2162 = arith.divf %2160, %2161 : vector<8x32xf32>
    %2163 = vector.extract_strided_slice %2131 {offsets = [0, 32], sizes = [8, 32], strides = [1, 1]} : vector<8x128xf32> to vector<8x32xf32>
    %2164 = arith.negf %2163 : vector<8x32xf32>
    %2165 = math.exp %2164 : vector<8x32xf32>
    %cst_578 = arith.constant 1.000000e+00 : f32
    %2166 = vector.broadcast %cst_578 : f32 to vector<8x32xf32>
    %2167 = arith.addf %2166, %2165 : vector<8x32xf32>
    %2168 = arith.divf %2166, %2167 : vector<8x32xf32>
    %2169 = vector.extract_strided_slice %2131 {offsets = [0, 64], sizes = [8, 32], strides = [1, 1]} : vector<8x128xf32> to vector<8x32xf32>
    %2170 = math.tanh %2169 : vector<8x32xf32>
    %2171 = vector.extract_strided_slice %2131 {offsets = [0, 96], sizes = [8, 32], strides = [1, 1]} : vector<8x128xf32> to vector<8x32xf32>
    %2172 = arith.negf %2171 : vector<8x32xf32>
    %2173 = math.exp %2172 : vector<8x32xf32>
    %cst_579 = arith.constant 1.000000e+00 : f32
    %2174 = vector.broadcast %cst_579 : f32 to vector<8x32xf32>
    %2175 = arith.addf %2174, %2173 : vector<8x32xf32>
    %2176 = arith.divf %2174, %2175 : vector<8x32xf32>
    %2177 = arith.mulf %2168, %2116 : vector<8x32xf32>
    %2178 = arith.mulf %2162, %2170 : vector<8x32xf32>
    %2179 = arith.addf %2177, %2178 : vector<8x32xf32>
    %2180 = math.tanh %2179 : vector<8x32xf32>
    %2181 = arith.mulf %2176, %2180 : vector<8x32xf32>
    %c8_i32_580 = arith.constant 8 : i32
    %2182 = tpu.concatenate %2156, %2181 in 1 : vector<8x32xf32>, vector<8x32xf32> -> vector<8x64xf32>
    %c0_581 = arith.constant 0 : index
    %c0_582 = arith.constant 0 : index
    %2183 = vector.load %arg5[%c0_581, %c0_582] : memref<64x12xf32, #tpu.memory_space<vmem>>, vector<64x12xf32>
    %cst_583 = arith.constant dense<0.000000e+00> : vector<8x12xf32>
    %2184 = tpu.matmul %2182, %2183, %cst_583 {dimension_numbers = #tpu.dot_dimension_numbers<[1], [0], [0], [1], [0, 0, 1, 1], [], []>} : vector<8x64xf32>, vector<64x12xf32>, vector<8x12xf32> -> vector<8x12xf32>
    %c0_584 = arith.constant 0 : index
    %c0_585 = arith.constant 0 : index
    %2185 = vector.load %arg6[%c0_584, %c0_585] : memref<1x12xf32, #tpu.memory_space<vmem>>, vector<1x12xf32>
    %2186 = vector.broadcast %2185 : vector<1x12xf32> to vector<8x12xf32>
    %2187 = arith.addf %2184, %2186 : vector<8x12xf32>
    %c0_586 = arith.constant 0 : index
    %c0_587 = arith.constant 0 : index
    %2188 = vector.load %arg7[%c0_586, %c0_587] : memref<8x12xf32, #tpu.memory_space<vmem>>, vector<8x12xf32>
    tpu.vector_store %arg7[%c0_586, %c0_587], %2187 {strides = array<i32>} : memref<8x12xf32, #tpu.memory_space<vmem>>, vector<8x12xf32>,
    return
  }
}

</mosaic_0001>

<bundles_post_ra>
// kernel: multilayer_bilstm_forward.1
= control target key start
LH: loop header
LB: loop body
LE: loop exit
PB: predicated region body
PF: predicated region fallthrough
CT: control target
= control target key end

     0   :  { %v10297_v3 = vmov 0.0   ;;  %vm50_vm0 = vcmask 130048   ;;  %v10298_v12 = vmov 0.0|0.0   ;;  %vm10299_vm1 = vmmov 0   ;;  %s10300_s9 = smov 64   ;;  %s10301_s10 = smov 32   ;;  %s11802_s1 = inlined_call_operand.vmem [shape: f32[16,256], index: 1, kind: input, shape index: {}]   ;;  %s11803_s3 = inlined_call_operand.vmem [shape: f32[4,2,32,128], index: 3, kind: input, shape index: {}]   ;;  %s11804_s0 = inlined_call_operand.vmem [shape: f32[64,16], index: 0, kind: input, shape index: {}]   ;;  %s11805_s4 = inlined_call_operand.vmem [shape: f32[4,1,256], index: 4, kind: input, shape index: {}]   ;;  %s11806_s2 = inlined_call_operand.vmem [shape: f32[3,64,256], index: 2, kind: input, shape index: {}]   ;;  %s11807_s5 = inlined_call_operand.vmem [shape: f32[64,12], index: 5, kind: input, shape index: {}]   ;;  %s11808_s6 = inlined_call_operand.vmem [shape: f32[1,12], index: 6, kind: input, shape index: {}]   ;;  %s11809_s7 = inlined_call_operand.vmem [shape: f32[8,12], index: 7, kind: output, shape index: {}]  }
   0x1   :  { %v35_v0 = vld [vmem:[%s11802_s1 + $0x8] sm:$0xff]  ;;  %v37_v1 = vld [vmem:[%s11802_s1 + $0x18] sm:$0xff]  ;;  %v34_v2 = vld [vmem:[%s11802_s1] sm:$0xff]  ;;  %175 = vmatprep.mubr.f32.mxu1 %v10297_v3  ;;  %139 = vmatprep.mubr.f32.mxu0 %v10297_v3  ;;  %v40_v23 = vlaneseq  ;;  %vm217_vm2 = vcmask 261120   ;;  %vm7902_vm3 = vcmask 523264   ;;  %vm7976_vm4 = vcmask 97280  }
   0x2   :  { %v9282_v4 = vpack.c.bf16 %v37_v1, %v35_v0  ;;  %v36_v5 = vld [vmem:[%s11802_s1 + $0x10] sm:$0xff]  ;;  %v204_v6 = vld [vmem:[%s11803_s3] sm:$0xff]  ;;  %v205_v8 = vld [vmem:[%s11803_s3 + $0x8] sm:$0xff] }
   0x3   :  { %v9284_v7 = vpack.c.bf16 %v36_v5, %v34_v2  ;;  %v32_v9 = vld [vmem:[%s11804_s0 + $0x30] sm:$0xff]  ;;  %v10365_v10 = vpack.c.bf16 %v205_v8, %v204_v6  ;;  %v26_v11 = vld [vmem:[%s11804_s0] sm:$0xff]  ;;  %v207_v14 = vld [vmem:[%s11803_s3 + $0x18] sm:$0xff]  ;;  %v41_v24 = vshrl.u32 %v40_v23, 7 }
   0x4   :  { %9730 = vmatprep.subr.bf16.mxu1 %v9282_v4  ;;  %9283 = vmatprep.subr.bf16.mxu0 %v9282_v4  ;;  %v206_v13 = vld [vmem:[%s11803_s3 + $0x10] sm:$0xff]  ;;  %v33_v15 = vld [vmem:[%s11804_s0 + $0x38] sm:$0xff]  ;;  %v7997_v17 = vld [vmem:[%s11803_s3 + $0x20] sm:$0xff] }
   0x5   :  { %9731 = vmatpush1.bf16.msra.mxu1 %v9284_v7  ;;  %9285 = vmatpush1.bf16.msra.mxu0 %v9284_v7  ;;  %v10385_v16 = vpack.c.bf16 %v207_v14, %v206_v13  ;;  %v7998_v18 = vld [vmem:[%s11803_s3 + $0x28] sm:$0xff]  ;;  %v7999_v20 = vld [vmem:[%s11803_s3 + $0x30] sm:$0xff]  ;;  %v8000_v21 = vld [vmem:[%s11803_s3 + $0x38] sm:$0xff]  ;;  %v10428_v25 = vsub.s32 0, %v41_v24  ;;  %v10445_v36 = vsub.s32 1, %v41_v24 }
   0x6   :  { %9286 = vmatprep.subr.bf16.mxu1 %v10298_v12  ;;  %9310 = vmatprep.subr.bf16.mxu0 %v10298_v12  ;;  %v10401_v19 = vpack.c.bf16 %v7998_v18, %v7997_v17  ;;  %v10414_v22 = vpack.c.bf16 %v8000_v21, %v7999_v20  ;;  %v38_v26 = vld [vmem:[%s11805_s4] sm:$0x3]  ;;  %v27_v0 = vld [vmem:[%s11804_s0 + $0x8] sm:$0xff] }
   0x7   :  { %v10440_v31 = vrot.slane %v38_v26, %v10428_v25  ;;  %v10448_v39 = vrot.slane %v38_v26, %v10445_v36 }
   0x8   :  { %7995 = vmatmul.mubr.msk.f32.vlgmr.msra.gmra.mrb[0].mxu1 %vm50_vm0, %v32_v9  ;;  %7989 = vmatmul.mubr.msk.f32.vlgmr.msra.gmra.mrb[0].mxu0 %vm50_vm0, %v26_v11 }
   0x9   :  { %9288 = vmatpush3.bf16.msra.mxu1 %v10365_v10  ;;  %181 = vmatprep.mubr.f32.mxu1 %v10297_v3 }
   0xa   :  { %9289 = vmatprep.subr.bf16.mxu1 %v10298_v12  ;;  %145 = vmatprep.mubr.f32.mxu0 %v10297_v3 }
   0xb   :  { %9312 = vmatpush3.bf16.msra.mxu0 %v10365_v10 }
   0xc   :  { %7996 = vmatmul.mubr.msk.f32.gmra.mrb[2].mxu1 %vm50_vm0, %v33_v15  ;;  %9313 = vmatprep.subr.bf16.mxu0 %v10298_v12 }
   0xd   :  { %9291 = vmatpush3.bf16.msra.mxu1 %v10385_v16  ;;  %8567 = vmatprep.mubr.msk.f32.mxu1 %vm10299_vm1, %v10297_v3 }
   0xe   :  { %9292 = vmatprep.subr.bf16.mxu1 %v10298_v12  ;;  %7990 = vmatmul.mubr.msk.f32.gmra.mrb[2].mxu0 %vm50_vm0, %v27_v0 }
   0xf   :  { %9315 = vmatpush3.bf16.msra.mxu0 %v10385_v16  ;;  %151 = vmatprep.mubr.f32.mxu0 %v10297_v3 }
  0x10   :  { %8568 = vmatmul.mubr.f32.vlgmr.msra.gmra.mrb[4].mxu1 %v10297_v3  ;;  %9322 = vmatprep.subr.bf16.mxu0 %v10298_v12 }
  0x11   :  { %9294 = vmatpush3.bf16.msra.mxu1 %v10401_v19  ;;  %8578 = vmatprep.mubr.msk.f32.mxu1 %vm10299_vm1, %v10297_v3 }
  0x12   :  { %9295 = vmatprep.subr.bf16.mxu1 %v10298_v12 }
  0x15   :  { %9297 = vmatpush3.bf16.msra.mxu1 %v10414_v22 }
  0x16   :  { %9298 = vmatprep.subr.bf16.mxu1 %v10298_v12 }
  0x18   :  { %8579 = vmatmul.mubr.f32.vlgmr.msra.gmra.mrb[6].mxu1 %v10297_v3 }
  0x19   :  { %9300 = vmatpush3.bf16.msra.mxu1 %v10365_v10  ;;  %8589 = vmatprep.mubr.msk.f32.mxu1 %vm10299_vm1, %v10297_v3 }
  0x1a   :  { %9301 = vmatprep.subr.bf16.mxu1 %v10298_v12 }
  0x1d   :  { %9303 = vmatpush3.bf16.msra.mxu1 %v10385_v16 }
  0x1e   :  { %9304 = vmatprep.subr.bf16.mxu1 %v10298_v12 }
  0xdb   :  { %v10433_v27 = vpop.f32.mrb[0].mxu1  ;;  %v141_v28 = vpop.f32.mrb[0].mxu0 }
  0xdc   :  { %v10435_v29 = vpop.f32.mrb[1].mxu1  ;;  %v10437_v30 = vpop.f32.mrb[1].mxu0  ;;  %v142_v34 = vadd.f32 %v141_v28, %v10440_v31 }
  0xdd   :  { %v180_v20 = vadd.f32 %v10435_v29, %v10448_v39 }
  0xdf   :  { %v10442_v32 = vpop.f32.mrb[2].mxu1 }
  0xe0   :  { %v185_v33 = vpop.f32.mrb[3].mxu1 }
  0xe1   :  { %v186_v40 = vadd.f32 %v185_v33, %v10448_v39  ;;  %v147_v8 = vpop.f32.mrb[2].mxu0 }
  0xe2   :  { %v10486_v13 = vpop.f32.mrb[3].mxu0  ;;  %v148_v14 = vadd.f32 %v147_v8, %v10440_v31 }
  0xe3   :  { %v287_v35 = vpop.f32.mrb[4].mxu1 }
  0xe4   :  { %v291_v37 = vadd.f32 %v287_v35, %v142_v34  ;;  %v8569_v38 = vpop.f32.mrb[5].mxu1 }
  0xe6   :  { %9785 = vtanh.f32 %v291_v37  ;;  %v8001_v46 = vmul.f32 -1.442695, %v291_v37 }
  0xeb   :  { %v362_v41 = vpop.f32.mrb[6].mxu1 }
  0xec   :  { %v366_v42 = vadd.f32 %v362_v41, %v186_v40  ;;  %v8580_v43 = vpop.f32.mrb[7].mxu1 }
  0xee   :  { %9787 = vtanh.f32 %v366_v42  ;;  %v8002_v47 = vmul.f32 -1.442695, %v366_v42 }
  0xef   :  { %9789 = vpow2.f32 %v8001_v46 }
  0xf0   :  { %v9786_v44 = vpop.eup %9785  ;;  %9791 = vpow2.f32 %v8002_v47 }
  0xf1   :  { %376 = vrot.lane.b32.xlu0 %v9786_v44, %s10300_s9 }
  0xf8   :  { %v9788_v45 = vpop.eup %9787 }
  0xf9   :  { %400 = vrot.lane.b32.xlu0 %v9788_v45, %s10300_s9  ;;  %v9790_v48 = vpop.eup %9789 }
  0xfa   :  { %v370_v49 = vadd.f32 1.0, %v9790_v48  ;;  %v9792_v50 = vpop.eup %9791 }
  0xfb   :  { %v394_v51 = vadd.f32 1.0, %v9792_v50 }
  0xfc   :  { %9793 = vrcp.f32 %v370_v49 }
  0xfd   :  { %9795 = vrcp.f32 %v394_v51 }
 0x106   :  { %v9794_v52 = vpop.eup %9793 }
 0x107   :  { %v9796_v55 = vpop.eup %9795  ;;  %v374_v58 = vmul.f32 0.0, %v9794_v52 }
 0x108   :  { %v398_v61 = vmul.f32 0.0, %v9796_v55 }
 0x163   :  { %v377_v53 = vpop.permute.xlu0 %376 }
 0x164   :  { %v379_v54 = vmul.f32 %v9794_v52, %v377_v53 }
 0x166   :  { %381 = vrot.lane.b32.xlu1 %v379_v54, %s10301_s10  ;;  %v29_v54 = vld [vmem:[%s11804_s0 + $0x18] sm:$0xff] }
 0x16b   :  { %v401_v56 = vpop.permute.xlu0 %400 }
 0x16c   :  { %v403_v57 = vmul.f32 %v9796_v55, %v401_v56 }
 0x16e   :  { %405 = vrot.lane.b32.xlu1 %v403_v57, %s10301_s10  ;;  %v31_v57 = vld [vmem:[%s11804_s0 + $0x28] sm:$0xff] }
 0x1d8   :  { %v382_v59 = vpop.permute.xlu1 %381 }
 0x1d9   :  { %v10455_v60 = vadd.f32 %v382_v59, %v374_v58 }
 0x1db   :  { %9797 = vtanh.f32 %v10455_v60 }
 0x1e0   :  { %v406_v62 = vpop.permute.xlu1 %405 }
 0x1e1   :  { %v10458_v63 = vadd.f32 %v406_v62, %v398_v61 }
 0x1e3   :  { %9799 = vtanh.f32 %v10458_v63 }
 0x1e5   :  { %v9798_v1 = vpop.eup %9797 }
 0x1e6   :  { %387 = vrot.lane.b32.xlu0 %v9798_v1, %s10300_s9 }
 0x1ed   :  { %v9800_v2 = vpop.eup %9799 }
 0x1ee   :  { %411 = vrot.lane.b32.xlu1 %v9800_v2, %s10300_s9 }
 0x258   :  { %v388_v4 = vpop.permute.xlu0 %387 }
 0x259   :  { %v390_v5 = vmul.f32 %v9794_v52, %v388_v4  ;;  %v28_v52 = vld [vmem:[%s11804_s0 + $0x10] sm:$0xff] }
 0x25a   :  { %7991 = vmatmul.mubr.msk.f32.gmra.mrb[4].mxu0 %vm50_vm0, %v28_v52 }
 0x25b   :  { %416 = vrot.lane.b32.xlu0 %v390_v5, %s10301_s10  ;;  %157 = vmatprep.mubr.f32.mxu0 %v10297_v3 }
 0x25e   :  { %7992 = vmatmul.mubr.msk.f32.gmra.mrb[6].mxu0 %vm50_vm0, %v29_v54 }
 0x25f   :  { %163 = vmatprep.mubr.f32.mxu0 %v10297_v3 }
 0x260   :  { %v412_v6 = vpop.permute.xlu1 %411 }
 0x261   :  { %v414_v7 = vmul.f32 %v9796_v55, %v412_v6  ;;  %v30_v55 = vld [vmem:[%s11804_s0 + $0x20] sm:$0xff] }
 0x262   :  { %7993 = vmatmul.mubr.msk.f32.gmra.mrb[8].mxu0 %vm50_vm0, %v30_v55 }
 0x263   :  { %421 = vrot.lane.b32.xlu1 %v414_v7, %s10301_s10  ;;  %169 = vmatprep.mubr.f32.mxu0 %v10297_v3 }
 0x266   :  { %7994 = vmatmul.mubr.msk.f32.gmra.mrb[10].mxu0 %vm50_vm0, %v31_v57 }
 0x267   :  { %8611 = vmatprep.mubr.msk.f32.mxu0 %vm10299_vm1, %v10297_v3 }
 0x2cd   :  { %v417_v9 = vpop.permute.xlu0 %416 }
 0x2ce   :  { %419 = vst.msk [vmem:[#allocation3] sm:$0xff] %vm217_vm2, %v417_v9  ;;  %8590 = vmatmul.mubr.msk.f32.vlgmr.msra.gmra.mrb[8].mxu1 %vm217_vm2, %v417_v9 }
 0x2cf   :  { %9306 = vmatpush3.bf16.msra.mxu1 %v10401_v19  ;;  %8600 = vmatprep.mubr.msk.f32.mxu1 %vm10299_vm1, %v10297_v3 }
 0x2d0   :  { %9307 = vmatprep.subr.bf16.mxu1 %v10298_v12 }
 0x2d3   :  { %9309 = vmatpush3.bf16.msra.mxu1 %v10414_v22 }
 0x2d4   :  { %9316 = vmatprep.subr.bf16.mxu1 %v10298_v12 }
 0x2d5   :  { %v422_v11 = vpop.permute.xlu1 %421 }
 0x2d6   :  { %425 = vst.msk [vmem:[#allocation4 + $0x38] sm:$0xff] %vm217_vm2, %v422_v11  ;;  %8601 = vmatmul.mubr.msk.f32.vlgmr.msra.gmra.mrb[10].mxu1 %vm217_vm2, %v422_v11 }
 0x2d7   :  { %9318 = vmatpush3.bf16.msra.mxu1 %v10401_v19  ;;  %8622 = vmatprep.mubr.msk.f32.mxu1 %vm10299_vm1, %v10297_v3 }
 0x2d8   :  { %9319 = vmatprep.subr.bf16.mxu1 %v10298_v12 }
 0x2db   :  { %9321 = vmatpush3.bf16.msra.mxu1 %v10414_v22 }
 0x2dc   :  { %9328 = vmatprep.subr.bf16.mxu1 %v10298_v12 }
 0x32d   :  { %v153_v62 = vpop.f32.mrb[4].mxu0 }
 0x32e   :  { %v154_v9 = vadd.f32 %v153_v62, %v10440_v31 }
 0x3a1   :  { %v498_v15 = vpop.f32.mrb[8].mxu1 }
 0x3a2   :  { %v502_v17 = vadd.f32 %v498_v15, %v148_v14  ;;  %v8591_v18 = vpop.f32.mrb[9].mxu1 }
 0x3a4   :  { %9801 = vtanh.f32 %v502_v17  ;;  %v8005_v33 = vmul.f32 -1.442695, %v502_v17 }
 0x3a9   :  { %v575_v21 = vpop.f32.mrb[10].mxu1 }
 0x3aa   :  { %v579_v23 = vadd.f32 %v575_v21, %v180_v20  ;;  %v8602_v24 = vpop.f32.mrb[11].mxu1 }
 0x3ac   :  { %9803 = vtanh.f32 %v579_v23  ;;  %v8006_v34 = vmul.f32 -1.442695, %v579_v23 }
 0x3ad   :  { %9805 = vpow2.f32 %v8005_v33 }
 0x3ae   :  { %v9802_v26 = vpop.eup %9801  ;;  %9807 = vpow2.f32 %v8006_v34 }
 0x3af   :  { %589 = vrot.lane.b32.xlu1 %v9802_v26, %s10300_s9 }
 0x3b6   :  { %v9804_v28 = vpop.eup %9803 }
 0x3b7   :  { %613 = vrot.lane.b32.xlu0 %v9804_v28, %s10300_s9  ;;  %v9806_v35 = vpop.eup %9805 }
 0x3b8   :  { %v583_v37 = vadd.f32 1.0, %v9806_v35  ;;  %v9808_v38 = vpop.eup %9807 }
 0x3b9   :  { %v607_v40 = vadd.f32 1.0, %v9808_v38 }
 0x3ba   :  { %9809 = vrcp.f32 %v583_v37 }
 0x3bb   :  { %9811 = vrcp.f32 %v607_v40 }
 0x3c4   :  { %v9810_v29 = vpop.eup %9809 }
 0x3c5   :  { %v9812_v43 = vpop.eup %9811  ;;  %v587_v46 = vmul.f32 %v9810_v29, %v10455_v60 }
 0x3c6   :  { %v611_v49 = vmul.f32 %v9812_v43, %v10458_v63  ;;  %v10528_v63 = vpop.f32.mrb[5].mxu0 }
 0x3c7   :  { %v10530_v0 = vpop.f32.mrb[6].mxu0 }
 0x3c8   :  { %v10532_v1 = vpop.f32.mrb[7].mxu0 }
 0x3c9   :  { %v10534_v2 = vpop.f32.mrb[8].mxu0 }
 0x3ca   :  { %v10536_v4 = vpop.f32.mrb[9].mxu0 }
 0x3cb   :  { %v10538_v5 = vpop.f32.mrb[10].mxu0  ;;  %v168_v62 = vadd.f32 %v10536_v4, %v10448_v39 }
 0x3cc   :  { %v173_v6 = vpop.f32.mrb[11].mxu0 }
 0x3cd   :  { %v174_v17 = vadd.f32 %v173_v6, %v10448_v39 }
 0x421   :  { %v590_v41 = vpop.permute.xlu1 %589 }
 0x422   :  { %v592_v42 = vmul.f32 %v9810_v29, %v590_v41 }
 0x424   :  { %594 = vrot.lane.b32.xlu1 %v592_v42, %s10301_s10 }
 0x429   :  { %v614_v44 = vpop.permute.xlu0 %613 }
 0x42a   :  { %v616_v45 = vmul.f32 %v9812_v43, %v614_v44 }
 0x42c   :  { %618 = vrot.lane.b32.xlu0 %v616_v45, %s10301_s10 }
 0x496   :  { %v595_v47 = vpop.permute.xlu1 %594 }
 0x497   :  { %v10496_v48 = vadd.f32 %v595_v47, %v587_v46 }
 0x499   :  { %9813 = vtanh.f32 %v10496_v48 }
 0x49e   :  { %v619_v50 = vpop.permute.xlu0 %618 }
 0x49f   :  { %v10500_v51 = vadd.f32 %v619_v50, %v611_v49 }
 0x4a1   :  { %9815 = vtanh.f32 %v10500_v51 }
 0x4a3   :  { %v9814_v53 = vpop.eup %9813 }
 0x4a4   :  { %600 = vrot.lane.b32.xlu1 %v9814_v53, %s10300_s9 }
 0x4ab   :  { %v9816_v56 = vpop.eup %9815 }
 0x4ac   :  { %624 = vrot.lane.b32.xlu0 %v9816_v56, %s10300_s9 }
 0x516   :  { %v601_v58 = vpop.permute.xlu1 %600 }
 0x517   :  { %v603_v59 = vmul.f32 %v9810_v29, %v601_v58  ;;  %v160_v58 = vadd.f32 %v10530_v0, %v10440_v31 }
 0x519   :  { %629 = vrot.lane.b32.xlu1 %v603_v59, %s10301_s10 }
 0x51e   :  { %v625_v60 = vpop.permute.xlu0 %624 }
 0x51f   :  { %v627_v61 = vmul.f32 %v9812_v43, %v625_v60 }
 0x521   :  { %635 = vrot.lane.b32.xlu0 %v627_v61, %s10301_s10 }
 0x58b   :  { %v630_v7 = vpop.permute.xlu1 %629 }
 0x58c   :  { %633 = vst.msk [vmem:[#allocation3 + $0x8] sm:$0xff] %vm217_vm2, %v630_v7  ;;  %8612 = vmatmul.mubr.msk.f32.vlgmr.msra.gmra.mrb[12].mxu0 %vm217_vm2, %v630_v7 }
 0x58d   :  { %9324 = vmatpush3.bf16.msra.mxu0 %v10365_v10  ;;  %8633 = vmatprep.mubr.msk.f32.mxu0 %vm10299_vm1, %v10297_v3 }
 0x58e   :  { %9325 = vmatprep.subr.bf16.mxu0 %v10298_v12 }
 0x591   :  { %9327 = vmatpush3.bf16.msra.mxu0 %v10385_v16 }
 0x592   :  { %9334 = vmatprep.subr.bf16.mxu0 %v10298_v12 }
 0x593   :  { %v636_v8 = vpop.permute.xlu0 %635 }
 0x594   :  { %639 = vst.msk [vmem:[#allocation4 + $0x30] sm:$0xff] %vm217_vm2, %v636_v8  ;;  %8623 = vmatmul.mubr.msk.f32.vlgmr.msra.gmra.mrb[12].mxu1 %vm217_vm2, %v636_v8 }
 0x595   :  { %9330 = vmatpush3.bf16.msra.mxu1 %v10401_v19  ;;  %8644 = vmatprep.mubr.msk.f32.mxu1 %vm10299_vm1, %v10297_v3 }
 0x596   :  { %9331 = vmatprep.subr.bf16.mxu1 %v10298_v12 }
 0x599   :  { %9333 = vmatpush3.bf16.msra.mxu1 %v10414_v22 }
 0x59a   :  { %9340 = vmatprep.subr.bf16.mxu1 %v10298_v12 }
 0x65f   :  { %v712_v11 = vpop.f32.mrb[12].mxu0 }
 0x660   :  { %v716_v14 = vadd.f32 %v712_v11, %v154_v9  ;;  %v8613_v15 = vpop.f32.mrb[13].mxu0 }
 0x662   :  { %9817 = vtanh.f32 %v716_v14  ;;  %v8009_v26 = vmul.f32 -1.442695, %v716_v14 }
 0x667   :  { %v789_v18 = vpop.f32.mrb[12].mxu1 }
 0x668   :  { %v793_v20 = vadd.f32 %v789_v18, %v174_v17  ;;  %v8624_v21 = vpop.f32.mrb[13].mxu1 }
 0x66a   :  { %9819 = vtanh.f32 %v793_v20  ;;  %v8010_v28 = vmul.f32 -1.442695, %v793_v20 }
 0x66b   :  { %9821 = vpow2.f32 %v8009_v26 }
 0x66c   :  { %v9818_v23 = vpop.eup %9817  ;;  %9823 = vpow2.f32 %v8010_v28 }
 0x66d   :  { %803 = vrot.lane.b32.xlu1 %v9818_v23, %s10300_s9 }
 0x674   :  { %v9820_v24 = vpop.eup %9819 }
 0x675   :  { %827 = vrot.lane.b32.xlu0 %v9820_v24, %s10300_s9  ;;  %v9822_v33 = vpop.eup %9821 }
 0x676   :  { %v797_v34 = vadd.f32 1.0, %v9822_v33  ;;  %v9824_v35 = vpop.eup %9823 }
 0x677   :  { %v821_v37 = vadd.f32 1.0, %v9824_v35 }
 0x678   :  { %9825 = vrcp.f32 %v797_v34 }
 0x679   :  { %9827 = vrcp.f32 %v821_v37 }
 0x682   :  { %v9826_v38 = vpop.eup %9825 }
 0x683   :  { %v9828_v41 = vpop.eup %9827  ;;  %v801_v44 = vmul.f32 %v9826_v38, %v10496_v48 }
 0x684   :  { %v825_v47 = vmul.f32 %v9828_v41, %v10500_v51 }
 0x6df   :  { %v804_v40 = vpop.permute.xlu1 %803 }
 0x6e0   :  { %v806_v29 = vmul.f32 %v9826_v38, %v804_v40 }
 0x6e2   :  { %808 = vrot.lane.b32.xlu1 %v806_v29, %s10301_s10 }
 0x6e7   :  { %v828_v42 = vpop.permute.xlu0 %827 }
 0x6e8   :  { %v830_v43 = vmul.f32 %v9828_v41, %v828_v42 }
 0x6ea   :  { %832 = vrot.lane.b32.xlu0 %v830_v43, %s10301_s10 }
 0x754   :  { %v809_v45 = vpop.permute.xlu1 %808 }
 0x755   :  { %v10563_v46 = vadd.f32 %v809_v45, %v801_v44 }
 0x757   :  { %9829 = vtanh.f32 %v10563_v46 }
 0x75c   :  { %v833_v49 = vpop.permute.xlu0 %832 }
 0x75d   :  { %v10567_v50 = vadd.f32 %v833_v49, %v825_v47  ;;  %v166_v49 = vadd.f32 %v10534_v2, %v10440_v31 }
 0x75f   :  { %9831 = vtanh.f32 %v10567_v50 }
 0x761   :  { %v9830_v52 = vpop.eup %9829 }
 0x762   :  { %814 = vrot.lane.b32.xlu1 %v9830_v52, %s10300_s9 }
 0x769   :  { %v9832_v53 = vpop.eup %9831 }
 0x76a   :  { %838 = vrot.lane.b32.xlu0 %v9832_v53, %s10300_s9 }
 0x7d4   :  { %v815_v54 = vpop.permute.xlu1 %814 }
 0x7d5   :  { %v817_v48 = vmul.f32 %v9826_v38, %v815_v54  ;;  %v162_v54 = vadd.f32 %v10532_v1, %v10448_v39 }
 0x7d7   :  { %843 = vrot.lane.b32.xlu1 %v817_v48, %s10301_s10 }
 0x7dc   :  { %v839_v55 = vpop.permute.xlu0 %838 }
 0x7dd   :  { %v841_v56 = vmul.f32 %v9828_v41, %v839_v55 }
 0x7df   :  { %849 = vrot.lane.b32.xlu0 %v841_v56, %s10301_s10 }
 0x849   :  { %v844_v51 = vpop.permute.xlu1 %843 }
 0x84a   :  { %847 = vst.msk [vmem:[#allocation3 + $0x10] sm:$0xff] %vm217_vm2, %v844_v51  ;;  %8634 = vmatmul.mubr.msk.f32.vlgmr.msra.gmra.mrb[14].mxu0 %vm217_vm2, %v844_v51 }
 0x84b   :  { %9336 = vmatpush3.bf16.msra.mxu0 %v10365_v10  ;;  %8655 = vmatprep.mubr.msk.f32.mxu0 %vm10299_vm1, %v10297_v3 }
 0x84c   :  { %9337 = vmatprep.subr.bf16.mxu0 %v10298_v12 }
 0x84f   :  { %9339 = vmatpush3.bf16.msra.mxu0 %v10385_v16 }
 0x850   :  { %9346 = vmatprep.subr.bf16.mxu0 %v10298_v12 }
 0x851   :  { %v850_v57 = vpop.permute.xlu0 %849 }
 0x852   :  { %853 = vst.msk [vmem:[#allocation4 + $0x28] sm:$0xff] %vm217_vm2, %v850_v57  ;;  %8645 = vmatmul.mubr.msk.f32.vlgmr.msra.gmra.mrb[14].mxu1 %vm217_vm2, %v850_v57 }
 0x853   :  { %9342 = vmatpush3.bf16.msra.mxu1 %v10401_v19  ;;  %8666 = vmatprep.mubr.msk.f32.mxu1 %vm10299_vm1, %v10297_v3 }
 0x854   :  { %9343 = vmatprep.subr.bf16.mxu1 %v10298_v12 }
 0x857   :  { %9345 = vmatpush3.bf16.msra.mxu1 %v10414_v22 }
 0x858   :  { %9352 = vmatprep.subr.bf16.mxu1 %v10298_v12 }
 0x91d   :  { %v926_v59 = vpop.f32.mrb[14].mxu0 }
 0x91e   :  { %v930_v60 = vadd.f32 %v926_v59, %v160_v58  ;;  %v8635_v61 = vpop.f32.mrb[15].mxu0 }
 0x920   :  { %9833 = vtanh.f32 %v930_v60  ;;  %v8013_v14 = vmul.f32 -1.442695, %v930_v60 }
 0x925   :  { %v1003_v6 = vpop.f32.mrb[14].mxu1 }
 0x926   :  { %v1007_v7 = vadd.f32 %v1003_v6, %v168_v62  ;;  %v8646_v8 = vpop.f32.mrb[15].mxu1 }
 0x928   :  { %9835 = vtanh.f32 %v1007_v7  ;;  %v8014_v0 = vmul.f32 -1.442695, %v1007_v7 }
 0x929   :  { %9837 = vpow2.f32 %v8013_v14 }
 0x92a   :  { %v9834_v9 = vpop.eup %9833  ;;  %9839 = vpow2.f32 %v8014_v0 }
 0x92b   :  { %1017 = vrot.lane.b32.xlu1 %v9834_v9, %s10300_s9 }
 0x932   :  { %v9836_v11 = vpop.eup %9835 }
 0x933   :  { %1041 = vrot.lane.b32.xlu0 %v9836_v11, %s10300_s9  ;;  %v9838_v15 = vpop.eup %9837 }
 0x934   :  { %v1011_v17 = vadd.f32 1.0, %v9838_v15  ;;  %v9840_v18 = vpop.eup %9839 }
 0x935   :  { %v1035_v20 = vadd.f32 1.0, %v9840_v18 }
 0x936   :  { %9841 = vrcp.f32 %v1011_v17 }
 0x937   :  { %9843 = vrcp.f32 %v1035_v20 }
 0x940   :  { %v9842_v4 = vpop.eup %9841 }
 0x941   :  { %v9844_v24 = vpop.eup %9843  ;;  %v1015_v33 = vmul.f32 %v9842_v4, %v10563_v46 }
 0x942   :  { %v1039_v37 = vmul.f32 %v9844_v24, %v10567_v50 }
 0x99d   :  { %v1018_v21 = vpop.permute.xlu1 %1017 }
 0x99e   :  { %v1020_v23 = vmul.f32 %v9842_v4, %v1018_v21 }
 0x9a0   :  { %1022 = vrot.lane.b32.xlu1 %v1020_v23, %s10301_s10 }
 0x9a5   :  { %v1042_v26 = vpop.permute.xlu0 %1041 }
 0x9a6   :  { %v1044_v28 = vmul.f32 %v9844_v24, %v1042_v26 }
 0x9a8   :  { %1046 = vrot.lane.b32.xlu0 %v1044_v28, %s10301_s10 }
 0xa12   :  { %v1023_v34 = vpop.permute.xlu1 %1022 }
 0xa13   :  { %v10599_v35 = vadd.f32 %v1023_v34, %v1015_v33 }
 0xa15   :  { %9845 = vtanh.f32 %v10599_v35 }
 0xa1a   :  { %v1047_v38 = vpop.permute.xlu0 %1046 }
 0xa1b   :  { %v10603_v40 = vadd.f32 %v1047_v38, %v1039_v37 }
 0xa1d   :  { %9847 = vtanh.f32 %v10603_v40 }
 0xa1f   :  { %v9846_v29 = vpop.eup %9845 }
 0xa20   :  { %1028 = vrot.lane.b32.xlu1 %v9846_v29, %s10300_s9  ;;  %v156_v29 = vadd.f32 %v10528_v63, %v10448_v39 }
 0xa27   :  { %v9848_v41 = vpop.eup %9847 }
 0xa28   :  { %1052 = vrot.lane.b32.xlu0 %v9848_v41, %s10300_s9 }
 0xa92   :  { %v1029_v42 = vpop.permute.xlu1 %1028 }
 0xa93   :  { %v1031_v43 = vmul.f32 %v9842_v4, %v1029_v42 }
 0xa95   :  { %1057 = vrot.lane.b32.xlu1 %v1031_v43, %s10301_s10 }
 0xa9a   :  { %v1053_v44 = vpop.permute.xlu0 %1052 }
 0xa9b   :  { %v1055_v45 = vmul.f32 %v9844_v24, %v1053_v44 }
 0xa9d   :  { %1063 = vrot.lane.b32.xlu0 %v1055_v45, %s10301_s10 }
 0xb07   :  { %v1058_v46 = vpop.permute.xlu1 %1057 }
 0xb08   :  { %1061 = vst.msk [vmem:[#allocation3 + $0x18] sm:$0xff] %vm217_vm2, %v1058_v46  ;;  %8656 = vmatmul.mubr.msk.f32.vlgmr.msra.gmra.mrb[16].mxu0 %vm217_vm2, %v1058_v46 }
 0xb09   :  { %9348 = vmatpush3.bf16.msra.mxu0 %v10365_v10  ;;  %8677 = vmatprep.mubr.msk.f32.mxu0 %vm10299_vm1, %v10297_v3 }
 0xb0a   :  { %9349 = vmatprep.subr.bf16.mxu0 %v10298_v12 }
 0xb0d   :  { %9351 = vmatpush3.bf16.msra.mxu0 %v10385_v16 }
 0xb0e   :  { %9358 = vmatprep.subr.bf16.mxu0 %v10298_v12 }
 0xb0f   :  { %v1064_v47 = vpop.permute.xlu0 %1063 }
 0xb10   :  { %1067 = vst.msk [vmem:[#allocation4 + $0x20] sm:$0xff] %vm217_vm2, %v1064_v47  ;;  %8667 = vmatmul.mubr.msk.f32.vlgmr.msra.gmra.mrb[16].mxu1 %vm217_vm2, %v1064_v47 }
 0xb11   :  { %9354 = vmatpush3.bf16.msra.mxu1 %v10401_v19  ;;  %8688 = vmatprep.mubr.msk.f32.mxu1 %vm10299_vm1, %v10297_v3 }
 0xb12   :  { %9355 = vmatprep.subr.bf16.mxu1 %v10298_v12 }
 0xb15   :  { %9357 = vmatpush3.bf16.msra.mxu1 %v10414_v22 }
 0xb16   :  { %9364 = vmatprep.subr.bf16.mxu1 %v10298_v12 }
 0xbdb   :  { %v1137_v50 = vpop.f32.mrb[16].mxu0 }
 0xbdc   :  { %v1141_v52 = vadd.f32 %v1137_v50, %v166_v49  ;;  %v8657_v53 = vpop.f32.mrb[17].mxu0 }
 0xbde   :  { %9849 = vtanh.f32 %v1141_v52  ;;  %v8017_v58 = vmul.f32 -1.442695, %v1141_v52 }
 0xbe3   :  { %v1211_v48 = vpop.f32.mrb[16].mxu1 }
 0xbe4   :  { %v1215_v55 = vadd.f32 %v1211_v48, %v162_v54  ;;  %v8668_v56 = vpop.f32.mrb[17].mxu1 }
 0xbe6   :  { %9851 = vtanh.f32 %v1215_v55  ;;  %v8018_v2 = vmul.f32 -1.442695, %v1215_v55 }
 0xbe7   :  { %9853 = vpow2.f32 %v8017_v58 }
 0xbe8   :  { %v9850_v51 = vpop.eup %9849  ;;  %9855 = vpow2.f32 %v8018_v2 }
 0xbe9   :  { %1225 = vrot.lane.b32.xlu1 %v9850_v51, %s10300_s9 }
 0xbf0   :  { %v9852_v57 = vpop.eup %9851 }
 0xbf1   :  { %1249 = vrot.lane.b32.xlu0 %v9852_v57, %s10300_s9  ;;  %v9854_v59 = vpop.eup %9853 }
 0xbf2   :  { %v1219_v60 = vadd.f32 1.0, %v9854_v59  ;;  %v9856_v61 = vpop.eup %9855 }
 0xbf3   :  { %v1243_v62 = vadd.f32 1.0, %v9856_v61 }
 0xbf4   :  { %9857 = vrcp.f32 %v1219_v60 }
 0xbf5   :  { %9859 = vrcp.f32 %v1243_v62 }
 0xbfe   :  { %v9858_v1 = vpop.eup %9857 }
 0xbff   :  { %v9860_v8 = vpop.eup %9859  ;;  %v1223_v14 = vmul.f32 %v9858_v1, %v10599_v35  ;;  %v172_v35 = vadd.f32 %v10538_v5, %v10440_v31 }
 0xc00   :  { %v1247_v17 = vmul.f32 %v9860_v8, %v10603_v40 }
 0xc5b   :  { %v1226_v6 = vpop.permute.xlu1 %1225 }
 0xc5c   :  { %v1228_v7 = vmul.f32 %v9858_v1, %v1226_v6 }
 0xc5e   :  { %1230 = vrot.lane.b32.xlu1 %v1228_v7, %s10301_s10 }
 0xc63   :  { %v1250_v9 = vpop.permute.xlu0 %1249 }
 0xc64   :  { %v1252_v11 = vmul.f32 %v9860_v8, %v1250_v9 }
 0xc66   :  { %1254 = vrot.lane.b32.xlu0 %v1252_v11, %s10301_s10 }
 0xcd0   :  { %v1231_v0 = vpop.permute.xlu1 %1230 }
 0xcd1   :  { %v10635_v15 = vadd.f32 %v1231_v0, %v1223_v14 }
 0xcd3   :  { %9861 = vtanh.f32 %v10635_v15 }
 0xcd8   :  { %v1255_v18 = vpop.permute.xlu0 %1254 }
 0xcd9   :  { %v10639_v20 = vadd.f32 %v1255_v18, %v1247_v17 }
 0xcdb   :  { %9863 = vtanh.f32 %v10639_v20 }
 0xcdd   :  { %v9862_v4 = vpop.eup %9861 }
 0xcde   :  { %1236 = vrot.lane.b32.xlu1 %v9862_v4, %s10300_s9 }
 0xce5   :  { %v9864_v21 = vpop.eup %9863 }
 0xce6   :  { %1260 = vrot.lane.b32.xlu0 %v9864_v21, %s10300_s9 }
 0xd50   :  { %v1237_v23 = vpop.permute.xlu1 %1236 }
 0xd51   :  { %v1239_v24 = vmul.f32 %v9858_v1, %v1237_v23 }
 0xd53   :  { %1265 = vrot.lane.b32.xlu1 %v1239_v24, %s10301_s10 }
 0xd58   :  { %v1261_v26 = vpop.permute.xlu0 %1260 }
 0xd59   :  { %v1263_v28 = vmul.f32 %v9860_v8, %v1261_v26 }
 0xd5b   :  { %1271 = vrot.lane.b32.xlu0 %v1263_v28, %s10301_s10 }
 0xdc5   :  { %v1266_v33 = vpop.permute.xlu1 %1265 }
 0xdc6   :  { %1269 = vst.msk [vmem:[#allocation3 + $0x20] sm:$0xff] %vm217_vm2, %v1266_v33  ;;  %8678 = vmatmul.mubr.msk.f32.vlgmr.msra.gmra.mrb[18].mxu0 %vm217_vm2, %v1266_v33 }
 0xdc7   :  { %9360 = vmatpush3.bf16.msra.mxu0 %v10365_v10  ;;  %8699 = vmatprep.mubr.msk.f32.mxu0 %vm10299_vm1, %v10297_v3 }
 0xdc8   :  { %9361 = vmatprep.subr.bf16.mxu0 %v10298_v12 }
 0xdcb   :  { %9363 = vmatpush3.bf16.msra.mxu0 %v10385_v16 }
 0xdcc   :  { %9370 = vmatprep.subr.bf16.mxu0 %v10298_v12 }
 0xdcd   :  { %v1272_v34 = vpop.permute.xlu0 %1271 }
 0xdce   :  { %1275 = vst.msk [vmem:[#allocation4 + $0x18] sm:$0xff] %vm217_vm2, %v1272_v34  ;;  %8689 = vmatmul.mubr.msk.f32.vlgmr.msra.gmra.mrb[18].mxu1 %vm217_vm2, %v1272_v34 }
 0xdcf   :  { %9366 = vmatpush3.bf16.msra.mxu1 %v10401_v19  ;;  %8710 = vmatprep.mubr.msk.f32.mxu1 %vm10299_vm1, %v10297_v3 }
 0xdd0   :  { %9367 = vmatprep.subr.bf16.mxu1 %v10298_v12 }
 0xdd3   :  { %9369 = vmatpush3.bf16.msra.mxu1 %v10414_v22 }
 0xdd4   :  { %9376 = vmatprep.subr.bf16.mxu1 %v10298_v12 }
 0xe99   :  { %v1345_v37 = vpop.f32.mrb[18].mxu0 }
 0xe9a   :  { %v1349_v38 = vadd.f32 %v1345_v37, %v172_v35  ;;  %v8679_v40 = vpop.f32.mrb[19].mxu0 }
 0xe9c   :  { %9865 = vtanh.f32 %v1349_v38  ;;  %v8021_v46 = vmul.f32 -1.442695, %v1349_v38 }
 0xea1   :  { %v1419_v41 = vpop.f32.mrb[18].mxu1 }
 0xea2   :  { %v1423_v42 = vadd.f32 %v1419_v41, %v156_v29  ;;  %v8690_v43 = vpop.f32.mrb[19].mxu1 }
 0xea4   :  { %9867 = vtanh.f32 %v1423_v42  ;;  %v8022_v5 = vmul.f32 -1.442695, %v1423_v42 }
 0xea5   :  { %9869 = vpow2.f32 %v8021_v46 }
 0xea6   :  { %v9866_v44 = vpop.eup %9865  ;;  %9871 = vpow2.f32 %v8022_v5 }
 0xea7   :  { %1433 = vrot.lane.b32.xlu1 %v9866_v44, %s10300_s9 }
 0xeae   :  { %v9868_v45 = vpop.eup %9867 }
 0xeaf   :  { %1457 = vrot.lane.b32.xlu0 %v9868_v45, %s10300_s9  ;;  %v9870_v47 = vpop.eup %9869 }
 0xeb0   :  { %v1427_v49 = vadd.f32 1.0, %v9870_v47  ;;  %v9872_v50 = vpop.eup %9871 }
 0xeb1   :  { %v1451_v52 = vadd.f32 1.0, %v9872_v50 }
 0xeb2   :  { %9873 = vrcp.f32 %v1427_v49 }
 0xeb3   :  { %9875 = vrcp.f32 %v1451_v52 }
 0xebc   :  { %v9874_v63 = vpop.eup %9873 }
 0xebd   :  { %v9876_v48 = vpop.eup %9875  ;;  %v1431_v51 = vmul.f32 %v9874_v63, %v10635_v15  ;;  %v150_v15 = vadd.f32 %v10486_v13, %v10448_v39 }
 0xebe   :  { %v1455_v2 = vmul.f32 %v9876_v48, %v10639_v20 }
 0xf19   :  { %v1434_v53 = vpop.permute.xlu1 %1433 }
 0xf1a   :  { %v1436_v54 = vmul.f32 %v9874_v63, %v1434_v53 }
 0xf1c   :  { %1438 = vrot.lane.b32.xlu1 %v1436_v54, %s10301_s10 }
 0xf21   :  { %v1458_v55 = vpop.permute.xlu0 %1457 }
 0xf22   :  { %v1460_v56 = vmul.f32 %v9876_v48, %v1458_v55  ;;  %v144_v55 = vadd.f32 %v10437_v30, %v10448_v39 }
 0xf24   :  { %1462 = vrot.lane.b32.xlu0 %v1460_v56, %s10301_s10 }
 0xf8e   :  { %v1439_v57 = vpop.permute.xlu1 %1438 }
 0xf8f   :  { %v10671_v58 = vadd.f32 %v1439_v57, %v1431_v51 }
 0xf91   :  { %9877 = vtanh.f32 %v10671_v58 }
 0xf96   :  { %v1463_v59 = vpop.permute.xlu0 %1462 }
 0xf97   :  { %v10675_v60 = vadd.f32 %v1463_v59, %v1455_v2 }
 0xf99   :  { %9879 = vtanh.f32 %v10675_v60 }
 0xf9b   :  { %v9878_v61 = vpop.eup %9877 }
 0xf9c   :  { %1444 = vrot.lane.b32.xlu1 %v9878_v61, %s10300_s9 }
 0xfa3   :  { %v9880_v62 = vpop.eup %9879 }
 0xfa4   :  { %1468 = vrot.lane.b32.xlu0 %v9880_v62, %s10300_s9 }
0x100e   :  { %v1445_v1 = vpop.permute.xlu1 %1444 }
0x100f   :  { %v1447_v6 = vmul.f32 %v9874_v63, %v1445_v1  ;;  %v184_v63 = vadd.f32 %v10442_v32, %v10440_v31 }
0x1011   :  { %1473 = vrot.lane.b32.xlu1 %v1447_v6, %s10301_s10 }
0x1016   :  { %v1469_v7 = vpop.permute.xlu0 %1468 }
0x1017   :  { %v1471_v8 = vmul.f32 %v9876_v48, %v1469_v7 }
0x1019   :  { %1479 = vrot.lane.b32.xlu0 %v1471_v8, %s10301_s10 }
0x1083   :  { %v1474_v9 = vpop.permute.xlu1 %1473 }
0x1084   :  { %1477 = vst.msk [vmem:[#allocation3 + $0x28] sm:$0xff] %vm217_vm2, %v1474_v9  ;;  %8700 = vmatmul.mubr.msk.f32.vlgmr.msra.gmra.mrb[20].mxu0 %vm217_vm2, %v1474_v9 }
0x1085   :  { %9372 = vmatpush3.bf16.msra.mxu0 %v10365_v10  ;;  %8721 = vmatprep.mubr.msk.f32.mxu0 %vm10299_vm1, %v10297_v3  ;;  %v178_v10 = vadd.f32 %v10433_v27, %v10440_v31 }
0x1086   :  { %9373 = vmatprep.subr.bf16.mxu0 %v10298_v12 }
0x1089   :  { %9375 = vmatpush3.bf16.msra.mxu0 %v10385_v16 }
0x108b   :  { %v1480_v11 = vpop.permute.xlu0 %1479 }
0x108c   :  { %1483 = vst.msk [vmem:[#allocation4 + $0x10] sm:$0xff] %vm217_vm2, %v1480_v11  ;;  %8711 = vmatmul.mubr.msk.f32.vlgmr.msra.gmra.mrb[20].mxu1 %vm217_vm2, %v1480_v11 }
0x108d   :  { %9378 = vmatpush3.bf16.msra.mxu1 %v10401_v19  ;;  %8732 = vmatprep.mubr.msk.f32.mxu1 %vm10299_vm1, %v10297_v3 }
0x108e   :  { %9379 = vmatprep.subr.bf16.mxu1 %v10298_v12 }
0x1091   :  { %9381 = vmatpush3.bf16.msra.mxu1 %v10414_v22 }
0x1092   :  { %9398 = vmatprep.subr.bf16.mxu1 %v10298_v12 }
0x1157   :  { %v1553_v16 = vpop.f32.mrb[20].mxu0 }
0x1158   :  { %v1557_v14 = vadd.f32 %v1553_v16, %v178_v10  ;;  %v8701_v0 = vpop.f32.mrb[21].mxu0 }
0x115a   :  { %9881 = vtanh.f32 %v1557_v14  ;;  %v8025_v4 = vmul.f32 -1.442695, %v1557_v14 }
0x115f   :  { %v1627_v19 = vpop.f32.mrb[20].mxu1 }
0x1160   :  { %v1631_v17 = vadd.f32 %v1627_v19, %v150_v15  ;;  %v8712_v18 = vpop.f32.mrb[21].mxu1 }
0x1161   :  { %v1926_v18 = vld [vmem:[%s11806_s2 + $0x58] sm:$0xff] }
0x1162   :  { %9883 = vtanh.f32 %v1631_v17  ;;  %v8026_v27 = vmul.f32 -1.442695, %v1631_v17  ;;  %v1924_v17 = vld [vmem:[%s11806_s2 + $0x48] sm:$0xff] }
0x1163   :  { %9885 = vpow2.f32 %v8025_v4  ;;  %v1925_v4 = vld [vmem:[%s11806_s2 + $0x50] sm:$0xff] }
0x1164   :  { %v9882_v20 = vpop.eup %9881  ;;  %9887 = vpow2.f32 %v8026_v27 }
0x1165   :  { %1641 = vrot.lane.b32.xlu1 %v9882_v20, %s10300_s9  ;;  %v9382_v20 = vpack.c.bf16 %v1926_v18, %v1924_v17 }
0x1167   :  { %9383 = vmatprep.subr.bf16.mxu0 %v9382_v20  ;;  %v8047_v20 = vld [vmem:[%s11805_s4 + $0x2] sm:$0x3] }
0x116c   :  { %v9884_v22 = vpop.eup %9883 }
0x116d   :  { %1665 = vrot.lane.b32.xlu0 %v9884_v22, %s10300_s9  ;;  %v9886_v21 = vpop.eup %9885  ;;  %v1923_v22 = vld [vmem:[%s11806_s2 + $0x40] sm:$0xff] }
0x116e   :  { %v1635_v23 = vadd.f32 1.0, %v9886_v21  ;;  %v9888_v24 = vpop.eup %9887  ;;  %v9384_v27 = vpack.c.bf16 %v1925_v4, %v1923_v22  ;;  %v1928_v21 = vld [vmem:[%s11806_s2 + $0x68] sm:$0xff]  ;;  %v2211_v22 = vrot.slane %v8047_v20, %v10428_v25  ;;  %v2215_v4 = vrot.slane %v8047_v20, %v10445_v36 }
0x116f   :  { %v1659_v26 = vadd.f32 1.0, %v9888_v24  ;;  %v1927_v24 = vld [vmem:[%s11806_s2 + $0x60] sm:$0xff] }
0x1170   :  { %9889 = vrcp.f32 %v1635_v23  ;;  %v1930_v23 = vld [vmem:[%s11806_s2 + $0x78] sm:$0xff] }
0x1171   :  { %9891 = vrcp.f32 %v1659_v26  ;;  %v9386_v26 = vpack.c.bf16 %v1930_v23, %v1928_v21 }
0x117a   :  { %v9890_v13 = vpop.eup %9889 }
0x117b   :  { %v9892_v34 = vpop.eup %9891  ;;  %v1639_v38 = vmul.f32 %v9890_v13, %v10671_v58 }
0x117c   :  { %v1663_v41 = vmul.f32 %v9892_v34, %v10675_v60 }
0x11d7   :  { %v1642_v28 = vpop.permute.xlu1 %1641 }
0x11d8   :  { %v1644_v33 = vmul.f32 %v9890_v13, %v1642_v28  ;;  %v1908_v28 = vld [vmem:[%s11806_s2 + $0x8] sm:$0xff] }
0x11da   :  { %1646 = vrot.lane.b32.xlu1 %v1644_v33, %s10301_s10  ;;  %v1910_v33 = vld [vmem:[%s11806_s2 + $0x18] sm:$0xff] }
0x11df   :  { %v1666_v35 = vpop.permute.xlu0 %1665 }
0x11e0   :  { %v1668_v37 = vmul.f32 %v9892_v34, %v1666_v35 }
0x11e2   :  { %1670 = vrot.lane.b32.xlu0 %v1668_v37, %s10301_s10  ;;  %v9390_v37 = vpack.c.bf16 %v1910_v33, %v1908_v28 }
0x124c   :  { %v1647_v40 = vpop.permute.xlu1 %1646 }
0x124d   :  { %v1649_v29 = vadd.f32 %v1647_v40, %v1639_v38 }
0x124f   :  { %9893 = vtanh.f32 %v1649_v29 }
0x1254   :  { %v1671_v42 = vpop.permute.xlu0 %1670 }
0x1255   :  { %v1673_v43 = vadd.f32 %v1671_v42, %v1663_v41  ;;  %v8048_v41 = vld [vmem:[%s11803_s3 + $0x40] sm:$0xff]  ;;  %v8049_v42 = vld [vmem:[%s11803_s3 + $0x48] sm:$0xff] }
0x1257   :  { %9895 = vtanh.f32 %v1673_v43 }
0x1259   :  { %v9894_v44 = vpop.eup %9893 }
0x125a   :  { %1652 = vrot.lane.b32.xlu1 %v9894_v44, %s10300_s9  ;;  %v8050_v44 = vld [vmem:[%s11803_s3 + $0x50] sm:$0xff] }
0x1261   :  { %v9896_v45 = vpop.eup %9895 }
0x1262   :  { %1676 = vrot.lane.b32.xlu0 %v9896_v45, %s10300_s9  ;;  %v8051_v45 = vld [vmem:[%s11803_s3 + $0x58] sm:$0xff] }
0x12cc   :  { %v1653_v46 = vpop.permute.xlu1 %1652 }
0x12cd   :  { %v1655_v5 = vmul.f32 %v9890_v13, %v1653_v46  ;;  %v1929_v13 = vld [vmem:[%s11806_s2 + $0x70] sm:$0xff]  ;;  %v10776_v46 = vpack.c.bf16 %v8051_v45, %v8050_v44 }
0x12ce   :  { %v9388_v35 = vpack.c.bf16 %v1929_v13, %v1927_v24 }
0x12cf   :  { %1681 = vrot.lane.b32.xlu1 %v1655_v5, %s10301_s10  ;;  %v8052_v5 = vld [vmem:[%s11803_s3 + $0x60] sm:$0xff] }
0x12d4   :  { %v1677_v47 = vpop.permute.xlu0 %1676 }
0x12d5   :  { %v1679_v49 = vmul.f32 %v9892_v34, %v1677_v47  ;;  %v8053_v47 = vld [vmem:[%s11803_s3 + $0x68] sm:$0xff] }
0x12d7   :  { %1687 = vrot.lane.b32.xlu0 %v1679_v49, %s10301_s10  ;;  %v10789_v49 = vpack.c.bf16 %v8053_v47, %v8052_v5 }
0x1341   :  { %v1682_v50 = vpop.permute.xlu1 %1681 }
0x1342   :  { %1685 = vst.msk [vmem:[#allocation3 + $0x30] sm:$0xff] %vm217_vm2, %v1682_v50  ;;  %8722 = vmatmul.mubr.msk.f32.vlgmr.msra.gmra.mrb[22].mxu0 %vm217_vm2, %v1682_v50  ;;  %v8054_v50 = vld [vmem:[%s11803_s3 + $0x70] sm:$0xff] }
0x1343   :  { %2019 = vmatprep.mubr.f32.mxu0 %v10297_v3  ;;  %9385 = vmatpush1.bf16.msra.mxu0 %v9384_v27 }
0x1344   :  { %9387 = vmatprep.subr.bf16.mxu0 %v9386_v26 }
0x1347   :  { %9389 = vmatpush1.bf16.msra.mxu0 %v9388_v35 }
0x1348   :  { %9391 = vmatprep.subr.bf16.mxu0 %v9390_v37 }
0x1349   :  { %v1688_v52 = vpop.permute.xlu0 %1687 }
0x134a   :  { %1691 = vst.msk [vmem:[#allocation4 + $0x8] sm:$0xff] %vm217_vm2, %v1688_v52  ;;  %8733 = vmatmul.mubr.msk.f32.vlgmr.msra.gmra.mrb[22].mxu1 %vm217_vm2, %v1688_v52  ;;  %v8055_v52 = vld [vmem:[%s11803_s3 + $0x78] sm:$0xff] }
0x134b   :  { %8743 = vmatprep.mubr.msk.f32.mxu1 %vm10299_vm1, %v10297_v3 }
0x1415   :  { %v1761_v53 = vpop.f32.mrb[22].mxu0 }
0x1416   :  { %v1765_v54 = vadd.f32 %v1761_v53, %v184_v63  ;;  %v8723_v48 = vpop.f32.mrb[23].mxu0  ;;  %v10799_v63 = vpack.c.bf16 %v8055_v52, %v8054_v50 }
0x1417   :  { %v1907_v48 = vld [vmem:[%s11806_s2] sm:$0xff] }
0x1418   :  { %9897 = vtanh.f32 %v1765_v54  ;;  %v8029_v59 = vmul.f32 -1.442695, %v1765_v54 }
0x141d   :  { %v1835_v56 = vpop.f32.mrb[22].mxu1 }
0x141e   :  { %v1839_v51 = vadd.f32 %v1835_v56, %v144_v55  ;;  %v8734_v57 = vpop.f32.mrb[23].mxu1  ;;  %v1909_v55 = vld [vmem:[%s11806_s2 + $0x10] sm:$0xff]  ;;  %v1912_v56 = vld [vmem:[%s11806_s2 + $0x28] sm:$0xff] }
0x141f   :  { %v9392_v57 = vpack.c.bf16 %v1909_v55, %v1907_v48 }
0x1420   :  { %9899 = vtanh.f32 %v1839_v51  ;;  %v8030_v31 = vmul.f32 -1.442695, %v1839_v51  ;;  %v1914_v51 = vld [vmem:[%s11806_s2 + $0x38] sm:$0xff] }
0x1421   :  { %9901 = vpow2.f32 %v8029_v59  ;;  %v1913_v59 = vld [vmem:[%s11806_s2 + $0x30] sm:$0xff] }
0x1422   :  { %v9898_v58 = vpop.eup %9897  ;;  %9903 = vpow2.f32 %v8030_v31 }
0x1423   :  { %1849 = vrot.lane.b32.xlu1 %v9898_v58, %s10300_s9  ;;  %v9394_v58 = vpack.c.bf16 %v1914_v51, %v1912_v56 }
0x142a   :  { %v9900_v2 = vpop.eup %9899 }
0x142b   :  { %1873 = vrot.lane.b32.xlu0 %v9900_v2, %s10300_s9  ;;  %v9902_v32 = vpop.eup %9901  ;;  %v1911_v2 = vld [vmem:[%s11806_s2 + $0x20] sm:$0xff] }
0x142c   :  { %v1843_v60 = vadd.f32 1.0, %v9902_v32  ;;  %v9904_v61 = vpop.eup %9903  ;;  %v9396_v32 = vpack.c.bf16 %v1913_v59, %v1911_v2 }
0x142d   :  { %v1867_v62 = vadd.f32 1.0, %v9904_v61  ;;  %v1917_v61 = vld [vmem:[#allocation4 + $0x10] sm:$0xff] }
0x142e   :  { %9905 = vrcp.f32 %v1843_v60  ;;  %v1916_v60 = vld [vmem:[#allocation4 + $0x8] sm:$0xff] }
0x142f   :  { %9907 = vrcp.f32 %v1867_v62  ;;  %v1918_v62 = vld [vmem:[#allocation4 + $0x18] sm:$0xff] }
0x1438   :  { %v9906_v30 = vpop.eup %9905 }
0x1439   :  { %v9908_v6 = vpop.eup %9907  ;;  %v1847_v9 = vmul.f32 %v9906_v30, %v1649_v29 }
0x143a   :  { %v1871_v16 = vmul.f32 %v9908_v6, %v1673_v43  ;;  %v10766_v43 = vpack.c.bf16 %v8049_v42, %v8048_v41 }
0x143c   :  { %9400 = vmatpush3.bf16.msra.mxu1 %v10766_v43 }
0x143d   :  { %9401 = vmatprep.subr.bf16.mxu1 %v10298_v12 }
0x1440   :  { %9403 = vmatpush3.bf16.msra.mxu1 %v10776_v46 }
0x1441   :  { %9404 = vmatprep.subr.bf16.mxu1 %v10298_v12 }
0x1443   :  { %8744 = vmatmul.mubr.f32.vlgmr.msra.gmra.mrb[24].mxu1 %v10297_v3 }
0x1444   :  { %8754 = vmatprep.mubr.msk.f32.mxu1 %vm10299_vm1, %v10297_v3  ;;  %9406 = vmatpush3.bf16.msra.mxu1 %v10789_v49 }
0x1445   :  { %9407 = vmatprep.subr.bf16.mxu1 %v10298_v12 }
0x1448   :  { %9409 = vmatpush3.bf16.msra.mxu1 %v10799_v63 }
0x1449   :  { %9410 = vmatprep.subr.bf16.mxu1 %v10298_v12 }
0x144b   :  { %8755 = vmatmul.mubr.f32.vlgmr.msra.gmra.mrb[26].mxu1 %v10297_v3 }
0x144c   :  { %9412 = vmatpush3.bf16.msra.mxu1 %v10766_v43  ;;  %8765 = vmatprep.mubr.msk.f32.mxu1 %vm10299_vm1, %v10297_v3 }
0x144d   :  { %9413 = vmatprep.subr.bf16.mxu1 %v10298_v12 }
0x1450   :  { %9415 = vmatpush3.bf16.msra.mxu1 %v10776_v46 }
0x1451   :  { %9416 = vmatprep.subr.bf16.mxu1 %v10298_v12 }
0x1495   :  { %v1850_v39 = vpop.permute.xlu1 %1849 }
0x1496   :  { %v1852_v1 = vmul.f32 %v9906_v30, %v1850_v39  ;;  %v1920_v39 = vld [vmem:[#allocation4 + $0x28] sm:$0xff] }
0x1498   :  { %1854 = vrot.lane.b32.xlu1 %v1852_v1, %s10301_s10  ;;  %v1921_v1 = vld [vmem:[#allocation4 + $0x30] sm:$0xff] }
0x149d   :  { %v1874_v7 = vpop.permute.xlu0 %1873 }
0x149e   :  { %v1876_v8 = vmul.f32 %v9908_v6, %v1874_v7  ;;  %v1899_v7 = vld [vmem:[#allocation3] sm:$0xff] }
0x14a0   :  { %1878 = vrot.lane.b32.xlu0 %v1876_v8, %s10301_s10  ;;  %v1900_v8 = vld [vmem:[#allocation3 + $0x8] sm:$0xff] }
0x150a   :  { %v1855_v11 = vpop.permute.xlu1 %1854 }
0x150b   :  { %v1857_v10 = vadd.f32 %v1855_v11, %v1847_v9  ;;  %v1901_v9 = vld [vmem:[#allocation3 + $0x10] sm:$0xff]  ;;  %v1902_v11 = vld [vmem:[#allocation3 + $0x18] sm:$0xff] }
0x150d   :  { %9909 = vtanh.f32 %v1857_v10  ;;  %v1903_v10 = vld [vmem:[#allocation3 + $0x20] sm:$0xff] }
0x1512   :  { %v1879_v14 = vpop.permute.xlu0 %1878 }
0x1513   :  { %v1881_v0 = vadd.f32 %v1879_v14, %v1871_v16  ;;  %v1904_v16 = vld [vmem:[#allocation3 + $0x28] sm:$0xff]  ;;  %v1905_v14 = vld [vmem:[#allocation3 + $0x30] sm:$0xff] }
0x1515   :  { %9911 = vtanh.f32 %v1881_v0 }
0x1517   :  { %v9910_v15 = vpop.eup %9909 }
0x1518   :  { %1860 = vrot.lane.b32.xlu1 %v9910_v15, %s10300_s9  ;;  %v2327_v15 = vpop.f32.mrb[24].mxu1 }
0x151f   :  { %v9912_v19 = vpop.eup %9911 }
0x1520   :  { %1884 = vrot.lane.b32.xlu0 %v9912_v19, %s10300_s9  ;;  %v8745_v19 = vpop.f32.mrb[25].mxu1 }
0x1521   :  { %v2399_v17 = vpop.f32.mrb[26].mxu1 }
0x1522   :  { %v8756_v18 = vpop.f32.mrb[27].mxu1 }
0x158a   :  { %v1861_v34 = vpop.permute.xlu1 %1860 }
0x158b   :  { %v1863_v38 = vmul.f32 %v9906_v30, %v1861_v34  ;;  %v1919_v30 = vld [vmem:[#allocation4 + $0x20] sm:$0xff] }
0x158d   :  { %1889 = vrot.lane.b32.xlu1 %v1863_v38, %s10301_s10 }
0x1592   :  { %v1885_v40 = vpop.permute.xlu0 %1884 }
0x1593   :  { %v1887_v29 = vmul.f32 %v9908_v6, %v1885_v40  ;;  %v1922_v6 = vld [vmem:[#allocation4 + $0x38] sm:$0xff] }
0x1595   :  { %1895 = vrot.lane.b32.xlu0 %v1887_v29, %s10301_s10 }
0x15ff   :  { %v1890_v53 = vpop.permute.xlu1 %1889 }
0x1600   :  { %1893 = vst.msk [vmem:[#allocation3 + $0x38] sm:$0xff] %vm217_vm2, %v1890_v53 }
0x1607   :  { %v1896_v54 = vpop.permute.xlu0 %1895  ;;  %v1906_v0 = vld [vmem:[#allocation3 + $0x38] sm:$0xff] }
0x1608   :  { %1898 = vst.msk [vmem:[#allocation4] sm:$0xff] %vm217_vm2, %v1896_v54 }
0x160f   :  { %v1915_v31 = vld [vmem:[#allocation4] sm:$0xff] }
0x1610   :  { %8031 = vmatmul.mubr.msk.f32.vlgmr.msra.gmra.mrb[24].mxu0 %vm217_vm2, %v1915_v31 }
0x1611   :  { %9393 = vmatpush1.bf16.msra.mxu0 %v9392_v57  ;;  %2025 = vmatprep.mubr.f32.mxu0 %v10297_v3 }
0x1612   :  { %9395 = vmatprep.subr.bf16.mxu0 %v9394_v58 }
0x1614   :  { %8032 = vmatmul.mubr.msk.f32.gmra.mrb[26].mxu0 %vm217_vm2, %v1916_v60 }
0x1615   :  { %2031 = vmatprep.mubr.f32.mxu0 %v10297_v3  ;;  %9397 = vmatpush1.bf16.msra.mxu0 %v9396_v32 }
0x1616   :  { %9446 = vmatprep.subr.bf16.mxu0 %v10298_v12 }
0x1618   :  { %8033 = vmatmul.mubr.msk.f32.gmra.mrb[28].mxu0 %vm217_vm2, %v1917_v61 }
0x1619   :  { %2037 = vmatprep.mubr.f32.mxu0 %v10297_v3 }
0x161c   :  { %8034 = vmatmul.mubr.msk.f32.gmra.mrb[30].mxu0 %vm217_vm2, %v1918_v62 }
0x161d   :  { %2043 = vmatprep.mubr.f32.mxu0 %v10297_v3 }
0x1620   :  { %8035 = vmatmul.mubr.msk.f32.gmra.mrb[32].mxu0 %vm217_vm2, %v1919_v30 }
0x1621   :  { %2049 = vmatprep.mubr.f32.mxu0 %v10297_v3 }
0x1624   :  { %8036 = vmatmul.mubr.msk.f32.gmra.mrb[34].mxu0 %vm217_vm2, %v1920_v39 }
0x1625   :  { %2055 = vmatprep.mubr.f32.mxu0 %v10297_v3 }
0x1628   :  { %8037 = vmatmul.mubr.msk.f32.gmra.mrb[36].mxu0 %vm217_vm2, %v1921_v1 }
0x1629   :  { %2061 = vmatprep.mubr.f32.mxu0 %v10297_v3 }
0x162c   :  { %8038 = vmatmul.mubr.msk.f32.gmra.mrb[38].mxu0 %vm217_vm2, %v1922_v6 }
0x162d   :  { %2156 = vmatprep.mubr.f32.mxu0 %v10297_v3 }
0x1630   :  { %8039 = vmatmul.mubr.msk.f32.vlgmr.msra.gmra.mrb[24].mxu0 %vm217_vm2, %v1899_v7 }
0x1631   :  { %2162 = vmatprep.mubr.f32.mxu0 %v10297_v3  ;;  %9448 = vmatpush3.bf16.msra.mxu0 %v10766_v43 }
0x1632   :  { %9449 = vmatprep.subr.bf16.mxu0 %v10298_v12 }
0x1634   :  { %8040 = vmatmul.mubr.msk.f32.gmra.mrb[26].mxu0 %vm217_vm2, %v1900_v8 }
0x1635   :  { %2168 = vmatprep.mubr.f32.mxu0 %v10297_v3  ;;  %9451 = vmatpush3.bf16.msra.mxu0 %v10776_v46 }
0x1636   :  { %9458 = vmatprep.subr.bf16.mxu0 %v10298_v12 }
0x1638   :  { %8041 = vmatmul.mubr.msk.f32.gmra.mrb[28].mxu0 %vm217_vm2, %v1901_v9 }
0x1639   :  { %2174 = vmatprep.mubr.f32.mxu0 %v10297_v3 }
0x163c   :  { %8042 = vmatmul.mubr.msk.f32.gmra.mrb[30].mxu0 %vm217_vm2, %v1902_v11 }
0x163d   :  { %2180 = vmatprep.mubr.f32.mxu0 %v10297_v3 }
0x1640   :  { %8043 = vmatmul.mubr.msk.f32.gmra.mrb[32].mxu0 %vm217_vm2, %v1903_v10 }
0x1641   :  { %2186 = vmatprep.mubr.f32.mxu0 %v10297_v3 }
0x1644   :  { %8044 = vmatmul.mubr.msk.f32.gmra.mrb[34].mxu0 %vm217_vm2, %v1904_v16 }
0x1645   :  { %2192 = vmatprep.mubr.f32.mxu0 %v10297_v3 }
0x1648   :  { %8045 = vmatmul.mubr.msk.f32.gmra.mrb[36].mxu0 %vm217_vm2, %v1905_v14 }
0x1649   :  { %2198 = vmatprep.mubr.f32.mxu0 %v10297_v3 }
0x164c   :  { %8046 = vmatmul.mubr.msk.f32.gmra.mrb[38].mxu0 %vm217_vm2, %v1906_v0 }
0x164d   :  { %8831 = vmatprep.mubr.msk.f32.mxu0 %vm10299_vm1, %v10297_v3 }
0x1703   :  { %v2158_v27 = vpop.f32.mrb[24].mxu0 }
0x1704   :  { %v2218_v21 = vadd.f32 %v2211_v22, %v2158_v27  ;;  %v2160_v23 = vpop.f32.mrb[25].mxu0 }
0x1705   :  { %v10873_v24 = vadd.f32 %v2215_v4, %v2160_v23 }
0x1706   :  { %v2331_v26 = vadd.f32 %v2327_v15, %v2218_v21 }
0x1707   :  { %v2164_v13 = vpop.f32.mrb[26].mxu0 }
0x1708   :  { %9913 = vtanh.f32 %v2331_v26  ;;  %v10875_v28 = vadd.f32 %v2211_v22, %v2164_v13  ;;  %v2166_v33 = vpop.f32.mrb[27].mxu0  ;;  %v8056_v62 = vmul.f32 -1.442695, %v2331_v26 }
0x1709   :  { %v10877_v34 = vadd.f32 %v2215_v4, %v2166_v33 }
0x170b   :  { %v2170_v35 = vpop.f32.mrb[28].mxu0 }
0x170c   :  { %v10879_v37 = vadd.f32 %v2211_v22, %v2170_v35  ;;  %v2172_v38 = vpop.f32.mrb[29].mxu0 }
0x170d   :  { %v10881_v40 = vadd.f32 %v2215_v4, %v2172_v38 }
0x170f   :  { %v2176_v29 = vpop.f32.mrb[30].mxu0 }
0x1710   :  { %v10883_v41 = vadd.f32 %v2211_v22, %v2176_v29  ;;  %v2178_v42 = vpop.f32.mrb[31].mxu0 }
0x1711   :  { %v10885_v44 = vadd.f32 %v2215_v4, %v2178_v42 }
0x1712   :  { %v9914_v45 = vpop.eup %9913 }
0x1713   :  { %2413 = vrot.lane.b32.xlu0 %v9914_v45, %s10300_s9  ;;  %v2182_v5 = vpop.f32.mrb[32].mxu0 }
0x1714   :  { %v10888_v47 = vadd.f32 %v2211_v22, %v2182_v5  ;;  %v2184_v50 = vpop.f32.mrb[33].mxu0 }
0x1715   :  { %v10890_v52 = vadd.f32 %v2215_v4, %v2184_v50 }
0x1717   :  { %v2188_v53 = vpop.f32.mrb[34].mxu0 }
0x1718   :  { %v10892_v54 = vadd.f32 %v2211_v22, %v2188_v53  ;;  %v2190_v48 = vpop.f32.mrb[35].mxu0 }
0x1719   :  { %v10894_v55 = vadd.f32 %v2215_v4, %v2190_v48 }
0x171b   :  { %v2194_v56 = vpop.f32.mrb[36].mxu0 }
0x171c   :  { %v10896_v51 = vadd.f32 %v2211_v22, %v2194_v56  ;;  %v2196_v57 = vpop.f32.mrb[37].mxu0 }
0x171d   :  { %v10898_v58 = vadd.f32 %v2215_v4, %v2196_v57 }
0x171f   :  { %v2200_v2 = vpop.f32.mrb[38].mxu0 }
0x1720   :  { %v10900_v59 = vadd.f32 %v2211_v22, %v2200_v2  ;;  %v2202_v31 = vpop.f32.mrb[39].mxu0 }
0x1721   :  { %v2233_v32 = vadd.f32 %v2215_v4, %v2202_v31 }
0x1723   :  { %v2403_v60 = vadd.f32 %v2399_v17, %v2233_v32 }
0x1725   :  { %9915 = vtanh.f32 %v2403_v60  ;;  %v8057_v1 = vmul.f32 -1.442695, %v2403_v60 }
0x1726   :  { %9917 = vpow2.f32 %v8056_v62 }
0x172f   :  { %v9916_v61 = vpop.eup %9915 }
0x1730   :  { %2437 = vrot.lane.b32.xlu1 %v9916_v61, %s10300_s9  ;;  %v9918_v30 = vpop.eup %9917 }
0x1731   :  { %v2407_v39 = vadd.f32 1.0, %v9918_v30 }
0x1733   :  { %9919 = vrcp.f32 %v2407_v39 }
0x1734   :  { %9921 = vpow2.f32 %v8057_v1 }
0x173d   :  { %v9920_v6 = vpop.eup %9919 }
0x173e   :  { %v9922_v9 = vpop.eup %9921  ;;  %v2411_v0 = vmul.f32 0.0, %v9920_v6 }
0x173f   :  { %v2431_v11 = vadd.f32 1.0, %v9922_v9 }
0x1741   :  { %9923 = vrcp.f32 %v2431_v11 }
0x174b   :  { %v9924_v10 = vpop.eup %9923 }
0x174c   :  { %v2435_v18 = vmul.f32 0.0, %v9924_v10 }
0x1785   :  { %v2414_v7 = vpop.permute.xlu0 %2413 }
0x1786   :  { %v2416_v8 = vmul.f32 %v9920_v6, %v2414_v7 }
0x1788   :  { %2418 = vrot.lane.b32.xlu0 %v2416_v8, %s10301_s10 }
0x17a2   :  { %v2438_v16 = vpop.permute.xlu1 %2437 }
0x17a3   :  { %v2440_v14 = vmul.f32 %v9924_v10, %v2438_v16 }
0x17a5   :  { %2442 = vrot.lane.b32.xlu1 %v2440_v14, %s10301_s10 }
0x17fa   :  { %v2419_v15 = vpop.permute.xlu0 %2418 }
0x17fb   :  { %v2421_v19 = vadd.f32 %v2419_v15, %v2411_v0 }
0x17fd   :  { %9925 = vtanh.f32 %v2421_v19 }
0x1807   :  { %v9926_v17 = vpop.eup %9925 }
0x1808   :  { %2424 = vrot.lane.b32.xlu0 %v9926_v17, %s10300_s9 }
0x1817   :  { %v2443_v20 = vpop.permute.xlu1 %2442 }
0x1818   :  { %v2445_v22 = vadd.f32 %v2443_v20, %v2435_v18 }
0x181a   :  { %9927 = vtanh.f32 %v2445_v22 }
0x1824   :  { %v9928_v4 = vpop.eup %9927 }
0x1825   :  { %2448 = vrot.lane.b32.xlu1 %v9928_v4, %s10300_s9 }
0x187a   :  { %v2425_v27 = vpop.permute.xlu0 %2424 }
0x187b   :  { %v2427_v21 = vmul.f32 %v9920_v6, %v2425_v27 }
0x187d   :  { %2453 = vrot.lane.b32.xlu0 %v2427_v21, %s10301_s10 }
0x1897   :  { %v2449_v23 = vpop.permute.xlu1 %2448 }
0x1898   :  { %v2451_v26 = vmul.f32 %v9924_v10, %v2449_v23 }
0x189a   :  { %2458 = vrot.lane.b32.xlu1 %v2451_v26, %s10301_s10 }
0x18ef   :  { %v2454_v13 = vpop.permute.xlu0 %2453 }
0x18f0   :  { %2456 = vst.msk [vmem:[#allocation3] sm:$0xff] %vm217_vm2, %v2454_v13  ;;  %8766 = vmatmul.mubr.msk.f32.vlgmr.msra.gmra.mrb[28].mxu1 %vm217_vm2, %v2454_v13 }
0x18f1   :  { %9418 = vmatpush3.bf16.msra.mxu1 %v10789_v49  ;;  %8776 = vmatprep.mubr.msk.f32.mxu1 %vm10299_vm1, %v10297_v3 }
0x18f2   :  { %9419 = vmatprep.subr.bf16.mxu1 %v10298_v12 }
0x18f5   :  { %9421 = vmatpush3.bf16.msra.mxu1 %v10799_v63 }
0x18f6   :  { %9422 = vmatprep.subr.bf16.mxu1 %v10298_v12 }
0x190c   :  { %v2459_v33 = vpop.permute.xlu1 %2458 }
0x190d   :  { %2461 = vst.msk [vmem:[#allocation4 + $0x38] sm:$0xff] %vm217_vm2, %v2459_v33  ;;  %8777 = vmatmul.mubr.msk.f32.vlgmr.msra.gmra.mrb[30].mxu1 %vm217_vm2, %v2459_v33 }
0x190e   :  { %9424 = vmatpush3.bf16.msra.mxu1 %v10766_v43  ;;  %8787 = vmatprep.mubr.msk.f32.mxu1 %vm10299_vm1, %v10297_v3 }
0x190f   :  { %9425 = vmatprep.subr.bf16.mxu1 %v10298_v12 }
0x1912   :  { %9427 = vmatpush3.bf16.msra.mxu1 %v10776_v46 }
0x1913   :  { %9428 = vmatprep.subr.bf16.mxu1 %v10298_v12 }
0x19c3   :  { %v2531_v35 = vpop.f32.mrb[28].mxu1 }
0x19c4   :  { %v2535_v38 = vadd.f32 %v2531_v35, %v10875_v28  ;;  %v8767_v29 = vpop.f32.mrb[29].mxu1 }
0x19c6   :  { %9929 = vtanh.f32 %v2535_v38  ;;  %v8060_v48 = vmul.f32 -1.442695, %v2535_v38 }
0x19d0   :  { %v9930_v42 = vpop.eup %9929 }
0x19d1   :  { %2619 = vrot.lane.b32.xlu0 %v9930_v42, %s10300_s9 }
0x19e0   :  { %v2605_v45 = vpop.f32.mrb[30].mxu1 }
0x19e1   :  { %v2609_v5 = vadd.f32 %v2605_v45, %v10898_v58  ;;  %v8778_v50 = vpop.f32.mrb[31].mxu1 }
0x19e3   :  { %9931 = vtanh.f32 %v2609_v5  ;;  %v8061_v2 = vmul.f32 -1.442695, %v2609_v5 }
0x19e4   :  { %9933 = vpow2.f32 %v8060_v48 }
0x19ed   :  { %v9932_v53 = vpop.eup %9931 }
0x19ee   :  { %2643 = vrot.lane.b32.xlu1 %v9932_v53, %s10300_s9  ;;  %v9934_v56 = vpop.eup %9933 }
0x19ef   :  { %v2613_v57 = vadd.f32 1.0, %v9934_v56 }
0x19f1   :  { %9935 = vrcp.f32 %v2613_v57 }
0x19f2   :  { %9937 = vpow2.f32 %v8061_v2 }
0x19fb   :  { %v9936_v28 = vpop.eup %9935 }
0x19fc   :  { %v9938_v60 = vpop.eup %9937  ;;  %v2617_v39 = vmul.f32 %v9936_v28, %v2421_v19 }
0x19fd   :  { %v2637_v61 = vadd.f32 1.0, %v9938_v60 }
0x19ff   :  { %9939 = vrcp.f32 %v2637_v61 }
0x1a09   :  { %v9940_v58 = vpop.eup %9939 }
0x1a0a   :  { %v2641_v8 = vmul.f32 %v9940_v58, %v2445_v22 }
0x1a43   :  { %v2620_v31 = vpop.permute.xlu0 %2619 }
0x1a44   :  { %v2622_v32 = vmul.f32 %v9936_v28, %v2620_v31 }
0x1a46   :  { %2624 = vrot.lane.b32.xlu0 %v2622_v32, %s10301_s10 }
0x1a60   :  { %v2644_v62 = vpop.permute.xlu1 %2643 }
0x1a61   :  { %v2646_v30 = vmul.f32 %v9940_v58, %v2644_v62 }
0x1a63   :  { %2648 = vrot.lane.b32.xlu1 %v2646_v30, %s10301_s10 }
0x1ab8   :  { %v2625_v1 = vpop.permute.xlu0 %2624 }
0x1ab9   :  { %v2627_v6 = vadd.f32 %v2625_v1, %v2617_v39 }
0x1abb   :  { %9941 = vtanh.f32 %v2627_v6 }
0x1ac5   :  { %v9942_v7 = vpop.eup %9941 }
0x1ac6   :  { %2630 = vrot.lane.b32.xlu0 %v9942_v7, %s10300_s9 }
0x1ad5   :  { %v2649_v9 = vpop.permute.xlu1 %2648 }
0x1ad6   :  { %v2651_v11 = vadd.f32 %v2649_v9, %v2641_v8 }
0x1ad8   :  { %9943 = vtanh.f32 %v2651_v11 }
0x1ae2   :  { %v9944_v10 = vpop.eup %9943 }
0x1ae3   :  { %2654 = vrot.lane.b32.xlu1 %v9944_v10, %s10300_s9 }
0x1b38   :  { %v2631_v16 = vpop.permute.xlu0 %2630 }
0x1b39   :  { %v2633_v14 = vmul.f32 %v9936_v28, %v2631_v16 }
0x1b3b   :  { %2659 = vrot.lane.b32.xlu0 %v2633_v14, %s10301_s10 }
0x1b55   :  { %v2655_v0 = vpop.permute.xlu1 %2654 }
0x1b56   :  { %v2657_v15 = vmul.f32 %v9940_v58, %v2655_v0 }
0x1b58   :  { %2664 = vrot.lane.b32.xlu1 %v2657_v15, %s10301_s10 }
0x1bad   :  { %v2660_v19 = vpop.permute.xlu0 %2659 }
0x1bae   :  { %2662 = vst.msk [vmem:[#allocation3 + $0x8] sm:$0xff] %vm217_vm2, %v2660_v19  ;;  %8788 = vmatmul.mubr.msk.f32.vlgmr.msra.gmra.mrb[32].mxu1 %vm217_vm2, %v2660_v19 }
0x1baf   :  { %9430 = vmatpush3.bf16.msra.mxu1 %v10789_v49  ;;  %8798 = vmatprep.mubr.msk.f32.mxu1 %vm10299_vm1, %v10297_v3 }
0x1bb0   :  { %9431 = vmatprep.subr.bf16.mxu1 %v10298_v12 }
0x1bb3   :  { %9433 = vmatpush3.bf16.msra.mxu1 %v10799_v63 }
0x1bb4   :  { %9434 = vmatprep.subr.bf16.mxu1 %v10298_v12 }
0x1bca   :  { %v2665_v17 = vpop.permute.xlu1 %2664 }
0x1bcb   :  { %2667 = vst.msk [vmem:[#allocation4 + $0x30] sm:$0xff] %vm217_vm2, %v2665_v17  ;;  %8799 = vmatmul.mubr.msk.f32.vlgmr.msra.gmra.mrb[34].mxu1 %vm217_vm2, %v2665_v17 }
0x1bcc   :  { %9436 = vmatpush3.bf16.msra.mxu1 %v10766_v43  ;;  %8809 = vmatprep.mubr.msk.f32.mxu1 %vm10299_vm1, %v10297_v3 }
0x1bcd   :  { %9437 = vmatprep.subr.bf16.mxu1 %v10298_v12 }
0x1bd0   :  { %9439 = vmatpush3.bf16.msra.mxu1 %v10776_v46 }
0x1bd1   :  { %9440 = vmatprep.subr.bf16.mxu1 %v10298_v12 }
0x1c81   :  { %v2737_v18 = vpop.f32.mrb[32].mxu1 }
0x1c82   :  { %v2741_v20 = vadd.f32 %v2737_v18, %v10879_v37  ;;  %v8789_v22 = vpop.f32.mrb[33].mxu1 }
0x1c84   :  { %9945 = vtanh.f32 %v2741_v20  ;;  %v8064_v13 = vmul.f32 -1.442695, %v2741_v20 }
0x1c8e   :  { %v9946_v4 = vpop.eup %9945 }
0x1c8f   :  { %2825 = vrot.lane.b32.xlu0 %v9946_v4, %s10300_s9 }
0x1c9e   :  { %v2811_v27 = vpop.f32.mrb[34].mxu1 }
0x1c9f   :  { %v2815_v21 = vadd.f32 %v2811_v27, %v10894_v55  ;;  %v8800_v23 = vpop.f32.mrb[35].mxu1 }
0x1ca1   :  { %9947 = vtanh.f32 %v2815_v21  ;;  %v8065_v38 = vmul.f32 -1.442695, %v2815_v21 }
0x1ca2   :  { %9949 = vpow2.f32 %v8064_v13 }
0x1cab   :  { %v9948_v26 = vpop.eup %9947 }
0x1cac   :  { %2849 = vrot.lane.b32.xlu1 %v9948_v26, %s10300_s9  ;;  %v9950_v33 = vpop.eup %9949 }
0x1cad   :  { %v2819_v35 = vadd.f32 1.0, %v9950_v33 }
0x1caf   :  { %9951 = vrcp.f32 %v2819_v35 }
0x1cb0   :  { %9953 = vpow2.f32 %v8065_v38 }
0x1cb9   :  { %v9952_v37 = vpop.eup %9951 }
0x1cba   :  { %v9954_v45 = vpop.eup %9953  ;;  %v2823_v48 = vmul.f32 %v9952_v37, %v2627_v6 }
0x1cbb   :  { %v2843_v5 = vadd.f32 1.0, %v9954_v45 }
0x1cbd   :  { %9955 = vrcp.f32 %v2843_v5 }
0x1cc7   :  { %v9956_v55 = vpop.eup %9955 }
0x1cc8   :  { %v2847_v28 = vmul.f32 %v9956_v55, %v2651_v11 }
0x1d01   :  { %v2826_v29 = vpop.permute.xlu0 %2825 }
0x1d02   :  { %v2828_v42 = vmul.f32 %v9952_v37, %v2826_v29 }
0x1d04   :  { %2830 = vrot.lane.b32.xlu0 %v2828_v42, %s10301_s10 }
0x1d1e   :  { %v2850_v50 = vpop.permute.xlu1 %2849 }
0x1d1f   :  { %v2852_v53 = vmul.f32 %v9956_v55, %v2850_v50 }
0x1d21   :  { %2854 = vrot.lane.b32.xlu1 %v2852_v53, %s10301_s10 }
0x1d76   :  { %v2831_v56 = vpop.permute.xlu0 %2830 }
0x1d77   :  { %v2833_v57 = vadd.f32 %v2831_v56, %v2823_v48 }
0x1d79   :  { %9957 = vtanh.f32 %v2833_v57 }
0x1d83   :  { %v9958_v2 = vpop.eup %9957 }
0x1d84   :  { %2836 = vrot.lane.b32.xlu0 %v9958_v2, %s10300_s9 }
0x1d93   :  { %v2855_v31 = vpop.permute.xlu1 %2854 }
0x1d94   :  { %v2857_v32 = vadd.f32 %v2855_v31, %v2847_v28 }
0x1d96   :  { %9959 = vtanh.f32 %v2857_v32 }
0x1da0   :  { %v9960_v60 = vpop.eup %9959 }
0x1da1   :  { %2860 = vrot.lane.b32.xlu1 %v9960_v60, %s10300_s9 }
0x1df6   :  { %v2837_v61 = vpop.permute.xlu0 %2836 }
0x1df7   :  { %v2839_v58 = vmul.f32 %v9952_v37, %v2837_v61 }
0x1df9   :  { %2865 = vrot.lane.b32.xlu0 %v2839_v58, %s10301_s10 }
0x1e13   :  { %v2861_v62 = vpop.permute.xlu1 %2860 }
0x1e14   :  { %v2863_v30 = vmul.f32 %v9956_v55, %v2861_v62 }
0x1e16   :  { %2870 = vrot.lane.b32.xlu1 %v2863_v30, %s10301_s10 }
0x1e6b   :  { %v2866_v39 = vpop.permute.xlu0 %2865 }
0x1e6c   :  { %2868 = vst.msk [vmem:[#allocation3 + $0x10] sm:$0xff] %vm217_vm2, %v2866_v39  ;;  %8810 = vmatmul.mubr.msk.f32.vlgmr.msra.gmra.mrb[36].mxu1 %vm217_vm2, %v2866_v39 }
0x1e6d   :  { %9442 = vmatpush3.bf16.msra.mxu1 %v10789_v49  ;;  %8820 = vmatprep.mubr.msk.f32.mxu1 %vm10299_vm1, %v10297_v3 }
0x1e6e   :  { %9443 = vmatprep.subr.bf16.mxu1 %v10298_v12 }
0x1e71   :  { %9445 = vmatpush3.bf16.msra.mxu1 %v10799_v63 }
0x1e72   :  { %9452 = vmatprep.subr.bf16.mxu1 %v10298_v12 }
0x1e88   :  { %v2871_v1 = vpop.permute.xlu1 %2870 }
0x1e89   :  { %2873 = vst.msk [vmem:[#allocation4 + $0x28] sm:$0xff] %vm217_vm2, %v2871_v1  ;;  %8821 = vmatmul.mubr.msk.f32.vlgmr.msra.gmra.mrb[38].mxu1 %vm217_vm2, %v2871_v1 }
0x1e8a   :  { %9454 = vmatpush3.bf16.msra.mxu1 %v10789_v49  ;;  %8842 = vmatprep.mubr.msk.f32.mxu1 %vm10299_vm1, %v10297_v3 }
0x1e8b   :  { %9455 = vmatprep.subr.bf16.mxu1 %v10298_v12 }
0x1e8e   :  { %9457 = vmatpush3.bf16.msra.mxu1 %v10799_v63 }
0x1e8f   :  { %9464 = vmatprep.subr.bf16.mxu1 %v10298_v12 }
0x1f3f   :  { %v2943_v6 = vpop.f32.mrb[36].mxu1 }
0x1f40   :  { %v2947_v7 = vadd.f32 %v2943_v6, %v10883_v41  ;;  %v8811_v8 = vpop.f32.mrb[37].mxu1 }
0x1f42   :  { %9961 = vtanh.f32 %v2947_v7  ;;  %v8068_v0 = vmul.f32 -1.442695, %v2947_v7 }
0x1f4c   :  { %v9962_v9 = vpop.eup %9961 }
0x1f4d   :  { %3031 = vrot.lane.b32.xlu1 %v9962_v9, %s10300_s9 }
0x1f5c   :  { %v3017_v11 = vpop.f32.mrb[38].mxu1 }
0x1f5d   :  { %v3021_v10 = vadd.f32 %v3017_v11, %v10890_v52  ;;  %v8822_v16 = vpop.f32.mrb[39].mxu1 }
0x1f5f   :  { %9963 = vtanh.f32 %v3021_v10  ;;  %v8069_v17 = vmul.f32 -1.442695, %v3021_v10 }
0x1f60   :  { %9965 = vpow2.f32 %v8068_v0 }
0x1f69   :  { %v9964_v14 = vpop.eup %9963 }
0x1f6a   :  { %3055 = vrot.lane.b32.xlu0 %v9964_v14, %s10300_s9  ;;  %v9966_v15 = vpop.eup %9965 }
0x1f6b   :  { %v3025_v19 = vadd.f32 1.0, %v9966_v15 }
0x1f6d   :  { %9967 = vrcp.f32 %v3025_v19 }
0x1f6e   :  { %9969 = vpow2.f32 %v8069_v17 }
0x1f77   :  { %v9968_v41 = vpop.eup %9967 }
0x1f78   :  { %v9970_v22 = vpop.eup %9969  ;;  %v3029_v23 = vmul.f32 %v9968_v41, %v2833_v57 }
0x1f79   :  { %v3049_v4 = vadd.f32 1.0, %v9970_v22 }
0x1f7b   :  { %9971 = vrcp.f32 %v3049_v4 }
0x1f85   :  { %v9972_v52 = vpop.eup %9971 }
0x1f86   :  { %v3053_v35 = vmul.f32 %v9972_v52, %v2857_v32 }
0x1fbf   :  { %v3032_v18 = vpop.permute.xlu1 %3031 }
0x1fc0   :  { %v3034_v20 = vmul.f32 %v9968_v41, %v3032_v18 }
0x1fc2   :  { %3036 = vrot.lane.b32.xlu1 %v3034_v20, %s10301_s10 }
0x1fdc   :  { %v3056_v27 = vpop.permute.xlu0 %3055 }
0x1fdd   :  { %v3058_v21 = vmul.f32 %v9972_v52, %v3056_v27 }
0x1fdf   :  { %3060 = vrot.lane.b32.xlu0 %v3058_v21, %s10301_s10 }
0x2034   :  { %v3037_v26 = vpop.permute.xlu1 %3036 }
0x2035   :  { %v3039_v13 = vadd.f32 %v3037_v26, %v3029_v23 }
0x2037   :  { %9973 = vtanh.f32 %v3039_v13 }
0x2041   :  { %v9974_v33 = vpop.eup %9973 }
0x2042   :  { %3042 = vrot.lane.b32.xlu1 %v9974_v33, %s10300_s9 }
0x2051   :  { %v3061_v38 = vpop.permute.xlu0 %3060 }
0x2052   :  { %v3063_v37 = vadd.f32 %v3061_v38, %v3053_v35 }
0x2054   :  { %9975 = vtanh.f32 %v3063_v37 }
0x205e   :  { %v9976_v29 = vpop.eup %9975 }
0x205f   :  { %3066 = vrot.lane.b32.xlu0 %v9976_v29, %s10300_s9 }
0x20b4   :  { %v3043_v42 = vpop.permute.xlu1 %3042 }
0x20b5   :  { %v3045_v45 = vmul.f32 %v9968_v41, %v3043_v42 }
0x20b7   :  { %3071 = vrot.lane.b32.xlu1 %v3045_v45, %s10301_s10 }
0x20d1   :  { %v3067_v5 = vpop.permute.xlu0 %3066 }
0x20d2   :  { %v3069_v55 = vmul.f32 %v9972_v52, %v3067_v5 }
0x20d4   :  { %3076 = vrot.lane.b32.xlu0 %v3069_v55, %s10301_s10 }
0x2129   :  { %v3072_v50 = vpop.permute.xlu1 %3071 }
0x212a   :  { %3074 = vst.msk [vmem:[#allocation3 + $0x18] sm:$0xff] %vm217_vm2, %v3072_v50  ;;  %8832 = vmatmul.mubr.msk.f32.vlgmr.msra.gmra.mrb[40].mxu0 %vm217_vm2, %v3072_v50 }
0x212b   :  { %9460 = vmatpush3.bf16.msra.mxu0 %v10766_v43  ;;  %8853 = vmatprep.mubr.msk.f32.mxu0 %vm10299_vm1, %v10297_v3 }
0x212c   :  { %9461 = vmatprep.subr.bf16.mxu0 %v10298_v12 }
0x212f   :  { %9463 = vmatpush3.bf16.msra.mxu0 %v10776_v46 }
0x2130   :  { %9470 = vmatprep.subr.bf16.mxu0 %v10298_v12 }
0x2146   :  { %v3077_v53 = vpop.permute.xlu0 %3076 }
0x2147   :  { %3079 = vst.msk [vmem:[#allocation4 + $0x20] sm:$0xff] %vm217_vm2, %v3077_v53  ;;  %8843 = vmatmul.mubr.msk.f32.vlgmr.msra.gmra.mrb[40].mxu1 %vm217_vm2, %v3077_v53 }
0x2148   :  { %9466 = vmatpush3.bf16.msra.mxu1 %v10789_v49  ;;  %8864 = vmatprep.mubr.msk.f32.mxu1 %vm10299_vm1, %v10297_v3 }
0x2149   :  { %9467 = vmatprep.subr.bf16.mxu1 %v10298_v12 }
0x214c   :  { %9469 = vmatpush3.bf16.msra.mxu1 %v10799_v63 }
0x214d   :  { %9476 = vmatprep.subr.bf16.mxu1 %v10298_v12 }
0x21fd   :  { %v3149_v48 = vpop.f32.mrb[40].mxu0 }
0x21fe   :  { %v3153_v56 = vadd.f32 %v3149_v48, %v10888_v47  ;;  %v8833_v57 = vpop.f32.mrb[41].mxu0 }
0x2200   :  { %9977 = vtanh.f32 %v3153_v56  ;;  %v8072_v61 = vmul.f32 -1.442695, %v3153_v56 }
0x220a   :  { %v9978_v2 = vpop.eup %9977 }
0x220b   :  { %3237 = vrot.lane.b32.xlu1 %v9978_v2, %s10300_s9 }
0x221a   :  { %v3223_v28 = vpop.f32.mrb[40].mxu1 }
0x221b   :  { %v3227_v31 = vadd.f32 %v3223_v28, %v10885_v44  ;;  %v8844_v32 = vpop.f32.mrb[41].mxu1 }
0x221d   :  { %9979 = vtanh.f32 %v3227_v31  ;;  %v8073_v30 = vmul.f32 -1.442695, %v3227_v31 }
0x221e   :  { %9981 = vpow2.f32 %v8072_v61 }
0x2227   :  { %v9980_v60 = vpop.eup %9979 }
0x2228   :  { %3261 = vrot.lane.b32.xlu0 %v9980_v60, %s10300_s9  ;;  %v9982_v58 = vpop.eup %9981 }
0x2229   :  { %v3231_v62 = vadd.f32 1.0, %v9982_v58 }
0x222b   :  { %9983 = vrcp.f32 %v3231_v62 }
0x222c   :  { %9985 = vpow2.f32 %v8073_v30 }
0x2235   :  { %v9984_v47 = vpop.eup %9983 }
0x2236   :  { %v9986_v6 = vpop.eup %9985  ;;  %v3235_v11 = vmul.f32 %v9984_v47, %v3039_v13 }
0x2237   :  { %v3255_v7 = vadd.f32 1.0, %v9986_v6 }
0x2239   :  { %9987 = vrcp.f32 %v3255_v7 }
0x2243   :  { %v9988_v44 = vpop.eup %9987 }
0x2244   :  { %v3259_v0 = vmul.f32 %v9988_v44, %v3063_v37 }
0x227d   :  { %v3238_v39 = vpop.permute.xlu1 %3237 }
0x227e   :  { %v3240_v1 = vmul.f32 %v9984_v47, %v3238_v39 }
0x2280   :  { %3242 = vrot.lane.b32.xlu1 %v3240_v1, %s10301_s10 }
0x229a   :  { %v3262_v8 = vpop.permute.xlu0 %3261 }
0x229b   :  { %v3264_v9 = vmul.f32 %v9988_v44, %v3262_v8 }
0x229d   :  { %3266 = vrot.lane.b32.xlu0 %v3264_v9, %s10301_s10 }
0x22f2   :  { %v3243_v10 = vpop.permute.xlu1 %3242 }
0x22f3   :  { %v3245_v16 = vadd.f32 %v3243_v10, %v3235_v11 }
0x22f5   :  { %9989 = vtanh.f32 %v3245_v16 }
0x22ff   :  { %v9990_v14 = vpop.eup %9989 }
0x2300   :  { %3248 = vrot.lane.b32.xlu1 %v9990_v14, %s10300_s9 }
0x230f   :  { %v3267_v15 = vpop.permute.xlu0 %3266 }
0x2310   :  { %v3269_v19 = vadd.f32 %v3267_v15, %v3259_v0 }
0x2312   :  { %9991 = vtanh.f32 %v3269_v19 }
0x231c   :  { %v9992_v17 = vpop.eup %9991 }
0x231d   :  { %3272 = vrot.lane.b32.xlu0 %v9992_v17, %s10300_s9 }
0x2372   :  { %v3249_v41 = vpop.permute.xlu1 %3248 }
0x2373   :  { %v3251_v18 = vmul.f32 %v9984_v47, %v3249_v41 }
0x2375   :  { %3277 = vrot.lane.b32.xlu1 %v3251_v18, %s10301_s10 }
0x238f   :  { %v3273_v20 = vpop.permute.xlu0 %3272 }
0x2390   :  { %v3275_v22 = vmul.f32 %v9988_v44, %v3273_v20 }
0x2392   :  { %3282 = vrot.lane.b32.xlu0 %v3275_v22, %s10301_s10 }
0x23e7   :  { %v3278_v4 = vpop.permute.xlu1 %3277 }
0x23e8   :  { %3280 = vst.msk [vmem:[#allocation3 + $0x20] sm:$0xff] %vm217_vm2, %v3278_v4  ;;  %8854 = vmatmul.mubr.msk.f32.vlgmr.msra.gmra.mrb[42].mxu0 %vm217_vm2, %v3278_v4 }
0x23e9   :  { %9472 = vmatpush3.bf16.msra.mxu0 %v10766_v43  ;;  %8875 = vmatprep.mubr.msk.f32.mxu0 %vm10299_vm1, %v10297_v3 }
0x23ea   :  { %9473 = vmatprep.subr.bf16.mxu0 %v10298_v12 }
0x23ed   :  { %9475 = vmatpush3.bf16.msra.mxu0 %v10776_v46 }
0x23ee   :  { %9482 = vmatprep.subr.bf16.mxu0 %v10298_v12 }
0x2404   :  { %v3283_v52 = vpop.permute.xlu0 %3282 }
0x2405   :  { %3285 = vst.msk [vmem:[#allocation4 + $0x18] sm:$0xff] %vm217_vm2, %v3283_v52  ;;  %8865 = vmatmul.mubr.msk.f32.vlgmr.msra.gmra.mrb[42].mxu1 %vm217_vm2, %v3283_v52 }
0x2406   :  { %9478 = vmatpush3.bf16.msra.mxu1 %v10789_v49  ;;  %8886 = vmatprep.mubr.msk.f32.mxu1 %vm10299_vm1, %v10297_v3 }
0x2407   :  { %9479 = vmatprep.subr.bf16.mxu1 %v10298_v12 }
0x240a   :  { %9481 = vmatpush3.bf16.msra.mxu1 %v10799_v63 }
0x240b   :  { %9488 = vmatprep.subr.bf16.mxu1 %v10298_v12 }
0x24bb   :  { %v3355_v27 = vpop.f32.mrb[42].mxu0 }
0x24bc   :  { %v3359_v21 = vadd.f32 %v3355_v27, %v10892_v54  ;;  %v8855_v23 = vpop.f32.mrb[43].mxu0 }
0x24be   :  { %9993 = vtanh.f32 %v3359_v21  ;;  %v8076_v37 = vmul.f32 -1.442695, %v3359_v21 }
0x24c8   :  { %v9994_v26 = vpop.eup %9993 }
0x24c9   :  { %3443 = vrot.lane.b32.xlu1 %v9994_v26, %s10300_s9 }
0x24d8   :  { %v3429_v13 = vpop.f32.mrb[42].mxu1 }
0x24d9   :  { %v3433_v33 = vadd.f32 %v3429_v13, %v10881_v40  ;;  %v8866_v35 = vpop.f32.mrb[43].mxu1 }
0x24db   :  { %9995 = vtanh.f32 %v3433_v33  ;;  %v8077_v45 = vmul.f32 -1.442695, %v3433_v33 }
0x24dc   :  { %9997 = vpow2.f32 %v8076_v37 }
0x24e5   :  { %v9996_v38 = vpop.eup %9995 }
0x24e6   :  { %3467 = vrot.lane.b32.xlu0 %v9996_v38, %s10300_s9  ;;  %v9998_v29 = vpop.eup %9997 }
0x24e7   :  { %v3437_v42 = vadd.f32 1.0, %v9998_v29 }
0x24e9   :  { %9999 = vrcp.f32 %v3437_v42 }
0x24ea   :  { %10001 = vpow2.f32 %v8077_v45 }
0x24f3   :  { %v10000_v54 = vpop.eup %9999 }
0x24f4   :  { %v10002_v50 = vpop.eup %10001  ;;  %v3441_v57 = vmul.f32 %v10000_v54, %v3245_v16 }
0x24f5   :  { %v3461_v53 = vadd.f32 1.0, %v10002_v50 }
0x24f7   :  { %10003 = vrcp.f32 %v3461_v53 }
0x2501   :  { %v10004_v40 = vpop.eup %10003 }
0x2502   :  { %v3465_v32 = vmul.f32 %v10004_v40, %v3269_v19 }
0x253b   :  { %v3444_v5 = vpop.permute.xlu1 %3443 }
0x253c   :  { %v3446_v55 = vmul.f32 %v10000_v54, %v3444_v5 }
0x253e   :  { %3448 = vrot.lane.b32.xlu1 %v3446_v55, %s10301_s10 }
0x2558   :  { %v3468_v48 = vpop.permute.xlu0 %3467 }
0x2559   :  { %v3470_v56 = vmul.f32 %v10004_v40, %v3468_v48 }
0x255b   :  { %3472 = vrot.lane.b32.xlu0 %v3470_v56, %s10301_s10 }
0x25b0   :  { %v3449_v2 = vpop.permute.xlu1 %3448 }
0x25b1   :  { %v3451_v28 = vadd.f32 %v3449_v2, %v3441_v57 }
0x25b3   :  { %10005 = vtanh.f32 %v3451_v28 }
0x25bd   :  { %v10006_v31 = vpop.eup %10005 }
0x25be   :  { %3454 = vrot.lane.b32.xlu1 %v10006_v31, %s10300_s9 }
0x25cd   :  { %v3473_v60 = vpop.permute.xlu0 %3472 }
0x25ce   :  { %v3475_v61 = vadd.f32 %v3473_v60, %v3465_v32 }
0x25d0   :  { %10007 = vtanh.f32 %v3475_v61 }
0x25da   :  { %v10008_v58 = vpop.eup %10007 }
0x25db   :  { %3478 = vrot.lane.b32.xlu0 %v10008_v58, %s10300_s9 }
0x2630   :  { %v3455_v62 = vpop.permute.xlu1 %3454 }
0x2631   :  { %v3457_v30 = vmul.f32 %v10000_v54, %v3455_v62 }
0x2633   :  { %3483 = vrot.lane.b32.xlu1 %v3457_v30, %s10301_s10 }
0x264d   :  { %v3479_v47 = vpop.permute.xlu0 %3478 }
0x264e   :  { %v3481_v39 = vmul.f32 %v10004_v40, %v3479_v47 }
0x2650   :  { %3488 = vrot.lane.b32.xlu0 %v3481_v39, %s10301_s10 }
0x26a5   :  { %v3484_v1 = vpop.permute.xlu1 %3483 }
0x26a6   :  { %3486 = vst.msk [vmem:[#allocation3 + $0x28] sm:$0xff] %vm217_vm2, %v3484_v1  ;;  %8876 = vmatmul.mubr.msk.f32.vlgmr.msra.gmra.mrb[44].mxu0 %vm217_vm2, %v3484_v1 }
0x26a7   :  { %9484 = vmatpush3.bf16.msra.mxu0 %v10766_v43  ;;  %8897 = vmatprep.mubr.msk.f32.mxu0 %vm10299_vm1, %v10297_v3 }
0x26a8   :  { %9485 = vmatprep.subr.bf16.mxu0 %v10298_v12 }
0x26ab   :  { %9487 = vmatpush3.bf16.msra.mxu0 %v10776_v46 }
0x26c2   :  { %v3489_v6 = vpop.permute.xlu0 %3488 }
0x26c3   :  { %3491 = vst.msk [vmem:[#allocation4 + $0x10] sm:$0xff] %vm217_vm2, %v3489_v6  ;;  %8887 = vmatmul.mubr.msk.f32.vlgmr.msra.gmra.mrb[44].mxu1 %vm217_vm2, %v3489_v6 }
0x26c4   :  { %9490 = vmatpush3.bf16.msra.mxu1 %v10789_v49  ;;  %8908 = vmatprep.mubr.msk.f32.mxu1 %vm10299_vm1, %v10297_v3 }
0x26c5   :  { %9491 = vmatprep.subr.bf16.mxu1 %v10298_v12 }
0x26c8   :  { %9493 = vmatpush3.bf16.msra.mxu1 %v10799_v63 }
0x26c9   :  { %9510 = vmatprep.subr.bf16.mxu1 %v10298_v12 }
0x2779   :  { %v3561_v43 = vpop.f32.mrb[44].mxu0 }
0x277a   :  { %v3565_v7 = vadd.f32 %v3561_v43, %v10896_v51  ;;  %v8877_v46 = vpop.f32.mrb[45].mxu0 }
0x277b   :  { %v8095_v46 = vld [vmem:[%s11806_s2 + $0xc8] sm:$0xff] }
0x277c   :  { %10009 = vtanh.f32 %v3565_v7  ;;  %v8080_v10 = vmul.f32 -1.442695, %v3565_v7 }
0x2786   :  { %v10010_v44 = vpop.eup %10009 }
0x2787   :  { %3649 = vrot.lane.b32.xlu1 %v10010_v44, %s10300_s9  ;;  %v8097_v44 = vld [vmem:[%s11806_s2 + $0xd8] sm:$0xff] }
0x2796   :  { %v3635_v8 = vpop.f32.mrb[44].mxu1 }
0x2797   :  { %v3639_v49 = vadd.f32 %v3635_v8, %v10877_v34  ;;  %v8888_v9 = vpop.f32.mrb[45].mxu1  ;;  %v9494_v8 = vpack.c.bf16 %v8097_v44, %v8095_v46 }
0x2799   :  { %10011 = vtanh.f32 %v3639_v49  ;;  %v8081_v14 = vmul.f32 -1.442695, %v3639_v49  ;;  %9495 = vmatprep.subr.bf16.mxu0 %v9494_v8  ;;  %v8118_v8 = vld [vmem:[%s11805_s4 + $0x4] sm:$0x3] }
0x279a   :  { %10013 = vpow2.f32 %v8080_v10  ;;  %v8096_v10 = vld [vmem:[%s11806_s2 + $0xd0] sm:$0xff] }
0x27a3   :  { %v10012_v11 = vpop.eup %10011 }
0x27a4   :  { %3673 = vrot.lane.b32.xlu0 %v10012_v11, %s10300_s9  ;;  %v10014_v63 = vpop.eup %10013  ;;  %v8094_v11 = vld [vmem:[%s11806_s2 + $0xc0] sm:$0xff] }
0x27a5   :  { %v3643_v16 = vadd.f32 1.0, %v10014_v63  ;;  %v9496_v63 = vpack.c.bf16 %v8096_v10, %v8094_v11 }
0x27a7   :  { %10015 = vrcp.f32 %v3643_v16  ;;  %v8099_v16 = vld [vmem:[%s11806_s2 + $0xe8] sm:$0xff] }
0x27a8   :  { %10017 = vpow2.f32 %v8081_v14  ;;  %v8101_v14 = vld [vmem:[%s11806_s2 + $0xf8] sm:$0xff] }
0x27b1   :  { %v10016_v51 = vpop.eup %10015 }
0x27b2   :  { %v10018_v19 = vpop.eup %10017  ;;  %v3647_v20 = vmul.f32 %v10016_v51, %v3451_v28 }
0x27b3   :  { %v3667_v17 = vadd.f32 1.0, %v10018_v19  ;;  %v8087_v19 = vld [vmem:[%s11806_s2 + $0x88] sm:$0xff] }
0x27b5   :  { %10019 = vrcp.f32 %v3667_v17  ;;  %v8089_v17 = vld [vmem:[%s11806_s2 + $0x98] sm:$0xff] }
0x27bf   :  { %v10020_v34 = vpop.eup %10019 }
0x27c0   :  { %v3671_v27 = vmul.f32 %v10020_v34, %v3475_v61 }
0x27f9   :  { %v3650_v0 = vpop.permute.xlu1 %3649 }
0x27fa   :  { %v3652_v15 = vmul.f32 %v10016_v51, %v3650_v0  ;;  %v9498_v0 = vpack.c.bf16 %v8101_v14, %v8099_v16 }
0x27fc   :  { %3654 = vrot.lane.b32.xlu1 %v3652_v15, %s10301_s10  ;;  %v8100_v15 = vld [vmem:[%s11806_s2 + $0xf0] sm:$0xff] }
0x2816   :  { %v3674_v41 = vpop.permute.xlu0 %3673 }
0x2817   :  { %v3676_v18 = vmul.f32 %v10020_v34, %v3674_v41  ;;  %v9502_v41 = vpack.c.bf16 %v8089_v17, %v8087_v19 }
0x2819   :  { %3678 = vrot.lane.b32.xlu0 %v3676_v18, %s10301_s10 }
0x286e   :  { %v3655_v22 = vpop.permute.xlu1 %3654 }
0x286f   :  { %v3657_v4 = vadd.f32 %v3655_v22, %v3647_v20  ;;  %v8119_v22 = vld [vmem:[%s11803_s3 + $0x80] sm:$0xff] }
0x2871   :  { %10021 = vtanh.f32 %v3657_v4 }
0x287b   :  { %v10022_v52 = vpop.eup %10021 }
0x287c   :  { %3660 = vrot.lane.b32.xlu1 %v10022_v52, %s10300_s9 }
0x288b   :  { %v3679_v21 = vpop.permute.xlu0 %3678 }
0x288c   :  { %v3681_v23 = vadd.f32 %v3679_v21, %v3671_v27  ;;  %v8121_v27 = vld [vmem:[%s11803_s3 + $0x90] sm:$0xff]  ;;  %v8122_v21 = vld [vmem:[%s11803_s3 + $0x98] sm:$0xff] }
0x288e   :  { %10023 = vtanh.f32 %v3681_v23 }
0x2898   :  { %v10024_v26 = vpop.eup %10023 }
0x2899   :  { %3684 = vrot.lane.b32.xlu0 %v10024_v26, %s10300_s9  ;;  %v8123_v26 = vld [vmem:[%s11803_s3 + $0xa0] sm:$0xff] }
0x28ee   :  { %v3661_v13 = vpop.permute.xlu1 %3660 }
0x28ef   :  { %v3663_v33 = vmul.f32 %v10016_v51, %v3661_v13  ;;  %v8098_v51 = vld [vmem:[%s11806_s2 + $0xe0] sm:$0xff]  ;;  %v8124_v13 = vld [vmem:[%s11803_s3 + $0xa8] sm:$0xff] }
0x28f1   :  { %3689 = vrot.lane.b32.xlu1 %v3663_v33, %s10301_s10  ;;  %v11140_v33 = vpack.c.bf16 %v8124_v13, %v8123_v26 }
0x290b   :  { %v3685_v35 = vpop.permute.xlu0 %3684 }
0x290c   :  { %v3687_v38 = vmul.f32 %v10020_v34, %v3685_v35  ;;  %v9500_v34 = vpack.c.bf16 %v8100_v15, %v8098_v51  ;;  %v8125_v35 = vld [vmem:[%s11803_s3 + $0xb0] sm:$0xff] }
0x290e   :  { %3694 = vrot.lane.b32.xlu0 %v3687_v38, %s10301_s10  ;;  %v8126_v38 = vld [vmem:[%s11803_s3 + $0xb8] sm:$0xff] }
0x2963   :  { %v3690_v37 = vpop.permute.xlu1 %3689 }
0x2964   :  { %3692 = vst.msk [vmem:[#allocation3 + $0x30] sm:$0xff] %vm217_vm2, %v3690_v37  ;;  %8898 = vmatmul.mubr.msk.f32.vlgmr.msra.gmra.mrb[46].mxu0 %vm217_vm2, %v3690_v37  ;;  %v11150_v37 = vpack.c.bf16 %v8126_v38, %v8125_v35 }
0x2965   :  { %4025 = vmatprep.mubr.f32.mxu0 %v10297_v3  ;;  %9497 = vmatpush1.bf16.msra.mxu0 %v9496_v63 }
0x2966   :  { %9499 = vmatprep.subr.bf16.mxu0 %v9498_v0 }
0x2969   :  { %9501 = vmatpush1.bf16.msra.mxu0 %v9500_v34 }
0x296a   :  { %9503 = vmatprep.subr.bf16.mxu0 %v9502_v41 }
0x2980   :  { %v3695_v29 = vpop.permute.xlu0 %3694 }
0x2981   :  { %3697 = vst.msk [vmem:[#allocation4 + $0x8] sm:$0xff] %vm217_vm2, %v3695_v29  ;;  %8909 = vmatmul.mubr.msk.f32.vlgmr.msra.gmra.mrb[46].mxu1 %vm217_vm2, %v3695_v29 }
0x2982   :  { %8919 = vmatprep.mubr.msk.f32.mxu1 %vm10299_vm1, %v10297_v3 }
0x2a37   :  { %v3767_v42 = vpop.f32.mrb[46].mxu0 }
0x2a38   :  { %v3771_v45 = vadd.f32 %v3767_v42, %v10900_v59  ;;  %v8899_v54 = vpop.f32.mrb[47].mxu0 }
0x2a39   :  { %v8088_v54 = vld [vmem:[%s11806_s2 + $0x90] sm:$0xff] }
0x2a3a   :  { %10025 = vtanh.f32 %v3771_v45  ;;  %v8084_v48 = vmul.f32 -1.442695, %v3771_v45  ;;  %v8086_v45 = vld [vmem:[%s11806_s2 + $0x80] sm:$0xff] }
0x2a44   :  { %v10026_v5 = vpop.eup %10025 }
0x2a45   :  { %3855 = vrot.lane.b32.xlu1 %v10026_v5, %s10300_s9  ;;  %v8091_v5 = vld [vmem:[%s11806_s2 + $0xa8] sm:$0xff] }
0x2a54   :  { %v3841_v55 = vpop.f32.mrb[46].mxu1 }
0x2a55   :  { %v3845_v50 = vadd.f32 %v3841_v55, %v10873_v24  ;;  %v8910_v53 = vpop.f32.mrb[47].mxu1  ;;  %v8093_v55 = vld [vmem:[%s11806_s2 + $0xb8] sm:$0xff] }
0x2a56   :  { %v9506_v53 = vpack.c.bf16 %v8093_v55, %v8091_v5 }
0x2a57   :  { %10027 = vtanh.f32 %v3845_v50  ;;  %v8085_v2 = vmul.f32 -1.442695, %v3845_v50  ;;  %v9504_v50 = vpack.c.bf16 %v8088_v54, %v8086_v45 }
0x2a58   :  { %10029 = vpow2.f32 %v8084_v48  ;;  %v8092_v48 = vld [vmem:[%s11806_s2 + $0xb0] sm:$0xff] }
0x2a61   :  { %v10028_v40 = vpop.eup %10027 }
0x2a62   :  { %3879 = vrot.lane.b32.xlu0 %v10028_v40, %s10300_s9  ;;  %v10030_v56 = vpop.eup %10029  ;;  %v8090_v40 = vld [vmem:[%s11806_s2 + $0xa0] sm:$0xff] }
0x2a63   :  { %v3849_v57 = vadd.f32 1.0, %v10030_v56 }
0x2a65   :  { %10031 = vrcp.f32 %v3849_v57  ;;  %v9508_v57 = vpack.c.bf16 %v8092_v48, %v8090_v40 }
0x2a66   :  { %10033 = vpow2.f32 %v8085_v2  ;;  %v3922_v2 = vld [vmem:[#allocation4 + $0x8] sm:$0xff] }
0x2a6f   :  { %v10032_v59 = vpop.eup %10031 }
0x2a70   :  { %v10034_v32 = vpop.eup %10033  ;;  %v3853_v62 = vmul.f32 %v10032_v59, %v3657_v4  ;;  %v8120_v4 = vld [vmem:[%s11803_s3 + $0x88] sm:$0xff] }
0x2a71   :  { %v3873_v60 = vadd.f32 1.0, %v10034_v32  ;;  %v11117_v52 = vpack.c.bf16 %v8120_v4, %v8119_v22  ;;  %v3926_v32 = vld [vmem:[#allocation4 + $0x28] sm:$0xff] }
0x2a73   :  { %10035 = vrcp.f32 %v3873_v60  ;;  %9512 = vmatpush3.bf16.msra.mxu1 %v11117_v52  ;;  %v3927_v60 = vld [vmem:[#allocation4 + $0x30] sm:$0xff] }
0x2a74   :  { %9513 = vmatprep.subr.bf16.mxu1 %v10298_v12 }
0x2a7d   :  { %v10036_v24 = vpop.eup %10035 }
0x2a7e   :  { %v3877_v1 = vmul.f32 %v10036_v24, %v3681_v23  ;;  %v11127_v23 = vpack.c.bf16 %v8122_v21, %v8121_v27 }
0x2a80   :  { %9515 = vmatpush3.bf16.msra.mxu1 %v11127_v23 }
0x2a81   :  { %9516 = vmatprep.subr.bf16.mxu1 %v10298_v12 }
0x2a83   :  { %8920 = vmatmul.mubr.f32.vlgmr.msra.gmra.mrb[48].mxu1 %v10297_v3 }
0x2a84   :  { %8930 = vmatprep.mubr.msk.f32.mxu1 %vm10299_vm1, %v10297_v3  ;;  %9518 = vmatpush3.bf16.msra.mxu1 %v11140_v33 }
0x2a85   :  { %9519 = vmatprep.subr.bf16.mxu1 %v10298_v12 }
0x2a88   :  { %9521 = vmatpush3.bf16.msra.mxu1 %v11150_v37 }
0x2a89   :  { %9522 = vmatprep.subr.bf16.mxu1 %v10298_v12 }
0x2a8b   :  { %8931 = vmatmul.mubr.f32.vlgmr.msra.gmra.mrb[50].mxu1 %v10297_v3 }
0x2a8c   :  { %9524 = vmatpush3.bf16.msra.mxu1 %v11117_v52  ;;  %8941 = vmatprep.mubr.msk.f32.mxu1 %vm10299_vm1, %v10297_v3 }
0x2a8d   :  { %9525 = vmatprep.subr.bf16.mxu1 %v10298_v12 }
0x2a90   :  { %9527 = vmatpush3.bf16.msra.mxu1 %v11127_v23 }
0x2a91   :  { %9528 = vmatprep.subr.bf16.mxu1 %v10298_v12 }
0x2ab7   :  { %v3856_v28 = vpop.permute.xlu1 %3855 }
0x2ab8   :  { %v3858_v31 = vmul.f32 %v10032_v59, %v3856_v28  ;;  %v3924_v28 = vld [vmem:[#allocation4 + $0x18] sm:$0xff] }
0x2aba   :  { %3860 = vrot.lane.b32.xlu1 %v3858_v31, %s10301_s10  ;;  %v3925_v31 = vld [vmem:[#allocation4 + $0x20] sm:$0xff] }
0x2ad4   :  { %v3880_v61 = vpop.permute.xlu0 %3879 }
0x2ad5   :  { %v3882_v58 = vmul.f32 %v10036_v24, %v3880_v61  ;;  %v3904_v61 = vld [vmem:[#allocation3] sm:$0xff] }
0x2ad7   :  { %3884 = vrot.lane.b32.xlu0 %v3882_v58, %s10301_s10  ;;  %v3905_v58 = vld [vmem:[#allocation3 + $0x8] sm:$0xff] }
0x2b2c   :  { %v3861_v30 = vpop.permute.xlu1 %3860 }
0x2b2d   :  { %v3863_v47 = vadd.f32 %v3861_v30, %v3853_v62  ;;  %v3906_v62 = vld [vmem:[#allocation3 + $0x10] sm:$0xff]  ;;  %v3907_v30 = vld [vmem:[#allocation3 + $0x18] sm:$0xff] }
0x2b2f   :  { %10037 = vtanh.f32 %v3863_v47  ;;  %v3908_v47 = vld [vmem:[#allocation3 + $0x20] sm:$0xff] }
0x2b39   :  { %v10038_v39 = vpop.eup %10037 }
0x2b3a   :  { %3866 = vrot.lane.b32.xlu1 %v10038_v39, %s10300_s9  ;;  %v3909_v39 = vld [vmem:[#allocation3 + $0x28] sm:$0xff] }
0x2b49   :  { %v3885_v6 = vpop.permute.xlu0 %3884 }
0x2b4a   :  { %v3887_v43 = vadd.f32 %v3885_v6, %v3877_v1  ;;  %v3910_v1 = vld [vmem:[#allocation3 + $0x30] sm:$0xff] }
0x2b4c   :  { %10039 = vtanh.f32 %v3887_v43 }
0x2b56   :  { %v10040_v7 = vpop.eup %10039  ;;  %v4333_v43 = vpop.f32.mrb[48].mxu1 }
0x2b57   :  { %3890 = vrot.lane.b32.xlu0 %v10040_v7, %s10300_s9  ;;  %v8921_v7 = vpop.f32.mrb[49].mxu1 }
0x2b5e   :  { %v4405_v46 = vpop.f32.mrb[50].mxu1 }
0x2b5f   :  { %v8932_v44 = vpop.f32.mrb[51].mxu1 }
0x2bac   :  { %v3867_v49 = vpop.permute.xlu1 %3866 }
0x2bad   :  { %v3869_v9 = vmul.f32 %v10032_v59, %v3867_v49  ;;  %v3923_v59 = vld [vmem:[#allocation4 + $0x10] sm:$0xff]  ;;  %v4217_v49 = vrot.slane %v8118_v8, %v10428_v25 }
0x2baf   :  { %3895 = vrot.lane.b32.xlu1 %v3869_v9, %s10301_s10  ;;  %v4221_v9 = vrot.slane %v8118_v8, %v10445_v36 }
0x2bc9   :  { %v3891_v18 = vpop.permute.xlu0 %3890 }
0x2bca   :  { %v3893_v20 = vmul.f32 %v10036_v24, %v3891_v18  ;;  %v3928_v24 = vld [vmem:[#allocation4 + $0x38] sm:$0xff] }
0x2bcc   :  { %3900 = vrot.lane.b32.xlu0 %v3893_v20, %s10301_s10 }
0x2c21   :  { %v3896_v29 = vpop.permute.xlu1 %3895 }
0x2c22   :  { %3898 = vst.msk [vmem:[#allocation3 + $0x38] sm:$0xff] %vm217_vm2, %v3896_v29 }
0x2c29   :  { %v3911_v6 = vld [vmem:[#allocation3 + $0x38] sm:$0xff] }
0x2c3e   :  { %v3901_v42 = vpop.permute.xlu0 %3900 }
0x2c3f   :  { %3903 = vst.msk [vmem:[#allocation4] sm:$0xff] %vm217_vm2, %v3901_v42 }
0x2c46   :  { %v3921_v56 = vld [vmem:[#allocation4] sm:$0xff] }
0x2c47   :  { %8102 = vmatmul.mubr.msk.f32.vlgmr.msra.gmra.mrb[48].mxu0 %vm217_vm2, %v3921_v56 }
0x2c48   :  { %9505 = vmatpush1.bf16.msra.mxu0 %v9504_v50  ;;  %4031 = vmatprep.mubr.f32.mxu0 %v10297_v3 }
0x2c49   :  { %9507 = vmatprep.subr.bf16.mxu0 %v9506_v53 }
0x2c4b   :  { %8103 = vmatmul.mubr.msk.f32.gmra.mrb[50].mxu0 %vm217_vm2, %v3922_v2 }
0x2c4c   :  { %4037 = vmatprep.mubr.f32.mxu0 %v10297_v3  ;;  %9509 = vmatpush1.bf16.msra.mxu0 %v9508_v57 }
0x2c4d   :  { %9558 = vmatprep.subr.bf16.mxu0 %v10298_v12 }
0x2c4f   :  { %8104 = vmatmul.mubr.msk.f32.gmra.mrb[52].mxu0 %vm217_vm2, %v3923_v59 }
0x2c50   :  { %4043 = vmatprep.mubr.f32.mxu0 %v10297_v3 }
0x2c53   :  { %8105 = vmatmul.mubr.msk.f32.gmra.mrb[54].mxu0 %vm217_vm2, %v3924_v28 }
0x2c54   :  { %4049 = vmatprep.mubr.f32.mxu0 %v10297_v3 }
0x2c57   :  { %8106 = vmatmul.mubr.msk.f32.gmra.mrb[56].mxu0 %vm217_vm2, %v3925_v31 }
0x2c58   :  { %4055 = vmatprep.mubr.f32.mxu0 %v10297_v3 }
0x2c5b   :  { %8107 = vmatmul.mubr.msk.f32.gmra.mrb[58].mxu0 %vm217_vm2, %v3926_v32 }
0x2c5c   :  { %4061 = vmatprep.mubr.f32.mxu0 %v10297_v3 }
0x2c5f   :  { %8108 = vmatmul.mubr.msk.f32.gmra.mrb[60].mxu0 %vm217_vm2, %v3927_v60 }
0x2c60   :  { %4067 = vmatprep.mubr.f32.mxu0 %v10297_v3 }
0x2c63   :  { %8109 = vmatmul.mubr.msk.f32.gmra.mrb[62].mxu0 %vm217_vm2, %v3928_v24 }
0x2c64   :  { %4162 = vmatprep.mubr.f32.mxu0 %v10297_v3 }
0x2c67   :  { %8110 = vmatmul.mubr.msk.f32.vlgmr.msra.gmra.mrb[48].mxu0 %vm217_vm2, %v3904_v61 }
0x2c68   :  { %4168 = vmatprep.mubr.f32.mxu0 %v10297_v3  ;;  %9560 = vmatpush3.bf16.msra.mxu0 %v11117_v52 }
0x2c69   :  { %9561 = vmatprep.subr.bf16.mxu0 %v10298_v12 }
0x2c6b   :  { %8111 = vmatmul.mubr.msk.f32.gmra.mrb[50].mxu0 %vm217_vm2, %v3905_v58 }
0x2c6c   :  { %4174 = vmatprep.mubr.f32.mxu0 %v10297_v3  ;;  %9563 = vmatpush3.bf16.msra.mxu0 %v11127_v23 }
0x2c6d   :  { %9570 = vmatprep.subr.bf16.mxu0 %v10298_v12 }
0x2c6f   :  { %8112 = vmatmul.mubr.msk.f32.gmra.mrb[52].mxu0 %vm217_vm2, %v3906_v62 }
0x2c70   :  { %4180 = vmatprep.mubr.f32.mxu0 %v10297_v3 }
0x2c73   :  { %8113 = vmatmul.mubr.msk.f32.gmra.mrb[54].mxu0 %vm217_vm2, %v3907_v30 }
0x2c74   :  { %4186 = vmatprep.mubr.f32.mxu0 %v10297_v3 }
0x2c77   :  { %8114 = vmatmul.mubr.msk.f32.gmra.mrb[56].mxu0 %vm217_vm2, %v3908_v47 }
0x2c78   :  { %4192 = vmatprep.mubr.f32.mxu0 %v10297_v3 }
0x2c7b   :  { %8115 = vmatmul.mubr.msk.f32.gmra.mrb[58].mxu0 %vm217_vm2, %v3909_v39 }
0x2c7c   :  { %4198 = vmatprep.mubr.f32.mxu0 %v10297_v3 }
0x2c7f   :  { %8116 = vmatmul.mubr.msk.f32.gmra.mrb[60].mxu0 %vm217_vm2, %v3910_v1 }
0x2c80   :  { %4204 = vmatprep.mubr.f32.mxu0 %v10297_v3 }
0x2c83   :  { %8117 = vmatmul.mubr.msk.f32.gmra.mrb[62].mxu0 %vm217_vm2, %v3911_v6 }
0x2c84   :  { %9007 = vmatprep.mubr.msk.f32.mxu0 %vm10299_vm1, %v10297_v3 }
0x2d3a   :  { %v4164_v11 = vpop.f32.mrb[48].mxu0 }
0x2d3b   :  { %v4224_v10 = vadd.f32 %v4217_v49, %v4164_v11  ;;  %v4166_v63 = vpop.f32.mrb[49].mxu0 }
0x2d3c   :  { %v11224_v16 = vadd.f32 %v4221_v9, %v4166_v63 }
0x2d3d   :  { %v4337_v14 = vadd.f32 %v4333_v43, %v4224_v10 }
0x2d3e   :  { %v4170_v51 = vpop.f32.mrb[50].mxu0 }
0x2d3f   :  { %10041 = vtanh.f32 %v4337_v14  ;;  %v11226_v0 = vadd.f32 %v4217_v49, %v4170_v51  ;;  %v4172_v15 = vpop.f32.mrb[51].mxu0  ;;  %v8127_v28 = vmul.f32 -1.442695, %v4337_v14 }
0x2d40   :  { %v11228_v19 = vadd.f32 %v4221_v9, %v4172_v15 }
0x2d42   :  { %v4176_v17 = vpop.f32.mrb[52].mxu0 }
0x2d43   :  { %v11230_v34 = vadd.f32 %v4217_v49, %v4176_v17  ;;  %v4178_v41 = vpop.f32.mrb[53].mxu0 }
0x2d44   :  { %v11232_v18 = vadd.f32 %v4221_v9, %v4178_v41 }
0x2d46   :  { %v4182_v20 = vpop.f32.mrb[54].mxu0 }
0x2d47   :  { %v11234_v22 = vadd.f32 %v4217_v49, %v4182_v20  ;;  %v4184_v4 = vpop.f32.mrb[55].mxu0 }
0x2d48   :  { %v11236_v27 = vadd.f32 %v4221_v9, %v4184_v4 }
0x2d49   :  { %v10042_v21 = vpop.eup %10041 }
0x2d4a   :  { %4419 = vrot.lane.b32.xlu0 %v10042_v21, %s10300_s9  ;;  %v4188_v26 = vpop.f32.mrb[56].mxu0 }
0x2d4b   :  { %v11239_v13 = vadd.f32 %v4217_v49, %v4188_v26  ;;  %v4190_v35 = vpop.f32.mrb[57].mxu0 }
0x2d4c   :  { %v11241_v38 = vadd.f32 %v4221_v9, %v4190_v35 }
0x2d4e   :  { %v4194_v29 = vpop.f32.mrb[58].mxu0 }
0x2d4f   :  { %v11243_v42 = vadd.f32 %v4217_v49, %v4194_v29  ;;  %v4196_v45 = vpop.f32.mrb[59].mxu0 }
0x2d50   :  { %v11245_v54 = vadd.f32 %v4221_v9, %v4196_v45 }
0x2d52   :  { %v4200_v5 = vpop.f32.mrb[60].mxu0 }
0x2d53   :  { %v11247_v55 = vadd.f32 %v4217_v49, %v4200_v5  ;;  %v4202_v50 = vpop.f32.mrb[61].mxu0 }
0x2d54   :  { %v11249_v53 = vadd.f32 %v4221_v9, %v4202_v50 }
0x2d56   :  { %v4206_v40 = vpop.f32.mrb[62].mxu0 }
0x2d57   :  { %v11251_v48 = vadd.f32 %v4217_v49, %v4206_v40  ;;  %v4208_v56 = vpop.f32.mrb[63].mxu0 }
0x2d58   :  { %v4239_v57 = vadd.f32 %v4221_v9, %v4208_v56 }
0x2d5a   :  { %v4409_v2 = vadd.f32 %v4405_v46, %v4239_v57 }
0x2d5c   :  { %10043 = vtanh.f32 %v4409_v2  ;;  %v8128_v60 = vmul.f32 -1.442695, %v4409_v2 }
0x2d5d   :  { %10045 = vpow2.f32 %v8127_v28 }
0x2d66   :  { %v10044_v59 = vpop.eup %10043 }
0x2d67   :  { %4443 = vrot.lane.b32.xlu1 %v10044_v59, %s10300_s9  ;;  %v10046_v31 = vpop.eup %10045 }
0x2d68   :  { %v4413_v32 = vadd.f32 1.0, %v10046_v31 }
0x2d6a   :  { %10047 = vrcp.f32 %v4413_v32 }
0x2d6b   :  { %10049 = vpow2.f32 %v8128_v60 }
0x2d74   :  { %v10048_v24 = vpop.eup %10047 }
0x2d75   :  { %v10050_v62 = vpop.eup %10049  ;;  %v4417_v6 = vmul.f32 0.0, %v10048_v24 }
0x2d76   :  { %v4437_v30 = vadd.f32 1.0, %v10050_v62 }
0x2d78   :  { %10051 = vrcp.f32 %v4437_v30 }
0x2d82   :  { %v10052_v47 = vpop.eup %10051 }
0x2d83   :  { %v4441_v44 = vmul.f32 0.0, %v10052_v47 }
0x2dbc   :  { %v4420_v61 = vpop.permute.xlu0 %4419 }
0x2dbd   :  { %v4422_v58 = vmul.f32 %v10048_v24, %v4420_v61 }
0x2dbf   :  { %4424 = vrot.lane.b32.xlu0 %v4422_v58, %s10301_s10 }
0x2dd9   :  { %v4444_v39 = vpop.permute.xlu1 %4443 }
0x2dda   :  { %v4446_v1 = vmul.f32 %v10052_v47, %v4444_v39 }
0x2ddc   :  { %4448 = vrot.lane.b32.xlu1 %v4446_v1, %s10301_s10 }
0x2e31   :  { %v4425_v43 = vpop.permute.xlu0 %4424 }
0x2e32   :  { %v4427_v7 = vadd.f32 %v4425_v43, %v4417_v6 }
0x2e34   :  { %10053 = vtanh.f32 %v4427_v7 }
0x2e3e   :  { %v10054_v46 = vpop.eup %10053 }
0x2e3f   :  { %4430 = vrot.lane.b32.xlu0 %v10054_v46, %s10300_s9 }
0x2e4e   :  { %v4449_v8 = vpop.permute.xlu1 %4448 }
0x2e4f   :  { %v4451_v49 = vadd.f32 %v4449_v8, %v4441_v44 }
0x2e51   :  { %10055 = vtanh.f32 %v4451_v49 }
0x2e5b   :  { %v10056_v9 = vpop.eup %10055 }
0x2e5c   :  { %4454 = vrot.lane.b32.xlu1 %v10056_v9, %s10300_s9 }
0x2eb1   :  { %v4431_v11 = vpop.permute.xlu0 %4430 }
0x2eb2   :  { %v4433_v10 = vmul.f32 %v10048_v24, %v4431_v11 }
0x2eb4   :  { %4459 = vrot.lane.b32.xlu0 %v4433_v10, %s10301_s10 }
0x2ece   :  { %v4455_v63 = vpop.permute.xlu1 %4454 }
0x2ecf   :  { %v4457_v14 = vmul.f32 %v10052_v47, %v4455_v63 }
0x2ed1   :  { %4464 = vrot.lane.b32.xlu1 %v4457_v14, %s10301_s10 }
0x2f26   :  { %v4460_v51 = vpop.permute.xlu0 %4459 }
0x2f27   :  { %4462 = vst.msk [vmem:[#allocation3] sm:$0xff] %vm217_vm2, %v4460_v51  ;;  %8942 = vmatmul.mubr.msk.f32.vlgmr.msra.gmra.mrb[52].mxu1 %vm217_vm2, %v4460_v51 }
0x2f28   :  { %9530 = vmatpush3.bf16.msra.mxu1 %v11140_v33  ;;  %8952 = vmatprep.mubr.msk.f32.mxu1 %vm10299_vm1, %v10297_v3 }
0x2f29   :  { %9531 = vmatprep.subr.bf16.mxu1 %v10298_v12 }
0x2f2c   :  { %9533 = vmatpush3.bf16.msra.mxu1 %v11150_v37 }
0x2f2d   :  { %9534 = vmatprep.subr.bf16.mxu1 %v10298_v12 }
0x2f43   :  { %v4465_v15 = vpop.permute.xlu1 %4464 }
0x2f44   :  { %4467 = vst.msk [vmem:[#allocation4 + $0x38] sm:$0xff] %vm217_vm2, %v4465_v15  ;;  %8953 = vmatmul.mubr.msk.f32.vlgmr.msra.gmra.mrb[54].mxu1 %vm217_vm2, %v4465_v15 }
0x2f45   :  { %9536 = vmatpush3.bf16.msra.mxu1 %v11117_v52  ;;  %8963 = vmatprep.mubr.msk.f32.mxu1 %vm10299_vm1, %v10297_v3 }
0x2f46   :  { %9537 = vmatprep.subr.bf16.mxu1 %v10298_v12 }
0x2f49   :  { %9539 = vmatpush3.bf16.msra.mxu1 %v11127_v23 }
0x2f4a   :  { %9540 = vmatprep.subr.bf16.mxu1 %v10298_v12 }
0x2ffa   :  { %v4537_v17 = vpop.f32.mrb[52].mxu1 }
0x2ffb   :  { %v4541_v41 = vadd.f32 %v4537_v17, %v11226_v0  ;;  %v8943_v20 = vpop.f32.mrb[53].mxu1 }
0x2ffd   :  { %10057 = vtanh.f32 %v4541_v41  ;;  %v8131_v45 = vmul.f32 -1.442695, %v4541_v41 }
0x3007   :  { %v10058_v4 = vpop.eup %10057 }
0x3008   :  { %4625 = vrot.lane.b32.xlu0 %v10058_v4, %s10300_s9 }
0x3017   :  { %v4611_v21 = vpop.f32.mrb[54].mxu1 }
0x3018   :  { %v4615_v26 = vadd.f32 %v4611_v21, %v11249_v53  ;;  %v8954_v35 = vpop.f32.mrb[55].mxu1 }
0x301a   :  { %10059 = vtanh.f32 %v4615_v26  ;;  %v8132_v40 = vmul.f32 -1.442695, %v4615_v26 }
0x301b   :  { %10061 = vpow2.f32 %v8131_v45 }
0x3024   :  { %v10060_v29 = vpop.eup %10059 }
0x3025   :  { %4649 = vrot.lane.b32.xlu1 %v10060_v29, %s10300_s9  ;;  %v10062_v5 = vpop.eup %10061 }
0x3026   :  { %v4619_v50 = vadd.f32 1.0, %v10062_v5 }
0x3028   :  { %10063 = vrcp.f32 %v4619_v50 }
0x3029   :  { %10065 = vpow2.f32 %v8132_v40 }
0x3032   :  { %v10064_v0 = vpop.eup %10063 }
0x3033   :  { %v10066_v2 = vpop.eup %10065  ;;  %v4623_v32 = vmul.f32 %v10064_v0, %v4427_v7 }
0x3034   :  { %v4643_v59 = vadd.f32 1.0, %v10066_v2 }
0x3036   :  { %10067 = vrcp.f32 %v4643_v59 }
0x3040   :  { %v10068_v53 = vpop.eup %10067 }
0x3041   :  { %v4647_v58 = vmul.f32 %v10068_v53, %v4451_v49 }
0x307a   :  { %v4626_v56 = vpop.permute.xlu0 %4625 }
0x307b   :  { %v4628_v57 = vmul.f32 %v10064_v0, %v4626_v56 }
0x307d   :  { %4630 = vrot.lane.b32.xlu0 %v4628_v57, %s10301_s10 }
0x3097   :  { %v4650_v28 = vpop.permute.xlu1 %4649 }
0x3098   :  { %v4652_v31 = vmul.f32 %v10068_v53, %v4650_v28 }
0x309a   :  { %4654 = vrot.lane.b32.xlu1 %v4652_v31, %s10301_s10 }
0x30ef   :  { %v4631_v60 = vpop.permute.xlu0 %4630 }
0x30f0   :  { %v4633_v24 = vadd.f32 %v4631_v60, %v4623_v32 }
0x30f2   :  { %10069 = vtanh.f32 %v4633_v24 }
0x30fc   :  { %v10070_v61 = vpop.eup %10069 }
0x30fd   :  { %4636 = vrot.lane.b32.xlu0 %v10070_v61, %s10300_s9 }
0x310c   :  { %v4655_v62 = vpop.permute.xlu1 %4654 }
0x310d   :  { %v4657_v30 = vadd.f32 %v4655_v62, %v4647_v58 }
0x310f   :  { %10071 = vtanh.f32 %v4657_v30 }
0x3119   :  { %v10072_v47 = vpop.eup %10071 }
0x311a   :  { %4660 = vrot.lane.b32.xlu1 %v10072_v47, %s10300_s9 }
0x316f   :  { %v4637_v39 = vpop.permute.xlu0 %4636 }
0x3170   :  { %v4639_v1 = vmul.f32 %v10064_v0, %v4637_v39 }
0x3172   :  { %4665 = vrot.lane.b32.xlu0 %v4639_v1, %s10301_s10 }
0x318c   :  { %v4661_v6 = vpop.permute.xlu1 %4660 }
0x318d   :  { %v4663_v43 = vmul.f32 %v10068_v53, %v4661_v6 }
0x318f   :  { %4670 = vrot.lane.b32.xlu1 %v4663_v43, %s10301_s10 }
0x31e4   :  { %v4666_v7 = vpop.permute.xlu0 %4665 }
0x31e5   :  { %4668 = vst.msk [vmem:[#allocation3 + $0x8] sm:$0xff] %vm217_vm2, %v4666_v7  ;;  %8964 = vmatmul.mubr.msk.f32.vlgmr.msra.gmra.mrb[56].mxu1 %vm217_vm2, %v4666_v7 }
0x31e6   :  { %9542 = vmatpush3.bf16.msra.mxu1 %v11140_v33  ;;  %8974 = vmatprep.mubr.msk.f32.mxu1 %vm10299_vm1, %v10297_v3 }
0x31e7   :  { %9543 = vmatprep.subr.bf16.mxu1 %v10298_v12 }
0x31ea   :  { %9545 = vmatpush3.bf16.msra.mxu1 %v11150_v37 }
0x31eb   :  { %9546 = vmatprep.subr.bf16.mxu1 %v10298_v12 }
0x3201   :  { %v4671_v46 = vpop.permute.xlu1 %4670 }
0x3202   :  { %4673 = vst.msk [vmem:[#allocation4 + $0x30] sm:$0xff] %vm217_vm2, %v4671_v46  ;;  %8975 = vmatmul.mubr.msk.f32.vlgmr.msra.gmra.mrb[58].mxu1 %vm217_vm2, %v4671_v46 }
0x3203   :  { %9548 = vmatpush3.bf16.msra.mxu1 %v11117_v52  ;;  %8985 = vmatprep.mubr.msk.f32.mxu1 %vm10299_vm1, %v10297_v3 }
0x3204   :  { %9549 = vmatprep.subr.bf16.mxu1 %v10298_v12 }
0x3207   :  { %9551 = vmatpush3.bf16.msra.mxu1 %v11127_v23 }
0x3208   :  { %9552 = vmatprep.subr.bf16.mxu1 %v10298_v12 }
0x32b8   :  { %v4743_v44 = vpop.f32.mrb[56].mxu1 }
0x32b9   :  { %v4747_v8 = vadd.f32 %v4743_v44, %v11230_v34  ;;  %v8965_v49 = vpop.f32.mrb[57].mxu1 }
0x32bb   :  { %10073 = vtanh.f32 %v4747_v8  ;;  %v8135_v51 = vmul.f32 -1.442695, %v4747_v8 }
0x32c5   :  { %v10074_v9 = vpop.eup %10073 }
0x32c6   :  { %4831 = vrot.lane.b32.xlu0 %v10074_v9, %s10300_s9 }
0x32d5   :  { %v4817_v11 = vpop.f32.mrb[58].mxu1 }
0x32d6   :  { %v4821_v10 = vadd.f32 %v4817_v11, %v11245_v54  ;;  %v8976_v63 = vpop.f32.mrb[59].mxu1 }
0x32d8   :  { %10075 = vtanh.f32 %v4821_v10  ;;  %v8136_v41 = vmul.f32 -1.442695, %v4821_v10 }
0x32d9   :  { %10077 = vpow2.f32 %v8135_v51 }
0x32e2   :  { %v10076_v14 = vpop.eup %10075 }
0x32e3   :  { %4855 = vrot.lane.b32.xlu1 %v10076_v14, %s10300_s9  ;;  %v10078_v15 = vpop.eup %10077 }
0x32e4   :  { %v4825_v17 = vadd.f32 1.0, %v10078_v15 }
0x32e6   :  { %10079 = vrcp.f32 %v4825_v17 }
0x32e7   :  { %10081 = vpow2.f32 %v8136_v41 }
0x32f0   :  { %v10080_v34 = vpop.eup %10079 }
0x32f1   :  { %v10082_v21 = vpop.eup %10081  ;;  %v4829_v45 = vmul.f32 %v10080_v34, %v4633_v24 }
0x32f2   :  { %v4849_v26 = vadd.f32 1.0, %v10082_v21 }
0x32f4   :  { %10083 = vrcp.f32 %v4849_v26 }
0x32fe   :  { %v10084_v54 = vpop.eup %10083 }
0x32ff   :  { %v4853_v0 = vmul.f32 %v10084_v54, %v4657_v30 }
0x3338   :  { %v4832_v20 = vpop.permute.xlu0 %4831 }
0x3339   :  { %v4834_v4 = vmul.f32 %v10080_v34, %v4832_v20 }
0x333b   :  { %4836 = vrot.lane.b32.xlu0 %v4834_v4, %s10301_s10 }
0x3355   :  { %v4856_v35 = vpop.permute.xlu1 %4855 }
0x3356   :  { %v4858_v29 = vmul.f32 %v10084_v54, %v4856_v35 }
0x3358   :  { %4860 = vrot.lane.b32.xlu1 %v4858_v29, %s10301_s10 }
0x33ad   :  { %v4837_v5 = vpop.permute.xlu0 %4836 }
0x33ae   :  { %v4839_v50 = vadd.f32 %v4837_v5, %v4829_v45 }
0x33b0   :  { %10085 = vtanh.f32 %v4839_v50 }
0x33ba   :  { %v10086_v40 = vpop.eup %10085 }
0x33bb   :  { %4842 = vrot.lane.b32.xlu0 %v10086_v40, %s10300_s9 }
0x33ca   :  { %v4861_v56 = vpop.permute.xlu1 %4860 }
0x33cb   :  { %v4863_v57 = vadd.f32 %v4861_v56, %v4853_v0 }
0x33cd   :  { %10087 = vtanh.f32 %v4863_v57 }
0x33d7   :  { %v10088_v2 = vpop.eup %10087 }
0x33d8   :  { %4866 = vrot.lane.b32.xlu1 %v10088_v2, %s10300_s9 }
0x342d   :  { %v4843_v59 = vpop.permute.xlu0 %4842 }
0x342e   :  { %v4845_v53 = vmul.f32 %v10080_v34, %v4843_v59 }
0x3430   :  { %4871 = vrot.lane.b32.xlu0 %v4845_v53, %s10301_s10 }
0x344a   :  { %v4867_v28 = vpop.permute.xlu1 %4866 }
0x344b   :  { %v4869_v31 = vmul.f32 %v10084_v54, %v4867_v28 }
0x344d   :  { %4876 = vrot.lane.b32.xlu1 %v4869_v31, %s10301_s10 }
0x34a2   :  { %v4872_v32 = vpop.permute.xlu0 %4871 }
0x34a3   :  { %4874 = vst.msk [vmem:[#allocation3 + $0x10] sm:$0xff] %vm217_vm2, %v4872_v32  ;;  %8986 = vmatmul.mubr.msk.f32.vlgmr.msra.gmra.mrb[60].mxu1 %vm217_vm2, %v4872_v32 }
0x34a4   :  { %9554 = vmatpush3.bf16.msra.mxu1 %v11140_v33  ;;  %8996 = vmatprep.mubr.msk.f32.mxu1 %vm10299_vm1, %v10297_v3 }
0x34a5   :  { %9555 = vmatprep.subr.bf16.mxu1 %v10298_v12 }
0x34a8   :  { %9557 = vmatpush3.bf16.msra.mxu1 %v11150_v37 }
0x34a9   :  { %9564 = vmatprep.subr.bf16.mxu1 %v10298_v12 }
0x34bf   :  { %v4877_v60 = vpop.permute.xlu1 %4876 }
0x34c0   :  { %4879 = vst.msk [vmem:[#allocation4 + $0x28] sm:$0xff] %vm217_vm2, %v4877_v60  ;;  %8997 = vmatmul.mubr.msk.f32.vlgmr.msra.gmra.mrb[62].mxu1 %vm217_vm2, %v4877_v60 }
0x34c1   :  { %9566 = vmatpush3.bf16.msra.mxu1 %v11140_v33  ;;  %9018 = vmatprep.mubr.msk.f32.mxu1 %vm10299_vm1, %v10297_v3 }
0x34c2   :  { %9567 = vmatprep.subr.bf16.mxu1 %v10298_v12 }
0x34c5   :  { %9569 = vmatpush3.bf16.msra.mxu1 %v11150_v37 }
0x34c6   :  { %9576 = vmatprep.subr.bf16.mxu1 %v10298_v12 }
0x3576   :  { %v4949_v24 = vpop.f32.mrb[60].mxu1 }
0x3577   :  { %v4953_v61 = vadd.f32 %v4949_v24, %v11234_v22  ;;  %v8987_v58 = vpop.f32.mrb[61].mxu1 }
0x3579   :  { %10089 = vtanh.f32 %v4953_v61  ;;  %v8139_v6 = vmul.f32 -1.442695, %v4953_v61 }
0x3583   :  { %v10090_v62 = vpop.eup %10089 }
0x3584   :  { %5037 = vrot.lane.b32.xlu1 %v10090_v62, %s10300_s9 }
0x3593   :  { %v5023_v30 = vpop.f32.mrb[62].mxu1 }
0x3594   :  { %v5027_v47 = vadd.f32 %v5023_v30, %v11241_v38  ;;  %v8998_v39 = vpop.f32.mrb[63].mxu1 }
0x3596   :  { %10091 = vtanh.f32 %v5027_v47  ;;  %v8140_v46 = vmul.f32 -1.442695, %v5027_v47 }
0x3597   :  { %10093 = vpow2.f32 %v8139_v6 }
0x35a0   :  { %v10092_v1 = vpop.eup %10091 }
0x35a1   :  { %5061 = vrot.lane.b32.xlu0 %v10092_v1, %s10300_s9  ;;  %v10094_v43 = vpop.eup %10093 }
0x35a2   :  { %v5031_v7 = vadd.f32 1.0, %v10094_v43 }
0x35a4   :  { %10095 = vrcp.f32 %v5031_v7 }
0x35a5   :  { %10097 = vpow2.f32 %v8140_v46 }
0x35ae   :  { %v10096_v22 = vpop.eup %10095 }
0x35af   :  { %v10098_v49 = vpop.eup %10097  ;;  %v5035_v63 = vmul.f32 %v10096_v22, %v4839_v50 }
0x35b0   :  { %v5055_v9 = vadd.f32 1.0, %v10098_v49 }
0x35b2   :  { %10099 = vrcp.f32 %v5055_v9 }
0x35bc   :  { %v10100_v38 = vpop.eup %10099 }
0x35bd   :  { %v5059_v17 = vmul.f32 %v10100_v38, %v4863_v57 }
0x35f6   :  { %v5038_v44 = vpop.permute.xlu1 %5037 }
0x35f7   :  { %v5040_v8 = vmul.f32 %v10096_v22, %v5038_v44 }
0x35f9   :  { %5042 = vrot.lane.b32.xlu1 %v5040_v8, %s10301_s10 }
0x3613   :  { %v5062_v11 = vpop.permute.xlu0 %5061 }
0x3614   :  { %v5064_v10 = vmul.f32 %v10100_v38, %v5062_v11 }
0x3616   :  { %5066 = vrot.lane.b32.xlu0 %v5064_v10, %s10301_s10 }
0x366b   :  { %v5043_v14 = vpop.permute.xlu1 %5042 }
0x366c   :  { %v5045_v51 = vadd.f32 %v5043_v14, %v5035_v63 }
0x366e   :  { %10101 = vtanh.f32 %v5045_v51 }
0x3678   :  { %v10102_v15 = vpop.eup %10101 }
0x3679   :  { %5048 = vrot.lane.b32.xlu1 %v10102_v15, %s10300_s9 }
0x3688   :  { %v5067_v41 = vpop.permute.xlu0 %5066 }
0x3689   :  { %v5069_v34 = vadd.f32 %v5067_v41, %v5059_v17 }
0x368b   :  { %10103 = vtanh.f32 %v5069_v34 }
0x3695   :  { %v10104_v20 = vpop.eup %10103 }
0x3696   :  { %5072 = vrot.lane.b32.xlu0 %v10104_v20, %s10300_s9 }
0x36eb   :  { %v5049_v4 = vpop.permute.xlu1 %5048 }
0x36ec   :  { %v5051_v21 = vmul.f32 %v10096_v22, %v5049_v4 }
0x36ee   :  { %5077 = vrot.lane.b32.xlu1 %v5051_v21, %s10301_s10 }
0x3708   :  { %v5073_v26 = vpop.permute.xlu0 %5072 }
0x3709   :  { %v5075_v54 = vmul.f32 %v10100_v38, %v5073_v26 }
0x370b   :  { %5082 = vrot.lane.b32.xlu0 %v5075_v54, %s10301_s10 }
0x3760   :  { %v5078_v35 = vpop.permute.xlu1 %5077 }
0x3761   :  { %5080 = vst.msk [vmem:[#allocation3 + $0x18] sm:$0xff] %vm217_vm2, %v5078_v35  ;;  %9008 = vmatmul.mubr.msk.f32.vlgmr.msra.gmra.mrb[64].mxu0 %vm217_vm2, %v5078_v35 }
0x3762   :  { %9572 = vmatpush3.bf16.msra.mxu0 %v11117_v52  ;;  %9029 = vmatprep.mubr.msk.f32.mxu0 %vm10299_vm1, %v10297_v3 }
0x3763   :  { %9573 = vmatprep.subr.bf16.mxu0 %v10298_v12 }
0x3766   :  { %9575 = vmatpush3.bf16.msra.mxu0 %v11127_v23 }
0x3767   :  { %9582 = vmatprep.subr.bf16.mxu0 %v10298_v12 }
0x377d   :  { %v5083_v29 = vpop.permute.xlu0 %5082 }
0x377e   :  { %5085 = vst.msk [vmem:[#allocation4 + $0x20] sm:$0xff] %vm217_vm2, %v5083_v29  ;;  %9019 = vmatmul.mubr.msk.f32.vlgmr.msra.gmra.mrb[64].mxu1 %vm217_vm2, %v5083_v29 }
0x377f   :  { %9578 = vmatpush3.bf16.msra.mxu1 %v11140_v33  ;;  %9040 = vmatprep.mubr.msk.f32.mxu1 %vm10299_vm1, %v10297_v3 }
0x3780   :  { %9579 = vmatprep.subr.bf16.mxu1 %v10298_v12 }
0x3783   :  { %9581 = vmatpush3.bf16.msra.mxu1 %v11150_v37 }
0x3784   :  { %9588 = vmatprep.subr.bf16.mxu1 %v10298_v12 }
0x3834   :  { %v5155_v45 = vpop.f32.mrb[64].mxu0 }
0x3835   :  { %v5159_v5 = vadd.f32 %v5155_v45, %v11239_v13  ;;  %v9009_v50 = vpop.f32.mrb[65].mxu0 }
0x3837   :  { %10105 = vtanh.f32 %v5159_v5  ;;  %v8143_v59 = vmul.f32 -1.442695, %v5159_v5 }
0x3841   :  { %v10106_v40 = vpop.eup %10105 }
0x3842   :  { %5243 = vrot.lane.b32.xlu1 %v10106_v40, %s10300_s9 }
0x3851   :  { %v5229_v0 = vpop.f32.mrb[64].mxu1 }
0x3852   :  { %v5233_v56 = vadd.f32 %v5229_v0, %v11236_v27  ;;  %v9020_v57 = vpop.f32.mrb[65].mxu1 }
0x3854   :  { %10107 = vtanh.f32 %v5233_v56  ;;  %v8144_v31 = vmul.f32 -1.442695, %v5233_v56 }
0x3855   :  { %10109 = vpow2.f32 %v8143_v59 }
0x385e   :  { %v10108_v2 = vpop.eup %10107 }
0x385f   :  { %5267 = vrot.lane.b32.xlu0 %v10108_v2, %s10300_s9  ;;  %v10110_v53 = vpop.eup %10109 }
0x3860   :  { %v5237_v28 = vadd.f32 1.0, %v10110_v53 }
0x3862   :  { %10111 = vrcp.f32 %v5237_v28 }
0x3863   :  { %10113 = vpow2.f32 %v8144_v31 }
0x386c   :  { %v10112_v13 = vpop.eup %10111 }
0x386d   :  { %v10114_v24 = vpop.eup %10113  ;;  %v5241_v30 = vmul.f32 %v10112_v13, %v5045_v51 }
0x386e   :  { %v5261_v61 = vadd.f32 1.0, %v10114_v24 }
0x3870   :  { %10115 = vrcp.f32 %v5261_v61 }
0x387a   :  { %v10116_v27 = vpop.eup %10115 }
0x387b   :  { %v5265_v6 = vmul.f32 %v10116_v27, %v5069_v34 }
0x38b4   :  { %v5244_v32 = vpop.permute.xlu1 %5243 }
0x38b5   :  { %v5246_v60 = vmul.f32 %v10112_v13, %v5244_v32 }
0x38b7   :  { %5248 = vrot.lane.b32.xlu1 %v5246_v60, %s10301_s10 }
0x38d1   :  { %v5268_v58 = vpop.permute.xlu0 %5267 }
0x38d2   :  { %v5270_v62 = vmul.f32 %v10116_v27, %v5268_v58 }
0x38d4   :  { %5272 = vrot.lane.b32.xlu0 %v5270_v62, %s10301_s10 }
0x3929   :  { %v5249_v47 = vpop.permute.xlu1 %5248 }
0x392a   :  { %v5251_v39 = vadd.f32 %v5249_v47, %v5241_v30 }
0x392c   :  { %10117 = vtanh.f32 %v5251_v39 }
0x3936   :  { %v10118_v1 = vpop.eup %10117 }
0x3937   :  { %5254 = vrot.lane.b32.xlu1 %v10118_v1, %s10300_s9 }
0x3946   :  { %v5273_v43 = vpop.permute.xlu0 %5272 }
0x3947   :  { %v5275_v7 = vadd.f32 %v5273_v43, %v5265_v6 }
0x3949   :  { %10119 = vtanh.f32 %v5275_v7 }
0x3953   :  { %v10120_v46 = vpop.eup %10119 }
0x3954   :  { %5278 = vrot.lane.b32.xlu0 %v10120_v46, %s10300_s9 }
0x39a9   :  { %v5255_v22 = vpop.permute.xlu1 %5254 }
0x39aa   :  { %v5257_v44 = vmul.f32 %v10112_v13, %v5255_v22 }
0x39ac   :  { %5283 = vrot.lane.b32.xlu1 %v5257_v44, %s10301_s10 }
0x39c6   :  { %v5279_v8 = vpop.permute.xlu0 %5278 }
0x39c7   :  { %v5281_v49 = vmul.f32 %v10116_v27, %v5279_v8 }
0x39c9   :  { %5288 = vrot.lane.b32.xlu0 %v5281_v49, %s10301_s10 }
0x3a1e   :  { %v5284_v9 = vpop.permute.xlu1 %5283 }
0x3a1f   :  { %5286 = vst.msk [vmem:[#allocation3 + $0x20] sm:$0xff] %vm217_vm2, %v5284_v9  ;;  %9030 = vmatmul.mubr.msk.f32.vlgmr.msra.gmra.mrb[66].mxu0 %vm217_vm2, %v5284_v9 }
0x3a20   :  { %9584 = vmatpush3.bf16.msra.mxu0 %v11117_v52  ;;  %9051 = vmatprep.mubr.msk.f32.mxu0 %vm10299_vm1, %v10297_v3 }
0x3a21   :  { %9585 = vmatprep.subr.bf16.mxu0 %v10298_v12 }
0x3a24   :  { %9587 = vmatpush3.bf16.msra.mxu0 %v11127_v23 }
0x3a25   :  { %9594 = vmatprep.subr.bf16.mxu0 %v10298_v12 }
0x3a3b   :  { %v5289_v38 = vpop.permute.xlu0 %5288 }
0x3a3c   :  { %5291 = vst.msk [vmem:[#allocation4 + $0x18] sm:$0xff] %vm217_vm2, %v5289_v38  ;;  %9041 = vmatmul.mubr.msk.f32.vlgmr.msra.gmra.mrb[66].mxu1 %vm217_vm2, %v5289_v38 }
0x3a3d   :  { %9590 = vmatpush3.bf16.msra.mxu1 %v11140_v33  ;;  %9062 = vmatprep.mubr.msk.f32.mxu1 %vm10299_vm1, %v10297_v3 }
0x3a3e   :  { %9591 = vmatprep.subr.bf16.mxu1 %v10298_v12 }
0x3a41   :  { %9593 = vmatpush3.bf16.msra.mxu1 %v11150_v37 }
0x3a42   :  { %9600 = vmatprep.subr.bf16.mxu1 %v10298_v12 }
0x3af2   :  { %v5361_v11 = vpop.f32.mrb[66].mxu0 }
0x3af3   :  { %v5365_v10 = vadd.f32 %v5361_v11, %v11243_v42  ;;  %v9031_v63 = vpop.f32.mrb[67].mxu0 }
0x3af5   :  { %10121 = vtanh.f32 %v5365_v10  ;;  %v8147_v34 = vmul.f32 -1.442695, %v5365_v10 }
0x3aff   :  { %v10122_v14 = vpop.eup %10121 }
0x3b00   :  { %5449 = vrot.lane.b32.xlu1 %v10122_v14, %s10300_s9 }
0x3b0f   :  { %v5435_v51 = vpop.f32.mrb[66].mxu1 }
0x3b10   :  { %v5439_v15 = vadd.f32 %v5435_v51, %v11232_v18  ;;  %v9042_v17 = vpop.f32.mrb[67].mxu1 }
0x3b12   :  { %10123 = vtanh.f32 %v5439_v15  ;;  %v8148_v21 = vmul.f32 -1.442695, %v5439_v15 }
0x3b13   :  { %10125 = vpow2.f32 %v8147_v34 }
0x3b1c   :  { %v10124_v41 = vpop.eup %10123 }
0x3b1d   :  { %5473 = vrot.lane.b32.xlu0 %v10124_v41, %s10300_s9  ;;  %v10126_v20 = vpop.eup %10125 }
0x3b1e   :  { %v5443_v4 = vadd.f32 1.0, %v10126_v20 }
0x3b20   :  { %10127 = vrcp.f32 %v5443_v4 }
0x3b21   :  { %10129 = vpow2.f32 %v8148_v21 }
0x3b2a   :  { %v10128_v42 = vpop.eup %10127 }
0x3b2b   :  { %v10130_v35 = vpop.eup %10129  ;;  %v5447_v50 = vmul.f32 %v10128_v42, %v5251_v39 }
0x3b2c   :  { %v5467_v29 = vadd.f32 1.0, %v10130_v35 }
0x3b2e   :  { %10131 = vrcp.f32 %v5467_v29 }
0x3b38   :  { %v10132_v18 = vpop.eup %10131 }
0x3b39   :  { %v5471_v57 = vmul.f32 %v10132_v18, %v5275_v7 }
0x3b72   :  { %v5450_v26 = vpop.permute.xlu1 %5449 }
0x3b73   :  { %v5452_v54 = vmul.f32 %v10128_v42, %v5450_v26 }
0x3b75   :  { %5454 = vrot.lane.b32.xlu1 %v5452_v54, %s10301_s10 }
0x3b8f   :  { %v5474_v45 = vpop.permute.xlu0 %5473 }
0x3b90   :  { %v5476_v5 = vmul.f32 %v10132_v18, %v5474_v45 }
0x3b92   :  { %5478 = vrot.lane.b32.xlu0 %v5476_v5, %s10301_s10 }
0x3be7   :  { %v5455_v40 = vpop.permute.xlu1 %5454 }
0x3be8   :  { %v5457_v0 = vadd.f32 %v5455_v40, %v5447_v50 }
0x3bea   :  { %10133 = vtanh.f32 %v5457_v0 }
0x3bf4   :  { %v10134_v56 = vpop.eup %10133 }
0x3bf5   :  { %5460 = vrot.lane.b32.xlu1 %v10134_v56, %s10300_s9 }
0x3c04   :  { %v5479_v2 = vpop.permute.xlu0 %5478 }
0x3c05   :  { %v5481_v59 = vadd.f32 %v5479_v2, %v5471_v57 }
0x3c07   :  { %10135 = vtanh.f32 %v5481_v59 }
0x3c11   :  { %v10136_v53 = vpop.eup %10135 }
0x3c12   :  { %5484 = vrot.lane.b32.xlu0 %v10136_v53, %s10300_s9 }
0x3c67   :  { %v5461_v28 = vpop.permute.xlu1 %5460 }
0x3c68   :  { %v5463_v31 = vmul.f32 %v10128_v42, %v5461_v28 }
0x3c6a   :  { %5489 = vrot.lane.b32.xlu1 %v5463_v31, %s10301_s10 }
0x3c84   :  { %v5485_v13 = vpop.permute.xlu0 %5484 }
0x3c85   :  { %v5487_v32 = vmul.f32 %v10132_v18, %v5485_v13 }
0x3c87   :  { %5494 = vrot.lane.b32.xlu0 %v5487_v32, %s10301_s10 }
0x3cdc   :  { %v5490_v60 = vpop.permute.xlu1 %5489 }
0x3cdd   :  { %5492 = vst.msk [vmem:[#allocation3 + $0x28] sm:$0xff] %vm217_vm2, %v5490_v60  ;;  %9052 = vmatmul.mubr.msk.f32.vlgmr.msra.gmra.mrb[68].mxu0 %vm217_vm2, %v5490_v60 }
0x3cde   :  { %9596 = vmatpush3.bf16.msra.mxu0 %v11117_v52  ;;  %9073 = vmatprep.mubr.msk.f32.mxu0 %vm10299_vm1, %v10297_v3 }
0x3cdf   :  { %9597 = vmatprep.subr.bf16.mxu0 %v10298_v12 }
0x3ce2   :  { %9599 = vmatpush3.bf16.msra.mxu0 %v11127_v23 }
0x3cf9   :  { %v5495_v24 = vpop.permute.xlu0 %5494 }
0x3cfa   :  { %5497 = vst.msk [vmem:[#allocation4 + $0x10] sm:$0xff] %vm217_vm2, %v5495_v24  ;;  %9063 = vmatmul.mubr.msk.f32.vlgmr.msra.gmra.mrb[68].mxu1 %vm217_vm2, %v5495_v24 }
0x3cfb   :  { %9602 = vmatpush3.bf16.msra.mxu1 %v11140_v33  ;;  %9084 = vmatprep.mubr.msk.f32.mxu1 %vm10299_vm1, %v10297_v3 }
0x3cfc   :  { %9603 = vmatprep.subr.bf16.mxu1 %v10298_v12 }
0x3cff   :  { %9605 = vmatpush3.bf16.msra.mxu1 %v11150_v37 }
0x3d00   :  { %9622 = vmatprep.subr.bf16.mxu1 %v10298_v12 }
0x3db0   :  { %v5567_v52 = vpop.f32.mrb[68].mxu0 }
0x3db1   :  { %v5571_v61 = vadd.f32 %v5567_v52, %v11247_v55  ;;  %v9053_v23 = vpop.f32.mrb[69].mxu0 }
0x3db2   :  { %v8166_v23 = vld [vmem:[%s11806_s2 + $0x148] sm:$0xff] }
0x3db3   :  { %10137 = vtanh.f32 %v5571_v61  ;;  %v8151_v47 = vmul.f32 -1.442695, %v5571_v61 }
0x3dbd   :  { %v10138_v27 = vpop.eup %10137 }
0x3dbe   :  { %5655 = vrot.lane.b32.xlu1 %v10138_v27, %s10300_s9  ;;  %v8168_v27 = vld [vmem:[%s11806_s2 + $0x158] sm:$0xff] }
0x3dcd   :  { %v5641_v58 = vpop.f32.mrb[68].mxu1 }
0x3dce   :  { %v5645_v33 = vadd.f32 %v5641_v58, %v11228_v19  ;;  %v9064_v62 = vpop.f32.mrb[69].mxu1  ;;  %v9606_v58 = vpack.c.bf16 %v8168_v27, %v8166_v23 }
0x3dd0   :  { %10139 = vtanh.f32 %v5645_v33  ;;  %v8152_v1 = vmul.f32 -1.442695, %v5645_v33  ;;  %9607 = vmatprep.subr.bf16.mxu0 %v9606_v58  ;;  %v8189_v58 = vld [vmem:[%s11805_s4 + $0x6] sm:$0x3] }
0x3dd1   :  { %10141 = vpow2.f32 %v8151_v47  ;;  %v8167_v47 = vld [vmem:[%s11806_s2 + $0x150] sm:$0xff] }
0x3dda   :  { %v10140_v30 = vpop.eup %10139 }
0x3ddb   :  { %5679 = vrot.lane.b32.xlu0 %v10140_v30, %s10300_s9  ;;  %v10142_v37 = vpop.eup %10141  ;;  %v8165_v30 = vld [vmem:[%s11806_s2 + $0x140] sm:$0xff] }
0x3ddc   :  { %v5649_v39 = vadd.f32 1.0, %v10142_v37  ;;  %v9608_v37 = vpack.c.bf16 %v8167_v47, %v8165_v30 }
0x3dde   :  { %10143 = vrcp.f32 %v5649_v39  ;;  %v8170_v39 = vld [vmem:[%s11806_s2 + $0x168] sm:$0xff] }
0x3ddf   :  { %10145 = vpow2.f32 %v8152_v1  ;;  %v8172_v1 = vld [vmem:[%s11806_s2 + $0x178] sm:$0xff] }
0x3de8   :  { %v10144_v55 = vpop.eup %10143 }
0x3de9   :  { %v10146_v7 = vpop.eup %10145  ;;  %v5653_v8 = vmul.f32 %v10144_v55, %v5457_v0 }
0x3dea   :  { %v5673_v46 = vadd.f32 1.0, %v10146_v7  ;;  %v8158_v7 = vld [vmem:[%s11806_s2 + $0x108] sm:$0xff] }
0x3dec   :  { %10147 = vrcp.f32 %v5673_v46  ;;  %v8160_v46 = vld [vmem:[%s11806_s2 + $0x118] sm:$0xff] }
0x3df6   :  { %v10148_v19 = vpop.eup %10147 }
0x3df7   :  { %v5677_v11 = vmul.f32 %v10148_v19, %v5481_v59 }
0x3e30   :  { %v5656_v6 = vpop.permute.xlu1 %5655 }
0x3e31   :  { %v5658_v43 = vmul.f32 %v10144_v55, %v5656_v6  ;;  %v9610_v6 = vpack.c.bf16 %v8172_v1, %v8170_v39 }
0x3e33   :  { %5660 = vrot.lane.b32.xlu1 %v5658_v43, %s10301_s10  ;;  %v8171_v43 = vld [vmem:[%s11806_s2 + $0x170] sm:$0xff] }
0x3e4d   :  { %v5680_v22 = vpop.permute.xlu0 %5679 }
0x3e4e   :  { %v5682_v44 = vmul.f32 %v10148_v19, %v5680_v22  ;;  %v9614_v22 = vpack.c.bf16 %v8160_v46, %v8158_v7 }
0x3e50   :  { %5684 = vrot.lane.b32.xlu0 %v5682_v44, %s10301_s10 }
0x3ea5   :  { %v5661_v49 = vpop.permute.xlu1 %5660 }
0x3ea6   :  { %v5663_v9 = vadd.f32 %v5661_v49, %v5653_v8  ;;  %v8190_v49 = vld [vmem:[%s11803_s3 + $0xc0] sm:$0xff] }
0x3ea8   :  { %10149 = vtanh.f32 %v5663_v9 }
0x3eb2   :  { %v10150_v38 = vpop.eup %10149 }
0x3eb3   :  { %5666 = vrot.lane.b32.xlu1 %v10150_v38, %s10300_s9 }
0x3ec2   :  { %v5685_v10 = vpop.permute.xlu0 %5684 }
0x3ec3   :  { %v5687_v63 = vadd.f32 %v5685_v10, %v5677_v11  ;;  %v8192_v11 = vld [vmem:[%s11803_s3 + $0xd0] sm:$0xff]  ;;  %v8193_v10 = vld [vmem:[%s11803_s3 + $0xd8] sm:$0xff] }
0x3ec5   :  { %10151 = vtanh.f32 %v5687_v63 }
0x3ecf   :  { %v10152_v14 = vpop.eup %10151 }
0x3ed0   :  { %5690 = vrot.lane.b32.xlu0 %v10152_v14, %s10300_s9  ;;  %v8194_v14 = vld [vmem:[%s11803_s3 + $0xe0] sm:$0xff] }
0x3f25   :  { %v5667_v51 = vpop.permute.xlu1 %5666 }
0x3f26   :  { %v5669_v15 = vmul.f32 %v10144_v55, %v5667_v51  ;;  %v8169_v55 = vld [vmem:[%s11806_s2 + $0x160] sm:$0xff]  ;;  %v8195_v51 = vld [vmem:[%s11803_s3 + $0xe8] sm:$0xff] }
0x3f28   :  { %5695 = vrot.lane.b32.xlu1 %v5669_v15, %s10301_s10  ;;  %v11491_v15 = vpack.c.bf16 %v8195_v51, %v8194_v14 }
0x3f42   :  { %v5691_v17 = vpop.permute.xlu0 %5690 }
0x3f43   :  { %v5693_v41 = vmul.f32 %v10148_v19, %v5691_v17  ;;  %v9612_v19 = vpack.c.bf16 %v8171_v43, %v8169_v55  ;;  %v8196_v17 = vld [vmem:[%s11803_s3 + $0xf0] sm:$0xff] }
0x3f45   :  { %5700 = vrot.lane.b32.xlu0 %v5693_v41, %s10301_s10  ;;  %v8197_v41 = vld [vmem:[%s11803_s3 + $0xf8] sm:$0xff] }
0x3f9a   :  { %v5696_v34 = vpop.permute.xlu1 %5695 }
0x3f9b   :  { %5698 = vst.msk [vmem:[#allocation3 + $0x30] sm:$0xff] %vm217_vm2, %v5696_v34  ;;  %9074 = vmatmul.mubr.msk.f32.vlgmr.msra.gmra.mrb[70].mxu0 %vm217_vm2, %v5696_v34  ;;  %v11501_v34 = vpack.c.bf16 %v8197_v41, %v8196_v17 }
0x3f9c   :  { %6031 = vmatprep.mubr.f32.mxu0 %v10297_v3  ;;  %9609 = vmatpush1.bf16.msra.mxu0 %v9608_v37 }
0x3f9d   :  { %9611 = vmatprep.subr.bf16.mxu0 %v9610_v6 }
0x3fa0   :  { %9613 = vmatpush1.bf16.msra.mxu0 %v9612_v19 }
0x3fa1   :  { %9615 = vmatprep.subr.bf16.mxu0 %v9614_v22 }
0x3fb7   :  { %v5701_v20 = vpop.permute.xlu0 %5700 }
0x3fb8   :  { %5703 = vst.msk [vmem:[#allocation4 + $0x8] sm:$0xff] %vm217_vm2, %v5701_v20  ;;  %9085 = vmatmul.mubr.msk.f32.vlgmr.msra.gmra.mrb[70].mxu1 %vm217_vm2, %v5701_v20 }
0x3fb9   :  { %9095 = vmatprep.mubr.msk.f32.mxu1 %vm10299_vm1, %v10297_v3 }
0x406e   :  { %v5773_v4 = vpop.f32.mrb[70].mxu0 }
0x406f   :  { %v5777_v21 = vadd.f32 %v5773_v4, %v11251_v48  ;;  %v9075_v42 = vpop.f32.mrb[71].mxu0 }
0x4070   :  { %v8159_v42 = vld [vmem:[%s11806_s2 + $0x110] sm:$0xff] }
0x4071   :  { %10153 = vtanh.f32 %v5777_v21  ;;  %v8155_v45 = vmul.f32 -1.442695, %v5777_v21  ;;  %v8157_v21 = vld [vmem:[%s11806_s2 + $0x100] sm:$0xff] }
0x407b   :  { %v10154_v26 = vpop.eup %10153 }
0x407c   :  { %5861 = vrot.lane.b32.xlu1 %v10154_v26, %s10300_s9  ;;  %v8162_v26 = vld [vmem:[%s11806_s2 + $0x128] sm:$0xff] }
0x408b   :  { %v5847_v54 = vpop.f32.mrb[70].mxu1 }
0x408c   :  { %v5851_v35 = vadd.f32 %v5847_v54, %v11224_v16  ;;  %v9086_v29 = vpop.f32.mrb[71].mxu1  ;;  %v8164_v54 = vld [vmem:[%s11806_s2 + $0x138] sm:$0xff] }
0x408d   :  { %v9618_v29 = vpack.c.bf16 %v8164_v54, %v8162_v26 }
0x408e   :  { %10155 = vtanh.f32 %v5851_v35  ;;  %v8156_v40 = vmul.f32 -1.442695, %v5851_v35  ;;  %v9616_v35 = vpack.c.bf16 %v8159_v42, %v8157_v21 }
0x408f   :  { %10157 = vpow2.f32 %v8155_v45  ;;  %v8163_v45 = vld [vmem:[%s11806_s2 + $0x130] sm:$0xff] }
0x4098   :  { %v10156_v18 = vpop.eup %10155 }
0x4099   :  { %5885 = vrot.lane.b32.xlu0 %v10156_v18, %s10300_s9  ;;  %v10158_v5 = vpop.eup %10157  ;;  %v8161_v18 = vld [vmem:[%s11806_s2 + $0x120] sm:$0xff] }
0x409a   :  { %v5855_v50 = vadd.f32 1.0, %v10158_v5 }
0x409c   :  { %10159 = vrcp.f32 %v5855_v50  ;;  %v9620_v50 = vpack.c.bf16 %v8163_v45, %v8161_v18 }
0x409d   :  { %10161 = vpow2.f32 %v8156_v40  ;;  %v5928_v40 = vld [vmem:[#allocation4 + $0x8] sm:$0xff] }
0x40a6   :  { %v10160_v48 = vpop.eup %10159 }
0x40a7   :  { %v10162_v57 = vpop.eup %10161  ;;  %v5859_v28 = vmul.f32 %v10160_v48, %v5663_v9  ;;  %v8191_v9 = vld [vmem:[%s11803_s3 + $0xc8] sm:$0xff] }
0x40a8   :  { %v5879_v2 = vadd.f32 1.0, %v10162_v57  ;;  %v11468_v38 = vpack.c.bf16 %v8191_v9, %v8190_v49  ;;  %v5932_v57 = vld [vmem:[#allocation4 + $0x28] sm:$0xff] }
0x40aa   :  { %10163 = vrcp.f32 %v5879_v2  ;;  %9624 = vmatpush3.bf16.msra.mxu1 %v11468_v38  ;;  %v5933_v2 = vld [vmem:[#allocation4 + $0x30] sm:$0xff] }
0x40ab   :  { %9625 = vmatprep.subr.bf16.mxu1 %v10298_v12 }
0x40b4   :  { %v10164_v16 = vpop.eup %10163 }
0x40b5   :  { %v5883_v60 = vmul.f32 %v10164_v16, %v5687_v63  ;;  %v11478_v63 = vpack.c.bf16 %v8193_v10, %v8192_v11 }
0x40b7   :  { %9627 = vmatpush3.bf16.msra.mxu1 %v11478_v63 }
0x40b8   :  { %9628 = vmatprep.subr.bf16.mxu1 %v10298_v12 }
0x40ba   :  { %9096 = vmatmul.mubr.f32.vlgmr.msra.gmra.mrb[72].mxu1 %v10297_v3 }
0x40bb   :  { %9106 = vmatprep.mubr.msk.f32.mxu1 %vm10299_vm1, %v10297_v3  ;;  %9630 = vmatpush3.bf16.msra.mxu1 %v11491_v15 }
0x40bc   :  { %9631 = vmatprep.subr.bf16.mxu1 %v10298_v12 }
0x40bf   :  { %9633 = vmatpush3.bf16.msra.mxu1 %v11501_v34 }
0x40c0   :  { %9634 = vmatprep.subr.bf16.mxu1 %v10298_v12 }
0x40c2   :  { %9107 = vmatmul.mubr.f32.vlgmr.msra.gmra.mrb[74].mxu1 %v10297_v3 }
0x40c3   :  { %9636 = vmatpush3.bf16.msra.mxu1 %v11468_v38  ;;  %9117 = vmatprep.mubr.msk.f32.mxu1 %vm10299_vm1, %v10297_v3 }
0x40c4   :  { %9637 = vmatprep.subr.bf16.mxu1 %v10298_v12 }
0x40c7   :  { %9639 = vmatpush3.bf16.msra.mxu1 %v11478_v63 }
0x40c8   :  { %9640 = vmatprep.subr.bf16.mxu1 %v10298_v12 }
0x40ee   :  { %v5862_v0 = vpop.permute.xlu1 %5861 }
0x40ef   :  { %v5864_v56 = vmul.f32 %v10160_v48, %v5862_v0  ;;  %v5930_v0 = vld [vmem:[#allocation4 + $0x18] sm:$0xff] }
0x40f1   :  { %5866 = vrot.lane.b32.xlu1 %v5864_v56, %s10301_s10  ;;  %v5931_v56 = vld [vmem:[#allocation4 + $0x20] sm:$0xff] }
0x410b   :  { %v5886_v59 = vpop.permute.xlu0 %5885 }
0x410c   :  { %v5888_v53 = vmul.f32 %v10164_v16, %v5886_v59  ;;  %v5910_v59 = vld [vmem:[#allocation3] sm:$0xff] }
0x410e   :  { %5890 = vrot.lane.b32.xlu0 %v5888_v53, %s10301_s10  ;;  %v5911_v53 = vld [vmem:[#allocation3 + $0x8] sm:$0xff] }
0x4163   :  { %v5867_v31 = vpop.permute.xlu1 %5866 }
0x4164   :  { %v5869_v13 = vadd.f32 %v5867_v31, %v5859_v28  ;;  %v5912_v28 = vld [vmem:[#allocation3 + $0x10] sm:$0xff]  ;;  %v5913_v31 = vld [vmem:[#allocation3 + $0x18] sm:$0xff] }
0x4166   :  { %10165 = vtanh.f32 %v5869_v13  ;;  %v5914_v13 = vld [vmem:[#allocation3 + $0x20] sm:$0xff] }
0x4170   :  { %v10166_v32 = vpop.eup %10165 }
0x4171   :  { %5872 = vrot.lane.b32.xlu1 %v10166_v32, %s10300_s9  ;;  %v5915_v32 = vld [vmem:[#allocation3 + $0x28] sm:$0xff] }
0x4180   :  { %v5891_v24 = vpop.permute.xlu0 %5890 }
0x4181   :  { %v5893_v52 = vadd.f32 %v5891_v24, %v5883_v60  ;;  %v5916_v60 = vld [vmem:[#allocation3 + $0x30] sm:$0xff] }
0x4183   :  { %10167 = vtanh.f32 %v5893_v52 }
0x418d   :  { %v10168_v61 = vpop.eup %10167  ;;  %v6339_v52 = vpop.f32.mrb[72].mxu1 }
0x418e   :  { %5896 = vrot.lane.b32.xlu0 %v10168_v61, %s10300_s9  ;;  %v9097_v61 = vpop.f32.mrb[73].mxu1 }
0x4195   :  { %v6411_v23 = vpop.f32.mrb[74].mxu1 }
0x4196   :  { %v9108_v27 = vpop.f32.mrb[75].mxu1 }
0x41e3   :  { %v5873_v33 = vpop.permute.xlu1 %5872 }
0x41e4   :  { %v5875_v62 = vmul.f32 %v10160_v48, %v5873_v33  ;;  %v5929_v48 = vld [vmem:[#allocation4 + $0x10] sm:$0xff]  ;;  %v6223_v33 = vrot.slane %v8189_v58, %v10428_v25 }
0x41e6   :  { %5901 = vrot.lane.b32.xlu1 %v5875_v62, %s10301_s10  ;;  %v6227_v62 = vrot.slane %v8189_v58, %v10445_v36 }
0x4200   :  { %v5897_v44 = vpop.permute.xlu0 %5896 }
0x4201   :  { %v5899_v8 = vmul.f32 %v10164_v16, %v5897_v44  ;;  %v5934_v16 = vld [vmem:[#allocation4 + $0x38] sm:$0xff] }
0x4203   :  { %5906 = vrot.lane.b32.xlu0 %v5899_v8, %s10301_s10 }
0x4258   :  { %v5902_v20 = vpop.permute.xlu1 %5901 }
0x4259   :  { %5904 = vst.msk [vmem:[#allocation3 + $0x38] sm:$0xff] %vm217_vm2, %v5902_v20 }
0x4260   :  { %v5917_v24 = vld [vmem:[#allocation3 + $0x38] sm:$0xff] }
0x4275   :  { %v5907_v4 = vpop.permute.xlu0 %5906 }
0x4276   :  { %5909 = vst.msk [vmem:[#allocation4] sm:$0xff] %vm217_vm2, %v5907_v4 }
0x427d   :  { %v5927_v5 = vld [vmem:[#allocation4] sm:$0xff] }
0x427e   :  { %8173 = vmatmul.mubr.msk.f32.vlgmr.msra.gmra.mrb[72].mxu0 %vm217_vm2, %v5927_v5 }
0x427f   :  { %9617 = vmatpush1.bf16.msra.mxu0 %v9616_v35  ;;  %6037 = vmatprep.mubr.f32.mxu0 %v10297_v3 }
0x4280   :  { %9619 = vmatprep.subr.bf16.mxu0 %v9618_v29 }
0x4282   :  { %8174 = vmatmul.mubr.msk.f32.gmra.mrb[74].mxu0 %vm217_vm2, %v5928_v40 }
0x4283   :  { %6043 = vmatprep.mubr.f32.mxu0 %v10297_v3  ;;  %9621 = vmatpush1.bf16.msra.mxu0 %v9620_v50 }
0x4284   :  { %9670 = vmatprep.subr.bf16.mxu0 %v10298_v12 }
0x4286   :  { %8175 = vmatmul.mubr.msk.f32.gmra.mrb[76].mxu0 %vm217_vm2, %v5929_v48 }
0x4287   :  { %6049 = vmatprep.mubr.f32.mxu0 %v10297_v3 }
0x428a   :  { %8176 = vmatmul.mubr.msk.f32.gmra.mrb[78].mxu0 %vm217_vm2, %v5930_v0 }
0x428b   :  { %6055 = vmatprep.mubr.f32.mxu0 %v10297_v3 }
0x428e   :  { %8177 = vmatmul.mubr.msk.f32.gmra.mrb[80].mxu0 %vm217_vm2, %v5931_v56 }
0x428f   :  { %6061 = vmatprep.mubr.f32.mxu0 %v10297_v3 }
0x4292   :  { %8178 = vmatmul.mubr.msk.f32.gmra.mrb[82].mxu0 %vm217_vm2, %v5932_v57 }
0x4293   :  { %6067 = vmatprep.mubr.f32.mxu0 %v10297_v3 }
0x4296   :  { %8179 = vmatmul.mubr.msk.f32.gmra.mrb[84].mxu0 %vm217_vm2, %v5933_v2 }
0x4297   :  { %6073 = vmatprep.mubr.f32.mxu0 %v10297_v3 }
0x429a   :  { %8180 = vmatmul.mubr.msk.f32.gmra.mrb[86].mxu0 %vm217_vm2, %v5934_v16 }
0x429b   :  { %6168 = vmatprep.mubr.f32.mxu0 %v10297_v3 }
0x429e   :  { %8181 = vmatmul.mubr.msk.f32.vlgmr.msra.gmra.mrb[72].mxu0 %vm217_vm2, %v5910_v59 }
0x429f   :  { %6174 = vmatprep.mubr.f32.mxu0 %v10297_v3  ;;  %9672 = vmatpush3.bf16.msra.mxu0 %v11468_v38 }
0x42a0   :  { %9673 = vmatprep.subr.bf16.mxu0 %v10298_v12 }
0x42a2   :  { %8182 = vmatmul.mubr.msk.f32.gmra.mrb[74].mxu0 %vm217_vm2, %v5911_v53 }
0x42a3   :  { %6180 = vmatprep.mubr.f32.mxu0 %v10297_v3  ;;  %9675 = vmatpush3.bf16.msra.mxu0 %v11478_v63 }
0x42a4   :  { %9682 = vmatprep.subr.bf16.mxu0 %v10298_v12 }
0x42a6   :  { %8183 = vmatmul.mubr.msk.f32.gmra.mrb[76].mxu0 %vm217_vm2, %v5912_v28 }
0x42a7   :  { %6186 = vmatprep.mubr.f32.mxu0 %v10297_v3 }
0x42aa   :  { %8184 = vmatmul.mubr.msk.f32.gmra.mrb[78].mxu0 %vm217_vm2, %v5913_v31 }
0x42ab   :  { %6192 = vmatprep.mubr.f32.mxu0 %v10297_v3 }
0x42ae   :  { %8185 = vmatmul.mubr.msk.f32.gmra.mrb[80].mxu0 %vm217_vm2, %v5914_v13 }
0x42af   :  { %6198 = vmatprep.mubr.f32.mxu0 %v10297_v3 }
0x42b2   :  { %8186 = vmatmul.mubr.msk.f32.gmra.mrb[82].mxu0 %vm217_vm2, %v5915_v32 }
0x42b3   :  { %6204 = vmatprep.mubr.f32.mxu0 %v10297_v3 }
0x42b6   :  { %8187 = vmatmul.mubr.msk.f32.gmra.mrb[84].mxu0 %vm217_vm2, %v5916_v60 }
0x42b7   :  { %6210 = vmatprep.mubr.f32.mxu0 %v10297_v3 }
0x42ba   :  { %8188 = vmatmul.mubr.msk.f32.gmra.mrb[86].mxu0 %vm217_vm2, %v5917_v24 }
0x42bb   :  { %9183 = vmatprep.mubr.msk.f32.mxu0 %vm10299_vm1, %v10297_v3 }
0x4371   :  { %v6170_v30 = vpop.f32.mrb[72].mxu0 }
0x4372   :  { %v6230_v47 = vadd.f32 %v6223_v33, %v6170_v30  ;;  %v6172_v37 = vpop.f32.mrb[73].mxu0 }
0x4373   :  { %v11575_v39 = vadd.f32 %v6227_v62, %v6172_v37 }
0x4374   :  { %v6343_v1 = vadd.f32 %v6339_v52, %v6230_v47 }
0x4375   :  { %v6176_v55 = vpop.f32.mrb[74].mxu0 }
0x4376   :  { %10169 = vtanh.f32 %v6343_v1  ;;  %v11577_v6 = vadd.f32 %v6223_v33, %v6176_v55  ;;  %v6178_v43 = vpop.f32.mrb[75].mxu0  ;;  %v8198_v40 = vmul.f32 -1.442695, %v6343_v1 }
0x4377   :  { %v11579_v7 = vadd.f32 %v6227_v62, %v6178_v43 }
0x4379   :  { %v6182_v46 = vpop.f32.mrb[76].mxu0 }
0x437a   :  { %v11581_v19 = vadd.f32 %v6223_v33, %v6182_v46  ;;  %v6184_v22 = vpop.f32.mrb[77].mxu0 }
0x437b   :  { %v11583_v25 = vadd.f32 %v6227_v62, %v6184_v22 }
0x437d   :  { %v6188_v36 = vpop.f32.mrb[78].mxu0 }
0x437e   :  { %v11585_v44 = vadd.f32 %v6223_v33, %v6188_v36  ;;  %v6190_v8 = vpop.f32.mrb[79].mxu0 }
0x437f   :  { %v11587_v49 = vadd.f32 %v6227_v62, %v6190_v8 }
0x4380   :  { %v10170_v9 = vpop.eup %10169 }
0x4381   :  { %6425 = vrot.lane.b32.xlu0 %v10170_v9, %s10300_s9  ;;  %v6194_v11 = vpop.f32.mrb[80].mxu0 }
0x4382   :  { %v11590_v10 = vadd.f32 %v6223_v33, %v6194_v11  ;;  %v6196_v14 = vpop.f32.mrb[81].mxu0 }
0x4383   :  { %v11592_v51 = vadd.f32 %v6227_v62, %v6196_v14 }
0x4385   :  { %v6200_v17 = vpop.f32.mrb[82].mxu0 }
0x4386   :  { %v11594_v41 = vadd.f32 %v6223_v33, %v6200_v17  ;;  %v6202_v20 = vpop.f32.mrb[83].mxu0 }
0x4387   :  { %v11596_v4 = vadd.f32 %v6227_v62, %v6202_v20 }
0x4389   :  { %v6206_v21 = vpop.f32.mrb[84].mxu0 }
0x438a   :  { %v11598_v42 = vadd.f32 %v6223_v33, %v6206_v21  ;;  %v6208_v26 = vpop.f32.mrb[85].mxu0 }
0x438b   :  { %v11600_v54 = vadd.f32 %v6227_v62, %v6208_v26 }
0x438d   :  { %v6212_v35 = vpop.f32.mrb[86].mxu0 }
0x438e   :  { %v11602_v29 = vadd.f32 %v6223_v33, %v6212_v35  ;;  %v6214_v18 = vpop.f32.mrb[87].mxu0 }
0x438f   :  { %v6245_v45 = vadd.f32 %v6227_v62, %v6214_v18 }
0x4391   :  { %v6415_v5 = vadd.f32 %v6411_v23, %v6245_v45 }
0x4393   :  { %10171 = vtanh.f32 %v6415_v5  ;;  %v8199_v56 = vmul.f32 -1.442695, %v6415_v5 }
0x4394   :  { %10173 = vpow2.f32 %v8198_v40 }
0x439d   :  { %v10172_v50 = vpop.eup %10171 }
0x439e   :  { %6449 = vrot.lane.b32.xlu1 %v10172_v50, %s10300_s9  ;;  %v10174_v48 = vpop.eup %10173 }
0x439f   :  { %v6419_v0 = vadd.f32 1.0, %v10174_v48 }
0x43a1   :  { %10175 = vrcp.f32 %v6419_v0 }
0x43a2   :  { %10177 = vpow2.f32 %v8199_v56 }
0x43ab   :  { %v10176_v57 = vpop.eup %10175 }
0x43ac   :  { %v10178_v59 = vpop.eup %10177  ;;  %v6423_v32 = vmul.f32 0.0, %v10176_v57 }
0x43ad   :  { %v6443_v53 = vadd.f32 1.0, %v10178_v59 }
0x43af   :  { %10179 = vrcp.f32 %v6443_v53 }
0x43b9   :  { %v10180_v28 = vpop.eup %10179 }
0x43ba   :  { %v6447_v61 = vmul.f32 0.0, %v10180_v28 }
0x43f3   :  { %v6426_v2 = vpop.permute.xlu0 %6425 }
0x43f4   :  { %v6428_v16 = vmul.f32 %v10176_v57, %v6426_v2 }
0x43f6   :  { %6430 = vrot.lane.b32.xlu0 %v6428_v16, %s10301_s10 }
0x4410   :  { %v6450_v31 = vpop.permute.xlu1 %6449 }
0x4411   :  { %v6452_v13 = vmul.f32 %v10180_v28, %v6450_v31 }
0x4413   :  { %6454 = vrot.lane.b32.xlu1 %v6452_v13, %s10301_s10 }
0x4468   :  { %v6431_v60 = vpop.permute.xlu0 %6430 }
0x4469   :  { %v6433_v24 = vadd.f32 %v6431_v60, %v6423_v32 }
0x446b   :  { %10181 = vtanh.f32 %v6433_v24 }
0x4475   :  { %v10182_v52 = vpop.eup %10181 }
0x4476   :  { %6436 = vrot.lane.b32.xlu0 %v10182_v52, %s10300_s9 }
0x4485   :  { %v6455_v23 = vpop.permute.xlu1 %6454 }
0x4486   :  { %v6457_v27 = vadd.f32 %v6455_v23, %v6447_v61 }
0x4488   :  { %10183 = vtanh.f32 %v6457_v27 }
0x4492   :  { %v10184_v58 = vpop.eup %10183 }
0x4493   :  { %6460 = vrot.lane.b32.xlu1 %v10184_v58, %s10300_s9 }
0x44e8   :  { %v6437_v33 = vpop.permute.xlu0 %6436 }
0x44e9   :  { %v6439_v62 = vmul.f32 %v10176_v57, %v6437_v33 }
0x44eb   :  { %6466 = vrot.lane.b32.xlu0 %v6439_v62, %s10301_s10 }
0x4505   :  { %v6461_v30 = vpop.permute.xlu1 %6460 }
0x4506   :  { %v6463_v47 = vmul.f32 %v10180_v28, %v6461_v30 }
0x4508   :  { %6543 = vrot.lane.b32.xlu1 %v6463_v47, %s10301_s10 }
0x455d   :  { %v6467_v37 = vpop.permute.xlu0 %6466 }
0x455e   :  { %9118 = vmatmul.mubr.msk.f32.vlgmr.msra.gmra.mrb[76].mxu1 %vm217_vm2, %v6467_v37 }
0x455f   :  { %9642 = vmatpush3.bf16.msra.mxu1 %v11491_v15  ;;  %9128 = vmatprep.mubr.msk.f32.mxu1 %vm10299_vm1, %v10297_v3 }
0x4560   :  { %9643 = vmatprep.subr.bf16.mxu1 %v10298_v12 }
0x4563   :  { %9645 = vmatpush3.bf16.msra.mxu1 %v11501_v34 }
0x4564   :  { %9646 = vmatprep.subr.bf16.mxu1 %v10298_v12 }
0x457a   :  { %v6544_v1 = vpop.permute.xlu1 %6543 }
0x457b   :  { %9129 = vmatmul.mubr.msk.f32.vlgmr.msra.gmra.mrb[78].mxu1 %vm217_vm2, %v6544_v1 }
0x457c   :  { %9648 = vmatpush3.bf16.msra.mxu1 %v11468_v38  ;;  %9139 = vmatprep.mubr.msk.f32.mxu1 %vm10299_vm1, %v10297_v3 }
0x457d   :  { %9649 = vmatprep.subr.bf16.mxu1 %v10298_v12 }
0x4580   :  { %9651 = vmatpush3.bf16.msra.mxu1 %v11478_v63 }
0x4581   :  { %9652 = vmatprep.subr.bf16.mxu1 %v10298_v12 }
0x4631   :  { %v6536_v55 = vpop.f32.mrb[76].mxu1 }
0x4632   :  { %v6540_v43 = vadd.f32 %v6536_v55, %v11577_v6  ;;  %v9119_v46 = vpop.f32.mrb[77].mxu1 }
0x4634   :  { %10185 = vtanh.f32 %v6540_v43  ;;  %v8202_v14 = vmul.f32 -1.442695, %v6540_v43 }
0x463e   :  { %v10186_v22 = vpop.eup %10185 }
0x463f   :  { %6627 = vrot.lane.b32.xlu0 %v10186_v22, %s10300_s9 }
0x464e   :  { %v6613_v36 = vpop.f32.mrb[78].mxu1 }
0x464f   :  { %v6617_v8 = vadd.f32 %v6613_v36, %v11600_v54  ;;  %v9130_v9 = vpop.f32.mrb[79].mxu1 }
0x4651   :  { %10187 = vtanh.f32 %v6617_v8  ;;  %v8203_v21 = vmul.f32 -1.442695, %v6617_v8 }
0x4652   :  { %10189 = vpow2.f32 %v8202_v14 }
0x465b   :  { %v10188_v11 = vpop.eup %10187 }
0x465c   :  { %6651 = vrot.lane.b32.xlu1 %v10188_v11, %s10300_s9  ;;  %v10190_v17 = vpop.eup %10189 }
0x465d   :  { %v6621_v20 = vadd.f32 1.0, %v10190_v17 }
0x465f   :  { %10191 = vrcp.f32 %v6621_v20 }
0x4660   :  { %10193 = vpow2.f32 %v8203_v21 }
0x4669   :  { %v10192_v6 = vpop.eup %10191 }
0x466a   :  { %v10194_v18 = vpop.eup %10193  ;;  %v6625_v40 = vmul.f32 %v10192_v6, %v6433_v24 }
0x466b   :  { %v6645_v45 = vadd.f32 1.0, %v10194_v18 }
0x466d   :  { %10195 = vrcp.f32 %v6645_v45 }
0x4677   :  { %v10196_v54 = vpop.eup %10195 }
0x4678   :  { %v6649_v57 = vmul.f32 %v10196_v54, %v6457_v27 }
0x46b1   :  { %v6628_v26 = vpop.permute.xlu0 %6627 }
0x46b2   :  { %v6630_v35 = vmul.f32 %v10192_v6, %v6628_v26 }
0x46b4   :  { %6632 = vrot.lane.b32.xlu0 %v6630_v35, %s10301_s10 }
0x46ce   :  { %v6652_v5 = vpop.permute.xlu1 %6651 }
0x46cf   :  { %v6654_v50 = vmul.f32 %v10196_v54, %v6652_v5 }
0x46d1   :  { %6656 = vrot.lane.b32.xlu1 %v6654_v50, %s10301_s10 }
0x4726   :  { %v6633_v48 = vpop.permute.xlu0 %6632 }
0x4727   :  { %v6635_v0 = vadd.f32 %v6633_v48, %v6625_v40 }
0x4729   :  { %10197 = vtanh.f32 %v6635_v0 }
0x4733   :  { %v10198_v56 = vpop.eup %10197 }
0x4734   :  { %6638 = vrot.lane.b32.xlu0 %v10198_v56, %s10300_s9 }
0x4743   :  { %v6657_v2 = vpop.permute.xlu1 %6656 }
0x4744   :  { %v6659_v16 = vadd.f32 %v6657_v2, %v6649_v57 }
0x4746   :  { %10199 = vtanh.f32 %v6659_v16 }
0x4750   :  { %v10200_v59 = vpop.eup %10199 }
0x4751   :  { %6662 = vrot.lane.b32.xlu1 %v10200_v59, %s10300_s9 }
0x47a6   :  { %v6639_v53 = vpop.permute.xlu0 %6638 }
0x47a7   :  { %v6641_v28 = vmul.f32 %v10192_v6, %v6639_v53 }
0x47a9   :  { %6668 = vrot.lane.b32.xlu0 %v6641_v28, %s10301_s10 }
0x47c3   :  { %v6663_v31 = vpop.permute.xlu1 %6662 }
0x47c4   :  { %v6665_v13 = vmul.f32 %v10196_v54, %v6663_v31 }
0x47c6   :  { %6745 = vrot.lane.b32.xlu1 %v6665_v13, %s10301_s10 }
0x481b   :  { %v6669_v32 = vpop.permute.xlu0 %6668 }
0x481c   :  { %9140 = vmatmul.mubr.msk.f32.vlgmr.msra.gmra.mrb[80].mxu1 %vm217_vm2, %v6669_v32 }
0x481d   :  { %9654 = vmatpush3.bf16.msra.mxu1 %v11491_v15  ;;  %9150 = vmatprep.mubr.msk.f32.mxu1 %vm10299_vm1, %v10297_v3 }
0x481e   :  { %9655 = vmatprep.subr.bf16.mxu1 %v10298_v12 }
0x4821   :  { %9657 = vmatpush3.bf16.msra.mxu1 %v11501_v34 }
0x4822   :  { %9658 = vmatprep.subr.bf16.mxu1 %v10298_v12 }
0x4838   :  { %v6746_v60 = vpop.permute.xlu1 %6745 }
0x4839   :  { %9151 = vmatmul.mubr.msk.f32.vlgmr.msra.gmra.mrb[82].mxu1 %vm217_vm2, %v6746_v60 }
0x483a   :  { %9660 = vmatpush3.bf16.msra.mxu1 %v11468_v38  ;;  %9161 = vmatprep.mubr.msk.f32.mxu1 %vm10299_vm1, %v10297_v3 }
0x483b   :  { %9661 = vmatprep.subr.bf16.mxu1 %v10298_v12 }
0x483e   :  { %9663 = vmatpush3.bf16.msra.mxu1 %v11478_v63 }
0x483f   :  { %9664 = vmatprep.subr.bf16.mxu1 %v10298_v12 }
0x48ef   :  { %v6738_v24 = vpop.f32.mrb[80].mxu1 }
0x48f0   :  { %v6742_v52 = vadd.f32 %v6738_v24, %v11581_v19  ;;  %v9141_v61 = vpop.f32.mrb[81].mxu1 }
0x48f2   :  { %10201 = vtanh.f32 %v6742_v52  ;;  %v8206_v30 = vmul.f32 -1.442695, %v6742_v52 }
0x48fc   :  { %v10202_v23 = vpop.eup %10201 }
0x48fd   :  { %6829 = vrot.lane.b32.xlu0 %v10202_v23, %s10300_s9 }
0x490c   :  { %v6815_v27 = vpop.f32.mrb[82].mxu1 }
0x490d   :  { %v6819_v58 = vadd.f32 %v6815_v27, %v11596_v4  ;;  %v9152_v33 = vpop.f32.mrb[83].mxu1 }
0x490f   :  { %10203 = vtanh.f32 %v6819_v58  ;;  %v8207_v1 = vmul.f32 -1.442695, %v6819_v58 }
0x4910   :  { %10205 = vpow2.f32 %v8206_v30 }
0x4919   :  { %v10204_v62 = vpop.eup %10203 }
0x491a   :  { %6853 = vrot.lane.b32.xlu1 %v10204_v62, %s10300_s9  ;;  %v10206_v47 = vpop.eup %10205 }
0x491b   :  { %v6823_v37 = vadd.f32 1.0, %v10206_v47 }
0x491d   :  { %10207 = vrcp.f32 %v6823_v37 }
0x491e   :  { %10209 = vpow2.f32 %v8207_v1 }
0x4927   :  { %v10208_v19 = vpop.eup %10207 }
0x4928   :  { %v10210_v46 = vpop.eup %10209  ;;  %v6827_v9 = vmul.f32 %v10208_v19, %v6635_v0 }
0x4929   :  { %v6847_v22 = vadd.f32 1.0, %v10210_v46 }
0x492b   :  { %10211 = vrcp.f32 %v6847_v22 }
0x4935   :  { %v10212_v4 = vpop.eup %10211 }
0x4936   :  { %v6851_v20 = vmul.f32 %v10212_v4, %v6659_v16 }
0x496f   :  { %v6830_v55 = vpop.permute.xlu0 %6829 }
0x4970   :  { %v6832_v43 = vmul.f32 %v10208_v19, %v6830_v55 }
0x4972   :  { %6834 = vrot.lane.b32.xlu0 %v6832_v43, %s10301_s10 }
0x498c   :  { %v6854_v36 = vpop.permute.xlu1 %6853 }
0x498d   :  { %v6856_v8 = vmul.f32 %v10212_v4, %v6854_v36 }
0x498f   :  { %6858 = vrot.lane.b32.xlu1 %v6856_v8, %s10301_s10 }
0x49e4   :  { %v6835_v11 = vpop.permute.xlu0 %6834 }
0x49e5   :  { %v6837_v14 = vadd.f32 %v6835_v11, %v6827_v9 }
0x49e7   :  { %10213 = vtanh.f32 %v6837_v14 }
0x49f1   :  { %v10214_v17 = vpop.eup %10213 }
0x49f2   :  { %6840 = vrot.lane.b32.xlu0 %v10214_v17, %s10300_s9 }
0x4a01   :  { %v6859_v21 = vpop.permute.xlu1 %6858 }
0x4a02   :  { %v6861_v6 = vadd.f32 %v6859_v21, %v6851_v20 }
0x4a04   :  { %10215 = vtanh.f32 %v6861_v6 }
0x4a0e   :  { %v10216_v26 = vpop.eup %10215 }
0x4a0f   :  { %6864 = vrot.lane.b32.xlu1 %v10216_v26, %s10300_s9 }
0x4a64   :  { %v6841_v35 = vpop.permute.xlu0 %6840 }
0x4a65   :  { %v6843_v18 = vmul.f32 %v10208_v19, %v6841_v35 }
0x4a67   :  { %6870 = vrot.lane.b32.xlu0 %v6843_v18, %s10301_s10 }
0x4a81   :  { %v6865_v45 = vpop.permute.xlu1 %6864 }
0x4a82   :  { %v6867_v54 = vmul.f32 %v10212_v4, %v6865_v45 }
0x4a84   :  { %6947 = vrot.lane.b32.xlu1 %v6867_v54, %s10301_s10 }
0x4ad9   :  { %v6871_v5 = vpop.permute.xlu0 %6870 }
0x4ada   :  { %9162 = vmatmul.mubr.msk.f32.vlgmr.msra.gmra.mrb[84].mxu1 %vm217_vm2, %v6871_v5 }
0x4adb   :  { %9666 = vmatpush3.bf16.msra.mxu1 %v11491_v15  ;;  %9172 = vmatprep.mubr.msk.f32.mxu1 %vm10299_vm1, %v10297_v3 }
0x4adc   :  { %9667 = vmatprep.subr.bf16.mxu1 %v10298_v12 }
0x4adf   :  { %9669 = vmatpush3.bf16.msra.mxu1 %v11501_v34 }
0x4ae0   :  { %9676 = vmatprep.subr.bf16.mxu1 %v10298_v12 }
0x4af6   :  { %v6948_v50 = vpop.permute.xlu1 %6947 }
0x4af7   :  { %9173 = vmatmul.mubr.msk.f32.vlgmr.msra.gmra.mrb[86].mxu1 %vm217_vm2, %v6948_v50 }
0x4af8   :  { %9678 = vmatpush3.bf16.msra.mxu1 %v11491_v15  ;;  %9194 = vmatprep.mubr.msk.f32.mxu1 %vm10299_vm1, %v10297_v3 }
0x4af9   :  { %9679 = vmatprep.subr.bf16.mxu1 %v10298_v12 }
0x4afc   :  { %9681 = vmatpush3.bf16.msra.mxu1 %v11501_v34 }
0x4afd   :  { %9688 = vmatprep.subr.bf16.mxu1 %v10298_v12 }
0x4bad   :  { %v6940_v40 = vpop.f32.mrb[84].mxu1 }
0x4bae   :  { %v6944_v48 = vadd.f32 %v6940_v40, %v11585_v44  ;;  %v9163_v0 = vpop.f32.mrb[85].mxu1 }
0x4bb0   :  { %10217 = vtanh.f32 %v6944_v48  ;;  %v8210_v53 = vmul.f32 -1.442695, %v6944_v48 }
0x4bba   :  { %v10218_v56 = vpop.eup %10217 }
0x4bbb   :  { %7031 = vrot.lane.b32.xlu0 %v10218_v56, %s10300_s9 }
0x4bca   :  { %v7017_v57 = vpop.f32.mrb[86].mxu1 }
0x4bcb   :  { %v7021_v2 = vadd.f32 %v7017_v57, %v11592_v51  ;;  %v9174_v16 = vpop.f32.mrb[87].mxu1 }
0x4bcd   :  { %10219 = vtanh.f32 %v7021_v2  ;;  %v8211_v13 = vmul.f32 -1.442695, %v7021_v2 }
0x4bce   :  { %10221 = vpow2.f32 %v8210_v53 }
0x4bd7   :  { %v10220_v59 = vpop.eup %10219 }
0x4bd8   :  { %7055 = vrot.lane.b32.xlu1 %v10220_v59, %s10300_s9  ;;  %v10222_v28 = vpop.eup %10221 }
0x4bd9   :  { %v7025_v31 = vadd.f32 1.0, %v10222_v28 }
0x4bdb   :  { %10223 = vrcp.f32 %v7025_v31 }
0x4bdc   :  { %10225 = vpow2.f32 %v8211_v13 }
0x4be5   :  { %v10224_v44 = vpop.eup %10223 }
0x4be6   :  { %v10226_v24 = vpop.eup %10225  ;;  %v7029_v27 = vmul.f32 %v10224_v44, %v6837_v14 }
0x4be7   :  { %v7049_v52 = vadd.f32 1.0, %v10226_v24 }
0x4be9   :  { %10227 = vrcp.f32 %v7049_v52 }
0x4bf3   :  { %v10228_v51 = vpop.eup %10227 }
0x4bf4   :  { %v7053_v30 = vmul.f32 %v10228_v51, %v6861_v6 }
0x4c2d   :  { %v7032_v32 = vpop.permute.xlu0 %7031 }
0x4c2e   :  { %v7034_v60 = vmul.f32 %v10224_v44, %v7032_v32 }
0x4c30   :  { %7036 = vrot.lane.b32.xlu0 %v7034_v60, %s10301_s10 }
0x4c4a   :  { %v7056_v61 = vpop.permute.xlu1 %7055 }
0x4c4b   :  { %v7058_v23 = vmul.f32 %v10228_v51, %v7056_v61 }
0x4c4d   :  { %7060 = vrot.lane.b32.xlu1 %v7058_v23, %s10301_s10 }
0x4ca2   :  { %v7037_v58 = vpop.permute.xlu0 %7036 }
0x4ca3   :  { %v7039_v33 = vadd.f32 %v7037_v58, %v7029_v27 }
0x4ca5   :  { %10229 = vtanh.f32 %v7039_v33 }
0x4caf   :  { %v10230_v62 = vpop.eup %10229 }
0x4cb0   :  { %7042 = vrot.lane.b32.xlu0 %v10230_v62, %s10300_s9 }
0x4cbf   :  { %v7061_v47 = vpop.permute.xlu1 %7060 }
0x4cc0   :  { %v7063_v37 = vadd.f32 %v7061_v47, %v7053_v30 }
0x4cc2   :  { %10231 = vtanh.f32 %v7063_v37 }
0x4ccc   :  { %v10232_v1 = vpop.eup %10231 }
0x4ccd   :  { %7066 = vrot.lane.b32.xlu1 %v10232_v1, %s10300_s9 }
0x4d22   :  { %v7043_v19 = vpop.permute.xlu0 %7042 }
0x4d23   :  { %v7045_v55 = vmul.f32 %v10224_v44, %v7043_v19 }
0x4d25   :  { %7072 = vrot.lane.b32.xlu0 %v7045_v55, %s10301_s10 }
0x4d3f   :  { %v7067_v43 = vpop.permute.xlu1 %7066 }
0x4d40   :  { %v7069_v46 = vmul.f32 %v10228_v51, %v7067_v43 }
0x4d42   :  { %7149 = vrot.lane.b32.xlu1 %v7069_v46, %s10301_s10 }
0x4d97   :  { %v7073_v22 = vpop.permute.xlu0 %7072 }
0x4d98   :  { %9184 = vmatmul.mubr.msk.f32.vlgmr.msra.gmra.mrb[88].mxu0 %vm217_vm2, %v7073_v22 }
0x4d99   :  { %9684 = vmatpush3.bf16.msra.mxu0 %v11468_v38  ;;  %9205 = vmatprep.mubr.msk.f32.mxu0 %vm10299_vm1, %v10297_v3 }
0x4d9a   :  { %9685 = vmatprep.subr.bf16.mxu0 %v10298_v12 }
0x4d9d   :  { %9687 = vmatpush3.bf16.msra.mxu0 %v11478_v63 }
0x4d9e   :  { %9694 = vmatprep.subr.bf16.mxu0 %v10298_v12 }
0x4db4   :  { %v7150_v4 = vpop.permute.xlu1 %7149 }
0x4db5   :  { %9195 = vmatmul.mubr.msk.f32.vlgmr.msra.gmra.mrb[88].mxu1 %vm217_vm2, %v7150_v4 }
0x4db6   :  { %9690 = vmatpush3.bf16.msra.mxu1 %v11491_v15  ;;  %9216 = vmatprep.mubr.msk.f32.mxu1 %vm10299_vm1, %v10297_v3 }
0x4db7   :  { %9691 = vmatprep.subr.bf16.mxu1 %v10298_v12 }
0x4dba   :  { %9693 = vmatpush3.bf16.msra.mxu1 %v11501_v34 }
0x4dbb   :  { %9700 = vmatprep.subr.bf16.mxu1 %v10298_v12 }
0x4e6b   :  { %v7142_v36 = vpop.f32.mrb[88].mxu0 }
0x4e6c   :  { %v7146_v8 = vadd.f32 %v7142_v36, %v11590_v10  ;;  %v9185_v9 = vpop.f32.mrb[89].mxu0 }
0x4e6e   :  { %10233 = vtanh.f32 %v7146_v8  ;;  %v8214_v6 = vmul.f32 -1.442695, %v7146_v8 }
0x4e78   :  { %v10234_v11 = vpop.eup %10233 }
0x4e79   :  { %7233 = vrot.lane.b32.xlu0 %v10234_v11, %s10300_s9 }
0x4e88   :  { %v7219_v14 = vpop.f32.mrb[88].mxu1 }
0x4e89   :  { %v7223_v17 = vadd.f32 %v7219_v14, %v11587_v49  ;;  %v9196_v20 = vpop.f32.mrb[89].mxu1 }
0x4e8b   :  { %10235 = vtanh.f32 %v7223_v17  ;;  %v8215_v18 = vmul.f32 -1.442695, %v7223_v17 }
0x4e8c   :  { %10237 = vpow2.f32 %v8214_v6 }
0x4e95   :  { %v10236_v21 = vpop.eup %10235 }
0x4e96   :  { %7257 = vrot.lane.b32.xlu1 %v10236_v21, %s10300_s9  ;;  %v10238_v26 = vpop.eup %10237 }
0x4e97   :  { %v7227_v35 = vadd.f32 1.0, %v10238_v26 }
0x4e99   :  { %10239 = vrcp.f32 %v7227_v35 }
0x4e9a   :  { %10241 = vpow2.f32 %v8215_v18 }
0x4ea3   :  { %v10240_v10 = vpop.eup %10239 }
0x4ea4   :  { %v10242_v5 = vpop.eup %10241  ;;  %v7231_v0 = vmul.f32 %v10240_v10, %v7039_v33 }
0x4ea5   :  { %v7251_v50 = vadd.f32 1.0, %v10242_v5 }
0x4ea7   :  { %10243 = vrcp.f32 %v7251_v50 }
0x4eb1   :  { %v10244_v49 = vpop.eup %10243 }
0x4eb2   :  { %v7255_v16 = vmul.f32 %v10244_v49, %v7063_v37 }
0x4eeb   :  { %v7234_v45 = vpop.permute.xlu0 %7233 }
0x4eec   :  { %v7236_v54 = vmul.f32 %v10240_v10, %v7234_v45 }
0x4eee   :  { %7238 = vrot.lane.b32.xlu0 %v7236_v54, %s10301_s10 }
0x4f08   :  { %v7258_v40 = vpop.permute.xlu1 %7257 }
0x4f09   :  { %v7260_v48 = vmul.f32 %v10244_v49, %v7258_v40 }
0x4f0b   :  { %7262 = vrot.lane.b32.xlu1 %v7260_v48, %s10301_s10 }
0x4f60   :  { %v7239_v56 = vpop.permute.xlu0 %7238 }
0x4f61   :  { %v7241_v57 = vadd.f32 %v7239_v56, %v7231_v0 }
0x4f63   :  { %10245 = vtanh.f32 %v7241_v57 }
0x4f6d   :  { %v10246_v2 = vpop.eup %10245 }
0x4f6e   :  { %7244 = vrot.lane.b32.xlu0 %v10246_v2, %s10300_s9 }
0x4f7d   :  { %v7263_v59 = vpop.permute.xlu1 %7262 }
0x4f7e   :  { %v7265_v53 = vadd.f32 %v7263_v59, %v7255_v16 }
0x4f80   :  { %10247 = vtanh.f32 %v7265_v53 }
0x4f8a   :  { %v10248_v28 = vpop.eup %10247 }
0x4f8b   :  { %7268 = vrot.lane.b32.xlu1 %v10248_v28, %s10300_s9 }
0x4fe0   :  { %v7245_v31 = vpop.permute.xlu0 %7244 }
0x4fe1   :  { %v7247_v13 = vmul.f32 %v10240_v10, %v7245_v31 }
0x4fe3   :  { %7274 = vrot.lane.b32.xlu0 %v7247_v13, %s10301_s10 }
0x4ffd   :  { %v7269_v44 = vpop.permute.xlu1 %7268 }
0x4ffe   :  { %v7271_v32 = vmul.f32 %v10244_v49, %v7269_v44 }
0x5000   :  { %7351 = vrot.lane.b32.xlu1 %v7271_v32, %s10301_s10 }
0x5055   :  { %v7275_v60 = vpop.permute.xlu0 %7274 }
0x5056   :  { %9206 = vmatmul.mubr.msk.f32.vlgmr.msra.gmra.mrb[90].mxu0 %vm217_vm2, %v7275_v60 }
0x5057   :  { %9696 = vmatpush3.bf16.msra.mxu0 %v11468_v38  ;;  %9227 = vmatprep.mubr.msk.f32.mxu0 %vm10299_vm1, %v10297_v3 }
0x5058   :  { %9697 = vmatprep.subr.bf16.mxu0 %v10298_v12 }
0x505b   :  { %9699 = vmatpush3.bf16.msra.mxu0 %v11478_v63 }
0x505c   :  { %9706 = vmatprep.subr.bf16.mxu0 %v10298_v12 }
0x5072   :  { %v7352_v24 = vpop.permute.xlu1 %7351 }
0x5073   :  { %9217 = vmatmul.mubr.msk.f32.vlgmr.msra.gmra.mrb[90].mxu1 %vm217_vm2, %v7352_v24 }
0x5074   :  { %9702 = vmatpush3.bf16.msra.mxu1 %v11491_v15  ;;  %9238 = vmatprep.mubr.msk.f32.mxu1 %vm10299_vm1, %v10297_v3 }
0x5075   :  { %9703 = vmatprep.subr.bf16.mxu1 %v10298_v12 }
0x5078   :  { %9705 = vmatpush3.bf16.msra.mxu1 %v11501_v34 }
0x5079   :  { %9712 = vmatprep.subr.bf16.mxu1 %v10298_v12 }
0x5129   :  { %v7344_v52 = vpop.f32.mrb[90].mxu0 }
0x512a   :  { %v7348_v51 = vadd.f32 %v7344_v52, %v11594_v41  ;;  %v9207_v61 = vpop.f32.mrb[91].mxu0 }
0x512c   :  { %10249 = vtanh.f32 %v7348_v51  ;;  %v8218_v30 = vmul.f32 -1.442695, %v7348_v51 }
0x5136   :  { %v10250_v23 = vpop.eup %10249 }
0x5137   :  { %7435 = vrot.lane.b32.xlu0 %v10250_v23, %s10300_s9 }
0x5146   :  { %v7421_v27 = vpop.f32.mrb[90].mxu1 }
0x5147   :  { %v7425_v58 = vadd.f32 %v7421_v27, %v11583_v25  ;;  %v9218_v33 = vpop.f32.mrb[91].mxu1 }
0x5149   :  { %10251 = vtanh.f32 %v7425_v58  ;;  %v8219_v1 = vmul.f32 -1.442695, %v7425_v58 }
0x514a   :  { %10253 = vpow2.f32 %v8218_v30 }
0x5153   :  { %v10252_v62 = vpop.eup %10251 }
0x5154   :  { %7459 = vrot.lane.b32.xlu1 %v10252_v62, %s10300_s9  ;;  %v10254_v47 = vpop.eup %10253 }
0x5155   :  { %v7429_v37 = vadd.f32 1.0, %v10254_v47 }
0x5157   :  { %10255 = vrcp.f32 %v7429_v37 }
0x5158   :  { %10257 = vpow2.f32 %v8219_v1 }
0x5161   :  { %v10256_v41 = vpop.eup %10255 }
0x5162   :  { %v10258_v43 = vpop.eup %10257  ;;  %v7433_v36 = vmul.f32 %v10256_v41, %v7241_v57 }
0x5163   :  { %v7453_v46 = vadd.f32 1.0, %v10258_v43 }
0x5165   :  { %10259 = vrcp.f32 %v7453_v46 }
0x516f   :  { %v10260_v25 = vpop.eup %10259 }
0x5170   :  { %v7457_v14 = vmul.f32 %v10260_v25, %v7265_v53 }
0x51a9   :  { %v7436_v19 = vpop.permute.xlu0 %7435 }
0x51aa   :  { %v7438_v55 = vmul.f32 %v10256_v41, %v7436_v19 }
0x51ac   :  { %7440 = vrot.lane.b32.xlu0 %v7438_v55, %s10301_s10 }
0x51c6   :  { %v7460_v22 = vpop.permute.xlu1 %7459 }
0x51c7   :  { %v7462_v4 = vmul.f32 %v10260_v25, %v7460_v22 }
0x51c9   :  { %7464 = vrot.lane.b32.xlu1 %v7462_v4, %s10301_s10 }
0x521e   :  { %v7441_v8 = vpop.permute.xlu0 %7440 }
0x521f   :  { %v7443_v9 = vadd.f32 %v7441_v8, %v7433_v36 }
0x5221   :  { %10261 = vtanh.f32 %v7443_v9 }
0x522b   :  { %v10262_v11 = vpop.eup %10261 }
0x522c   :  { %7446 = vrot.lane.b32.xlu0 %v10262_v11, %s10300_s9 }
0x523b   :  { %v7465_v17 = vpop.permute.xlu1 %7464 }
0x523c   :  { %v7467_v20 = vadd.f32 %v7465_v17, %v7457_v14 }
0x523e   :  { %10263 = vtanh.f32 %v7467_v20 }
0x5248   :  { %v10264_v21 = vpop.eup %10263 }
0x5249   :  { %7470 = vrot.lane.b32.xlu1 %v10264_v21, %s10300_s9 }
0x529e   :  { %v7447_v6 = vpop.permute.xlu0 %7446 }
0x529f   :  { %v7449_v26 = vmul.f32 %v10256_v41, %v7447_v6 }
0x52a1   :  { %7476 = vrot.lane.b32.xlu0 %v7449_v26, %s10301_s10 }
0x52bb   :  { %v7471_v35 = vpop.permute.xlu1 %7470 }
0x52bc   :  { %v7473_v18 = vmul.f32 %v10260_v25, %v7471_v35 }
0x52be   :  { %7553 = vrot.lane.b32.xlu1 %v7473_v18, %s10301_s10 }
0x5313   :  { %v7477_v10 = vpop.permute.xlu0 %7476 }
0x5314   :  { %9228 = vmatmul.mubr.msk.f32.vlgmr.msra.gmra.mrb[92].mxu0 %vm217_vm2, %v7477_v10 }
0x5315   :  { %9708 = vmatpush3.bf16.msra.mxu0 %v11468_v38  ;;  %9249 = vmatprep.mubr.msk.f32.mxu0 %vm10299_vm1, %v10297_v3 }
0x5316   :  { %9709 = vmatprep.subr.bf16.mxu0 %v10298_v12 }
0x5319   :  { %9711 = vmatpush3.bf16.msra.mxu0 %v11478_v63 }
0x531a   :  { %9718 = vmatprep.subr.bf16.mxu0 %v10298_v12 }
0x5330   :  { %v7554_v45 = vpop.permute.xlu1 %7553 }
0x5331   :  { %9239 = vmatmul.mubr.msk.f32.vlgmr.msra.gmra.mrb[92].mxu1 %vm217_vm2, %v7554_v45  ;;  %v7887_v45 = vld [vmem:[%s11807_s5] sm:$0xff] }
0x5332   :  { %9714 = vmatpush3.bf16.msra.mxu1 %v11491_v15  ;;  %9260 = vmatprep.mubr.msk.f32.mxu1 %vm10299_vm1, %v10297_v3 }
0x5333   :  { %9715 = vmatprep.subr.bf16.mxu1 %v10298_v12 }
0x5336   :  { %9717 = vmatpush3.bf16.msra.mxu1 %v11501_v34 }
0x53e7   :  { %v7546_v38 = vpop.f32.mrb[92].mxu0 }
0x53e8   :  { %v7550_v54 = vadd.f32 %v7546_v38, %v11598_v42  ;;  %v9229_v5 = vpop.f32.mrb[93].mxu0  ;;  %v7888_v38 = vld [vmem:[%s11807_s5 + $0x8] sm:$0xff] }
0x53e9   :  { %v9719_v5 = vpack.c.bf16 %v7888_v38, %v7887_v45 }
0x53ea   :  { %10265 = vtanh.f32 %v7550_v54  ;;  %v8222_v48 = vmul.f32 -1.442695, %v7550_v54  ;;  %v7889_v54 = vld [vmem:[%s11807_s5 + $0x10] sm:$0xff] }
0x53f4   :  { %v10266_v63 = vpop.eup %10265 }
0x53f5   :  { %7637 = vrot.lane.b32.xlu0 %v10266_v63, %s10300_s9  ;;  %v7890_v63 = vld [vmem:[%s11807_s5 + $0x18] sm:$0xff] }
0x5404   :  { %v7623_v50 = vpop.f32.mrb[92].mxu1 }
0x5405   :  { %v7627_v49 = vadd.f32 %v7623_v50, %v11579_v7  ;;  %v9240_v40 = vpop.f32.mrb[93].mxu1  ;;  %v9722_v50 = vpack.c.bf16 %v7890_v63, %v7889_v54 }
0x5406   :  { %v7892_v40 = vld [vmem:[%s11807_s5 + $0x28] sm:$0xff] }
0x5407   :  { %10267 = vtanh.f32 %v7627_v49  ;;  %v8223_v56 = vmul.f32 -1.442695, %v7627_v49  ;;  %v7891_v49 = vld [vmem:[%s11807_s5 + $0x20] sm:$0xff] }
0x5408   :  { %10269 = vpow2.f32 %v8222_v48  ;;  %v7893_v48 = vld [vmem:[%s11807_s5 + $0x30] sm:$0xff] }
0x5411   :  { %v10268_v15 = vpop.eup %10267 }
0x5412   :  { %7661 = vrot.lane.b32.xlu1 %v10268_v15, %s10300_s9  ;;  %v10270_v0 = vpop.eup %10269  ;;  %v9725_v15 = vpack.c.bf16 %v7892_v40, %v7891_v49 }
0x5413   :  { %v7631_v34 = vadd.f32 1.0, %v10270_v0  ;;  %v7894_v0 = vld [vmem:[%s11807_s5 + $0x38] sm:$0xff] }
0x5415   :  { %10271 = vrcp.f32 %v7631_v34 }
0x5416   :  { %10273 = vpow2.f32 %v8223_v56 }
0x541f   :  { %v10272_v42 = vpop.eup %10271 }
0x5420   :  { %v10274_v16 = vpop.eup %10273  ;;  %v7635_v31 = vmul.f32 %v10272_v42, %v7443_v9 }
0x5421   :  { %v7655_v59 = vadd.f32 1.0, %v10274_v16 }
0x5423   :  { %10275 = vrcp.f32 %v7655_v59 }
0x542d   :  { %v10276_v7 = vpop.eup %10275 }
0x542e   :  { %v7659_v60 = vmul.f32 %v10276_v7, %v7467_v20 }
0x5467   :  { %v7638_v57 = vpop.permute.xlu0 %7637 }
0x5468   :  { %v7640_v2 = vmul.f32 %v10272_v42, %v7638_v57 }
0x546a   :  { %7642 = vrot.lane.b32.xlu0 %v7640_v2, %s10301_s10 }
0x5484   :  { %v7662_v53 = vpop.permute.xlu1 %7661 }
0x5485   :  { %v7664_v28 = vmul.f32 %v10276_v7, %v7662_v53  ;;  %v8228_v53 = vld [vmem:[%s11808_s6] ss:$0 sm:$0xff] }
0x5487   :  { %7666 = vrot.lane.b32.xlu1 %v7664_v28, %s10301_s10 }
0x54dc   :  { %v7643_v13 = vpop.permute.xlu0 %7642 }
0x54dd   :  { %v7645_v44 = vadd.f32 %v7643_v13, %v7635_v31 }
0x54df   :  { %10277 = vtanh.f32 %v7645_v44 }
0x54e9   :  { %v10278_v32 = vpop.eup %10277 }
0x54ea   :  { %7648 = vrot.lane.b32.xlu0 %v10278_v32, %s10300_s9 }
0x54f9   :  { %v7667_v24 = vpop.permute.xlu1 %7666 }
0x54fa   :  { %v7669_v52 = vadd.f32 %v7667_v24, %v7659_v60 }
0x54fc   :  { %10279 = vtanh.f32 %v7669_v52 }
0x5506   :  { %v10280_v51 = vpop.eup %10279 }
0x5507   :  { %7672 = vrot.lane.b32.xlu1 %v10280_v51, %s10300_s9 }
0x555c   :  { %v7649_v61 = vpop.permute.xlu0 %7648 }
0x555d   :  { %v7651_v23 = vmul.f32 %v10272_v42, %v7649_v61  ;;  %v9728_v42 = vpack.c.bf16 %v7894_v0, %v7893_v48 }
0x555f   :  { %7678 = vrot.lane.b32.xlu0 %v7651_v23, %s10301_s10 }
0x5579   :  { %v7673_v27 = vpop.permute.xlu1 %7672 }
0x557a   :  { %v7675_v58 = vmul.f32 %v10276_v7, %v7673_v27 }
0x557c   :  { %7755 = vrot.lane.b32.xlu1 %v7675_v58, %s10301_s10 }
0x55d1   :  { %v7679_v33 = vpop.permute.xlu0 %7678 }
0x55d2   :  { %9250 = vmatmul.mubr.msk.f32.vlgmr.msra.gmra.mrb[94].mxu0 %vm217_vm2, %v7679_v33 }
0x55d3   :  { %9279 = vmatprep.mubr.msk.f32.mxu0 %vm10299_vm1, %v10297_v3  ;;  %9720 = vmatpush3.bf16.msra.mxu0 %v9719_v5 }
0x55d4   :  { %9721 = vmatprep.subr.bf16.mxu0 %v10298_v12 }
0x55d7   :  { %9723 = vmatpush3.bf16.msra.mxu0 %v9722_v50 }
0x55d8   :  { %9724 = vmatprep.subr.bf16.mxu0 %v10298_v12 }
0x55db   :  { %9726 = vmatpush3.bf16.msra.mxu0 %v9725_v15 }
0x55dc   :  { %9727 = vmatprep.subr.bf16.mxu0 %v10298_v12 }
0x55df   :  { %9729 = vmatpush3.bf16.msra.mxu0 %v9728_v42 }
0x55ee   :  { %v7756_v62 = vpop.permute.xlu1 %7755 }
0x55ef   :  { %9261 = vmatmul.mubr.msk.f32.vlgmr.msra.gmra.mrb[94].mxu1 %vm217_vm2, %v7756_v62 }
0x56a5   :  { %v7748_v30 = vpop.f32.mrb[94].mxu0 }
0x56a6   :  { %v7752_v47 = vadd.f32 %v7748_v30, %v11602_v29  ;;  %v9251_v37 = vpop.f32.mrb[95].mxu0 }
0x56a8   :  { %10281 = vtanh.f32 %v7752_v47  ;;  %v8226_v3 = vmul.f32 -1.442695, %v7752_v47 }
0x56b2   :  { %v10282_v1 = vpop.eup %10281 }
0x56b3   :  { %7839 = vrot.lane.b32.xlu0 %v10282_v1, %s10300_s9 }
0x56c2   :  { %v7825_v41 = vpop.f32.mrb[94].mxu1 }
0x56c3   :  { %v7829_v19 = vadd.f32 %v7825_v41, %v11575_v39  ;;  %v9262_v55 = vpop.f32.mrb[95].mxu1 }
0x56c5   :  { %10283 = vtanh.f32 %v7829_v19  ;;  %v8227_v22 = vmul.f32 -1.442695, %v7829_v19 }
0x56c6   :  { %10285 = vpow2.f32 %v8226_v3 }
0x56cf   :  { %v10284_v43 = vpop.eup %10283 }
0x56d0   :  { %7863 = vrot.lane.b32.xlu1 %v10284_v43, %s10300_s9  ;;  %v10286_v46 = vpop.eup %10285 }
0x56d1   :  { %v7833_v25 = vadd.f32 1.0, %v10286_v46 }
0x56d3   :  { %10287 = vrcp.f32 %v7833_v25 }
0x56d4   :  { %10289 = vpow2.f32 %v8227_v22 }
0x56dd   :  { %v10288_v29 = vpop.eup %10287 }
0x56de   :  { %v10290_v8 = vpop.eup %10289  ;;  %v7837_v17 = vmul.f32 %v10288_v29, %v7645_v44 }
0x56df   :  { %v7857_v9 = vadd.f32 1.0, %v10290_v8 }
0x56e1   :  { %10291 = vrcp.f32 %v7857_v9 }
0x56eb   :  { %v10292_v39 = vpop.eup %10291 }
0x56ec   :  { %v7861_v26 = vmul.f32 %v10292_v39, %v7669_v52 }
0x5725   :  { %v7840_v4 = vpop.permute.xlu0 %7839 }
0x5726   :  { %v7842_v36 = vmul.f32 %v10288_v29, %v7840_v4 }
0x5728   :  { %7844 = vrot.lane.b32.xlu0 %v7842_v36, %s10301_s10 }
0x5742   :  { %v7864_v11 = vpop.permute.xlu1 %7863 }
0x5743   :  { %v7866_v14 = vmul.f32 %v10292_v39, %v7864_v11 }
0x5745   :  { %7868 = vrot.lane.b32.xlu1 %v7866_v14, %s10301_s10 }
0x579a   :  { %v7845_v20 = vpop.permute.xlu0 %7844 }
0x579b   :  { %v7847_v21 = vadd.f32 %v7845_v20, %v7837_v17 }
0x579d   :  { %10293 = vtanh.f32 %v7847_v21 }
0x57a7   :  { %v10294_v6 = vpop.eup %10293 }
0x57a8   :  { %7850 = vrot.lane.b32.xlu0 %v10294_v6, %s10300_s9 }
0x57b7   :  { %v7869_v35 = vpop.permute.xlu1 %7868 }
0x57b8   :  { %v7871_v18 = vadd.f32 %v7869_v35, %v7861_v26 }
0x57ba   :  { %10295 = vtanh.f32 %v7871_v18 }
0x57c4   :  { %v10296_v10 = vpop.eup %10295 }
0x57c5   :  { %7874 = vrot.lane.b32.xlu1 %v10296_v10, %s10300_s9 }
0x581a   :  { %v7851_v34 = vpop.permute.xlu0 %7850 }
0x581b   :  { %v7853_v56 = vmul.f32 %v10288_v29, %v7851_v34 }
0x581d   :  { %7879 = vrot.lane.b32.xlu0 %v7853_v56, %s10301_s10 }
0x5837   :  { %v7875_v57 = vpop.permute.xlu1 %7874 }
0x5838   :  { %v7877_v2 = vmul.f32 %v10292_v39, %v7875_v57 }
0x583a   :  { %7883 = vrot.lane.b32.xlu1 %v7877_v2, %s10300_s9 }
0x588f   :  { %v7880_v16 = vpop.permute.xlu0 %7879 }
0x58ac   :  { %v7884_v59 = vpop.permute.xlu1 %7883 }
0x58ad   :  { %v7886_v7 = vsel %vm217_vm2, %v7880_v16, %v7884_v59 }
0x58ae   :  { %9280 = vmatmul.mubr.msk.f32.vlgmr.msra.gmra.mrb[96].mxu0 %vm7902_vm3, %v7886_v7 }
0x5981   :  { %v7972_v28 = vpop.f32.mrb[96].mxu0 }
0x5982   :  { %v7973_v12 = vadd.f32 %v8228_v53, %v7972_v28  ;;  %v9281_v31 = vpop.f32.mrb[97].mxu0 }
0x5984   :  { %7977 = vst.msk [vmem:[%s11809_s7] sm:$0xff] %vm7976_vm4, %v7973_v12 }

</bundles_post_ra>
